<compile_context>
chip_gen: v7x
topology: tpu7x:2x2x1
jax: 0.10.0
libtpu: 0.0.40
codegen_flags: <defaults>
</compile_context>

<pallas_src>
import math
from functools import partial

import jax
import jax.numpy as jnp
from jax import lax
from jax.experimental import pallas as pl
from jax.experimental.pallas import tpu as pltpu


# ---------------------------------------------------------------------------
# kernel
# ---------------------------------------------------------------------------
def _rmsnorm(x, w, eps):
    # x: (S, D) f32, w: (1, D) f32
    ms = jnp.mean(x * x, axis=-1, keepdims=True)
    return x * lax.rsqrt(ms + eps) * w


def _block_kernel(x_ref, cosf_ref, sinf_ref,
                  anorm_ref, wqkv_ref, wo_ref,
                  fnorm_ref, w13_ref, b13_ref, w2_ref, b2_ref,
                  onorm_ref, o_ref,
                  *, n_heads, head_dim, hidden, eps, apply_final):
    D = n_heads * head_dim
    hd2 = head_dim // 2

    x = x_ref[0]                        # (S, D) f32
    cosf = cosf_ref[...]                # (S, head_dim) f32 = [cos | cos]
    sinf = sinf_ref[...]                # (S, head_dim) f32 = [-sin | sin]

    # ---- attention ----
    hn = _rmsnorm(x, anorm_ref[...], eps).astype(jnp.bfloat16)
    qkv = jnp.dot(hn, wqkv_ref[...], preferred_element_type=jnp.float32)   # (S, 3D) f32
    q = qkv[:, :D]                      # q weights carry 1/sqrt(head_dim) + rope permutation
    k = qkv[:, D:2 * D]                 # k weights carry the rope permutation
    v = qkv[:, 2 * D:].astype(jnp.bfloat16)
    wo = wo_ref[...]                    # (D, D) bf16, loaded once

    acc = x                             # residual + per-head wo contributions
    for h in range(n_heads):            # small static unroll (H=4)
        sl = slice(h * head_dim, (h + 1) * head_dim)
        qh = q[:, sl]
        kh = k[:, sl]
        # rotate-half RoPE (weights pre-permuted on host to even/odd-split order)
        qh = qh * cosf + jnp.concatenate([qh[:, hd2:], qh[:, :hd2]], axis=-1) * sinf
        kh = kh * cosf + jnp.concatenate([kh[:, hd2:], kh[:, :hd2]], axis=-1) * sinf
        # scores: contract last dims directly (no explicit kh.T), bf16 in / f32 acc
        s = lax.dot_general(qh.astype(jnp.bfloat16), kh.astype(jnp.bfloat16),
                            (((1,), (1,)), ((), ())),
                            preferred_element_type=jnp.float32)             # (S, S)
        s = s - jnp.max(s, axis=-1, keepdims=True)
        p = jnp.exp(s)
        p = p * pl.reciprocal(jnp.sum(p, axis=-1, keepdims=True), approx=True)
        ctx = jnp.dot(p.astype(jnp.bfloat16), v[:, sl],
                      preferred_element_type=jnp.float32)                   # (S, hd)
        # fold this head's output straight into the wo product (no concat)
        acc = acc + jnp.dot(ctx.astype(jnp.bfloat16), wo[sl, :],
                            preferred_element_type=jnp.float32)
    h1 = acc

    # ---- SwiGLU FFN (w1/w3 fused; the reference Linear layers have biases) ----
    hn2 = _rmsnorm(h1, fnorm_ref[...], eps).astype(jnp.bfloat16)
    ag = jnp.dot(hn2, w13_ref[...], preferred_element_type=jnp.float32) + b13_ref[...]
    a = ag[:, :hidden]
    g = ag[:, hidden:]
    a = a * (1.0 / (1.0 + jnp.exp(-a)))          # SiLU in f32 (EUP exp)
    ff = jnp.dot((a * g).astype(jnp.bfloat16), w2_ref[...],
                 preferred_element_type=jnp.float32) + b2_ref[...]
    out = h1 + ff

    if apply_final:                               # final RMSNorm fused into last block
        out = _rmsnorm(out, onorm_ref[...], eps)
    o_ref[0] = out


# ---------------------------------------------------------------------------
# wrappers
# ---------------------------------------------------------------------------
def _const_spec(arr):
    zeros = (0,) * arr.ndim
    return pl.BlockSpec(arr.shape, lambda b, _z=zeros: _z)


def transformer_block(x, layer, cosf, sinf, final_norm_w, *, n_heads, eps,
                      apply_final):
    B, S, D = x.shape
    head_dim = D // n_heads
    hidden = layer["w2"].shape[0]
    operands = (x, cosf, sinf,
                layer["attn_norm"], layer["wqkv"], layer["wo"],
                layer["ffn_norm"], layer["w13"], layer["b13"],
                layer["w2"], layer["b2"], final_norm_w)
    in_specs = [pl.BlockSpec((1, S, D), lambda b: (b, 0, 0))]
    in_specs += [_const_spec(a) for a in operands[1:]]
    kernel = partial(_block_kernel, n_heads=n_heads, head_dim=head_dim,
                     hidden=hidden, eps=eps, apply_final=apply_final)
    return pl.pallas_call(
        kernel,
        grid=(B,),
        in_specs=in_specs,
        out_specs=pl.BlockSpec((1, S, D), lambda b: (b, 0, 0)),
        out_shape=jax.ShapeDtypeStruct((B, S, D), jnp.float32),
        # B=2 -> even split across v7x's two TensorCores; single axis is also
        # fine on v5e/v6e.  Default scoped-VMEM limit is ample at these shapes.
        compiler_params=pltpu.CompilerParams(dimension_semantics=("parallel",)),
    )(*operands)


# ---------------------------------------------------------------------------
# host-side precompute / packing
# ---------------------------------------------------------------------------
def precompute_rope(head_dim, seq_len, theta):
    # torch: freqs_cis[p, i] = exp(1j * p / theta^(2i/head_dim))
    inv = 1.0 / (theta ** (jnp.arange(0, head_dim, 2, dtype=jnp.float32) / head_dim))
    t = jnp.arange(seq_len, dtype=jnp.float32)
    ang = jnp.outer(t, inv)                              # (S, head_dim // 2)
    cos, sin = jnp.cos(ang), jnp.sin(ang)
    cosf = jnp.concatenate([cos, cos], axis=-1)          # (S, head_dim)
    sinf = jnp.concatenate([-sin, sin], axis=-1)         # (S, head_dim)
    return cosf, sinf, cos, sin


def _rope_perm(D, n_heads):
    # per head: even pair components first, then odd ("rotate-half" layout)
    hd = D // n_heads
    pieces = []
    for h in range(n_heads):
        base = h * hd
        pieces.append(jnp.arange(base, base + hd, 2))
        pieces.append(jnp.arange(base + 1, base + hd, 2))
    return jnp.concatenate(pieces)


def pack_layer(p, n_heads):
    """Fuse/permute/cast original-layout layer params for the kernel."""
    D = p["wq"].shape[0]
    hd = D // n_heads
    perm = _rope_perm(D, n_heads)
    scale = 1.0 / math.sqrt(hd)                          # softmax scale folded into wq
    wq = (p["wq"] * scale)[:, perm]
    wk = p["wk"][:, perm]
    wqkv = jnp.concatenate([wq, wk, p["wv"]], axis=1).astype(jnp.bfloat16)
    w13 = jnp.concatenate([p["w1"], p["w3"]], axis=1).astype(jnp.bfloat16)
    b13 = jnp.concatenate([p["b1"], p["b3"]], axis=1)    # biases stay f32
    return dict(attn_norm=p["attn_norm"], wqkv=wqkv,
                wo=p["wo"].astype(jnp.bfloat16),
                ffn_norm=p["ffn_norm"], w13=w13, b13=b13,
                w2=p["w2"].astype(jnp.bfloat16), b2=p["b2"])


def llama_forward(x, params, cosf, sinf, *, n_heads, eps):
    packed = [pack_layer(p, n_heads) for p in params["layers"]]
    n = len(packed)
    for i, lw in enumerate(packed):
        x = transformer_block(x, lw, cosf, sinf, params["final_norm"],
                              n_heads=n_heads, eps=eps,
                              apply_final=(i == n - 1))
    return x


def init_params(key, dim, n_layers, multiple_of=256, ffn_dim_multiplier=None):
    hidden = int(2 * (4 * dim) / 3)
    if ffn_dim_multiplier is not None:
        hidden = int(ffn_dim_multiplier * hidden)
    hidden = multiple_of * ((hidden + multiple_of - 1) // multiple_of)
    s = 0.02
    layers = []
    for _ in range(n_layers):
        key, *ks = jax.random.split(key, 14)
        layers.append(dict(
            attn_norm=1.0 + 0.1 * jax.random.normal(ks[10], (1, dim), jnp.float32),
            wq=s * jax.random.normal(ks[0], (dim, dim), jnp.float32),
            wk=s * jax.random.normal(ks[1], (dim, dim), jnp.float32),
            wv=s * jax.random.normal(ks[2], (dim, dim), jnp.float32),
            wo=s * jax.random.normal(ks[3], (dim, dim), jnp.float32),
            ffn_norm=1.0 + 0.1 * jax.random.normal(ks[11], (1, dim), jnp.float32),
            w1=s * jax.random.normal(ks[4], (dim, hidden), jnp.float32),
            b1=s * jax.random.normal(ks[5], (1, hidden), jnp.float32),
            w3=s * jax.random.normal(ks[6], (dim, hidden), jnp.float32),
            b3=s * jax.random.normal(ks[7], (1, hidden), jnp.float32),
            w2=s * jax.random.normal(ks[8], (hidden, dim), jnp.float32),
            b2=s * jax.random.normal(ks[9], (1, dim), jnp.float32),
        ))
    key, kf = jax.random.split(key)
    return dict(layers=layers,
                final_norm=1.0 + 0.1 * jax.random.normal(kf, (1, dim), jnp.float32))


# ---------------------------------------------------------------------------
# pure-JAX f32 reference (original weights, torch semantics)
# ---------------------------------------------------------------------------
def reference_forward(x, params, cos_p, sin_p, n_heads, eps):
    B, S, D = x.shape
    hd = D // n_heads
    cos_b = cos_p[None, :, None, :]
    sin_b = sin_p[None, :, None, :]

    def rms(v, w):
        return v * lax.rsqrt(jnp.mean(v * v, -1, keepdims=True) + eps) * w

    def rope(t):
        t5 = t.reshape(B, S, n_heads, hd // 2, 2)
        te, to = t5[..., 0], t5[..., 1]
        oe = te * cos_b - to * sin_b
        oo = to * cos_b + te * sin_b
        return jnp.stack([oe, oo], axis=-1).reshape(B, S, D)

    for p in params["layers"]:
        h = rms(x, p["attn_norm"])
        q = h @ p["wq"]; k = h @ p["wk"]; v = h @ p["wv"]
        q = rope(q); k = rope(k)
        q4 = q.reshape(B, S, n_heads, hd).transpose(0, 2, 1, 3)
        k4 = k.reshape(B, S, n_heads, hd).transpose(0, 2, 1, 3)
        v4 = v.reshape(B, S, n_heads, hd).transpose(0, 2, 1, 3)
        s = jnp.einsum("bhqd,bhkd->bhqk", q4, k4) / math.sqrt(hd)
        pr = jax.nn.softmax(s, axis=-1)
        o = jnp.einsum("bhqk,bhkd->bhqd", pr, v4).transpose(0, 2, 1, 3).reshape(B, S, D)
        x = x + o @ p["wo"]
        hn = rms(x, p["ffn_norm"])
        a = jax.nn.silu(hn @ p["w1"] + p["b1"])
        g = hn @ p["w3"] + p["b3"]
        x = x + (a * g) @ p["w2"] + p["b2"]
    return rms(x, params["final_norm"])


# ---------------------------------------------------------------------------
if __name__ == "__main__":
    # Small but module-consistent config: dim=256, n_heads=4 (head_dim=64),
    # n_layers=2, seq == max_seq_len = 128 (required by the rotary broadcast).
    dim, n_layers, n_heads, max_seq_len, theta = 256, 2, 4, 128, 500000.0
    eps = 1e-5
    B, S = 2, max_seq_len

    key = jax.random.PRNGKey(0)
    kx, kp = jax.random.split(key)
    x = jax.random.normal(kx, (B, S, dim), jnp.float32)
    params = init_params(kp, dim, n_layers)
    cosf, sinf, cos_p, sin_p = precompute_rope(dim // n_heads, S, theta)

    out = llama_forward(x, params, cosf, sinf, n_heads=n_heads, eps=eps)
    out = jax.block_until_ready(out)

    ref = reference_forward(x, params, cos_p, sin_p, n_heads, eps)
    assert out.shape == (B, S, dim)
    assert bool(jnp.all(jnp.isfinite(out)))
    # bf16 matmul operands + approx reciprocal vs. pure-f32 reference
    assert bool(jnp.allclose(out, ref, rtol=2e-2, atol=2e-2)), "mismatch vs reference"
    print("KERNEL_OK")
</pallas_src>

<mosaic_0001>
module attributes {stable_mosaic.version = 11 : i64} {
  func.func @_block_kernel(%arg0: i32, %arg1: memref<1x128x256xf32, #tpu.memory_space<vmem>>, %arg2: memref<128x64xf32, #tpu.memory_space<vmem>>, %arg3: memref<128x64xf32, #tpu.memory_space<vmem>>, %arg4: memref<1x256xf32, #tpu.memory_space<vmem>>, %arg5: memref<256x768xbf16, #tpu.memory_space<vmem>>, %arg6: memref<256x256xbf16, #tpu.memory_space<vmem>>, %arg7: memref<1x256xf32, #tpu.memory_space<vmem>>, %arg8: memref<256x1536xbf16, #tpu.memory_space<vmem>>, %arg9: memref<1x1536xf32, #tpu.memory_space<vmem>>, %arg10: memref<768x256xbf16, #tpu.memory_space<vmem>>, %arg11: memref<1x256xf32, #tpu.memory_space<vmem>>, %arg12: memref<1x256xf32, #tpu.memory_space<vmem>>, %arg13: memref<1x128x256xf32, #tpu.memory_space<vmem>>) attributes {dimension_semantics = [#tpu.dimension_semantics<parallel>], iteration_bounds = array<i64: 2>, scalar_prefetch = 0 : i64, scratch_operands = 0 : i64, tpu.core_type = #tpu.core_type<tc>, window_params = [{transform_indices = @transform_0, window_bounds = array<i64: 1, 128, 256>}, {pipeline_mode = #tpu.pipeline_mode<synchronous>, transform_indices = @transform_1, window_bounds = array<i64: 128, 64>}, {pipeline_mode = #tpu.pipeline_mode<synchronous>, transform_indices = @transform_2, window_bounds = array<i64: 128, 64>}, {pipeline_mode = #tpu.pipeline_mode<synchronous>, transform_indices = @transform_3, window_bounds = array<i64: 1, 256>}, {pipeline_mode = #tpu.pipeline_mode<synchronous>, transform_indices = @transform_4, window_bounds = array<i64: 256, 768>}, {pipeline_mode = #tpu.pipeline_mode<synchronous>, transform_indices = @transform_5, window_bounds = array<i64: 256, 256>}, {pipeline_mode = #tpu.pipeline_mode<synchronous>, transform_indices = @transform_6, window_bounds = array<i64: 1, 256>}, {pipeline_mode = #tpu.pipeline_mode<synchronous>, transform_indices = @transform_7, window_bounds = array<i64: 256, 1536>}, {pipeline_mode = #tpu.pipeline_mode<synchronous>, transform_indices = @transform_8, window_bounds = array<i64: 1, 1536>}, {pipeline_mode = #tpu.pipeline_mode<synchronous>, transform_indices = @transform_9, window_bounds = array<i64: 768, 256>}, {pipeline_mode = #tpu.pipeline_mode<synchronous>, transform_indices = @transform_10, window_bounds = array<i64: 1, 256>}, {pipeline_mode = #tpu.pipeline_mode<synchronous>, transform_indices = @transform_11, window_bounds = array<i64: 1, 256>}, {transform_indices = @transform_12, window_bounds = array<i64: 1, 128, 256>}]} {
    %c0 = arith.constant 0 : index
    %c0_0 = arith.constant 0 : index
    %c0_1 = arith.constant 0 : index
    %0 = vector.load %arg1[%c0, %c0_0, %c0_1] : memref<1x128x256xf32, #tpu.memory_space<vmem>>, vector<1x128x256xf32>
    %1 = vector.shape_cast %0 : vector<1x128x256xf32> to vector<128x256xf32>
    %c0_2 = arith.constant 0 : index
    %c0_3 = arith.constant 0 : index
    %2 = vector.load %arg2[%c0_2, %c0_3] : memref<128x64xf32, #tpu.memory_space<vmem>>, vector<128x64xf32>
    %c0_4 = arith.constant 0 : index
    %c0_5 = arith.constant 0 : index
    %3 = vector.load %arg3[%c0_4, %c0_5] : memref<128x64xf32, #tpu.memory_space<vmem>>, vector<128x64xf32>
    %c0_6 = arith.constant 0 : index
    %c0_7 = arith.constant 0 : index
    %4 = vector.load %arg4[%c0_6, %c0_7] : memref<1x256xf32, #tpu.memory_space<vmem>>, vector<1x256xf32>
    %5 = arith.mulf %1, %1 : vector<128x256xf32>
    %cst = arith.constant dense<0.000000e+00> : vector<128xf32>
    %6 = vector.multi_reduction <add>, %5, %cst [1] : vector<128x256xf32> to vector<128xf32>
    %7 = vector.shape_cast %6 : vector<128xf32> to vector<128x1xf32>
    %cst_8 = arith.constant 2.560000e+02 : f32
    %8 = vector.broadcast %cst_8 : f32 to vector<128x1xf32>
    %9 = arith.divf %7, %8 : vector<128x1xf32>
    %cst_9 = arith.constant 9.99999974E-6 : f32
    %10 = vector.broadcast %cst_9 : f32 to vector<128x1xf32>
    %11 = arith.addf %9, %10 : vector<128x1xf32>
    %12 = math.rsqrt %11 : vector<128x1xf32>
    %13 = vector.broadcast %12 : vector<128x1xf32> to vector<128x256xf32>
    %14 = arith.mulf %1, %13 : vector<128x256xf32>
    %15 = vector.broadcast %4 : vector<1x256xf32> to vector<128x256xf32>
    %16 = arith.mulf %14, %15 : vector<128x256xf32>
    %17 = arith.truncf %16 : vector<128x256xf32> to vector<128x256xbf16>
    %c0_10 = arith.constant 0 : index
    %c0_11 = arith.constant 0 : index
    %18 = vector.load %arg5[%c0_10, %c0_11] : memref<256x768xbf16, #tpu.memory_space<vmem>>, vector<256x768xbf16>
    %cst_12 = arith.constant dense<0.000000e+00> : vector<128x768xf32>
    %19 = tpu.matmul %17, %18, %cst_12 {dimension_numbers = #tpu.dot_dimension_numbers<[1], [0], [0], [1], [0, 0, 1, 1], [], []>} : vector<128x256xbf16>, vector<256x768xbf16>, vector<128x768xf32> -> vector<128x768xf32>
    %20 = vector.extract_strided_slice %19 {offsets = [0, 0], sizes = [128, 256], strides = [1, 1]} : vector<128x768xf32> to vector<128x256xf32>
    %21 = vector.extract_strided_slice %19 {offsets = [0, 256], sizes = [128, 256], strides = [1, 1]} : vector<128x768xf32> to vector<128x256xf32>
    %22 = vector.extract_strided_slice %19 {offsets = [0, 512], sizes = [128, 256], strides = [1, 1]} : vector<128x768xf32> to vector<128x256xf32>
    %23 = arith.truncf %22 : vector<128x256xf32> to vector<128x256xbf16>
    %c0_13 = arith.constant 0 : index
    %c0_14 = arith.constant 0 : index
    %24 = vector.load %arg6[%c0_13, %c0_14] : memref<256x256xbf16, #tpu.memory_space<vmem>>, vector<256x256xbf16>
    %25 = vector.extract_strided_slice %20 {offsets = [0, 0], sizes = [128, 64], strides = [1, 1]} : vector<128x256xf32> to vector<128x64xf32>
    %26 = vector.extract_strided_slice %21 {offsets = [0, 0], sizes = [128, 64], strides = [1, 1]} : vector<128x256xf32> to vector<128x64xf32>
    %27 = arith.mulf %25, %2 : vector<128x64xf32>
    %28 = vector.extract_strided_slice %25 {offsets = [0, 32], sizes = [128, 32], strides = [1, 1]} : vector<128x64xf32> to vector<128x32xf32>
    %29 = vector.extract_strided_slice %25 {offsets = [0, 0], sizes = [128, 32], strides = [1, 1]} : vector<128x64xf32> to vector<128x32xf32>
    %30 = tpu.concatenate %28, %29 in 1 : vector<128x32xf32>, vector<128x32xf32> -> vector<128x64xf32>
    %31 = arith.mulf %30, %3 : vector<128x64xf32>
    %32 = arith.addf %27, %31 : vector<128x64xf32>
    %33 = arith.mulf %26, %2 : vector<128x64xf32>
    %34 = vector.extract_strided_slice %26 {offsets = [0, 32], sizes = [128, 32], strides = [1, 1]} : vector<128x64xf32> to vector<128x32xf32>
    %35 = vector.extract_strided_slice %26 {offsets = [0, 0], sizes = [128, 32], strides = [1, 1]} : vector<128x64xf32> to vector<128x32xf32>
    %36 = tpu.concatenate %34, %35 in 1 : vector<128x32xf32>, vector<128x32xf32> -> vector<128x64xf32>
    %37 = arith.mulf %36, %3 : vector<128x64xf32>
    %38 = arith.addf %33, %37 : vector<128x64xf32>
    %39 = arith.truncf %32 : vector<128x64xf32> to vector<128x64xbf16>
    %40 = arith.truncf %38 : vector<128x64xf32> to vector<128x64xbf16>
    %cst_15 = arith.constant dense<0.000000e+00> : vector<128x128xf32>
    %41 = tpu.matmul %39, %40, %cst_15 {dimension_numbers = #tpu.dot_dimension_numbers<[1], [1], [0], [0], [0, 0, 1, 0], [], []>} : vector<128x64xbf16>, vector<128x64xbf16>, vector<128x128xf32> -> vector<128x128xf32>
    %cst_16 = arith.constant dense<0xFF800000> : vector<128xf32>
    %42 = vector.multi_reduction <maximumf>, %41, %cst_16 [1] : vector<128x128xf32> to vector<128xf32>
    %43 = vector.shape_cast %42 : vector<128xf32> to vector<128x1xf32>
    %44 = vector.broadcast %43 : vector<128x1xf32> to vector<128x128xf32>
    %45 = arith.subf %41, %44 : vector<128x128xf32>
    %46 = math.exp %45 : vector<128x128xf32>
    %cst_17 = arith.constant dense<0.000000e+00> : vector<128xf32>
    %47 = vector.multi_reduction <add>, %46, %cst_17 [1] : vector<128x128xf32> to vector<128xf32>
    %48 = vector.shape_cast %47 : vector<128xf32> to vector<128x1xf32>
    %49 = tpu.reciprocal %48 {approx = true} : vector<128x1xf32> -> vector<128x1xf32>
    %50 = vector.broadcast %49 : vector<128x1xf32> to vector<128x128xf32>
    %51 = arith.mulf %46, %50 : vector<128x128xf32>
    %52 = arith.truncf %51 : vector<128x128xf32> to vector<128x128xbf16>
    %53 = vector.extract_strided_slice %23 {offsets = [0, 0], sizes = [128, 64], strides = [1, 1]} : vector<128x256xbf16> to vector<128x64xbf16>
    %cst_18 = arith.constant dense<0.000000e+00> : vector<128x64xf32>
    %54 = tpu.matmul %52, %53, %cst_18 {dimension_numbers = #tpu.dot_dimension_numbers<[1], [0], [0], [1], [0, 0, 1, 1], [], []>} : vector<128x128xbf16>, vector<128x64xbf16>, vector<128x64xf32> -> vector<128x64xf32>
    %55 = arith.truncf %54 : vector<128x64xf32> to vector<128x64xbf16>
    %56 = vector.extract_strided_slice %24 {offsets = [0, 0], sizes = [64, 256], strides = [1, 1]} : vector<256x256xbf16> to vector<64x256xbf16>
    %cst_19 = arith.constant dense<0.000000e+00> : vector<128x256xf32>
    %57 = tpu.matmul %55, %56, %cst_19 {dimension_numbers = #tpu.dot_dimension_numbers<[1], [0], [0], [1], [0, 0, 1, 1], [], []>} : vector<128x64xbf16>, vector<64x256xbf16>, vector<128x256xf32> -> vector<128x256xf32>
    %58 = arith.addf %1, %57 : vector<128x256xf32>
    %59 = vector.extract_strided_slice %20 {offsets = [0, 64], sizes = [128, 64], strides = [1, 1]} : vector<128x256xf32> to vector<128x64xf32>
    %60 = vector.extract_strided_slice %21 {offsets = [0, 64], sizes = [128, 64], strides = [1, 1]} : vector<128x256xf32> to vector<128x64xf32>
    %61 = arith.mulf %59, %2 : vector<128x64xf32>
    %62 = vector.extract_strided_slice %59 {offsets = [0, 32], sizes = [128, 32], strides = [1, 1]} : vector<128x64xf32> to vector<128x32xf32>
    %63 = vector.extract_strided_slice %59 {offsets = [0, 0], sizes = [128, 32], strides = [1, 1]} : vector<128x64xf32> to vector<128x32xf32>
    %64 = tpu.concatenate %62, %63 in 1 : vector<128x32xf32>, vector<128x32xf32> -> vector<128x64xf32>
    %65 = arith.mulf %64, %3 : vector<128x64xf32>
    %66 = arith.addf %61, %65 : vector<128x64xf32>
    %67 = arith.mulf %60, %2 : vector<128x64xf32>
    %68 = vector.extract_strided_slice %60 {offsets = [0, 32], sizes = [128, 32], strides = [1, 1]} : vector<128x64xf32> to vector<128x32xf32>
    %69 = vector.extract_strided_slice %60 {offsets = [0, 0], sizes = [128, 32], strides = [1, 1]} : vector<128x64xf32> to vector<128x32xf32>
    %70 = tpu.concatenate %68, %69 in 1 : vector<128x32xf32>, vector<128x32xf32> -> vector<128x64xf32>
    %71 = arith.mulf %70, %3 : vector<128x64xf32>
    %72 = arith.addf %67, %71 : vector<128x64xf32>
    %73 = arith.truncf %66 : vector<128x64xf32> to vector<128x64xbf16>
    %74 = arith.truncf %72 : vector<128x64xf32> to vector<128x64xbf16>
    %cst_20 = arith.constant dense<0.000000e+00> : vector<128x128xf32>
    %75 = tpu.matmul %73, %74, %cst_20 {dimension_numbers = #tpu.dot_dimension_numbers<[1], [1], [0], [0], [0, 0, 1, 0], [], []>} : vector<128x64xbf16>, vector<128x64xbf16>, vector<128x128xf32> -> vector<128x128xf32>
    %cst_21 = arith.constant dense<0xFF800000> : vector<128xf32>
    %76 = vector.multi_reduction <maximumf>, %75, %cst_21 [1] : vector<128x128xf32> to vector<128xf32>
    %77 = vector.shape_cast %76 : vector<128xf32> to vector<128x1xf32>
    %78 = vector.broadcast %77 : vector<128x1xf32> to vector<128x128xf32>
    %79 = arith.subf %75, %78 : vector<128x128xf32>
    %80 = math.exp %79 : vector<128x128xf32>
    %cst_22 = arith.constant dense<0.000000e+00> : vector<128xf32>
    %81 = vector.multi_reduction <add>, %80, %cst_22 [1] : vector<128x128xf32> to vector<128xf32>
    %82 = vector.shape_cast %81 : vector<128xf32> to vector<128x1xf32>
    %83 = tpu.reciprocal %82 {approx = true} : vector<128x1xf32> -> vector<128x1xf32>
    %84 = vector.broadcast %83 : vector<128x1xf32> to vector<128x128xf32>
    %85 = arith.mulf %80, %84 : vector<128x128xf32>
    %86 = arith.truncf %85 : vector<128x128xf32> to vector<128x128xbf16>
    %87 = vector.extract_strided_slice %23 {offsets = [0, 64], sizes = [128, 64], strides = [1, 1]} : vector<128x256xbf16> to vector<128x64xbf16>
    %cst_23 = arith.constant dense<0.000000e+00> : vector<128x64xf32>
    %88 = tpu.matmul %86, %87, %cst_23 {dimension_numbers = #tpu.dot_dimension_numbers<[1], [0], [0], [1], [0, 0, 1, 1], [], []>} : vector<128x128xbf16>, vector<128x64xbf16>, vector<128x64xf32> -> vector<128x64xf32>
    %89 = arith.truncf %88 : vector<128x64xf32> to vector<128x64xbf16>
    %90 = vector.extract_strided_slice %24 {offsets = [64, 0], sizes = [64, 256], strides = [1, 1]} : vector<256x256xbf16> to vector<64x256xbf16>
    %cst_24 = arith.constant dense<0.000000e+00> : vector<128x256xf32>
    %91 = tpu.matmul %89, %90, %cst_24 {dimension_numbers = #tpu.dot_dimension_numbers<[1], [0], [0], [1], [0, 0, 1, 1], [], []>} : vector<128x64xbf16>, vector<64x256xbf16>, vector<128x256xf32> -> vector<128x256xf32>
    %92 = arith.addf %58, %91 : vector<128x256xf32>
    %93 = vector.extract_strided_slice %20 {offsets = [0, 128], sizes = [128, 64], strides = [1, 1]} : vector<128x256xf32> to vector<128x64xf32>
    %94 = vector.extract_strided_slice %21 {offsets = [0, 128], sizes = [128, 64], strides = [1, 1]} : vector<128x256xf32> to vector<128x64xf32>
    %95 = arith.mulf %93, %2 : vector<128x64xf32>
    %96 = vector.extract_strided_slice %93 {offsets = [0, 32], sizes = [128, 32], strides = [1, 1]} : vector<128x64xf32> to vector<128x32xf32>
    %97 = vector.extract_strided_slice %93 {offsets = [0, 0], sizes = [128, 32], strides = [1, 1]} : vector<128x64xf32> to vector<128x32xf32>
    %98 = tpu.concatenate %96, %97 in 1 : vector<128x32xf32>, vector<128x32xf32> -> vector<128x64xf32>
    %99 = arith.mulf %98, %3 : vector<128x64xf32>
    %100 = arith.addf %95, %99 : vector<128x64xf32>
    %101 = arith.mulf %94, %2 : vector<128x64xf32>
    %102 = vector.extract_strided_slice %94 {offsets = [0, 32], sizes = [128, 32], strides = [1, 1]} : vector<128x64xf32> to vector<128x32xf32>
    %103 = vector.extract_strided_slice %94 {offsets = [0, 0], sizes = [128, 32], strides = [1, 1]} : vector<128x64xf32> to vector<128x32xf32>
    %104 = tpu.concatenate %102, %103 in 1 : vector<128x32xf32>, vector<128x32xf32> -> vector<128x64xf32>
    %105 = arith.mulf %104, %3 : vector<128x64xf32>
    %106 = arith.addf %101, %105 : vector<128x64xf32>
    %107 = arith.truncf %100 : vector<128x64xf32> to vector<128x64xbf16>
    %108 = arith.truncf %106 : vector<128x64xf32> to vector<128x64xbf16>
    %cst_25 = arith.constant dense<0.000000e+00> : vector<128x128xf32>
    %109 = tpu.matmul %107, %108, %cst_25 {dimension_numbers = #tpu.dot_dimension_numbers<[1], [1], [0], [0], [0, 0, 1, 0], [], []>} : vector<128x64xbf16>, vector<128x64xbf16>, vector<128x128xf32> -> vector<128x128xf32>
    %cst_26 = arith.constant dense<0xFF800000> : vector<128xf32>
    %110 = vector.multi_reduction <maximumf>, %109, %cst_26 [1] : vector<128x128xf32> to vector<128xf32>
    %111 = vector.shape_cast %110 : vector<128xf32> to vector<128x1xf32>
    %112 = vector.broadcast %111 : vector<128x1xf32> to vector<128x128xf32>
    %113 = arith.subf %109, %112 : vector<128x128xf32>
    %114 = math.exp %113 : vector<128x128xf32>
    %cst_27 = arith.constant dense<0.000000e+00> : vector<128xf32>
    %115 = vector.multi_reduction <add>, %114, %cst_27 [1] : vector<128x128xf32> to vector<128xf32>
    %116 = vector.shape_cast %115 : vector<128xf32> to vector<128x1xf32>
    %117 = tpu.reciprocal %116 {approx = true} : vector<128x1xf32> -> vector<128x1xf32>
    %118 = vector.broadcast %117 : vector<128x1xf32> to vector<128x128xf32>
    %119 = arith.mulf %114, %118 : vector<128x128xf32>
    %120 = arith.truncf %119 : vector<128x128xf32> to vector<128x128xbf16>
    %121 = vector.extract_strided_slice %23 {offsets = [0, 128], sizes = [128, 64], strides = [1, 1]} : vector<128x256xbf16> to vector<128x64xbf16>
    %cst_28 = arith.constant dense<0.000000e+00> : vector<128x64xf32>
    %122 = tpu.matmul %120, %121, %cst_28 {dimension_numbers = #tpu.dot_dimension_numbers<[1], [0], [0], [1], [0, 0, 1, 1], [], []>} : vector<128x128xbf16>, vector<128x64xbf16>, vector<128x64xf32> -> vector<128x64xf32>
    %123 = arith.truncf %122 : vector<128x64xf32> to vector<128x64xbf16>
    %124 = vector.extract_strided_slice %24 {offsets = [128, 0], sizes = [64, 256], strides = [1, 1]} : vector<256x256xbf16> to vector<64x256xbf16>
    %cst_29 = arith.constant dense<0.000000e+00> : vector<128x256xf32>
    %125 = tpu.matmul %123, %124, %cst_29 {dimension_numbers = #tpu.dot_dimension_numbers<[1], [0], [0], [1], [0, 0, 1, 1], [], []>} : vector<128x64xbf16>, vector<64x256xbf16>, vector<128x256xf32> -> vector<128x256xf32>
    %126 = arith.addf %92, %125 : vector<128x256xf32>
    %127 = vector.extract_strided_slice %20 {offsets = [0, 192], sizes = [128, 64], strides = [1, 1]} : vector<128x256xf32> to vector<128x64xf32>
    %128 = vector.extract_strided_slice %21 {offsets = [0, 192], sizes = [128, 64], strides = [1, 1]} : vector<128x256xf32> to vector<128x64xf32>
    %129 = arith.mulf %127, %2 : vector<128x64xf32>
    %130 = vector.extract_strided_slice %127 {offsets = [0, 32], sizes = [128, 32], strides = [1, 1]} : vector<128x64xf32> to vector<128x32xf32>
    %131 = vector.extract_strided_slice %127 {offsets = [0, 0], sizes = [128, 32], strides = [1, 1]} : vector<128x64xf32> to vector<128x32xf32>
    %132 = tpu.concatenate %130, %131 in 1 : vector<128x32xf32>, vector<128x32xf32> -> vector<128x64xf32>
    %133 = arith.mulf %132, %3 : vector<128x64xf32>
    %134 = arith.addf %129, %133 : vector<128x64xf32>
    %135 = arith.mulf %128, %2 : vector<128x64xf32>
    %136 = vector.extract_strided_slice %128 {offsets = [0, 32], sizes = [128, 32], strides = [1, 1]} : vector<128x64xf32> to vector<128x32xf32>
    %137 = vector.extract_strided_slice %128 {offsets = [0, 0], sizes = [128, 32], strides = [1, 1]} : vector<128x64xf32> to vector<128x32xf32>
    %138 = tpu.concatenate %136, %137 in 1 : vector<128x32xf32>, vector<128x32xf32> -> vector<128x64xf32>
    %139 = arith.mulf %138, %3 : vector<128x64xf32>
    %140 = arith.addf %135, %139 : vector<128x64xf32>
    %141 = arith.truncf %134 : vector<128x64xf32> to vector<128x64xbf16>
    %142 = arith.truncf %140 : vector<128x64xf32> to vector<128x64xbf16>
    %cst_30 = arith.constant dense<0.000000e+00> : vector<128x128xf32>
    %143 = tpu.matmul %141, %142, %cst_30 {dimension_numbers = #tpu.dot_dimension_numbers<[1], [1], [0], [0], [0, 0, 1, 0], [], []>} : vector<128x64xbf16>, vector<128x64xbf16>, vector<128x128xf32> -> vector<128x128xf32>
    %cst_31 = arith.constant dense<0xFF800000> : vector<128xf32>
    %144 = vector.multi_reduction <maximumf>, %143, %cst_31 [1] : vector<128x128xf32> to vector<128xf32>
    %145 = vector.shape_cast %144 : vector<128xf32> to vector<128x1xf32>
    %146 = vector.broadcast %145 : vector<128x1xf32> to vector<128x128xf32>
    %147 = arith.subf %143, %146 : vector<128x128xf32>
    %148 = math.exp %147 : vector<128x128xf32>
    %cst_32 = arith.constant dense<0.000000e+00> : vector<128xf32>
    %149 = vector.multi_reduction <add>, %148, %cst_32 [1] : vector<128x128xf32> to vector<128xf32>
    %150 = vector.shape_cast %149 : vector<128xf32> to vector<128x1xf32>
    %151 = tpu.reciprocal %150 {approx = true} : vector<128x1xf32> -> vector<128x1xf32>
    %152 = vector.broadcast %151 : vector<128x1xf32> to vector<128x128xf32>
    %153 = arith.mulf %148, %152 : vector<128x128xf32>
    %154 = arith.truncf %153 : vector<128x128xf32> to vector<128x128xbf16>
    %155 = vector.extract_strided_slice %23 {offsets = [0, 192], sizes = [128, 64], strides = [1, 1]} : vector<128x256xbf16> to vector<128x64xbf16>
    %cst_33 = arith.constant dense<0.000000e+00> : vector<128x64xf32>
    %156 = tpu.matmul %154, %155, %cst_33 {dimension_numbers = #tpu.dot_dimension_numbers<[1], [0], [0], [1], [0, 0, 1, 1], [], []>} : vector<128x128xbf16>, vector<128x64xbf16>, vector<128x64xf32> -> vector<128x64xf32>
    %157 = arith.truncf %156 : vector<128x64xf32> to vector<128x64xbf16>
    %158 = vector.extract_strided_slice %24 {offsets = [192, 0], sizes = [64, 256], strides = [1, 1]} : vector<256x256xbf16> to vector<64x256xbf16>
    %cst_34 = arith.constant dense<0.000000e+00> : vector<128x256xf32>
    %159 = tpu.matmul %157, %158, %cst_34 {dimension_numbers = #tpu.dot_dimension_numbers<[1], [0], [0], [1], [0, 0, 1, 1], [], []>} : vector<128x64xbf16>, vector<64x256xbf16>, vector<128x256xf32> -> vector<128x256xf32>
    %160 = arith.addf %126, %159 : vector<128x256xf32>
    %c0_35 = arith.constant 0 : index
    %c0_36 = arith.constant 0 : index
    %161 = vector.load %arg7[%c0_35, %c0_36] : memref<1x256xf32, #tpu.memory_space<vmem>>, vector<1x256xf32>
    %162 = arith.mulf %160, %160 : vector<128x256xf32>
    %cst_37 = arith.constant dense<0.000000e+00> : vector<128xf32>
    %163 = vector.multi_reduction <add>, %162, %cst_37 [1] : vector<128x256xf32> to vector<128xf32>
    %164 = vector.shape_cast %163 : vector<128xf32> to vector<128x1xf32>
    %cst_38 = arith.constant 2.560000e+02 : f32
    %165 = vector.broadcast %cst_38 : f32 to vector<128x1xf32>
    %166 = arith.divf %164, %165 : vector<128x1xf32>
    %cst_39 = arith.constant 9.99999974E-6 : f32
    %167 = vector.broadcast %cst_39 : f32 to vector<128x1xf32>
    %168 = arith.addf %166, %167 : vector<128x1xf32>
    %169 = math.rsqrt %168 : vector<128x1xf32>
    %170 = vector.broadcast %169 : vector<128x1xf32> to vector<128x256xf32>
    %171 = arith.mulf %160, %170 : vector<128x256xf32>
    %172 = vector.broadcast %161 : vector<1x256xf32> to vector<128x256xf32>
    %173 = arith.mulf %171, %172 : vector<128x256xf32>
    %174 = arith.truncf %173 : vector<128x256xf32> to vector<128x256xbf16>
    %c0_40 = arith.constant 0 : index
    %c0_41 = arith.constant 0 : index
    %175 = vector.load %arg8[%c0_40, %c0_41] : memref<256x1536xbf16, #tpu.memory_space<vmem>>, vector<256x1536xbf16>
    %cst_42 = arith.constant dense<0.000000e+00> : vector<128x1536xf32>
    %176 = tpu.matmul %174, %175, %cst_42 {dimension_numbers = #tpu.dot_dimension_numbers<[1], [0], [0], [1], [0, 0, 1, 1], [], []>} : vector<128x256xbf16>, vector<256x1536xbf16>, vector<128x1536xf32> -> vector<128x1536xf32>
    %c0_43 = arith.constant 0 : index
    %c0_44 = arith.constant 0 : index
    %177 = vector.load %arg9[%c0_43, %c0_44] : memref<1x1536xf32, #tpu.memory_space<vmem>>, vector<1x1536xf32>
    %178 = vector.broadcast %177 : vector<1x1536xf32> to vector<128x1536xf32>
    %179 = arith.addf %176, %178 : vector<128x1536xf32>
    %180 = vector.extract_strided_slice %179 {offsets = [0, 0], sizes = [128, 768], strides = [1, 1]} : vector<128x1536xf32> to vector<128x768xf32>
    %181 = vector.extract_strided_slice %179 {offsets = [0, 768], sizes = [128, 768], strides = [1, 1]} : vector<128x1536xf32> to vector<128x768xf32>
    %cst_45 = arith.constant 0.000000e+00 : f32
    %182 = vector.broadcast %cst_45 : f32 to vector<128x768xf32>
    %183 = arith.subf %182, %180 : vector<128x768xf32>
    %184 = math.exp %183 : vector<128x768xf32>
    %cst_46 = arith.constant 1.000000e+00 : f32
    %185 = vector.broadcast %cst_46 : f32 to vector<128x768xf32>
    %186 = arith.addf %185, %184 : vector<128x768xf32>
    %cst_47 = arith.constant 1.000000e+00 : f32
    %187 = vector.broadcast %cst_47 : f32 to vector<128x768xf32>
    %188 = arith.divf %187, %186 : vector<128x768xf32>
    %189 = arith.mulf %180, %188 : vector<128x768xf32>
    %190 = arith.mulf %189, %181 : vector<128x768xf32>
    %191 = arith.truncf %190 : vector<128x768xf32> to vector<128x768xbf16>
    %c0_48 = arith.constant 0 : index
    %c0_49 = arith.constant 0 : index
    %192 = vector.load %arg10[%c0_48, %c0_49] : memref<768x256xbf16, #tpu.memory_space<vmem>>, vector<768x256xbf16>
    %cst_50 = arith.constant dense<0.000000e+00> : vector<128x256xf32>
    %193 = tpu.matmul %191, %192, %cst_50 {dimension_numbers = #tpu.dot_dimension_numbers<[1], [0], [0], [1], [0, 0, 1, 1], [], []>} : vector<128x768xbf16>, vector<768x256xbf16>, vector<128x256xf32> -> vector<128x256xf32>
    %c0_51 = arith.constant 0 : index
    %c0_52 = arith.constant 0 : index
    %194 = vector.load %arg11[%c0_51, %c0_52] : memref<1x256xf32, #tpu.memory_space<vmem>>, vector<1x256xf32>
    %195 = vector.broadcast %194 : vector<1x256xf32> to vector<128x256xf32>
    %196 = arith.addf %193, %195 : vector<128x256xf32>
    %197 = arith.addf %160, %196 : vector<128x256xf32>
    %c0_53 = arith.constant 0 : index
    %c0_54 = arith.constant 0 : index
    %c0_55 = arith.constant 0 : index
    %198 = vector.load %arg13[%c0_53, %c0_54, %c0_55] : memref<1x128x256xf32, #tpu.memory_space<vmem>>, vector<1x128x256xf32>
    %199 = vector.shape_cast %198 : vector<1x128x256xf32> to vector<128x256xf32>
    %200 = vector.shape_cast %197 : vector<128x256xf32> to vector<1x128x256xf32>
    tpu.vector_store %arg13[%c0_53, %c0_54, %c0_55], %200 {strides = array<i32>} : memref<1x128x256xf32, #tpu.memory_space<vmem>>, vector<1x128x256xf32>,
    return
  }
  func.func @transform_0(%arg0: i32) -> (i32, i32, i32) {
    %c0_i32 = arith.constant 0 : i32
    %c0_i32_0 = arith.constant 0 : i32
    %c0_i32_1 = arith.constant 0 : i32
    return %arg0, %c0_i32, %c0_i32_0 : i32, i32, i32
  }
  func.func @transform_1(%arg0: i32) -> (i32, i32) {
    %c0_i32 = arith.constant 0 : i32
    %c0_i32_0 = arith.constant 0 : i32
    %c0_i32_1 = arith.constant 0 : i32
    return %c0_i32, %c0_i32_0 : i32, i32
  }
  func.func @transform_2(%arg0: i32) -> (i32, i32) {
    %c0_i32 = arith.constant 0 : i32
    %c0_i32_0 = arith.constant 0 : i32
    %c0_i32_1 = arith.constant 0 : i32
    return %c0_i32, %c0_i32_0 : i32, i32
  }
  func.func @transform_3(%arg0: i32) -> (i32, i32) {
    %c0_i32 = arith.constant 0 : i32
    %c0_i32_0 = arith.constant 0 : i32
    %c0_i32_1 = arith.constant 0 : i32
    return %c0_i32, %c0_i32_0 : i32, i32
  }
  func.func @transform_4(%arg0: i32) -> (i32, i32) {
    %c0_i32 = arith.constant 0 : i32
    %c0_i32_0 = arith.constant 0 : i32
    %c0_i32_1 = arith.constant 0 : i32
    return %c0_i32, %c0_i32_0 : i32, i32
  }
  func.func @transform_5(%arg0: i32) -> (i32, i32) {
    %c0_i32 = arith.constant 0 : i32
    %c0_i32_0 = arith.constant 0 : i32
    %c0_i32_1 = arith.constant 0 : i32
    return %c0_i32, %c0_i32_0 : i32, i32
  }
  func.func @transform_6(%arg0: i32) -> (i32, i32) {
    %c0_i32 = arith.constant 0 : i32
    %c0_i32_0 = arith.constant 0 : i32
    %c0_i32_1 = arith.constant 0 : i32
    return %c0_i32, %c0_i32_0 : i32, i32
  }
  func.func @transform_7(%arg0: i32) -> (i32, i32) {
    %c0_i32 = arith.constant 0 : i32
    %c0_i32_0 = arith.constant 0 : i32
    %c0_i32_1 = arith.constant 0 : i32
    return %c0_i32, %c0_i32_0 : i32, i32
  }
  func.func @transform_8(%arg0: i32) -> (i32, i32) {
    %c0_i32 = arith.constant 0 : i32
    %c0_i32_0 = arith.constant 0 : i32
    %c0_i32_1 = arith.constant 0 : i32
    return %c0_i32, %c0_i32_0 : i32, i32
  }
  func.func @transform_9(%arg0: i32) -> (i32, i32) {
    %c0_i32 = arith.constant 0 : i32
    %c0_i32_0 = arith.constant 0 : i32
    %c0_i32_1 = arith.constant 0 : i32
    return %c0_i32, %c0_i32_0 : i32, i32
  }
  func.func @transform_10(%arg0: i32) -> (i32, i32) {
    %c0_i32 = arith.constant 0 : i32
    %c0_i32_0 = arith.constant 0 : i32
    %c0_i32_1 = arith.constant 0 : i32
    return %c0_i32, %c0_i32_0 : i32, i32
  }
  func.func @transform_11(%arg0: i32) -> (i32, i32) {
    %c0_i32 = arith.constant 0 : i32
    %c0_i32_0 = arith.constant 0 : i32
    %c0_i32_1 = arith.constant 0 : i32
    return %c0_i32, %c0_i32_0 : i32, i32
  }
  func.func @transform_12(%arg0: i32) -> (i32, i32, i32) {
    %c0_i32 = arith.constant 0 : i32
    %c0_i32_0 = arith.constant 0 : i32
    %c0_i32_1 = arith.constant 0 : i32
    return %arg0, %c0_i32, %c0_i32_0 : i32, i32, i32
  }
}

</mosaic_0001>

<bundles_post_ra>
// kernel: tpu_custom_call.1
= control target key start
LH: loop header
LB: loop body
LE: loop exit
PB: predicated region body
PF: predicated region fallthrough
CT: control target
= control target key end

     0   :  { %s18186_s0 = inlined_call_operand.hbm [shape: f32[2,128,256], index: 0, kind: input, shape index: {}]   ;;  %s18187_s1 = inlined_call_operand.vmem [shape: f32[128,64], index: 1, kind: input, shape index: {}]   ;;  %s18188_s2 = inlined_call_operand.vmem [shape: f32[128,64], index: 2, kind: input, shape index: {}]   ;;  %s18189_s3 = inlined_call_operand.vmem [shape: f32[1,256], index: 3, kind: input, shape index: {}]   ;;  %s18190_s4 = inlined_call_operand.hbm [shape: bf16[256,768], index: 4, kind: input, shape index: {}]   ;;  %s18191_s5 = inlined_call_operand.vmem [shape: bf16[256,256], index: 5, kind: input, shape index: {}]   ;;  %s18192_s6 = inlined_call_operand.vmem [shape: f32[1,256], index: 6, kind: input, shape index: {}]   ;;  %s18193_s7 = inlined_call_operand.hbm [shape: bf16[256,1536], index: 7, kind: input, shape index: {}]   ;;  %s18194_s8 = inlined_call_operand.vmem [shape: f32[1,1536], index: 8, kind: input, shape index: {}]   ;;  %s18195_s9 = inlined_call_operand.hbm [shape: bf16[768,256], index: 9, kind: input, shape index: {}]   ;;  %s18196_s10 = inlined_call_operand.vmem [shape: f32[1,256], index: 10, kind: input, shape index: {}]   ;;  %s18197_s11 = inlined_call_operand.vmem [shape: f32[1,256], index: 11, kind: input, shape index: {}]   ;;  %s18198_s12 = inlined_call_operand.hbm [shape: f32[2,128,256], index: 12, kind: output, shape index: {}]  }
   0x1   :  { %18470 = sst [smem:[#allocation122_spill]] %s18190_s4 }
   0x2   :  { %18471 = sst [smem:[#allocation123_spill]] %s18196_s10 }
   0x3   :  { %18472 = sst [smem:[#allocation124_spill]] %s18198_s12 }
   0x4   :  { %17 = vsyncpa [#allocation3], 0 }
   0x5   :  { %19 = vsyncpa [#allocation3 + $0x1], 0 }
   0x6   :  { %20 = vsyncpa [#allocation6], 0 }
   0x7   :  { %21 = vsyncpa [#allocation9], 0 }
   0x8   :  { %22 = vsyncpa [#allocation4], 0 }
   0x9   :  { %24 = vsyncpa [#allocation4 + $0x1], 0  ;;  %s12647_s21 = smov 0   ;;  %s12649_s22 = smov 0  }
   0xa   :  { %s12651_s23 = smov 0   ;;  %s12653_s24 = smov 0  }
   0xb LB: > { %18473 = sst [smem:[#allocation15_spill]] %s12549_s21  ;;  %s12668_s11 = sadd.s32 4294967295, %s12561_s24   ;;  %s12561_s24 = sphi %s12653_s24, %s19182_s24   ;;  %s12557_s23 = sphi %s12651_s23, %s19181_s23   ;;  %s12553_s22 = sphi %s12649_s22, %s19180_s22   ;;  %s12549_s21 = sphi %s12647_s21, %s19179_s21  }
   0xc   : > { %s9712_s25 = sadd.s32 4294967294, %s12561_s24   ;;  %p50_p0 = scmp.ne.s32.totalorder %s12553_s22, %s12549_s21 }
   0xd   : > { %p18199_p1 = scmp.eq.s32.totalorder %s12668_s11, 0  ;;  %p311_p3 = scmp.eq.s32.totalorder %s9712_s25, 1 }
   0xe   : > { %p9713_p5 = scmp.ge.s32.totalorder %s12561_s24, 1  ;;  %p318_p7 = scmp.lt.s32.totalorder %s12561_s24, 3 }
   0xf   : > { %p12677_p4 = por %p18199_p1, %p50_p0  ;;  %p12682_p6 = por %p311_p3, %p50_p0 }
  0x10   : > { %p12687_p8 = pnand %p9713_p5, %p318_p7  ;;  %s12563_s29 = smov [#allocation5]  }
  0x11   : > { %s18474_s26 = scalar_select %p12677_p4, 1, 0 }
  0x12   : > { %s18475_s27 = scalar_select %p12682_p6, 1, 0 }
  0x13   : > { %s18477_s28 = scalar_select %p12687_p8, 1, 0 }
  0x14   : > { %18476 = sst [smem:[#allocation16_spill]] %s18475_s27  ;;  %s339_s30 = sshll.u32 %s12563_s29, 4  ;;  %s12691_s30 = int_to_ptr.vmem [resolvable:$true] %s339_s30 }
  0x15   : > { %p10870_p9 = pneg %p12687_p8  ;;  %s12564_s14 = smov [#allocation7]  }
  0x16   : > { %s358_s15 = sshll.u32 %s12564_s14, 4  ;;  %s18479_s4 = sld [smem:[#allocation122_spill]]  ;;  %s12702_s15 = int_to_ptr.vmem [resolvable:$true] %s358_s15 }
  0x17   : > { %p12698_p11 = pnand %p10870_p9, %p18199_p1 }
  0x19   : > { %p12712_p13 = pneg %p12698_p11 }
  0x1c   : > { %s12373_s18 = scalar_lea.hbm %s18479_s4, 12288 }
  0x1d   : > { %p12374_p12 = scmp.ne.s32.totalorder %s18479_s4, %s12373_s18  ;;  %p12380_p5 = scmp.lt.u32.totalorder %s12373_s18, %s18479_s4 }
  0x1f   : > { %p12376_p0 = pnand %p12712_p13, %p12374_p12 }
  0x21   : > { %p12377_p3 = pneg %p12376_p0 }
  0x23   : > { %p12382_p7 = pnand %p12380_p5, %p12377_p3 }
  0x25   : > { %12385 = shalt.err (!%p12382_p7)
}
  0x26   : > { %s12386_s16 = scalar_lea.vmem %s12691_s30, 12288  ;;  %p12394_p2 = scmp.lt.s32.totalorder %s12691_s30, %s12691_s30 }
  0x27   : > { %p12387_p9 = scmp.ne.s32.totalorder %s12691_s30, %s12386_s16  ;;  %p12395_p6 = scmp.lt.s32.totalorder %s12386_s16, %s12386_s16 }
  0x29   : > { %p12389_p10 = pnand %p12387_p9, %p12712_p13  ;;  %p12396_p12 = por %p12395_p6, %p12394_p2 }
  0x2b   : > { %p12390_p1 = pneg %p12389_p10 }
  0x2d   : > { %p12397_p0 = pnand %p12396_p12, %p12390_p1 }
  0x2f   : > { %12400 = shalt.err (!%p12397_p0)
}
  0x30   : > { %s12565_s17 = smov 384   ;;  %s12566_s18 = smov 24  }
  0x31   : > { %10873 = dma.hbm_to_vmem [thread:$0]  (!%p12698_p11), %s18479_s4, 12288, %s12691_s30, [#allocation6], %s12565_s17, %s12565_s17, %s12566_s18  }
  0x32   : > { %s12401_s27 = scalar_lea.hbm %s18193_s7, 24576 }
  0x33   : > { %p12402_p2 = scmp.ne.s32.totalorder %s18193_s7, %s12401_s27  ;;  %p12408_p10 = scmp.lt.u32.totalorder %s12401_s27, %s18193_s7 }
  0x35   : > { %p12404_p1 = pnand %p12402_p2, %p12712_p13 }
  0x37   : > { %p12405_p6 = pneg %p12404_p1 }
  0x39   : > { %p12410_p3 = pnand %p12408_p10, %p12405_p6 }
  0x3b   : > { %12413 = shalt.err (!%p12410_p3)
}
  0x3c   : > { %s12414_s30 = scalar_lea.vmem %s12702_s15, 24576  ;;  %p12422_p12 = scmp.lt.s32.totalorder %s12702_s15, %s12702_s15 }
  0x3d   : > { %p12415_p5 = scmp.ne.s32.totalorder %s12702_s15, %s12414_s30  ;;  %p12423_p0 = scmp.lt.s32.totalorder %s12414_s30, %s12414_s30 }
  0x3f   : > { %p12417_p7 = pnand %p12415_p5, %p12712_p13  ;;  %p12424_p2 = por %p12423_p0, %p12422_p12 }
  0x41   : > { %p12418_p9 = pneg %p12417_p7 }
  0x43   : > { %p12425_p1 = pnand %p12424_p2, %p12418_p9 }
  0x45   : > { %12428 = shalt.err (!%p12425_p1)
}
  0x46   : > { %s12567_s12 = smov 768   ;;  %s12568_s10 = smov 48  }
  0x47   : > { %10876 = dma.hbm_to_vmem [thread:$0]  (!%p12698_p11), %s18193_s7, 24576, %s12702_s15, [#allocation6], %s12567_s12, %s12567_s12, %s12568_s10  }
  0x48   : > { %s12569_s17 = smov [#allocation8]   ;;  %s12429_s29 = scalar_lea.hbm %s18195_s9, 12288 }
  0x49   : > { %s374_s18 = sshll.u32 %s12569_s17, 4  ;;  %p12430_p6 = scmp.ne.s32.totalorder %s18195_s9, %s12429_s29  ;;  %s375_s18 = int_to_ptr.vmem [resolvable:$true] %s374_s18 }
  0x4a   : > { %p12436_p5 = scmp.lt.u32.totalorder %s12429_s29, %s18195_s9 }
  0x4b   : > { %p12432_p10 = pnand %p12430_p6, %p12712_p13 }
  0x4d   : > { %p12433_p3 = pneg %p12432_p10 }
  0x4f   : > { %p12438_p7 = pnand %p12436_p5, %p12433_p3 }
  0x51   : > { %12441 = shalt.err (!%p12438_p7)
}
  0x52   : > { %s12442_s15 = scalar_lea.vmem %s375_s18, 12288  ;;  %p12450_p2 = scmp.lt.s32.totalorder %s375_s18, %s375_s18 }
  0x53   : > { %p12443_p9 = scmp.ne.s32.totalorder %s375_s18, %s12442_s15  ;;  %p12451_p1 = scmp.lt.s32.totalorder %s12442_s15, %s12442_s15 }
  0x55   : > { %p12445_p12 = pnand %p12443_p9, %p12712_p13  ;;  %p12452_p4 = por %p12451_p1, %p12450_p2 }
  0x57   : > { %p12446_p0 = pneg %p12445_p12 }
  0x59   : > { %p12453_p8 = pnand %p12452_p4, %p12446_p0 }
  0x5b   : > { %12456 = shalt.err (!%p12453_p8)
}
  0x5c   : > { %s12570_s12 = smov 128   ;;  %s12571_s4 = smov 8  }
  0x5d   : > { %10879 = dma.hbm_to_vmem [thread:$0]  (!%p12698_p11), %s18195_s9, 12288, %s375_s18, [#allocation9], %s12570_s12, %s12570_s12, %s12571_s4  }
  0x5e   : > { %s12775_s21 = sadd.s32 1, %s12561_s24   ;;  %s37_s17 = sadd.s32 1, %s12557_s23 }
  0x5f   : > { %s34_s27 = ssub.s32 %s12561_s24, %s12775_s21  ;;  %p44_p8 = scmp.ne.s32.totalorder %s12557_s23, %s12553_s22 }
  0x60   : > { %p35_p4 = scmp.eq.s32.totalorder %s34_s27, 0  ;;  %p45_p13 = scmp.eq.s32.totalorder %s12561_s24, 0 }
  0x61   : > { %p10891_p6 = scmp.lt.s32.totalorder %s12561_s24, 2  ;;  %p18481_p3 = scmp.eq.s32.totalorder %s12668_s11, 1 }
  0x62   : > { %s12785_s19 = scalar_select %p35_p4, %s12557_s23, %s37_s17  }
  0x63   : > { %p46_p10 = por %p45_p13, %p44_p8  ;;  %p12789_p5 = por %p18481_p3, %p44_p8 }
  0x64   : > { %s394_s13 = sand.u32 1, %s12557_s23   ;;  %s10212_s29 = sshll.u32 %s12561_s24, 12 }
  0x65   : > { %s9718_s18 = sshll.u32 %s394_s13, 8  ;;  %s12798_s30 = scalar_lea.hbm %s18186_s0, %s10212_s29 }
  0x66   : > { %s398_s15 = scalar_lea.vmem [#allocation2], %s9718_s18  ;;  %p12800_p11 = pnand %p10891_p6, %p46_p10 }
  0x67   : > { %s405_s12 = sshll.u32 %s398_s15, 4  ;;  %s12806_s25 = scalar_lea.sflag [#allocation3], %s394_s13  ;;  %s12804_s12 = int_to_ptr.vmem [resolvable:$true] %s405_s12 }
  0x68   : > { %s12457_s10 = scalar_lea.hbm %s12798_s30, 4096  ;;  %p12459_p9 = pneg %p12800_p11 }
  0x69   : > { %p12458_p7 = scmp.ne.s32.totalorder %s12798_s30, %s12457_s10  ;;  %s12462_s29 = scalar_lea.hbm %s18186_s0, 8192 }
  0x6a   : > { %p12463_p2 = scmp.lt.u32.totalorder %s12798_s30, %s18186_s0  ;;  %p12464_p1 = scmp.lt.u32.totalorder %s12462_s29, %s12457_s10 }
  0x6b   : > { %p12460_p12 = pnand %p12459_p9, %p12458_p7  ;;  %p12466_p8 = scmp.lt.u32.totalorder %s12457_s10, %s12798_s30 }
  0x6c   : > { %p12465_p4 = por %p12464_p1, %p12463_p2 }
  0x6d   : > { %p12461_p0 = pneg %p12460_p12 }
  0x6e   : > { %p12467_p13 = por %p12466_p8, %p12465_p4 }
  0x70   : > { %p12468_p6 = pnand %p12467_p13, %p12461_p0 }
  0x72   : > { %12471 = shalt.err (!%p12468_p6)
}
  0x73   : > { %s12472_s13 = scalar_lea.vmem %s12804_s12, 4096  ;;  %s12572_s16 = smov [#allocation2]  }
  0x74   : > { %p12473_p10 = scmp.ne.s32.totalorder %s12804_s12, %s12472_s13  ;;  %s12477_s15 = sshll.u32 %s12572_s16, 4  ;;  %s12478_s15 = int_to_ptr.vmem [resolvable:$false] %s12477_s15 }
  0x75   : > { %s12479_s27 = scalar_lea.vmem %s12478_s15, 8192  ;;  %p12480_p12 = scmp.lt.s32.totalorder %s12804_s12, %s12478_s15 }
  0x76   : > { %p12475_p3 = pnand %p12473_p10, %p12459_p9  ;;  %p12481_p2 = scmp.lt.s32.totalorder %s12479_s27, %s12472_s13 }
  0x78   : > { %p12476_p7 = pneg %p12475_p3  ;;  %p12482_p1 = por %p12481_p2, %p12480_p12 }
  0x7a   : > { %p12483_p4 = pnand %p12482_p1, %p12476_p7 }
  0x7c   : > { %12486 = shalt.err (!%p12483_p4)
}
  0x7d   : > { %s12573_s10 = smov 256   ;;  %s12574_s17 = smov 16  }
  0x7e   : > { %10883 = dma.hbm_to_vmem [thread:$0]  (!%p12800_p11), %s12798_s30, 4096, %s12804_s12, %s12806_s25, %s12573_s10, %s12573_s10, %s12574_s17  }
  0x7f   : > { %p18484_p9 = scmp.ne.s32.totalorder %s18477_s28, 0 }
  0x81   : > { %417 = sbr.rel (%p18484_p9) target bundleno = 4126 (0x101e), region = 68 }
  0x88   : > { %s12837_s29 = sand.u32 1, %s12553_s22   ;;  %p18485_p0 = scmp.ne.s32.totalorder %s18474_s26, 0 }
  0x89   : > { %s9722_s18 = sshll.u32 %s12837_s29, 8  ;;  %s420_s14 = scalar_lea.sflag [#allocation3], %s12837_s29 }
  0x8a   : > { %s12843_s13 = scalar_lea.vmem [#allocation2], %s9722_s18 }
  0x8b   : > { %12532 = dma.done.wait (%p18485_p0), %s420_s14, 4096  }
  0x8c   : > { %12534 = vsyncadd (%p18485_p0), %s420_s14, 4294963200  ;;  %p18486_p11 = scmp.eq.s32.totalorder %s12668_s11, 0 }
  0x8e   : > { %12536 = dma.done.wait (%p18486_p11), [#allocation6], 36864   ;;  %p18487_p8 = pmov %p18486_p11 }
  0x90   : > { %12538 = vsyncadd (%p18487_p8), [#allocation6], 4294930432  ;;  %p18488_p13 = pmov %p18487_p8 }
  0x91   : > { %p18489_p6 = pmov %p18487_p8 }
  0x92   : > { %12540 = dma.done.wait (%p18488_p13), [#allocation9], 12288  }
  0x93   : > { %12542 = vsyncadd (%p18489_p6), [#allocation9], 4294955008  ;;  %v477_v0 = vld [vmem:[%s12843_s13] sm:$0xff]  ;;  %v478_v1 = vld [vmem:[%s12843_s13 + $0x8] sm:$0xff]  ;;  %s12575_s30 = smov 96   ;;  %s12576_s12 = smov 32  }
  0x94   : > { %v481_v2 = vld [vmem:[%s12843_s13 + $0x20] sm:$0xff]  ;;  %v542_v3 = vmul.f32 %v477_v0, %v477_v0  ;;  %v543_v4 = vmul.f32 %v478_v1, %v478_v1  ;;  %v482_v5 = vld [vmem:[%s12843_s13 + $0x28] sm:$0xff]  ;;  %v479_v7 = vld [vmem:[%s12843_s13 + $0x10] sm:$0xff]  ;;  %vm1853_vm0 = vcmask 261120   ;;  %vm2094_vm1 = vcmask 523264   ;;  %s12577_s26 = smov 64  }
  0x95   : > { %v546_v6 = vmul.f32 %v481_v2, %v481_v2  ;;  %v480_v8 = vld [vmem:[%s12843_s13 + $0x18] sm:$0xff]  ;;  %v547_v9 = vmul.f32 %v482_v5, %v482_v5  ;;  %v544_v10 = vmul.f32 %v479_v7, %v479_v7  ;;  %v483_v12 = vld [vmem:[%s12843_s13 + $0x30] sm:$0xff]  ;;  %v485_v19 = vld [vmem:[%s12843_s13 + $0x40] sm:$0xff]  ;;  %s19138_s10 = sld [smem:[#allocation123_spill]]  ;;  %s12579_s4 = smov [#allocation10]  }
  0x96   : > { %v545_v11 = vmul.f32 %v480_v8, %v480_v8  ;;  %v484_v13 = vld [vmem:[%s12843_s13 + $0x38] sm:$0xff]  ;;  %v487_v14 = vld [vmem:[%s12843_s13 + $0x50] sm:$0xff]  ;;  %v574_v15 = vadd.f32 %v543_v4, %v542_v3  ;;  %v548_v16 = vmul.f32 %v483_v12, %v483_v12  ;;  %v486_v20 = vld [vmem:[%s12843_s13 + $0x48] sm:$0xff]  ;;  %v550_v23 = vmul.f32 %v485_v19, %v485_v19  ;;  %s12491_s25 = sshll.u32 %s12579_s4, 4  ;;  %s12492_s25 = int_to_ptr.vmem [resolvable:$false] %s12491_s25 }
  0x97   : > { %v549_v17 = vmul.f32 %v484_v13, %v484_v13  ;;  %v488_v18 = vld [vmem:[%s12843_s13 + $0x58] sm:$0xff]  ;;  %v580_v21 = vadd.f32 %v547_v9, %v546_v6  ;;  %v551_v24 = vmul.f32 %v486_v20, %v486_v20  ;;  %v552_v26 = vmul.f32 %v487_v14, %v487_v14  ;;  %v489_v28 = vld [vmem:[%s12843_s13 + $0x60] sm:$0xff]  ;;  %v490_v29 = vld [vmem:[%s12843_s13 + $0x68] sm:$0xff]  ;;  %s12493_s16 = scalar_lea.vmem %s12492_s25, 8192 }
  0x98   : > { %575 = vadd.xlane.f32.xlu0 %v574_v15  ;;  %v577_v22 = vadd.f32 %v545_v11, %v544_v10  ;;  %v553_v27 = vmul.f32 %v488_v18, %v488_v18  ;;  %v491_v30 = vld [vmem:[%s12843_s13 + $0x70] sm:$0xff]  ;;  %v492_v31 = vld [vmem:[%s12843_s13 + $0x78] sm:$0xff]  ;;  %v554_v33 = vmul.f32 %v489_v28, %v489_v28  ;;  %v555_v34 = vmul.f32 %v490_v29, %v490_v29  ;;  %v493_v40 = vld [vmem:[%s12843_s13 + $0x80] sm:$0xff] }
  0x99   : > { %581 = vadd.xlane.f32.xlu1 %v580_v21  ;;  %v583_v25 = vadd.f32 %v549_v17, %v548_v16  ;;  %v586_v32 = vadd.f32 %v551_v24, %v550_v23  ;;  %v495_v35 = vld [vmem:[%s12843_s13 + $0x90] sm:$0xff]  ;;  %v496_v36 = vld [vmem:[%s12843_s13 + $0x98] sm:$0xff]  ;;  %v556_v38 = vmul.f32 %v491_v30, %v491_v30  ;;  %v557_v39 = vmul.f32 %v492_v31, %v492_v31  ;;  %v494_v41 = vld [vmem:[%s12843_s13 + $0x88] sm:$0xff] }
  0x9a   : > { %v589_v37 = vadd.f32 %v553_v27, %v552_v26  ;;  %v10945_v42 = vld [vmem:[#allocation5 + $0x4] ss:$24 sps:$4 sm:$0xff]   ;;  %v10947_v43 = vld [vmem:[#allocation5] ss:$24 sps:$4 sm:$0xff]   ;;  %v10948_v44 = vld [vmem:[#allocation5 + $0x34] ss:$24 sps:$4 sm:$0xff]   ;;  %v592_v45 = vadd.f32 %v555_v34, %v554_v33  ;;  %v558_v46 = vmul.f32 %v493_v40, %v493_v40  ;;  %v559_v47 = vmul.f32 %v494_v41, %v494_v41 }
  0x9b   : > { %v499_v48 = vld [vmem:[%s12843_s13 + $0xb0] sm:$0xff]  ;;  %v497_v49 = vld [vmem:[%s12843_s13 + $0xa0] sm:$0xff]  ;;  %1338 = vmatprep.subr.bf16.mxu0 %v10945_v42  ;;  %v595_v50 = vadd.f32 %v557_v39, %v556_v38  ;;  %v560_v51 = vmul.f32 %v495_v35, %v495_v35  ;;  %v561_v52 = vmul.f32 %v496_v36, %v496_v36  ;;  %v498_v53 = vld [vmem:[%s12843_s13 + $0xa8] sm:$0xff] }
  0x9c   : > { %578 = vadd.xlane.f32.xlu0 %v577_v22  ;;  %1339 = vmatpush1.bf16.msra.mxu0 %v10947_v43  ;;  %v10950_v54 = vld [vmem:[#allocation5 + $0x30] ss:$24 sps:$4 sm:$0xff]   ;;  %v500_v55 = vld [vmem:[%s12843_s13 + $0xb8] sm:$0xff]  ;;  %v598_v57 = vadd.f32 %v559_v47, %v558_v46  ;;  %v562_v58 = vmul.f32 %v497_v49, %v497_v49  ;;  %v563_v59 = vmul.f32 %v498_v53, %v498_v53  ;;  %v501_v61 = vld [vmem:[%s12843_s13 + $0xc0] sm:$0xff] }
  0x9d   : > { %584 = vadd.xlane.f32.xlu1 %v583_v25  ;;  %1340 = vmatprep.subr.bf16.mxu0 %v10948_v44  ;;  %v10951_v56 = vld [vmem:[#allocation5 + $0x64] ss:$24 sps:$4 sm:$0xff]   ;;  %v503_v60 = vld [vmem:[%s12843_s13 + $0xd0] sm:$0xff]  ;;  %v601_v62 = vadd.f32 %v561_v52, %v560_v51  ;;  %v564_v63 = vmul.f32 %v499_v48, %v499_v48  ;;  %v565_v0 = vmul.f32 %v500_v55, %v500_v55  ;;  %v502_v1 = vld [vmem:[%s12843_s13 + $0xc8] sm:$0xff] }
  0x9e   : > { %v10953_v2 = vld [vmem:[#allocation5 + $0x60] ss:$24 sps:$4 sm:$0xff]   ;;  %v10954_v4 = vld [vmem:[#allocation5 + $0x94] ss:$24 sps:$4 sm:$0xff]   ;;  %v604_v5 = vadd.f32 %v563_v59, %v562_v58  ;;  %v566_v6 = vmul.f32 %v501_v61, %v501_v61  ;;  %v567_v7 = vmul.f32 %v502_v1, %v502_v1  ;;  %v568_v11 = vmul.f32 %v503_v60, %v503_v60  ;;  %v10956_v14 = vld [vmem:[#allocation5 + $0x90] ss:$24 sps:$4 sm:$0xff]  }
  0x9f   : > { %v504_v3 = vld [vmem:[%s12843_s13 + $0xd8] sm:$0xff]  ;;  %v507_v8 = vld [vmem:[%s12843_s13 + $0xf0] sm:$0xff]  ;;  %v505_v9 = vld [vmem:[%s12843_s13 + $0xe0] sm:$0xff]  ;;  %v607_v10 = vadd.f32 %v565_v0, %v564_v63  ;;  %v704_v58 = vlaneseq }
  0xa0   : > { %587 = vadd.xlane.f32.xlu0 %v586_v32  ;;  %1341 = vmatpush1.bf16.msra.mxu0 %v10950_v54  ;;  %v569_v12 = vmul.f32 %v504_v3, %v504_v3  ;;  %v506_v13 = vld [vmem:[%s12843_s13 + $0xe8] sm:$0xff]  ;;  %v508_v15 = vld [vmem:[%s12843_s13 + $0xf8] sm:$0xff]  ;;  %v610_v17 = vadd.f32 %v567_v7, %v566_v6  ;;  %v570_v18 = vmul.f32 %v505_v9, %v505_v9 }
  0xa1   : > { %590 = vadd.xlane.f32.xlu1 %v589_v37  ;;  %1342 = vmatprep.subr.bf16.mxu0 %v10951_v56  ;;  %v10957_v16 = vld [vmem:[#allocation5 + $0xc4] ss:$24 sps:$4 sm:$0xff]   ;;  %v571_v19 = vmul.f32 %v506_v13, %v506_v13  ;;  %v572_v21 = vmul.f32 %v507_v8, %v507_v8  ;;  %v573_v22 = vmul.f32 %v508_v15, %v508_v15  ;;  %v10959_v23 = vld [vmem:[#allocation5 + $0xc0] ss:$24 sps:$4 sm:$0xff]   ;;  %v10960_v24 = vld [vmem:[#allocation5 + $0xf4] ss:$24 sps:$4 sm:$0xff]  }
  0xa2   : > { %v613_v20 = vadd.f32 %v569_v12, %v568_v11  ;;  %v10962_v27 = vld [vmem:[#allocation5 + $0xf0] ss:$24 sps:$4 sm:$0xff]   ;;  %v10963_v28 = vld [vmem:[#allocation5 + $0x124] ss:$24 sps:$4 sm:$0xff]   ;;  %v10965_v29 = vld [vmem:[#allocation5 + $0x120] ss:$24 sps:$4 sm:$0xff]  }
  0xa3   : > { %v616_v25 = vadd.f32 %v571_v19, %v570_v18  ;;  %v619_v26 = vadd.f32 %v573_v22, %v572_v21  ;;  %v10966_v30 = vld [vmem:[#allocation5 + $0x154] ss:$24 sps:$4 sm:$0xff]   ;;  %v10968_v31 = vld [vmem:[#allocation5 + $0x150] ss:$24 sps:$4 sm:$0xff]   ;;  %v10969_v32 = vld [vmem:[#allocation5 + $0x184] ss:$24 sps:$4 sm:$0xff]  }
  0xa4   : > { %593 = vadd.xlane.f32.xlu0 %v592_v45  ;;  %1343 = vmatpush1.bf16.msra.mxu0 %v10953_v2  ;;  %v10971_v33 = vld [vmem:[#allocation5 + $0x180] ss:$24 sps:$4 sm:$0xff]   ;;  %v10972_v34 = vld [vmem:[#allocation5 + $0x1b4] ss:$24 sps:$4 sm:$0xff]   ;;  %v10974_v35 = vld [vmem:[#allocation5 + $0x1b0] ss:$24 sps:$4 sm:$0xff]  }
  0xa5   : > { %596 = vadd.xlane.f32.xlu1 %v595_v50  ;;  %1344 = vmatprep.subr.bf16.mxu0 %v10954_v4  ;;  %v10975_v36 = vld [vmem:[#allocation5 + $0x1e4] ss:$24 sps:$4 sm:$0xff]   ;;  %v10977_v37 = vld [vmem:[#allocation5 + $0x1e0] ss:$24 sps:$4 sm:$0xff]   ;;  %v10978_v38 = vld [vmem:[#allocation5 + $0x214] ss:$24 sps:$4 sm:$0xff]  }
  0xa6   : > { %v10980_v39 = vld [vmem:[#allocation5 + $0x210] ss:$24 sps:$4 sm:$0xff]   ;;  %v10981_v40 = vld [vmem:[#allocation5 + $0x244] ss:$24 sps:$4 sm:$0xff]   ;;  %v10983_v41 = vld [vmem:[#allocation5 + $0x240] ss:$24 sps:$4 sm:$0xff]  }
  0xa7   : > { %v10984_v42 = vld [vmem:[#allocation5 + $0x274] ss:$24 sps:$4 sm:$0xff]   ;;  %v10986_v43 = vld [vmem:[#allocation5 + $0x270] ss:$24 sps:$4 sm:$0xff]   ;;  %v10987_v44 = vld [vmem:[#allocation5 + $0x2a4] ss:$24 sps:$4 sm:$0xff]  }
  0xa8   : > { %599 = vadd.xlane.f32.xlu0 %v598_v57  ;;  %1345 = vmatpush1.bf16.msra.mxu0 %v10956_v14  ;;  %v10989_v45 = vld [vmem:[#allocation5 + $0x2a0] ss:$24 sps:$4 sm:$0xff]   ;;  %v10990_v46 = vld [vmem:[#allocation5 + $0x2d4] ss:$24 sps:$4 sm:$0xff]   ;;  %v10992_v47 = vld [vmem:[#allocation5 + $0x2d0] ss:$24 sps:$4 sm:$0xff]  }
  0xa9   : > { %602 = vadd.xlane.f32.xlu1 %v601_v62  ;;  %1346 = vmatprep.subr.bf16.mxu0 %v10957_v16  ;;  %v10995_v48 = vld [vmem:[#allocation5 + $0xc] ss:$24 sps:$4 sm:$0xff]   ;;  %v12889_v1 = vshrl.u32 %v704_v58, 7 }
  0xab   : > { %18490 = vst [vmem:[#allocation17_spill] sm:$0xff] %v12889_v1  ;;  %v12895_v7 = vsub.s32 1, %v12889_v1 }
  0xac   : > { %605 = vadd.xlane.f32.xlu0 %v604_v5  ;;  %1347 = vmatpush1.bf16.msra.mxu0 %v10959_v23  ;;  %v541_v5 = vld [vmem:[%s18189_s3] sm:$0x3] }
  0xad   : > { %608 = vadd.xlane.f32.xlu1 %v607_v10  ;;  %1348 = vmatprep.subr.bf16.mxu0 %v10960_v24  ;;  %18491 = vst [vmem:[#allocation18_spill] sm:$0xff] %v12895_v7  ;;  %v12898_v10 = vsub.s32 0, %v12889_v1  ;;  %v12902_v19 = vrot.slane %v541_v5, %v12895_v7  ;;  %v12275_v23 = vld [vmem:[%s12843_s13] sm:$0xff] }
  0xae   : > { %v13239_v7 = vld [vmem:[%s18188_s2] sm:$0xff] }
  0xaf   : > { %18492 = vst [vmem:[#allocation19_spill] sm:$0xff] %v12898_v10 }
  0xb0   : > { %611 = vadd.xlane.f32.xlu0 %v610_v17  ;;  %1349 = vmatpush1.bf16.msra.mxu0 %v10962_v27  ;;  %v12273_v17 = vld [vmem:[%s12843_s13 + $0x8] sm:$0xff] }
  0xb1   : > { %614 = vadd.xlane.f32.xlu1 %v613_v20  ;;  %1350 = vmatprep.subr.bf16.mxu0 %v10963_v28  ;;  %v12274_v20 = vld [vmem:[%s12843_s13 + $0x28] sm:$0xff] }
  0xb4   : > { %617 = vadd.xlane.f32.xlu0 %v616_v25  ;;  %1351 = vmatpush1.bf16.msra.mxu0 %v10965_v29  ;;  %v12907_v25 = vrot.slane %v541_v5, %v12898_v10 }
  0xb5   : > { %620 = vadd.xlane.f32.xlu1 %v619_v26  ;;  %1352 = vmatprep.subr.bf16.mxu0 %v10966_v30  ;;  %v12276_v30 = vld [vmem:[%s12843_s13 + $0x18] sm:$0xff] }
  0xb8   : > { %1353 = vmatpush1.bf16.msra.mxu0 %v10968_v31 }
  0xb9   : > { %1354 = vmatprep.subr.bf16.mxu0 %v10969_v32  ;;  %v12277_v32 = vld [vmem:[%s12843_s13 + $0x10] sm:$0xff] }
  0xbc   : > { %1355 = vmatpush1.bf16.msra.mxu0 %v10971_v33 }
  0xbd   : > { %1356 = vmatprep.subr.bf16.mxu0 %v10972_v34 }
  0xc0   : > { %1357 = vmatpush1.bf16.msra.mxu0 %v10974_v35  ;;  %v12278_v35 = vld [vmem:[%s12843_s13 + $0x38] sm:$0xff] }
  0xc1   : > { %1358 = vmatprep.subr.bf16.mxu0 %v10975_v36 }
  0xc4   : > { %1359 = vmatpush1.bf16.msra.mxu0 %v10977_v37 }
  0xc5   : > { %1360 = vmatprep.subr.bf16.mxu0 %v10978_v38 }
  0xc8   : > { %1361 = vmatpush1.bf16.msra.mxu0 %v10980_v39  ;;  %v10993_v39 = vld [vmem:[#allocation5 + $0x8] ss:$24 sps:$4 sm:$0xff]  }
  0xc9   : > { %1362 = vmatprep.subr.bf16.mxu0 %v10981_v40 }
  0xcc   : > { %1363 = vmatpush1.bf16.msra.mxu0 %v10983_v41 }
  0xcd   : > { %1364 = vmatprep.subr.bf16.mxu0 %v10984_v42 }
  0xd0   : > { %1365 = vmatpush1.bf16.msra.mxu0 %v10986_v43 }
  0xd1   : > { %1366 = vmatprep.subr.bf16.mxu0 %v10987_v44 }
  0xd4   : > { %1367 = vmatpush1.bf16.msra.mxu0 %v10989_v45  ;;  %v10998_v45 = vld [vmem:[#allocation5 + $0x3c] ss:$24 sps:$4 sm:$0xff]  }
  0xd5   : > { %1368 = vmatprep.subr.bf16.mxu0 %v10990_v46 }
  0xd8   : > { %1369 = vmatpush1.bf16.msra.mxu0 %v10992_v47 }
  0xd9   : > { %1451 = vmatprep.subr.bf16.mxu0 %v10995_v48 }
 0x125   : > { %v576_v49 = vpop.xlane.xlu0 %575 }
 0x126   : > { %v623_v50 = vmul.f32 0.00390625, %v576_v49  ;;  %v582_v51 = vpop.xlane.xlu1 %581 }
 0x127   : > { %v625_v52 = vmul.f32 0.00390625, %v582_v51  ;;  %v12279_v51 = vld [vmem:[%s12843_s13 + $0x48] sm:$0xff] }
 0x128   : > { %v639_v53 = vadd.f32 1e-05, %v623_v50 }
 0x129   : > { %v641_v54 = vadd.f32 1e-05, %v625_v52  ;;  %v579_v55 = vpop.xlane.xlu0 %578 }
 0x12a   : > { %11569 = vrsqrt.f32 %v639_v53  ;;  %v624_v56 = vmul.f32 0.00390625, %v579_v55  ;;  %v585_v57 = vpop.xlane.xlu1 %584  ;;  %v12280_v55 = vld [vmem:[%s12843_s13 + $0x20] sm:$0xff] }
 0x12b   : > { %11571 = vrsqrt.f32 %v641_v54  ;;  %v626_v59 = vmul.f32 0.00390625, %v585_v57  ;;  %v12281_v57 = vld [vmem:[%s12843_s13 + $0x30] sm:$0xff] }
 0x12c   : > { %v640_v60 = vadd.f32 1e-05, %v624_v56 }
 0x12d   : > { %v642_v61 = vadd.f32 1e-05, %v626_v59  ;;  %v588_v62 = vpop.xlane.xlu0 %587  ;;  %v12282_v59 = vld [vmem:[%s12843_s13 + $0x58] sm:$0xff] }
 0x12e   : > { %11573 = vrsqrt.f32 %v640_v60  ;;  %v591_v63 = vpop.xlane.xlu1 %590  ;;  %v627_v0 = vmul.f32 0.00390625, %v588_v62 }
 0x12f   : > { %11575 = vrsqrt.f32 %v642_v61  ;;  %v628_v2 = vmul.f32 0.00390625, %v591_v63  ;;  %v10996_v61 = vld [vmem:[#allocation5 + $0x38] ss:$24 sps:$4 sm:$0xff]   ;;  %v11001_v63 = vld [vmem:[#allocation5 + $0x6c] ss:$24 sps:$4 sm:$0xff]  }
 0x130   : > { %v643_v3 = vadd.f32 1e-05, %v627_v0 }
 0x131   : > { %v644_v4 = vadd.f32 1e-05, %v628_v2  ;;  %v594_v6 = vpop.xlane.xlu0 %593 }
 0x132   : > { %11577 = vrsqrt.f32 %v643_v3  ;;  %v597_v8 = vpop.xlane.xlu1 %596  ;;  %v629_v9 = vmul.f32 0.00390625, %v594_v6 }
 0x133   : > { %11579 = vrsqrt.f32 %v644_v4  ;;  %v630_v11 = vmul.f32 0.00390625, %v597_v8 }
 0x134   : > { %v11570_v12 = vpop.eup %11569  ;;  %v645_v13 = vadd.f32 1e-05, %v629_v9  ;;  %v10999_v9 = vld [vmem:[#allocation5 + $0x68] ss:$24 sps:$4 sm:$0xff]  }
 0x135   : > { %v11572_v14 = vpop.eup %11571  ;;  %v646_v15 = vadd.f32 1e-05, %v630_v11  ;;  %v600_v16 = vpop.xlane.xlu0 %599  ;;  %v672_v18 = vmul.f32 %v12273_v17, %v11570_v12  ;;  %v671_v24 = vmul.f32 %v12275_v23, %v11570_v12  ;;  %v11004_v12 = vld [vmem:[#allocation5 + $0x9c] ss:$24 sps:$4 sm:$0xff]  }
 0x136   : > { %v676_v21 = vmul.f32 %v12274_v20, %v11572_v14  ;;  %v603_v22 = vpop.xlane.xlu1 %602  ;;  %11581 = vrsqrt.f32 %v645_v13  ;;  %v631_v26 = vmul.f32 0.00390625, %v600_v16  ;;  %v675_v56 = vmul.f32 %v12280_v55, %v11572_v14  ;;  %v12283_v13 = vld [vmem:[%s12843_s13 + $0x40] sm:$0xff]  ;;  %v12286_v23 = vld [vmem:[%s12843_s13 + $0x78] sm:$0xff] }
 0x137   : > { %11583 = vrsqrt.f32 %v646_v15  ;;  %v632_v28 = vmul.f32 0.00390625, %v603_v22  ;;  %v715_v34 = vmul.f32 %v12902_v19, %v672_v18  ;;  %v714_v40 = vmul.f32 %v12907_v25, %v671_v24  ;;  %v12284_v15 = vld [vmem:[%s12843_s13 + $0x50] sm:$0xff] }
 0x138   : > { %v11574_v27 = vpop.eup %11573  ;;  %v719_v37 = vmul.f32 %v12902_v19, %v676_v21  ;;  %v647_v42 = vadd.f32 1e-05, %v631_v26  ;;  %v718_v6 = vmul.f32 %v12907_v25, %v675_v56  ;;  %v12285_v21 = vld [vmem:[%s12843_s13 + $0x68] sm:$0xff]  ;;  %v11010_v56 = vld [vmem:[#allocation5 + $0xfc] ss:$24 sps:$4 sm:$0xff]  }
 0x139   : > { %v11576_v29 = vpop.eup %11575  ;;  %v674_v31 = vmul.f32 %v12276_v30, %v11574_v27  ;;  %v673_v33 = vmul.f32 %v12277_v32, %v11574_v27  ;;  %v648_v46 = vadd.f32 1e-05, %v632_v28  ;;  %v606_v47 = vpop.xlane.xlu0 %605  ;;  %v11002_v28 = vld [vmem:[#allocation5 + $0x98] ss:$24 sps:$4 sm:$0xff]  }
 0x13a   : > { %v678_v36 = vmul.f32 %v12278_v35, %v11576_v29  ;;  %v609_v53 = vpop.xlane.xlu1 %608  ;;  %v677_v58 = vmul.f32 %v12281_v57, %v11576_v29  ;;  %11585 = vrsqrt.f32 %v647_v42  ;;  %v633_v62 = vmul.f32 0.00390625, %v606_v47  ;;  %v12288_v42 = vld [vmem:[%s12843_s13 + $0x70] sm:$0xff] }
 0x13b   : > { %v717_v38 = vmul.f32 %v12902_v19, %v674_v31  ;;  %v716_v41 = vmul.f32 %v12907_v25, %v673_v33  ;;  %11587 = vrsqrt.f32 %v648_v46  ;;  %v634_v0 = vmul.f32 0.00390625, %v609_v53  ;;  %v11005_v46 = vld [vmem:[#allocation5 + $0xc8] ss:$24 sps:$4 sm:$0xff]  }
 0x13c   : > { %v11578_v43 = vpop.eup %11577  ;;  %v721_v44 = vmul.f32 %v12902_v19, %v678_v36  ;;  %v720_v8 = vmul.f32 %v12907_v25, %v677_v58  ;;  %v649_v11 = vadd.f32 1e-05, %v633_v62  ;;  %v11008_v62 = vld [vmem:[#allocation5 + $0xf8] ss:$24 sps:$4 sm:$0xff]  }
 0x13d   : > { %v11580_v48 = vpop.eup %11579  ;;  %v12918_v49 = vpack.c.bf16 %v717_v38, %v715_v34  ;;  %v12920_v50 = vpack.c.bf16 %v716_v41, %v714_v40  ;;  %v680_v52 = vmul.f32 %v12279_v51, %v11578_v43  ;;  %v679_v14 = vmul.f32 %v12283_v13, %v11578_v43  ;;  %v612_v26 = vpop.xlane.xlu0 %611  ;;  %v12287_v40 = vld [vmem:[%s12843_s13 + $0x60] sm:$0xff] }
 0x13e   : > { %v12923_v54 = vpack.c.bf16 %v721_v44, %v719_v37  ;;  %v682_v60 = vmul.f32 %v12282_v59, %v11580_v48  ;;  %v681_v16 = vmul.f32 %v12284_v15, %v11580_v48  ;;  %v650_v17 = vadd.f32 1e-05, %v634_v0  ;;  %v615_v18 = vpop.xlane.xlu1 %614  ;;  %v11007_v37 = vld [vmem:[#allocation5 + $0xcc] ss:$24 sps:$4 sm:$0xff]   ;;  %v11011_v13 = vld [vmem:[#allocation5 + $0x128] ss:$24 sps:$4 sm:$0xff]  }
 0x13f   : > { %1370 = vmatprep.mubr.bf16.mxu0 %v12918_v49  ;;  %v723_v3 = vmul.f32 %v12902_v19, %v680_v52  ;;  %v12941_v27 = vpack.c.bf16 %v720_v8, %v718_v6  ;;  %11589 = vrsqrt.f32 %v649_v11  ;;  %v636_v29 = vmul.f32 0.00390625, %v615_v18  ;;  %v12289_v48 = vld [vmem:[%s12843_s13 + $0x88] sm:$0xff]  ;;  %v12290_v52 = vld [vmem:[%s12843_s13 + $0x98] sm:$0xff]  ;;  %v12291_v6 = vld [vmem:[%s12843_s13 + $0x80] sm:$0xff] }
 0x140   : > { %1371 = vmatmul.mubr.bf16.vlgmr.msra.gmra.mrb[0].mxu0 %v12920_v50  ;;  %v11582_v2 = vpop.eup %11581  ;;  %v725_v4 = vmul.f32 %v12902_v19, %v682_v60  ;;  %v722_v30 = vmul.f32 %v12907_v25, %v679_v14  ;;  %v724_v31 = vmul.f32 %v12907_v25, %v681_v16  ;;  %11591 = vrsqrt.f32 %v650_v17  ;;  %v12293_v15 = vld [vmem:[%s12843_s13 + $0xa8] sm:$0xff]  ;;  %v12294_v17 = vld [vmem:[%s12843_s13 + $0xb8] sm:$0xff] }
 0x141   : > { %1452 = vmatpush1.bf16.msra.mxu0 %v10993_v39  ;;  %1380 = vmatprep.mubr.bf16.mxu0 %v12923_v54  ;;  %v11584_v5 = vpop.eup %11583  ;;  %v684_v22 = vmul.f32 %v12285_v21, %v11582_v2  ;;  %v635_v32 = vmul.f32 0.00390625, %v612_v26  ;;  %v652_v38 = vadd.f32 1e-05, %v636_v29  ;;  %v683_v41 = vmul.f32 %v12287_v40, %v11582_v2  ;;  %v618_v55 = vpop.xlane.xlu0 %617  ;;  %v11016_v21 = vld [vmem:[#allocation5 + $0x15c] ss:$24 sps:$4 sm:$0xff]   ;;  %v12297_v40 = vld [vmem:[%s12843_s13 + $0xc8] sm:$0xff] }
 0x142   : > { %1453 = vmatprep.subr.bf16.mxu0 %v10998_v45  ;;  %v12937_v20 = vpack.c.bf16 %v725_v4, %v723_v3  ;;  %v686_v24 = vmul.f32 %v12286_v23, %v11584_v5  ;;  %v12949_v39 = vpack.c.bf16 %v724_v31, %v722_v30  ;;  %v685_v43 = vmul.f32 %v12288_v42, %v11584_v5  ;;  %v621_v45 = vpop.xlane.xlu1 %620  ;;  %v11013_v3 = vld [vmem:[#allocation5 + $0x12c] ss:$24 sps:$4 sm:$0xff]   ;;  %v11014_v26 = vld [vmem:[#allocation5 + $0x158] ss:$24 sps:$4 sm:$0xff]  }
 0x143   : > { %v727_v34 = vmul.f32 %v12902_v19, %v684_v22  ;;  %v651_v44 = vadd.f32 1e-05, %v635_v32  ;;  %11593 = vrsqrt.f32 %v652_v38  ;;  %v638_v57 = vmul.f32 0.00390625, %v621_v45  ;;  %v11019_v31 = vld [vmem:[#allocation5 + $0x18c] ss:$24 sps:$4 sm:$0xff]   ;;  %v12298_v42 = vld [vmem:[%s12843_s13 + $0xd8] sm:$0xff] }
 0x144   : > { %v11586_v33 = vpop.eup %11585  ;;  %v729_v35 = vmul.f32 %v12902_v19, %v686_v24  ;;  %v726_v58 = vmul.f32 %v12907_v25, %v683_v41  ;;  %v728_v59 = vmul.f32 %v12907_v25, %v685_v43  ;;  %v637_v60 = vmul.f32 0.00390625, %v618_v55 }
 0x145   : > { %1454 = vmatpush1.bf16.msra.mxu0 %v10996_v61  ;;  %v11588_v36 = vpop.eup %11587  ;;  %v688_v51 = vmul.f32 %v12289_v48, %v11586_v33  ;;  %11595 = vrsqrt.f32 %v651_v44  ;;  %v654_v4 = vadd.f32 1e-05, %v638_v57  ;;  %v687_v8 = vmul.f32 %v12291_v6, %v11586_v33  ;;  %v12295_v33 = vld [vmem:[%s12843_s13 + $0xa0] sm:$0xff]  ;;  %v11022_v44 = vld [vmem:[#allocation5 + $0x1bc] ss:$24 sps:$4 sm:$0xff]  }
 0x146   : > { %1455 = vmatprep.subr.bf16.mxu0 %v11001_v63  ;;  %v12953_v47 = vpack.c.bf16 %v729_v35, %v727_v34  ;;  %v690_v53 = vmul.f32 %v12290_v52, %v11588_v36  ;;  %v12963_v5 = vpack.c.bf16 %v728_v59, %v726_v58  ;;  %v12296_v35 = vld [vmem:[%s12843_s13 + $0xb0] sm:$0xff]  ;;  %v12299_v58 = vld [vmem:[%s12843_s13 + $0xc0] sm:$0xff] }
 0x147   : > { %v731_v63 = vmul.f32 %v12902_v19, %v688_v51  ;;  %11597 = vrsqrt.f32 %v654_v4  ;;  %v730_v22 = vmul.f32 %v12907_v25, %v687_v8  ;;  %v11020_v51 = vld [vmem:[#allocation5 + $0x1b8] ss:$24 sps:$4 sm:$0xff]   ;;  %v11028_v6 = vld [vmem:[#allocation5 + $0x21c] ss:$24 sps:$4 sm:$0xff]  }
 0x148   : > { %1381 = vmatmul.mubr.bf16.gmra.mrb[4].mxu0 %v12941_v27  ;;  %v733_v0 = vmul.f32 %v12902_v19, %v690_v53 }
 0x149   : > { %1456 = vmatpush1.bf16.msra.mxu0 %v10999_v9  ;;  %1390 = vmatprep.mubr.bf16.mxu0 %v12937_v20  ;;  %v11590_v61 = vpop.eup %11589  ;;  %v12292_v9 = vld [vmem:[%s12843_s13 + $0x90] sm:$0xff] }
 0x14a   : > { %1457 = vmatprep.subr.bf16.mxu0 %v11004_v12  ;;  %v11592_v2 = vpop.eup %11591  ;;  %v689_v11 = vmul.f32 %v12292_v9, %v11588_v36  ;;  %v653_v12 = vadd.f32 1e-05, %v637_v60  ;;  %v12967_v14 = vpack.c.bf16 %v733_v0, %v731_v63  ;;  %v692_v16 = vmul.f32 %v12293_v15, %v11590_v61  ;;  %v12300_v60 = vld [vmem:[%s12843_s13 + $0xd0] sm:$0xff]  ;;  %v12301_v0 = vld [vmem:[%s12843_s13 + $0xe8] sm:$0xff] }
 0x14b   : > { %v694_v18 = vmul.f32 %v12294_v17, %v11592_v2  ;;  %v691_v34 = vmul.f32 %v12295_v33, %v11590_v61  ;;  %v693_v36 = vmul.f32 %v12296_v35, %v11592_v2  ;;  %v11031_v15 = vld [vmem:[#allocation5 + $0x24c] ss:$24 sps:$4 sm:$0xff]   ;;  %v11035_v33 = vld [vmem:[#allocation5 + $0x2a8] ss:$24 sps:$4 sm:$0xff]   ;;  %v11038_v35 = vld [vmem:[#allocation5 + $0x2d8] ss:$24 sps:$4 sm:$0xff]  }
 0x14c   : > { %v732_v23 = vmul.f32 %v12907_v25, %v689_v11  ;;  %11599 = vrsqrt.f32 %v653_v12  ;;  %v11026_v11 = vld [vmem:[#allocation5 + $0x218] ss:$24 sps:$4 sm:$0xff]   ;;  %v12303_v17 = vld [vmem:[%s12843_s13 + $0xe0] sm:$0xff] }
 0x14d   : > { %1458 = vmatpush1.bf16.msra.mxu0 %v11002_v28  ;;  %v11594_v24 = vpop.eup %11593  ;;  %v735_v28 = vmul.f32 %v12902_v19, %v692_v16  ;;  %v737_v29 = vmul.f32 %v12902_v19, %v694_v18  ;;  %v734_v45 = vmul.f32 %v12907_v25, %v691_v34  ;;  %v11040_v34 = vld [vmem:[#allocation5 + $0x2dc] ss:$24 sps:$4 sm:$0xff]  }
 0x14e   : > { %1459 = vmatprep.subr.bf16.mxu0 %v11007_v37  ;;  %v12977_v32 = vpack.c.bf16 %v732_v23, %v730_v22  ;;  %v11017_v37 = vld [vmem:[#allocation5 + $0x188] ss:$24 sps:$4 sm:$0xff]   ;;  %v698_v43 = vmul.f32 %v12298_v42, %v11594_v24  ;;  %v697_v61 = vmul.f32 %v12300_v60, %v11594_v24  ;;  %v11070_v60 = vld [vmem:[#allocation5 + $0x1c4] ss:$24 sps:$4 sm:$0xff]  }
 0x14f   : > { %v11596_v30 = vpop.eup %11595  ;;  %v12981_v38 = vpack.c.bf16 %v737_v29, %v735_v28  ;;  %v11029_v23 = vld [vmem:[#allocation5 + $0x248] ss:$24 sps:$4 sm:$0xff]   ;;  %v11032_v29 = vld [vmem:[#allocation5 + $0x278] ss:$24 sps:$4 sm:$0xff]  }
 0x150   : > { %1391 = vmatmul.mubr.bf16.gmra.mrb[8].mxu0 %v12949_v39  ;;  %v696_v41 = vmul.f32 %v12297_v40, %v11596_v30  ;;  %v741_v53 = vmul.f32 %v12902_v19, %v698_v43  ;;  %v695_v59 = vmul.f32 %v12299_v58, %v11596_v30  ;;  %v740_v9 = vmul.f32 %v12907_v25, %v697_v61  ;;  %v11037_v30 = vld [vmem:[#allocation5 + $0x2ac] ss:$24 sps:$4 sm:$0xff]   ;;  %v11044_v40 = vld [vmem:[#allocation5 + $0x40] ss:$24 sps:$4 sm:$0xff]   ;;  %v11047_v42 = vld [vmem:[#allocation5 + $0x70] ss:$24 sps:$4 sm:$0xff]  }
 0x151   : > { %1460 = vmatpush1.bf16.msra.mxu0 %v11005_v46  ;;  %1400 = vmatprep.mubr.bf16.mxu0 %v12953_v47  ;;  %v736_v46 = vmul.f32 %v12907_v25, %v693_v36  ;;  %v11598_v48 = vpop.eup %11597  ;;  %v11041_v36 = vld [vmem:[#allocation5 + $0x10] ss:$24 sps:$4 sm:$0xff]   ;;  %v11052_v43 = vld [vmem:[#allocation5 + $0xa4] ss:$24 sps:$4 sm:$0xff]   ;;  %v11067_v58 = vld [vmem:[#allocation5 + $0x194] ss:$24 sps:$4 sm:$0xff]  }
 0x152   : > { %1461 = vmatprep.subr.bf16.mxu0 %v11010_v56  ;;  %v739_v52 = vmul.f32 %v12902_v19, %v696_v41  ;;  %v11025_v56 = vld [vmem:[#allocation5 + $0x1ec] ss:$24 sps:$4 sm:$0xff]   ;;  %v738_v8 = vmul.f32 %v12907_v25, %v695_v59  ;;  %v11065_v59 = vld [vmem:[#allocation5 + $0x190] ss:$24 sps:$4 sm:$0xff]   ;;  %v11068_v61 = vld [vmem:[#allocation5 + $0x1c0] ss:$24 sps:$4 sm:$0xff]  }
 0x153   : > { %v12991_v57 = vpack.c.bf16 %v736_v46, %v734_v45  ;;  %v11049_v41 = vld [vmem:[#allocation5 + $0x74] ss:$24 sps:$4 sm:$0xff]   ;;  %v11053_v46 = vld [vmem:[#allocation5 + $0xd0] ss:$24 sps:$4 sm:$0xff]  }
 0x154   : > { %v12995_v63 = vpack.c.bf16 %v741_v53, %v739_v52  ;;  %v13005_v16 = vpack.c.bf16 %v740_v9, %v738_v8  ;;  %v11055_v45 = vld [vmem:[#allocation5 + $0xd4] ss:$24 sps:$4 sm:$0xff]   ;;  %v11059_v53 = vld [vmem:[#allocation5 + $0x130] ss:$24 sps:$4 sm:$0xff]   ;;  %v11082_v8 = vld [vmem:[#allocation5 + $0x284] ss:$24 sps:$4 sm:$0xff]  }
 0x155   : > { %1462 = vmatpush1.bf16.msra.mxu0 %v11008_v62  ;;  %v11023_v62 = vld [vmem:[#allocation5 + $0x1e8] ss:$24 sps:$4 sm:$0xff]   ;;  %v11061_v52 = vld [vmem:[#allocation5 + $0x134] ss:$24 sps:$4 sm:$0xff]  }
 0x156   : > { %1463 = vmatprep.subr.bf16.mxu0 %v11013_v3  ;;  %v11600_v55 = vpop.eup %11599  ;;  %v12302_v3 = vld [vmem:[%s12843_s13 + $0xf8] sm:$0xff] }
 0x157   : > { %v700_v2 = vmul.f32 %v12301_v0, %v11600_v55  ;;  %v702_v4 = vmul.f32 %v12302_v3, %v11598_v48  ;;  %v699_v18 = vmul.f32 %v12303_v17, %v11600_v55  ;;  %v11064_v55 = vld [vmem:[#allocation5 + $0x164] ss:$24 sps:$4 sm:$0xff]   ;;  %v11071_v0 = vld [vmem:[#allocation5 + $0x1f0] ss:$24 sps:$4 sm:$0xff]   ;;  %v11074_v3 = vld [vmem:[#allocation5 + $0x220] ss:$24 sps:$4 sm:$0xff]  }
 0x158   : > { %1401 = vmatmul.mubr.bf16.gmra.mrb[12].mxu0 %v12963_v5  ;;  %v11080_v9 = vld [vmem:[#allocation5 + $0x280] ss:$24 sps:$4 sm:$0xff]  }
 0x159   : > { %1464 = vmatpush1.bf16.msra.mxu0 %v11011_v13  ;;  %1410 = vmatprep.mubr.bf16.mxu0 %v12967_v14  ;;  %v743_v12 = vmul.f32 %v12902_v19, %v700_v2  ;;  %v745_v13 = vmul.f32 %v12902_v19, %v702_v4  ;;  %v742_v28 = vmul.f32 %v12907_v25, %v699_v18  ;;  %v11076_v2 = vld [vmem:[#allocation5 + $0x224] ss:$24 sps:$4 sm:$0xff]   ;;  %v11079_v4 = vld [vmem:[#allocation5 + $0x254] ss:$24 sps:$4 sm:$0xff]  }
 0x15a   : > { %1465 = vmatprep.subr.bf16.mxu0 %v11016_v21  ;;  %v12304_v21 = vld [vmem:[%s12843_s13 + $0xf0] sm:$0xff] }
 0x15b   : > { %v701_v22 = vmul.f32 %v12304_v21, %v11598_v48  ;;  %v13009_v24 = vpack.c.bf16 %v745_v13, %v743_v12  ;;  %v11058_v48 = vld [vmem:[#allocation5 + $0x104] ss:$24 sps:$4 sm:$0xff]   ;;  %v11083_v12 = vld [vmem:[#allocation5 + $0x2b0] ss:$24 sps:$4 sm:$0xff]  }
 0x15c   : > { %v11088_v13 = vld [vmem:[#allocation5 + $0x2e4] ss:$24 sps:$4 sm:$0xff]  }
 0x15d   : > { %1466 = vmatpush1.bf16.msra.mxu0 %v11014_v26  ;;  %v11034_v26 = vld [vmem:[#allocation5 + $0x27c] ss:$24 sps:$4 sm:$0xff]   ;;  %v744_v19 = vmul.f32 %v12907_v25, %v701_v22 }
 0x15e   : > { %1467 = vmatprep.subr.bf16.mxu0 %v11019_v31  ;;  %v11043_v25 = vld [vmem:[#allocation5 + $0x14] ss:$24 sps:$4 sm:$0xff]  }
 0x15f   : > { %v13015_v31 = vpack.c.bf16 %v744_v19, %v742_v28 }
 0x160   : > { %1411 = vmatmul.mubr.bf16.gmra.mrb[16].mxu0 %v12977_v32 }
 0x161   : > { %1468 = vmatpush1.bf16.msra.mxu0 %v11017_v37  ;;  %1420 = vmatprep.mubr.bf16.mxu0 %v12981_v38  ;;  %v11046_v37 = vld [vmem:[#allocation5 + $0x44] ss:$24 sps:$4 sm:$0xff]  }
 0x162   : > { %1469 = vmatprep.subr.bf16.mxu0 %v11022_v44  ;;  %v11050_v44 = vld [vmem:[#allocation5 + $0xa0] ss:$24 sps:$4 sm:$0xff]  }
 0x165   : > { %1470 = vmatpush1.bf16.msra.mxu0 %v11020_v51  ;;  %v11056_v51 = vld [vmem:[#allocation5 + $0x100] ss:$24 sps:$4 sm:$0xff]  }
 0x166   : > { %1471 = vmatprep.subr.bf16.mxu0 %v11025_v56  ;;  %v11062_v56 = vld [vmem:[#allocation5 + $0x160] ss:$24 sps:$4 sm:$0xff]  }
 0x168   : > { %1421 = vmatmul.mubr.bf16.gmra.mrb[20].mxu0 %v12991_v57 }
 0x169   : > { %1472 = vmatpush1.bf16.msra.mxu0 %v11023_v62  ;;  %1430 = vmatprep.mubr.bf16.mxu0 %v12995_v63  ;;  %v11073_v62 = vld [vmem:[#allocation5 + $0x1f4] ss:$24 sps:$4 sm:$0xff]  }
 0x16a   : > { %1473 = vmatprep.subr.bf16.mxu0 %v11028_v6  ;;  %v11077_v6 = vld [vmem:[#allocation5 + $0x250] ss:$24 sps:$4 sm:$0xff]  }
 0x16d   : > { %1474 = vmatpush1.bf16.msra.mxu0 %v11026_v11  ;;  %v11085_v11 = vld [vmem:[#allocation5 + $0x2b4] ss:$24 sps:$4 sm:$0xff]  }
 0x16e   : > { %1475 = vmatprep.subr.bf16.mxu0 %v11031_v15  ;;  %v11086_v15 = vld [vmem:[#allocation5 + $0x2e0] ss:$24 sps:$4 sm:$0xff]  }
 0x170   : > { %1431 = vmatmul.mubr.bf16.gmra.mrb[24].mxu0 %v13005_v16 }
 0x171   : > { %1476 = vmatpush1.bf16.msra.mxu0 %v11029_v23  ;;  %1440 = vmatprep.mubr.bf16.mxu0 %v13009_v24 }
 0x172   : > { %1477 = vmatprep.subr.bf16.mxu0 %v11034_v26 }
 0x175   : > { %1478 = vmatpush1.bf16.msra.mxu0 %v11032_v29 }
 0x176   : > { %1479 = vmatprep.subr.bf16.mxu0 %v11037_v30 }
 0x178   : > { %1441 = vmatmul.mubr.bf16.gmra.mrb[28].mxu0 %v13015_v31 }
 0x179   : > { %1480 = vmatpush1.bf16.msra.mxu0 %v11035_v33  ;;  %1483 = vmatprep.mubr.bf16.mxu0 %v12918_v49 }
 0x17a   : > { %1481 = vmatprep.subr.bf16.mxu0 %v11040_v34 }
 0x17d   : > { %1482 = vmatpush1.bf16.msra.mxu0 %v11038_v35 }
 0x17e   : > { %1564 = vmatprep.subr.bf16.mxu0 %v11043_v25 }
 0x180   : > { %1484 = vmatmul.mubr.bf16.vlgmr.msra.gmra.mrb[32].mxu0 %v12920_v50 }
 0x181   : > { %1493 = vmatprep.mubr.bf16.mxu0 %v12923_v54  ;;  %1565 = vmatpush1.bf16.msra.mxu0 %v11041_v36 }
 0x182   : > { %1566 = vmatprep.subr.bf16.mxu0 %v11046_v37 }
 0x185   : > { %1567 = vmatpush1.bf16.msra.mxu0 %v11044_v40 }
 0x186   : > { %1568 = vmatprep.subr.bf16.mxu0 %v11049_v41 }
 0x188   : > { %1494 = vmatmul.mubr.bf16.gmra.mrb[36].mxu0 %v12941_v27 }
 0x189   : > { %1503 = vmatprep.mubr.bf16.mxu0 %v12937_v20  ;;  %1569 = vmatpush1.bf16.msra.mxu0 %v11047_v42 }
 0x18a   : > { %1570 = vmatprep.subr.bf16.mxu0 %v11052_v43 }
 0x18d   : > { %1571 = vmatpush1.bf16.msra.mxu0 %v11050_v44 }
 0x18e   : > { %1572 = vmatprep.subr.bf16.mxu0 %v11055_v45 }
 0x190   : > { %1504 = vmatmul.mubr.bf16.gmra.mrb[40].mxu0 %v12949_v39 }
 0x191   : > { %1513 = vmatprep.mubr.bf16.mxu0 %v12953_v47  ;;  %1573 = vmatpush1.bf16.msra.mxu0 %v11053_v46 }
 0x192   : > { %1574 = vmatprep.subr.bf16.mxu0 %v11058_v48 }
 0x195   : > { %1575 = vmatpush1.bf16.msra.mxu0 %v11056_v51 }
 0x196   : > { %1576 = vmatprep.subr.bf16.mxu0 %v11061_v52 }
 0x198   : > { %1514 = vmatmul.mubr.bf16.gmra.mrb[44].mxu0 %v12963_v5 }
 0x199   : > { %1523 = vmatprep.mubr.bf16.mxu0 %v12967_v14  ;;  %1577 = vmatpush1.bf16.msra.mxu0 %v11059_v53 }
 0x19a   : > { %1578 = vmatprep.subr.bf16.mxu0 %v11064_v55 }
 0x19d   : > { %1579 = vmatpush1.bf16.msra.mxu0 %v11062_v56 }
 0x19e   : > { %1580 = vmatprep.subr.bf16.mxu0 %v11067_v58 }
 0x1a0   : > { %1524 = vmatmul.mubr.bf16.gmra.mrb[48].mxu0 %v12977_v32 }
 0x1a1   : > { %1533 = vmatprep.mubr.bf16.mxu0 %v12981_v38  ;;  %1581 = vmatpush1.bf16.msra.mxu0 %v11065_v59 }
 0x1a2   : > { %1582 = vmatprep.subr.bf16.mxu0 %v11070_v60 }
 0x1a5   : > { %1583 = vmatpush1.bf16.msra.mxu0 %v11068_v61 }
 0x1a6   : > { %1584 = vmatprep.subr.bf16.mxu0 %v11073_v62 }
 0x1a8   : > { %1534 = vmatmul.mubr.bf16.gmra.mrb[52].mxu0 %v12991_v57 }
 0x1a9   : > { %1543 = vmatprep.mubr.bf16.mxu0 %v12995_v63  ;;  %1585 = vmatpush1.bf16.msra.mxu0 %v11071_v0 }
 0x1aa   : > { %1586 = vmatprep.subr.bf16.mxu0 %v11076_v2 }
 0x1ad   : > { %1587 = vmatpush1.bf16.msra.mxu0 %v11074_v3 }
 0x1ae   : > { %1588 = vmatprep.subr.bf16.mxu0 %v11079_v4 }
 0x1b0   : > { %1544 = vmatmul.mubr.bf16.gmra.mrb[56].mxu0 %v13005_v16 }
 0x1b1   : > { %1553 = vmatprep.mubr.bf16.mxu0 %v13009_v24  ;;  %1589 = vmatpush1.bf16.msra.mxu0 %v11077_v6 }
 0x1b2   : > { %1590 = vmatprep.subr.bf16.mxu0 %v11082_v8 }
 0x1b5   : > { %1591 = vmatpush1.bf16.msra.mxu0 %v11080_v9 }
 0x1b6   : > { %1592 = vmatprep.subr.bf16.mxu0 %v11085_v11 }
 0x1b8   : > { %1554 = vmatmul.mubr.bf16.gmra.mrb[60].mxu0 %v13015_v31 }
 0x1b9   : > { %1593 = vmatpush1.bf16.msra.mxu0 %v11083_v12  ;;  %1596 = vmatprep.mubr.bf16.mxu0 %v12918_v49 }
 0x1ba   : > { %1594 = vmatprep.subr.bf16.mxu0 %v11088_v13 }
 0x1bd   : > { %1595 = vmatpush1.bf16.msra.mxu0 %v11086_v15 }
 0x1c0   : > { %1597 = vmatmul.mubr.bf16.vlgmr.msra.gmra.mrb[64].mxu0 %v12920_v50 }
 0x1c1   : > { %1606 = vmatprep.mubr.bf16.mxu0 %v12923_v54 }
 0x1c8   : > { %1607 = vmatmul.mubr.bf16.gmra.mrb[68].mxu0 %v12941_v27 }
 0x1c9   : > { %1616 = vmatprep.mubr.bf16.mxu0 %v12937_v20 }
 0x1d0   : > { %1617 = vmatmul.mubr.bf16.gmra.mrb[72].mxu0 %v12949_v39 }
 0x1d1   : > { %1626 = vmatprep.mubr.bf16.mxu0 %v12953_v47 }
 0x1d8   : > { %1627 = vmatmul.mubr.bf16.gmra.mrb[76].mxu0 %v12963_v5 }
 0x1d9   : > { %1636 = vmatprep.mubr.bf16.mxu0 %v12967_v14 }
 0x1e0   : > { %1637 = vmatmul.mubr.bf16.gmra.mrb[80].mxu0 %v12977_v32 }
 0x1e1   : > { %1646 = vmatprep.mubr.bf16.mxu0 %v12981_v38 }
 0x1e8   : > { %1647 = vmatmul.mubr.bf16.gmra.mrb[84].mxu0 %v12991_v57 }
 0x1e9   : > { %1656 = vmatprep.mubr.bf16.mxu0 %v12995_v63 }
 0x1f0   : > { %1657 = vmatmul.mubr.bf16.gmra.mrb[88].mxu0 %v13005_v16 }
 0x1f1   : > { %1666 = vmatprep.mubr.bf16.mxu0 %v13009_v24 }
 0x1f8   : > { %1667 = vmatmul.mubr.bf16.gmra.mrb[92].mxu0 %v13015_v31 }
 0x213   : > { %v13050_v49 = vpop.f32.mrb[0].mxu0 }
 0x214   : > { %18493 = vst [vmem:[#allocation20_spill] sm:$0xff] %v13050_v49  ;;  %1757 = vrot.lane.b32.xlu0 %v13050_v49, %s12575_s30  ;;  %v13054_v50 = vpop.f32.mrb[1].mxu0 }
 0x215   : > { %18494 = vst [vmem:[#allocation21_spill] sm:$0xff] %v13054_v50  ;;  %v13056_v54 = vpop.f32.mrb[2].mxu0 }
 0x216   : > { %18495 = vst [vmem:[#allocation22_spill] sm:$0xff] %v13056_v54  ;;  %1759 = vrot.lane.b32.xlu1 %v13056_v54, %s12575_s30  ;;  %v13060_v20 = vpop.f32.mrb[3].mxu0 }
 0x217   : > { %18496 = vst [vmem:[#allocation23_spill] sm:$0xff] %v13060_v20 }
 0x218   : > { %1805 = vrot.lane.b32.xlu0 %v13050_v49, %s12576_s12 }
 0x21a   : > { %1807 = vrot.lane.b32.xlu1 %v13056_v54, %s12576_s12 }
 0x21b   : > { %v13066_v27 = vpop.f32.mrb[4].mxu0 }
 0x21c   : > { %v13068_v39 = vpop.f32.mrb[5].mxu0 }
 0x21d   : > { %18497 = vst [vmem:[#allocation24_spill] sm:$0xff] %v13068_v39  ;;  %v13070_v47 = vpop.f32.mrb[6].mxu0 }
 0x21e   : > { %v13072_v5 = vpop.f32.mrb[7].mxu0 }
 0x21f   : > { %18498 = vst [vmem:[#allocation25_spill] sm:$0xff] %v13072_v5 }
 0x223   : > { %v13074_v14 = vpop.f32.mrb[8].mxu0 }
 0x224   : > { %v13076_v32 = vpop.f32.mrb[9].mxu0 }
 0x225   : > { %18499 = vst [vmem:[#allocation26_spill] sm:$0xff] %v13076_v32  ;;  %v13078_v38 = vpop.f32.mrb[10].mxu0 }
 0x226   : > { %v13080_v57 = vpop.f32.mrb[11].mxu0 }
 0x227   : > { %18500 = vst [vmem:[#allocation27_spill] sm:$0xff] %v13080_v57 }
 0x22b   : > { %v13082_v63 = vpop.f32.mrb[12].mxu0 }
 0x22c   : > { %v13084_v16 = vpop.f32.mrb[13].mxu0 }
 0x22d   : > { %18501 = vst [vmem:[#allocation28_spill] sm:$0xff] %v13084_v16  ;;  %v13086_v17 = vpop.f32.mrb[14].mxu0 }
 0x22e   : > { %v13088_v18 = vpop.f32.mrb[15].mxu0 }
 0x22f   : > { %18502 = vst [vmem:[#allocation29_spill] sm:$0xff] %v13088_v18 }
 0x233   : > { %v13090_v21 = vpop.f32.mrb[16].mxu0 }
 0x234   : > { %v13092_v22 = vpop.f32.mrb[17].mxu0 }
 0x235   : > { %18503 = vst [vmem:[#allocation30_spill] sm:$0xff] %v13092_v22  ;;  %v13094_v23 = vpop.f32.mrb[18].mxu0 }
 0x236   : > { %v13096_v24 = vpop.f32.mrb[19].mxu0 }
 0x237   : > { %18504 = vst [vmem:[#allocation31_spill] sm:$0xff] %v13096_v24 }
 0x23b   : > { %v13098_v26 = vpop.f32.mrb[20].mxu0 }
 0x23c   : > { %18505 = vst [vmem:[#allocation32_spill] sm:$0xff] %v13098_v26  ;;  %v13100_v28 = vpop.f32.mrb[21].mxu0 }
 0x23d   : > { %18506 = vst [vmem:[#allocation33_spill] sm:$0xff] %v13100_v28  ;;  %v13102_v19 = vpop.f32.mrb[22].mxu0  ;;  %v13261_v28 = vld [vmem:[%s18188_s2 + $0x8] sm:$0xff] }
 0x23e   : > { %18507 = vst [vmem:[#allocation34_spill] sm:$0xff] %v13102_v19  ;;  %v13104_v29 = vpop.f32.mrb[23].mxu0  ;;  %18545 = vst [vmem:[#allocation72_spill] sm:$0xff] %v13261_v28 }
 0x23f   : > { %18508 = vst [vmem:[#allocation35_spill] sm:$0xff] %v13104_v29 }
 0x243   : > { %v13106_v30 = vpop.f32.mrb[24].mxu0 }
 0x244   : > { %18509 = vst [vmem:[#allocation36_spill] sm:$0xff] %v13106_v30  ;;  %v13108_v31 = vpop.f32.mrb[25].mxu0 }
 0x245   : > { %18510 = vst [vmem:[#allocation37_spill] sm:$0xff] %v13108_v31  ;;  %v13110_v33 = vpop.f32.mrb[26].mxu0 }
 0x246   : > { %18511 = vst [vmem:[#allocation38_spill] sm:$0xff] %v13110_v33  ;;  %v13112_v34 = vpop.f32.mrb[27].mxu0 }
 0x247   : > { %18512 = vst [vmem:[#allocation39_spill] sm:$0xff] %v13112_v34 }
 0x24b   : > { %v13114_v35 = vpop.f32.mrb[28].mxu0 }
 0x24c   : > { %18513 = vst [vmem:[#allocation40_spill] sm:$0xff] %v13114_v35  ;;  %v13116_v25 = vpop.f32.mrb[29].mxu0 }
 0x24d   : > { %18514 = vst [vmem:[#allocation41_spill] sm:$0xff] %v13116_v25  ;;  %v13118_v36 = vpop.f32.mrb[30].mxu0  ;;  %v13246_v25 = vld [vmem:[%s18187_s1] sm:$0xff] }
 0x24e   : > { %18515 = vst [vmem:[#allocation42_spill] sm:$0xff] %v13118_v36  ;;  %v13120_v37 = vpop.f32.mrb[31].mxu0 }
 0x24f   : > { %18516 = vst [vmem:[#allocation43_spill] sm:$0xff] %v13120_v37  ;;  %v13251_v37 = vld [vmem:[%s18187_s1 + $0x8] sm:$0xff] }
 0x250   : > { %v1726_v39 = vmul.f32 %v13056_v54, %v13251_v37 }
 0x253   : > { %v13122_v40 = vpop.f32.mrb[32].mxu0 }
 0x254   : > { %18517 = vst [vmem:[#allocation44_spill] sm:$0xff] %v13122_v40  ;;  %1982 = vrot.lane.b32.xlu1 %v13122_v40, %s12576_s12  ;;  %1934 = vrot.lane.b32.xlu0 %v13122_v40, %s12575_s30  ;;  %v13128_v41 = vpop.f32.mrb[33].mxu0 }
 0x255   : > { %18518 = vst [vmem:[#allocation45_spill] sm:$0xff] %v13128_v41  ;;  %v13130_v42 = vpop.f32.mrb[34].mxu0 }
 0x256   : > { %18519 = vst [vmem:[#allocation46_spill] sm:$0xff] %v13130_v42  ;;  %v13132_v43 = vpop.f32.mrb[35].mxu0 }
 0x257   : > { %18520 = vst [vmem:[#allocation47_spill] sm:$0xff] %v13132_v43 }
 0x258   : > { %1936 = vrot.lane.b32.xlu1 %v13130_v42, %s12575_s30 }
 0x25b   : > { %v13136_v44 = vpop.f32.mrb[36].mxu0 }
 0x25c   : > { %18521 = vst [vmem:[#allocation48_spill] sm:$0xff] %v13136_v44  ;;  %1984 = vrot.lane.b32.xlu1 %v13130_v42, %s12576_s12  ;;  %1938 = vrot.lane.b32.xlu0 %v13136_v44, %s12575_s30  ;;  %v13142_v45 = vpop.f32.mrb[37].mxu0 }
 0x25d   : > { %18522 = vst [vmem:[#allocation49_spill] sm:$0xff] %v13142_v45  ;;  %v13144_v46 = vpop.f32.mrb[38].mxu0 }
 0x25e   : > { %18523 = vst [vmem:[#allocation50_spill] sm:$0xff] %v13144_v46  ;;  %v13146_v48 = vpop.f32.mrb[39].mxu0 }
 0x25f   : > { %18524 = vst [vmem:[#allocation51_spill] sm:$0xff] %v13146_v48 }
 0x260   : > { %1986 = vrot.lane.b32.xlu0 %v13136_v44, %s12576_s12  ;;  %1940 = vrot.lane.b32.xlu1 %v13144_v46, %s12575_s30 }
 0x263   : > { %v13152_v51 = vpop.f32.mrb[40].mxu0 }
 0x264   : > { %18525 = vst [vmem:[#allocation52_spill] sm:$0xff] %v13152_v51  ;;  %1988 = vrot.lane.b32.xlu1 %v13144_v46, %s12576_s12  ;;  %1942 = vrot.lane.b32.xlu0 %v13152_v51, %s12575_s30  ;;  %v13158_v52 = vpop.f32.mrb[41].mxu0 }
 0x265   : > { %18526 = vst [vmem:[#allocation53_spill] sm:$0xff] %v13158_v52  ;;  %v13160_v53 = vpop.f32.mrb[42].mxu0  ;;  %v13394_v52 = vld [vmem:[%s18187_s1 + $0x10] sm:$0xff] }
 0x266   : > { %18527 = vst [vmem:[#allocation54_spill] sm:$0xff] %v13160_v53  ;;  %v13162_v55 = vpop.f32.mrb[43].mxu0 }
 0x267   : > { %18528 = vst [vmem:[#allocation55_spill] sm:$0xff] %v13162_v55 }
 0x268   : > { %1990 = vrot.lane.b32.xlu0 %v13152_v51, %s12576_s12  ;;  %1944 = vrot.lane.b32.xlu1 %v13160_v53, %s12575_s30 }
 0x26b   : > { %v13168_v56 = vpop.f32.mrb[44].mxu0 }
 0x26c   : > { %18529 = vst [vmem:[#allocation56_spill] sm:$0xff] %v13168_v56  ;;  %1992 = vrot.lane.b32.xlu1 %v13160_v53, %s12576_s12  ;;  %1946 = vrot.lane.b32.xlu0 %v13168_v56, %s12575_s30  ;;  %v13174_v58 = vpop.f32.mrb[45].mxu0 }
 0x26d   : > { %18530 = vst [vmem:[#allocation57_spill] sm:$0xff] %v13174_v58  ;;  %v13176_v59 = vpop.f32.mrb[46].mxu0 }
 0x26e   : > { %18531 = vst [vmem:[#allocation58_spill] sm:$0xff] %v13176_v59  ;;  %v13178_v60 = vpop.f32.mrb[47].mxu0 }
 0x26f   : > { %18532 = vst [vmem:[#allocation59_spill] sm:$0xff] %v13178_v60 }
 0x270   : > { %1994 = vrot.lane.b32.xlu0 %v13168_v56, %s12576_s12  ;;  %1948 = vrot.lane.b32.xlu1 %v13176_v59, %s12575_s30 }
 0x273   : > { %v13184_v61 = vpop.f32.mrb[48].mxu0 }
 0x274   : > { %18533 = vst [vmem:[#allocation60_spill] sm:$0xff] %v13184_v61  ;;  %1996 = vrot.lane.b32.xlu1 %v13176_v59, %s12576_s12  ;;  %1950 = vrot.lane.b32.xlu0 %v13184_v61, %s12575_s30  ;;  %v13190_v62 = vpop.f32.mrb[49].mxu0 }
 0x275   : > { %18534 = vst [vmem:[#allocation61_spill] sm:$0xff] %v13190_v62  ;;  %v13192_v0 = vpop.f32.mrb[50].mxu0 }
 0x276   : > { %18535 = vst [vmem:[#allocation62_spill] sm:$0xff] %v13192_v0  ;;  %v13194_v2 = vpop.f32.mrb[51].mxu0 }
 0x277   : > { %18536 = vst [vmem:[#allocation63_spill] sm:$0xff] %v13194_v2 }
 0x278   : > { %1998 = vrot.lane.b32.xlu0 %v13184_v61, %s12576_s12  ;;  %1952 = vrot.lane.b32.xlu1 %v13192_v0, %s12575_s30 }
 0x27b   : > { %v13200_v3 = vpop.f32.mrb[52].mxu0 }
 0x27c   : > { %18537 = vst [vmem:[#allocation64_spill] sm:$0xff] %v13200_v3  ;;  %2000 = vrot.lane.b32.xlu1 %v13192_v0, %s12576_s12  ;;  %1954 = vrot.lane.b32.xlu0 %v13200_v3, %s12575_s30  ;;  %v13206_v4 = vpop.f32.mrb[53].mxu0 }
 0x27d   : > { %18538 = vst [vmem:[#allocation65_spill] sm:$0xff] %v13206_v4  ;;  %v13208_v6 = vpop.f32.mrb[54].mxu0 }
 0x27e   : > { %18539 = vst [vmem:[#allocation66_spill] sm:$0xff] %v13208_v6  ;;  %v13210_v8 = vpop.f32.mrb[55].mxu0 }
 0x27f   : > { %18540 = vst [vmem:[#allocation67_spill] sm:$0xff] %v13210_v8 }
 0x280   : > { %2002 = vrot.lane.b32.xlu0 %v13200_v3, %s12576_s12  ;;  %1956 = vrot.lane.b32.xlu1 %v13208_v6, %s12575_s30 }
 0x283   : > { %v13216_v9 = vpop.f32.mrb[56].mxu0 }
 0x284   : > { %18541 = vst [vmem:[#allocation68_spill] sm:$0xff] %v13216_v9  ;;  %2004 = vrot.lane.b32.xlu1 %v13208_v6, %s12576_s12  ;;  %1958 = vrot.lane.b32.xlu0 %v13216_v9, %s12575_s30  ;;  %v13222_v11 = vpop.f32.mrb[57].mxu0 }
 0x285   : > { %18542 = vst [vmem:[#allocation69_spill] sm:$0xff] %v13222_v11  ;;  %v13224_v12 = vpop.f32.mrb[58].mxu0 }
 0x286   : > { %18543 = vst [vmem:[#allocation70_spill] sm:$0xff] %v13224_v12  ;;  %v13226_v13 = vpop.f32.mrb[59].mxu0  ;;  %v13228_v15 = vpop.permute.xlu0 %1757 }
 0x287   : > { %18544 = vst [vmem:[#allocation71_spill] sm:$0xff] %v13226_v13 }
 0x288   : > { %v13230_v1 = vpop.permute.xlu1 %1759  ;;  %2006 = vrot.lane.b32.xlu0 %v13216_v9, %s12576_s12  ;;  %1960 = vrot.lane.b32.xlu1 %v13224_v12, %s12575_s30 }
 0x28a   : > { %v13241_v10 = vpop.permute.xlu0 %1805 }
 0x28b   : > { %v1854_v31 = vsel %vm1853_vm0, %v13228_v15, %v13241_v10  ;;  %v13256_v34 = vpop.f32.mrb[60].mxu0 }
 0x28c   : > { %v1870_v29 = vmul.f32 %v1854_v31, %v13239_v7  ;;  %v13264_v22 = vpop.permute.xlu1 %1807  ;;  %2008 = vrot.lane.b32.xlu1 %v13224_v12, %s12576_s12  ;;  %1962 = vrot.lane.b32.xlu0 %v13256_v34, %s12575_s30  ;;  %v13270_v24 = vpop.f32.mrb[61].mxu0  ;;  %v1725_v31 = vmul.f32 %v13050_v49, %v13246_v25 }
 0x28d   : > { %18546 = vst [vmem:[#allocation73_spill] sm:$0xff] %v13270_v24  ;;  %v1855_v16 = vsel %vm1853_vm0, %v13230_v1, %v13264_v22  ;;  %v13275_v18 = vpop.f32.mrb[62].mxu0 }
 0x28e   : > { %18547 = vst [vmem:[#allocation74_spill] sm:$0xff] %v13275_v18  ;;  %v1871_v32 = vmul.f32 %v1855_v16, %v13261_v28  ;;  %v13278_v57 = vpop.f32.mrb[63].mxu0  ;;  %v1886_v5 = vadd.f32 %v1870_v29, %v1725_v31 }
 0x28f   : > { %18548 = vst [vmem:[#allocation75_spill] sm:$0xff] %v13278_v57 }
 0x290   : > { %2010 = vrot.lane.b32.xlu0 %v13256_v34, %s12576_s12  ;;  %1964 = vrot.lane.b32.xlu1 %v13275_v18, %s12575_s30  ;;  %v1887_v50 = vadd.f32 %v1871_v32, %v1726_v39 }
 0x292   : > { %v2078_v20 = vpack.c.bf16 %v1887_v50, %v1886_v5 }
 0x293   : > { %v1598_v24 = vpop.f32.mrb[64].mxu0 }
 0x294   : > { %1761 = vrot.lane.b32.xlu0 %v13066_v27, %s12575_s30  ;;  %2012 = vrot.lane.b32.xlu1 %v13275_v18, %s12576_s12  ;;  %v1600_v16 = vpop.f32.mrb[65].mxu0 }
 0x295   : > { %10358 = vmatprep.mubr.msk.bf16.mxu1 %vm2094_vm1, %v2078_v20  ;;  %v1602_v57 = vpop.f32.mrb[66].mxu0 }
 0x296   : > { %v13293_v11 = vpack.c.bf16 %v1602_v57, %v1598_v24  ;;  %v1604_v13 = vpop.f32.mrb[67].mxu0 }
 0x297   : > { %v13295_v4 = vpack.c.bf16 %v1604_v13, %v1600_v16 }
 0x298   : > { %18549 = vst [vmem:[#allocation76_spill] sm:$0xff] %v13293_v11  ;;  %1809 = vrot.lane.b32.xlu0 %v13066_v27, %s12576_s12  ;;  %1763 = vrot.lane.b32.xlu1 %v13070_v47, %s12575_s30 }
 0x299   : > { %18550 = vst [vmem:[#allocation77_spill] sm:$0xff] %v13295_v4 }
 0x29b   : > { %v1608_v50 = vpop.f32.mrb[68].mxu0 }
 0x29c   : > { %1765 = vrot.lane.b32.xlu0 %v13074_v14, %s12575_s30  ;;  %1811 = vrot.lane.b32.xlu1 %v13070_v47, %s12576_s12  ;;  %v1610_v20 = vpop.f32.mrb[69].mxu0 }
 0x29d   : > { %v1612_v39 = vpop.f32.mrb[70].mxu0 }
 0x29e   : > { %v13305_v5 = vpack.c.bf16 %v1612_v39, %v1608_v50  ;;  %v1614_v32 = vpop.f32.mrb[71].mxu0 }
 0x29f   : > { %v13307_v57 = vpack.c.bf16 %v1614_v32, %v1610_v20 }
 0x2a0   : > { %18551 = vst [vmem:[#allocation78_spill] sm:$0xff] %v13305_v5  ;;  %1813 = vrot.lane.b32.xlu0 %v13074_v14, %s12576_s12  ;;  %1767 = vrot.lane.b32.xlu1 %v13078_v38, %s12575_s30 }
 0x2a1   : > { %18552 = vst [vmem:[#allocation79_spill] sm:$0xff] %v13307_v57 }
 0x2a3   : > { %v1618_v24 = vpop.f32.mrb[72].mxu0 }
 0x2a4   : > { %1769 = vrot.lane.b32.xlu0 %v13082_v63, %s12575_s30  ;;  %1815 = vrot.lane.b32.xlu1 %v13078_v38, %s12576_s12  ;;  %v1620_v29 = vpop.f32.mrb[73].mxu0 }
 0x2a5   : > { %v1622_v13 = vpop.f32.mrb[74].mxu0 }
 0x2a6   : > { %v13317_v31 = vpack.c.bf16 %v1622_v13, %v1618_v24  ;;  %v1624_v16 = vpop.f32.mrb[75].mxu0 }
 0x2a7   : > { %v13319_v50 = vpack.c.bf16 %v1624_v16, %v1620_v29 }
 0x2a8   : > { %18553 = vst [vmem:[#allocation80_spill] sm:$0xff] %v13317_v31  ;;  %1817 = vrot.lane.b32.xlu0 %v13082_v63, %s12576_s12  ;;  %1771 = vrot.lane.b32.xlu1 %v13086_v17, %s12575_s30 }
 0x2a9   : > { %18554 = vst [vmem:[#allocation81_spill] sm:$0xff] %v13319_v50 }
 0x2ab   : > { %v1628_v20 = vpop.f32.mrb[76].mxu0 }
 0x2ac   : > { %1773 = vrot.lane.b32.xlu0 %v13090_v21, %s12575_s30  ;;  %1819 = vrot.lane.b32.xlu1 %v13086_v17, %s12576_s12  ;;  %v1630_v39 = vpop.f32.mrb[77].mxu0 }
 0x2ad   : > { %v1632_v32 = vpop.f32.mrb[78].mxu0 }
 0x2ae   : > { %v13329_v24 = vpack.c.bf16 %v1632_v32, %v1628_v20  ;;  %v1634_v13 = vpop.f32.mrb[79].mxu0 }
 0x2af   : > { %v13331_v29 = vpack.c.bf16 %v1634_v13, %v1630_v39 }
 0x2b0   : > { %18555 = vst [vmem:[#allocation82_spill] sm:$0xff] %v13329_v24  ;;  %1821 = vrot.lane.b32.xlu0 %v13090_v21, %s12576_s12  ;;  %1775 = vrot.lane.b32.xlu1 %v13094_v23, %s12575_s30 }
 0x2b1   : > { %18556 = vst [vmem:[#allocation83_spill] sm:$0xff] %v13331_v29 }
 0x2b3   : > { %v1638_v16 = vpop.f32.mrb[80].mxu0 }
 0x2b4   : > { %1777 = vrot.lane.b32.xlu0 %v13098_v26, %s12575_s30  ;;  %1823 = vrot.lane.b32.xlu1 %v13094_v23, %s12576_s12  ;;  %v1640_v50 = vpop.f32.mrb[81].mxu0 }
 0x2b5   : > { %v1642_v57 = vpop.f32.mrb[82].mxu0 }
 0x2b6   : > { %v13341_v20 = vpack.c.bf16 %v1642_v57, %v1638_v16  ;;  %v1644_v32 = vpop.f32.mrb[83].mxu0 }
 0x2b7   : > { %v13343_v39 = vpack.c.bf16 %v1644_v32, %v1640_v50 }
 0x2b8   : > { %18557 = vst [vmem:[#allocation84_spill] sm:$0xff] %v13341_v20  ;;  %1825 = vrot.lane.b32.xlu0 %v13098_v26, %s12576_s12  ;;  %1779 = vrot.lane.b32.xlu1 %v13102_v19, %s12575_s30 }
 0x2b9   : > { %18558 = vst [vmem:[#allocation85_spill] sm:$0xff] %v13343_v39 }
 0x2bb   : > { %v1648_v13 = vpop.f32.mrb[84].mxu0 }
 0x2bc   : > { %1781 = vrot.lane.b32.xlu0 %v13106_v30, %s12575_s30  ;;  %1827 = vrot.lane.b32.xlu1 %v13102_v19, %s12576_s12  ;;  %v1650_v29 = vpop.f32.mrb[85].mxu0 }
 0x2bd   : > { %v1652_v4 = vpop.f32.mrb[86].mxu0 }
 0x2be   : > { %v13353_v57 = vpack.c.bf16 %v1652_v4, %v1648_v13  ;;  %v1654_v16 = vpop.f32.mrb[87].mxu0 }
 0x2bf   : > { %v13355_v50 = vpack.c.bf16 %v1654_v16, %v1650_v29 }
 0x2c0   : > { %18559 = vst [vmem:[#allocation86_spill] sm:$0xff] %v13353_v57  ;;  %1829 = vrot.lane.b32.xlu0 %v13106_v30, %s12576_s12  ;;  %1783 = vrot.lane.b32.xlu1 %v13110_v33, %s12575_s30 }
 0x2c1   : > { %18560 = vst [vmem:[#allocation87_spill] sm:$0xff] %v13355_v50 }
 0x2c3   : > { %v1658_v32 = vpop.f32.mrb[88].mxu0 }
 0x2c4   : > { %1785 = vrot.lane.b32.xlu0 %v13114_v35, %s12575_s30  ;;  %1831 = vrot.lane.b32.xlu1 %v13110_v33, %s12576_s12  ;;  %v1660_v39 = vpop.f32.mrb[89].mxu0 }
 0x2c5   : > { %v1662_v8 = vpop.f32.mrb[90].mxu0 }
 0x2c6   : > { %v13365_v4 = vpack.c.bf16 %v1662_v8, %v1658_v32  ;;  %v13367_v13 = vpop.permute.xlu1 %1982  ;;  %v1664_v29 = vpop.f32.mrb[91].mxu0 }
 0x2c7   : > { %18562 = vst [vmem:[#allocation89_spill] sm:$0xff] %v13367_v13  ;;  %v13369_v16 = vpack.c.bf16 %v1664_v29, %v1660_v39  ;;  %v13371_v50 = vpop.permute.xlu0 %1934 }
 0x2c8   : > { %18561 = vst [vmem:[#allocation88_spill] sm:$0xff] %v13365_v4  ;;  %18564 = vst [vmem:[#allocation91_spill] sm:$0xff] %v13371_v50  ;;  %1833 = vrot.lane.b32.xlu0 %v13114_v35, %s12576_s12  ;;  %1787 = vrot.lane.b32.xlu1 %v13118_v36, %s12575_s30  ;;  %v2030_v8 = vsel %vm1853_vm0, %v13371_v50, %v13367_v13  ;;  %v13511_v35 = vld [vmem:[%s18187_s1 + $0x48] sm:$0xff] }
 0x2c9   : > { %18563 = vst [vmem:[#allocation90_spill] sm:$0xff] %v13369_v16  ;;  %v2046_v16 = vmul.f32 %v2030_v8, %v13239_v7 }
 0x2ca   : > { %v13377_v62 = vpop.permute.xlu1 %1936 }
 0x2cb   : > { %18565 = vst [vmem:[#allocation92_spill] sm:$0xff] %v13377_v62  ;;  %v1668_v32 = vpop.f32.mrb[92].mxu0 }
 0x2cc   : > { %2722 = vrot.lane.b32.xlu0 %v13246_v25, %s12577_s26  ;;  %1835 = vrot.lane.b32.xlu1 %v13118_v36, %s12576_s12  ;;  %v1670_v39 = vpop.f32.mrb[93].mxu0 }
 0x2cd   : > { %v1672_v29 = vpop.f32.mrb[94].mxu0 }
 0x2ce   : > { %v13387_v2 = vpack.c.bf16 %v1672_v29, %v1668_v32  ;;  %v13389_v58 = vpop.permute.xlu1 %1984  ;;  %v1674_v60 = vpop.f32.mrb[95].mxu0  ;;  %v1902_v32 = vmul.f32 %v13122_v40, %v13246_v25  ;;  %v1903_v29 = vmul.f32 %v13130_v42, %v13251_v37  ;;  %v13427_v25 = vld [vmem:[%s18188_s2 + $0x10] sm:$0xff] }
 0x2cf   : > { %18567 = vst [vmem:[#allocation94_spill] sm:$0xff] %v13389_v58  ;;  %v2031_v55 = vsel %vm1853_vm0, %v13377_v62, %v13389_v58  ;;  %v13399_v49 = vpack.c.bf16 %v1674_v60, %v1670_v39  ;;  %v13401_v54 = vpop.permute.xlu0 %1938 }
 0x2d0   : > { %18566 = vst [vmem:[#allocation93_spill] sm:$0xff] %v13387_v2  ;;  %18569 = vst [vmem:[#allocation96_spill] sm:$0xff] %v13401_v54  ;;  %v2047_v8 = vmul.f32 %v2031_v55, %v13261_v28  ;;  %2726 = vrot.lane.b32.xlu0 %v13394_v52, %s12577_s26  ;;  %2724 = vrot.lane.b32.xlu1 %v13251_v37, %s12577_s26  ;;  %v2062_v60 = vadd.f32 %v2046_v16, %v1902_v32  ;;  %v13417_v55 = vld [vmem:[%s18187_s1 + $0x18] sm:$0xff] }
 0x2d1   : > { %18568 = vst [vmem:[#allocation95_spill] sm:$0xff] %v13399_v49  ;;  %v13422_v49 = vld [vmem:[%s18187_s1 + $0x20] sm:$0xff]  ;;  %v13441_v32 = vld [vmem:[%s18188_s2 + $0x18] sm:$0xff] }
 0x2d2   : > { %v13412_v13 = vpop.permute.xlu1 %1940  ;;  %v2063_v39 = vadd.f32 %v2047_v8, %v1903_v29 }
 0x2d3   : > { %18570 = vst [vmem:[#allocation97_spill] sm:$0xff] %v13412_v13  ;;  %v13429_v37 = vpop.permute.xlu0 %1986 }
 0x2d4   : > { %18571 = vst [vmem:[#allocation98_spill] sm:$0xff] %v13429_v37  ;;  %v2032_v16 = vsel %vm1853_vm0, %v13401_v54, %v13429_v37  ;;  %2730 = vrot.lane.b32.xlu0 %v13422_v49, %s12577_s26  ;;  %2728 = vrot.lane.b32.xlu1 %v13417_v55, %s12577_s26  ;;  %v2086_v8 = vpack.c.bf16 %v2063_v39, %v2062_v60  ;;  %v13451_v37 = vld [vmem:[%s18187_s1 + $0x28] sm:$0xff]  ;;  %v13456_v60 = vld [vmem:[%s18187_s1 + $0x30] sm:$0xff] }
 0x2d5   : > { %v2048_v29 = vmul.f32 %v2032_v16, %v13427_v25  ;;  %v1905_v54 = vmul.f32 %v13144_v46, %v13417_v55  ;;  %v13482_v46 = vld [vmem:[%s18187_s1 + $0x40] sm:$0xff] }
 0x2d6   : > { %v13444_v42 = vpop.permute.xlu1 %1988  ;;  %10822 = vmatprep.subr.msk.bf16.mxu1 %vm2094_vm1, %v2086_v8  ;;  %v2120_v40 = vsel %vm2094_vm1, %v2086_v8, 0  ;;  %v1904_v8 = vmul.f32 %v13136_v44, %v13394_v52 }
 0x2d7   : > { %18572 = vst [vmem:[#allocation99_spill] sm:$0xff] %v13444_v42  ;;  %v2033_v39 = vsel %vm1853_vm0, %v13412_v13, %v13444_v42  ;;  %v13461_v16 = vpop.permute.xlu0 %1942  ;;  %10343 = vmatpush3.bf16.xpose.msra.mxu1 %v2120_v40  ;;  %v13477_v40 = vld [vmem:[%s18187_s1 + $0x38] sm:$0xff] }
 0x2d8   : > { %18573 = vst [vmem:[#allocation100_spill] sm:$0xff] %v13461_v16  ;;  %v2049_v58 = vmul.f32 %v2033_v39, %v13441_v32  ;;  %2734 = vrot.lane.b32.xlu0 %v13456_v60, %s12577_s26  ;;  %2732 = vrot.lane.b32.xlu1 %v13451_v37, %s12577_s26  ;;  %v2064_v62 = vadd.f32 %v2048_v29, %v1904_v8  ;;  %v13487_v39 = vld [vmem:[%s18188_s2 + $0x20] sm:$0xff]  ;;  %v13501_v29 = vld [vmem:[%s18188_s2 + $0x28] sm:$0xff] }
 0x2d9   : > { %v1909_v19 = vmul.f32 %v13176_v59, %v13477_v40  ;;  %v13609_v59 = vld [vmem:[%s18188_s2 + $0x40] sm:$0xff] }
 0x2da   : > { %v2065_v50 = vadd.f32 %v2049_v58, %v1905_v54  ;;  %v13472_v42 = vpop.permute.xlu1 %1944 }
 0x2db   : > { %18574 = vst [vmem:[#allocation101_spill] sm:$0xff] %v13472_v42  ;;  %v13489_v44 = vpop.permute.xlu0 %1990 }
 0x2dc   : > { %18575 = vst [vmem:[#allocation102_spill] sm:$0xff] %v13489_v44  ;;  %v2034_v54 = vsel %vm1853_vm0, %v13461_v16, %v13489_v44  ;;  %2738 = vrot.lane.b32.xlu0 %v13482_v46, %s12577_s26  ;;  %2736 = vrot.lane.b32.xlu1 %v13477_v40, %s12577_s26  ;;  %v2087_v58 = vpack.c.bf16 %v2065_v50, %v2064_v62  ;;  %v13516_v62 = vld [vmem:[%s18187_s1 + $0x50] sm:$0xff] }
 0x2dd   : > { %v2050_v8 = vmul.f32 %v2034_v54, %v13487_v39  ;;  %v1907_v44 = vmul.f32 %v13160_v53, %v13451_v37  ;;  %v13542_v53 = vld [vmem:[%s18187_s1 + $0x60] sm:$0xff] }
 0x2de   : > { %v13504_v13 = vpop.permute.xlu1 %1992  ;;  %10823 = vmatprep.subr.msk.bf16.mxu1 %vm2094_vm1, %v2087_v58  ;;  %v2123_v36 = vsel %vm2094_vm1, %v2087_v58, 0  ;;  %v1906_v58 = vmul.f32 %v13152_v51, %v13422_v49 }
 0x2df   : > { %18576 = vst [vmem:[#allocation103_spill] sm:$0xff] %v13504_v13  ;;  %v2035_v50 = vsel %vm1853_vm0, %v13472_v42, %v13504_v13  ;;  %v13521_v54 = vpop.permute.xlu0 %1946  ;;  %10345 = vmatpush3.bf16.xpose.msra.mxu1 %v2123_v36  ;;  %v13537_v36 = vld [vmem:[%s18187_s1 + $0x58] sm:$0xff] }
 0x2e0   : > { %18577 = vst [vmem:[#allocation104_spill] sm:$0xff] %v13521_v54  ;;  %v2051_v16 = vmul.f32 %v2035_v50, %v13501_v29  ;;  %2742 = vrot.lane.b32.xlu0 %v13516_v62, %s12577_s26  ;;  %2740 = vrot.lane.b32.xlu1 %v13511_v35, %s12577_s26  ;;  %v2066_v33 = vadd.f32 %v2050_v8, %v1906_v58  ;;  %v13547_v50 = vld [vmem:[%s18188_s2 + $0x30] sm:$0xff]  ;;  %v13561_v8 = vld [vmem:[%s18188_s2 + $0x38] sm:$0xff] }
 0x2e2   : > { %v2067_v30 = vadd.f32 %v2051_v16, %v1907_v44  ;;  %v13532_v13 = vpop.permute.xlu1 %1948 }
 0x2e3   : > { %18578 = vst [vmem:[#allocation105_spill] sm:$0xff] %v13532_v13  ;;  %v13549_v51 = vpop.permute.xlu0 %1994 }
 0x2e4   : > { %18579 = vst [vmem:[#allocation106_spill] sm:$0xff] %v13549_v51  ;;  %v2036_v44 = vsel %vm1853_vm0, %v13521_v54, %v13549_v51  ;;  %2746 = vrot.lane.b32.xlu0 %v13542_v53, %s12577_s26  ;;  %2744 = vrot.lane.b32.xlu1 %v13537_v36, %s12577_s26  ;;  %v2088_v16 = vpack.c.bf16 %v2067_v30, %v2066_v33  ;;  %v13571_v54 = vld [vmem:[%s18187_s1 + $0x68] sm:$0xff]  ;;  %v13576_v30 = vld [vmem:[%s18187_s1 + $0x70] sm:$0xff] }
 0x2e5   : > { %v2052_v58 = vmul.f32 %v2036_v44, %v13547_v50  ;;  %v2787_v33 = vsel %vm1853_vm0, %v13264_v22, %v13230_v1 }
 0x2e6   : > { %v13564_v42 = vpop.permute.xlu1 %1996  ;;  %10824 = vmatprep.subr.msk.bf16.mxu1 %vm2094_vm1, %v2088_v16  ;;  %v2126_v51 = vsel %vm2094_vm1, %v2088_v16, 0  ;;  %v1908_v16 = vmul.f32 %v13168_v56, %v13456_v60  ;;  %v13601_v56 = vld [vmem:[%s18187_s1 + $0x78] sm:$0xff] }
 0x2e7   : > { %18580 = vst [vmem:[#allocation107_spill] sm:$0xff] %v13564_v42  ;;  %v2037_v44 = vsel %vm1853_vm0, %v13532_v13, %v13564_v42  ;;  %v13584_v2 = vpop.permute.xlu0 %1950  ;;  %10347 = vmatpush3.bf16.xpose.msra.mxu1 %v2126_v51  ;;  %v2803_v51 = vmul.f32 %v2787_v33, %v13261_v28 }
 0x2e8   : > { %v2053_v26 = vmul.f32 %v2037_v44, %v13561_v8  ;;  %2750 = vrot.lane.b32.xlu0 %v13576_v30, %s12577_s26  ;;  %2748 = vrot.lane.b32.xlu1 %v13571_v54, %s12577_s26  ;;  %v2068_v1 = vadd.f32 %v2052_v58, %v1908_v16  ;;  %v2786_v44 = vsel %vm1853_vm0, %v13241_v10, %v13228_v15  ;;  %v13622_v10 = vld [vmem:[%s18188_s2 + $0x48] sm:$0xff] }
 0x2e9   : > { %v2802_v15 = vmul.f32 %v2786_v44, %v13239_v7  ;;  %v1911_v44 = vmul.f32 %v13192_v0, %v13511_v35 }
 0x2ea   : > { %v2069_v22 = vadd.f32 %v2053_v26, %v1909_v19  ;;  %v13595_v42 = vpop.permute.xlu1 %1952 }
 0x2eb   : > { %18581 = vst [vmem:[#allocation108_spill] sm:$0xff] %v13595_v42  ;;  %v13611_v58 = vpop.permute.xlu0 %1998 }
 0x2ec   : > { %18582 = vst [vmem:[#allocation109_spill] sm:$0xff] %v13611_v58  ;;  %v2038_v26 = vsel %vm1853_vm0, %v13584_v2, %v13611_v58  ;;  %2836 = vrot.lane.b32.xlu0 %v2803_v51, %s12577_s26  ;;  %2752 = vrot.lane.b32.xlu1 %v13601_v56, %s12577_s26  ;;  %v2089_v19 = vpack.c.bf16 %v2069_v22, %v2068_v1 }
 0x2ed   : > { %v2054_v33 = vmul.f32 %v2038_v26, %v13609_v59  ;;  %v1910_v22 = vmul.f32 %v13184_v61, %v13482_v46 }
 0x2ee   : > { %v13626_v16 = vpop.permute.xlu1 %2000  ;;  %10825 = vmatprep.subr.msk.bf16.mxu1 %vm2094_vm1, %v2089_v19  ;;  %v2129_v13 = vsel %vm2094_vm1, %v2089_v19, 0 }
 0x2ef   : > { %18583 = vst [vmem:[#allocation110_spill] sm:$0xff] %v13626_v16  ;;  %v2039_v51 = vsel %vm1853_vm0, %v13595_v42, %v13626_v16  ;;  %v13633_v1 = vpop.permute.xlu0 %1954  ;;  %10349 = vmatpush3.bf16.xpose.msra.mxu1 %v2129_v13  ;;  %v2070_v19 = vadd.f32 %v2054_v33, %v1910_v22  ;;  %v13648_v13 = vld [vmem:[%s18188_s2 + $0x50] sm:$0xff]  ;;  %v13662_v33 = vld [vmem:[%s18188_s2 + $0x58] sm:$0xff] }
 0x2f0   : > { %18584 = vst [vmem:[#allocation111_spill] sm:$0xff] %v13633_v1  ;;  %v2055_v26 = vmul.f32 %v2039_v51, %v13622_v10  ;;  %3941 = vrot.lane.b32.xlu0 %v13128_v41, %s12575_s30  ;;  %2834 = vrot.lane.b32.xlu1 %v2802_v15, %s12577_s26 }
 0x2f2   : > { %v2071_v28 = vadd.f32 %v2055_v26, %v1911_v44  ;;  %v13643_v58 = vpop.permute.xlu1 %1956 }
 0x2f3   : > { %18585 = vst [vmem:[#allocation112_spill] sm:$0xff] %v13643_v58  ;;  %v13650_v61 = vpop.permute.xlu0 %2002 }
 0x2f4   : > { %18586 = vst [vmem:[#allocation113_spill] sm:$0xff] %v13650_v61  ;;  %v2040_v51 = vsel %vm1853_vm0, %v13633_v1, %v13650_v61  ;;  %3989 = vrot.lane.b32.xlu0 %v13128_v41, %s12576_s12  ;;  %3943 = vrot.lane.b32.xlu1 %v13132_v43, %s12575_s30  ;;  %v2090_v15 = vpack.c.bf16 %v2071_v28, %v2070_v19 }
 0x2f5   : > { %v2056_v22 = vmul.f32 %v2040_v51, %v13648_v13  ;;  %v1912_v28 = vmul.f32 %v13200_v3, %v13516_v62  ;;  %v1913_v19 = vmul.f32 %v13208_v6, %v13537_v36 }
 0x2f6   : > { %v13665_v44 = vpop.permute.xlu1 %2004  ;;  %10826 = vmatprep.subr.msk.bf16.mxu1 %vm2094_vm1, %v2090_v15  ;;  %v2132_v26 = vsel %vm2094_vm1, %v2090_v15, 0 }
 0x2f7   : > { %18587 = vst [vmem:[#allocation114_spill] sm:$0xff] %v13665_v44  ;;  %v2041_v0 = vsel %vm1853_vm0, %v13643_v58, %v13665_v44  ;;  %v13672_v41 = vpop.permute.xlu0 %1958  ;;  %10351 = vmatpush3.bf16.xpose.msra.mxu1 %v2132_v26  ;;  %v2072_v15 = vadd.f32 %v2056_v22, %v1912_v28  ;;  %v13688_v26 = vld [vmem:[%s18188_s2 + $0x60] sm:$0xff]  ;;  %v13702_v28 = vld [vmem:[%s18188_s2 + $0x68] sm:$0xff] }
 0x2f8   : > { %v2057_v51 = vmul.f32 %v2041_v0, %v13662_v33  ;;  %3945 = vrot.lane.b32.xlu0 %v13142_v45, %s12575_s30  ;;  %3991 = vrot.lane.b32.xlu1 %v13132_v43, %s12576_s12 }
 0x2fa   : > { %v2073_v61 = vadd.f32 %v2057_v51, %v1913_v19  ;;  %v13683_v44 = vpop.permute.xlu1 %1960 }
 0x2fb   : > { %18588 = vst [vmem:[#allocation115_spill] sm:$0xff] %v13683_v44  ;;  %v13690_v3 = vpop.permute.xlu0 %2006 }
 0x2fc   : > { %18589 = vst [vmem:[#allocation116_spill] sm:$0xff] %v13690_v3  ;;  %v2042_v0 = vsel %vm1853_vm0, %v13672_v41, %v13690_v3  ;;  %3993 = vrot.lane.b32.xlu0 %v13142_v45, %s12576_s12  ;;  %3947 = vrot.lane.b32.xlu1 %v13146_v48, %s12575_s30  ;;  %v2091_v22 = vpack.c.bf16 %v2073_v61, %v2072_v15 }
 0x2fd   : > { %v2058_v19 = vmul.f32 %v2042_v0, %v13688_v26  ;;  %v1914_v61 = vmul.f32 %v13216_v9, %v13542_v53  ;;  %v1915_v15 = vmul.f32 %v13224_v12, %v13571_v54 }
 0x2fe   : > { %v13705_v51 = vpop.permute.xlu1 %2008  ;;  %10827 = vmatprep.subr.msk.bf16.mxu1 %vm2094_vm1, %v2091_v22  ;;  %v2135_v6 = vsel %vm2094_vm1, %v2091_v22, 0 }
 0x2ff   : > { %18590 = vst [vmem:[#allocation117_spill] sm:$0xff] %v13705_v51  ;;  %v2043_v45 = vsel %vm1853_vm0, %v13683_v44, %v13705_v51  ;;  %v13712_v43 = vpop.permute.xlu0 %1962  ;;  %10353 = vmatpush3.bf16.xpose.msra.mxu1 %v2135_v6  ;;  %v2074_v58 = vadd.f32 %v2058_v19, %v1914_v61  ;;  %v13726_v51 = vld [vmem:[%s18188_s2 + $0x70] sm:$0xff] }
 0x300   : > { %18591 = vst [vmem:[#allocation118_spill] sm:$0xff] %v13712_v43  ;;  %v2059_v0 = vmul.f32 %v2043_v45, %v13702_v28  ;;  %3995 = vrot.lane.b32.xlu1 %v13146_v48, %s12576_s12  ;;  %v13736_v45 = vld [vmem:[%s18188_s2 + $0x78] sm:$0xff] }
 0x302   : > { %v2075_v22 = vadd.f32 %v2059_v0, %v1915_v15  ;;  %v13721_v1 = vpop.permute.xlu1 %1964 }
 0x303   : > { %18592 = vst [vmem:[#allocation119_spill] sm:$0xff] %v13721_v1  ;;  %v13728_v6 = vpop.permute.xlu0 %2010 }
 0x304   : > { %18593 = vst [vmem:[#allocation120_spill] sm:$0xff] %v13728_v6  ;;  %v2044_v12 = vsel %vm1853_vm0, %v13712_v43, %v13728_v6  ;;  %v2092_v9 = vpack.c.bf16 %v2075_v22, %v2074_v58  ;;  %v1916_v58 = vmul.f32 %v13256_v34, %v13576_v30  ;;  %v1917_v22 = vmul.f32 %v13275_v18, %v13601_v56 }
 0x305   : > { %v2060_v19 = vmul.f32 %v2044_v12, %v13726_v51 }
 0x306   : > { %v13739_v61 = vpop.permute.xlu1 %2012  ;;  %10828 = vmatprep.subr.msk.bf16.mxu1 %vm2094_vm1, %v2092_v9  ;;  %v2138_v15 = vsel %vm2094_vm1, %v2092_v9, 0 }
 0x307   : > { %18594 = vst [vmem:[#allocation121_spill] sm:$0xff] %v13739_v61  ;;  %v2045_v0 = vsel %vm1853_vm0, %v13721_v1, %v13739_v61  ;;  %v1762_v48 = vpop.permute.xlu0 %1761  ;;  %10355 = vmatpush3.bf16.xpose.msra.mxu1 %v2138_v15  ;;  %v2076_v44 = vadd.f32 %v2060_v19, %v1916_v58 }
 0x308   : > { %v2061_v12 = vmul.f32 %v2045_v0, %v13736_v45 }
 0x30a   : > { %v2077_v16 = vadd.f32 %v2061_v12, %v1917_v22  ;;  %v1764_v42 = vpop.permute.xlu1 %1763 }
 0x30b   : > { %v1810_v6 = vpop.permute.xlu0 %1809 }
 0x30c   : > { %v1856_v9 = vsel %vm1853_vm0, %v1762_v48, %v1810_v6  ;;  %v2788_v43 = vsel %vm1853_vm0, %v1810_v6, %v1762_v48  ;;  %v2093_v3 = vpack.c.bf16 %v2077_v16, %v2076_v44  ;;  %v1727_v48 = vmul.f32 %v13066_v27, %v13394_v52 }
 0x30d   : > { %v2804_v61 = vmul.f32 %v2788_v43, %v13427_v25  ;;  %v1872_v15 = vmul.f32 %v1856_v9, %v13427_v25  ;;  %v1728_v43 = vmul.f32 %v13070_v47, %v13417_v55 }
 0x30e   : > { %v1812_v1 = vpop.permute.xlu1 %1811  ;;  %10829 = vmatprep.subr.msk.bf16.mxu1 %vm2094_vm1, %v2093_v3  ;;  %v2141_v18 = vsel %vm2094_vm1, %v2093_v3, 0 }
 0x30f   : > { %v1857_v0 = vsel %vm1853_vm0, %v1764_v42, %v1812_v1  ;;  %v2789_v19 = vsel %vm1853_vm0, %v1812_v1, %v1764_v42  ;;  %2838 = vrot.lane.b32.xlu1 %v2804_v61, %s12577_s26  ;;  %v1766_v58 = vpop.permute.xlu0 %1765  ;;  %10357 = vmatpush3.bf16.xpose.msra.mxu1 %v2141_v18  ;;  %v1888_v3 = vadd.f32 %v1872_v15, %v1727_v48 }
 0x310   : > { %v1873_v16 = vmul.f32 %v1857_v0, %v13441_v32  ;;  %v2805_v44 = vmul.f32 %v2789_v19, %v13441_v32  ;;  %10374 = vmatprep.subr.bf16.mxu1 %v13293_v11 }
 0x312   : > { %v1889_v6 = vadd.f32 %v1873_v16, %v1728_v43  ;;  %2840 = vrot.lane.b32.xlu0 %v2805_v44, %s12577_s26  ;;  %v1768_v42 = vpop.permute.xlu1 %1767  ;;  %v1730_v43 = vmul.f32 %v13078_v38, %v13451_v37 }
 0x313   : > { %v1814_v1 = vpop.permute.xlu0 %1813 }
 0x314   : > { %v1858_v18 = vsel %vm1853_vm0, %v1766_v58, %v1814_v1  ;;  %v2790_v61 = vsel %vm1853_vm0, %v1814_v1, %v1766_v58  ;;  %v2079_v22 = vpack.c.bf16 %v1889_v6, %v1888_v3  ;;  %v1729_v58 = vmul.f32 %v13074_v14, %v13422_v49 }
 0x315   : > { %v2806_v12 = vmul.f32 %v2790_v61, %v13487_v39  ;;  %v1874_v9 = vmul.f32 %v1858_v18, %v13487_v39 }
 0x316   : > { %v1816_v0 = vpop.permute.xlu1 %1815  ;;  %10359 = vmatmul.mubr.msk.bf16.vlgmr.msra.gmra.mrb[0].mxu1 %vm2094_vm1, %v2079_v22 }
 0x317   : > { %v1859_v19 = vsel %vm1853_vm0, %v1768_v42, %v1816_v0  ;;  %v2791_v15 = vsel %vm1853_vm0, %v1816_v0, %v1768_v42  ;;  %2842 = vrot.lane.b32.xlu0 %v2806_v12, %s12577_s26  ;;  %v1770_v48 = vpop.permute.xlu0 %1769  ;;  %10375 = vmatpush3.bf16.msra.mxu1 %v13293_v11  ;;  %v1890_v3 = vadd.f32 %v1874_v9, %v1729_v58 }
 0x318   : > { %v1875_v16 = vmul.f32 %v1859_v19, %v13501_v29  ;;  %v2807_v44 = vmul.f32 %v2791_v15, %v13501_v29  ;;  %10376 = vmatprep.subr.bf16.mxu1 %v13305_v5  ;;  %v1731_v15 = vmul.f32 %v13082_v63, %v13456_v60 }
 0x31a   : > { %v1891_v6 = vadd.f32 %v1875_v16, %v1730_v43  ;;  %v1772_v42 = vpop.permute.xlu1 %1771  ;;  %2844 = vrot.lane.b32.xlu1 %v2807_v44, %s12577_s26 }
 0x31b   : > { %v1818_v1 = vpop.permute.xlu0 %1817  ;;  %10377 = vmatpush3.bf16.msra.mxu1 %v13305_v5 }
 0x31c   : > { %v1860_v18 = vsel %vm1853_vm0, %v1770_v48, %v1818_v1  ;;  %v2792_v49 = vsel %vm1853_vm0, %v1818_v1, %v1770_v48  ;;  %10378 = vmatprep.subr.bf16.mxu1 %v13317_v31  ;;  %v2080_v37 = vpack.c.bf16 %v1891_v6, %v1890_v3  ;;  %v1732_v48 = vmul.f32 %v13086_v17, %v13477_v40 }
 0x31d   : > { %v2808_v61 = vmul.f32 %v2792_v49, %v13547_v50  ;;  %v1876_v22 = vmul.f32 %v1860_v18, %v13547_v50 }
 0x31e   : > { %v1820_v12 = vpop.permute.xlu1 %1819  ;;  %10362 = vmatprep.mubr.msk.bf16.mxu1 %vm2094_vm1, %v2080_v37 }
 0x31f   : > { %v1861_v9 = vsel %vm1853_vm0, %v1772_v42, %v1820_v12  ;;  %v2793_v0 = vsel %vm1853_vm0, %v1820_v12, %v1772_v42  ;;  %2846 = vrot.lane.b32.xlu0 %v2808_v61, %s12577_s26  ;;  %v1774_v19 = vpop.permute.xlu0 %1773  ;;  %10379 = vmatpush3.bf16.msra.mxu1 %v13317_v31  ;;  %v1892_v16 = vadd.f32 %v1876_v22, %v1731_v15 }
 0x320   : > { %v1877_v58 = vmul.f32 %v1861_v9, %v13561_v8  ;;  %v2809_v43 = vmul.f32 %v2793_v0, %v13561_v8  ;;  %10380 = vmatprep.subr.bf16.mxu1 %v13329_v24  ;;  %v1733_v12 = vmul.f32 %v13090_v21, %v13482_v46  ;;  %v1734_v9 = vmul.f32 %v13094_v23, %v13511_v35 }
 0x322   : > { %v1893_v44 = vadd.f32 %v1877_v58, %v1732_v48  ;;  %v1776_v3 = vpop.permute.xlu1 %1775  ;;  %2848 = vrot.lane.b32.xlu1 %v2809_v43, %s12577_s26 }
 0x323   : > { %v1822_v6 = vpop.permute.xlu0 %1821  ;;  %10381 = vmatpush3.bf16.msra.mxu1 %v13329_v24 }
 0x324   : > { %v1862_v42 = vsel %vm1853_vm0, %v1774_v19, %v1822_v6  ;;  %v2794_v60 = vsel %vm1853_vm0, %v1822_v6, %v1774_v19  ;;  %10382 = vmatprep.subr.bf16.mxu1 %v13341_v20  ;;  %v2081_v40 = vpack.c.bf16 %v1893_v44, %v1892_v16 }
 0x325   : > { %v2810_v1 = vmul.f32 %v2794_v60, %v13609_v59  ;;  %v1878_v18 = vmul.f32 %v1862_v42, %v13609_v59 }
 0x326   : > { %v1824_v49 = vpop.permute.xlu1 %1823  ;;  %10363 = vmatmul.mubr.msk.bf16.gmra.mrb[4].mxu1 %vm2094_vm1, %v2081_v40 }
 0x327   : > { %v1863_v37 = vsel %vm1853_vm0, %v1776_v3, %v1824_v49  ;;  %v2795_v61 = vsel %vm1853_vm0, %v1824_v49, %v1776_v3  ;;  %2850 = vrot.lane.b32.xlu1 %v2810_v1, %s12577_s26  ;;  %v1778_v22 = vpop.permute.xlu0 %1777  ;;  %10383 = vmatpush3.bf16.msra.mxu1 %v13341_v20  ;;  %v1894_v15 = vadd.f32 %v1878_v18, %v1733_v12  ;;  %v18595_v1 = vld [vmem:[#allocation32_spill] sm:$0xff]  ;;  %v18596_v49 = vld [vmem:[#allocation34_spill] sm:$0xff]  ;;  %v18597_v12 = vld [vmem:[#allocation93_spill] sm:$0xff] }
 0x328   : > { %v1879_v0 = vmul.f32 %v1863_v37, %v13622_v10  ;;  %v2811_v19 = vmul.f32 %v2795_v61, %v13622_v10  ;;  %10384 = vmatprep.subr.bf16.mxu1 %v13353_v57  ;;  %v1735_v18 = vmul.f32 %v18595_v1, %v13516_v62  ;;  %v1736_v37 = vmul.f32 %v18596_v49, %v13537_v36 }
 0x32a   : > { %v1895_v48 = vadd.f32 %v1879_v0, %v1734_v9  ;;  %v1780_v58 = vpop.permute.xlu1 %1779  ;;  %2852 = vrot.lane.b32.xlu0 %v2811_v19, %s12577_s26 }
 0x32b   : > { %v1826_v43 = vpop.permute.xlu0 %1825  ;;  %10385 = vmatpush3.bf16.msra.mxu1 %v13353_v57 }
 0x32c   : > { %v1864_v16 = vsel %vm1853_vm0, %v1778_v22, %v1826_v43  ;;  %v2796_v46 = vsel %vm1853_vm0, %v1826_v43, %v1778_v22  ;;  %10386 = vmatprep.subr.bf16.mxu1 %v13365_v4  ;;  %v2082_v35 = vpack.c.bf16 %v1895_v48, %v1894_v15 }
 0x32d   : > { %v2812_v44 = vmul.f32 %v2796_v46, %v13648_v13  ;;  %v1880_v3 = vmul.f32 %v1864_v16, %v13648_v13 }
 0x32e   : > { %v1828_v6 = vpop.permute.xlu1 %1827  ;;  %10366 = vmatprep.mubr.msk.bf16.mxu1 %vm2094_vm1, %v2082_v35 }
 0x32f   : > { %v1865_v42 = vsel %vm1853_vm0, %v1780_v58, %v1828_v6  ;;  %v2797_v60 = vsel %vm1853_vm0, %v1828_v6, %v1780_v58  ;;  %2854 = vrot.lane.b32.xlu1 %v2812_v44, %s12577_s26  ;;  %v1782_v40 = vpop.permute.xlu0 %1781  ;;  %10387 = vmatpush3.bf16.msra.mxu1 %v13365_v4  ;;  %v1896_v9 = vadd.f32 %v1880_v3, %v1735_v18  ;;  %v18598_v3 = vld [vmem:[#allocation36_spill] sm:$0xff] }
 0x330   : > { %v1881_v61 = vmul.f32 %v1865_v42, %v13662_v33  ;;  %v2813_v22 = vmul.f32 %v2797_v60, %v13662_v33  ;;  %10388 = vmatprep.subr.bf16.mxu1 %v18597_v12  ;;  %v1737_v6 = vmul.f32 %v18598_v3, %v13542_v53  ;;  %v18599_v42 = vld [vmem:[#allocation38_spill] sm:$0xff] }
 0x331   : > { %v1738_v60 = vmul.f32 %v18599_v42, %v13571_v54 }
 0x332   : > { %v1897_v0 = vadd.f32 %v1881_v61, %v1736_v37  ;;  %v1784_v19 = vpop.permute.xlu1 %1783  ;;  %2856 = vrot.lane.b32.xlu0 %v2813_v22, %s12577_s26 }
 0x333   : > { %v1830_v15 = vpop.permute.xlu0 %1829  ;;  %10389 = vmatpush3.bf16.msra.mxu1 %v18597_v12 }
 0x334   : > { %v1866_v48 = vsel %vm1853_vm0, %v1782_v40, %v1830_v15  ;;  %v2798_v62 = vsel %vm1853_vm0, %v1830_v15, %v1782_v40  ;;  %v2083_v58 = vpack.c.bf16 %v1897_v0, %v1896_v9 }
 0x335   : > { %v2814_v36 = vmul.f32 %v2798_v62, %v13688_v26  ;;  %v1882_v43 = vmul.f32 %v1866_v48, %v13688_v26  ;;  %v18600_v48 = vld [vmem:[#allocation100_spill] sm:$0xff]  ;;  %v18601_v62 = vld [vmem:[#allocation102_spill] sm:$0xff] }
 0x336   : > { %v1832_v16 = vpop.permute.xlu1 %1831  ;;  %10367 = vmatmul.mubr.msk.bf16.gmra.mrb[8].mxu1 %vm2094_vm1, %v2083_v58  ;;  %v2918_v54 = vsel %vm1853_vm0, %v18601_v62, %v18600_v48 }
 0x337   : > { %v1867_v46 = vsel %vm1853_vm0, %v1784_v19, %v1832_v16  ;;  %v2799_v35 = vsel %vm1853_vm0, %v1832_v16, %v1784_v19  ;;  %2858 = vrot.lane.b32.xlu0 %v2814_v36, %s12577_s26  ;;  %v1786_v44 = vpop.permute.xlu0 %1785  ;;  %v1898_v37 = vadd.f32 %v1882_v43, %v1737_v6  ;;  %v18604_v6 = vld [vmem:[#allocation42_spill] sm:$0xff] }
 0x338   : > { %v1883_v40 = vmul.f32 %v1867_v46, %v13702_v28  ;;  %v2815_v18 = vmul.f32 %v2799_v35, %v13702_v28  ;;  %v18603_v35 = vld [vmem:[#allocation40_spill] sm:$0xff] }
 0x33a   : > { %v1899_v61 = vadd.f32 %v1883_v40, %v1738_v60  ;;  %v1788_v22 = vpop.permute.xlu1 %1787  ;;  %2860 = vrot.lane.b32.xlu1 %v2815_v18, %s12577_s26  ;;  %v1740_v60 = vmul.f32 %v18604_v6, %v13601_v56 }
 0x33b   : > { %v1834_v9 = vpop.permute.xlu0 %1833 }
 0x33c   : > { %v1868_v0 = vsel %vm1853_vm0, %v1786_v44, %v1834_v9  ;;  %v2800_v19 = vsel %vm1853_vm0, %v1834_v9, %v1786_v44  ;;  %v2084_v15 = vpack.c.bf16 %v1899_v61, %v1898_v37  ;;  %v1739_v44 = vmul.f32 %v18603_v35, %v13576_v30  ;;  %v18605_v37 = vld [vmem:[#allocation91_spill] sm:$0xff]  ;;  %v18606_v61 = vld [vmem:[#allocation89_spill] sm:$0xff] }
 0x33d   : > { %v2816_v53 = vmul.f32 %v2800_v19, %v13726_v51  ;;  %v1884_v58 = vmul.f32 %v1868_v0, %v13726_v51  ;;  %v2914_v9 = vsel %vm1853_vm0, %v18606_v61, %v18605_v37  ;;  %v18607_v0 = vld [vmem:[#allocation104_spill] sm:$0xff]  ;;  %v18608_v19 = vld [vmem:[#allocation106_spill] sm:$0xff] }
 0x33e   : > { %v1836_v36 = vpop.permute.xlu1 %1835  ;;  %10370 = vmatprep.mubr.msk.bf16.mxu1 %vm2094_vm1, %v2084_v15  ;;  %v2920_v15 = vsel %vm1853_vm0, %v18608_v19, %v18607_v0  ;;  %v2930_v62 = vmul.f32 %v2914_v9, %v13239_v7  ;;  %v18617_v37 = vld [vmem:[#allocation96_spill] sm:$0xff]  ;;  %v18618_v61 = vld [vmem:[#allocation98_spill] sm:$0xff] }
 0x33f   : > { %v1869_v43 = vsel %vm1853_vm0, %v1788_v22, %v1836_v36  ;;  %v2801_v16 = vsel %vm1853_vm0, %v1836_v36, %v1788_v22  ;;  %2862 = vrot.lane.b32.xlu0 %v2816_v53, %s12577_s26  ;;  %v13869_v46 = vpop.permute.xlu0 %2722  ;;  %v2934_v22 = vmul.f32 %v2918_v54, %v13487_v39  ;;  %v1900_v53 = vadd.f32 %v1884_v58, %v1739_v44  ;;  %v18613_v58 = vld [vmem:[#allocation109_spill] sm:$0xff] }
 0x340   : > { %18602 = vst [vmem:[#allocation32_spill] sm:$0xff] %v13869_v46  ;;  %v1885_v40 = vmul.f32 %v1869_v43, %v13736_v45  ;;  %v2817_v18 = vmul.f32 %v2801_v16, %v13736_v45  ;;  %v18611_v43 = vld [vmem:[#allocation92_spill] sm:$0xff]  ;;  %v18612_v16 = vld [vmem:[#allocation94_spill] sm:$0xff]  ;;  %v2936_v54 = vmul.f32 %v2920_v15, %v13547_v50  ;;  %v2922_v44 = vsel %vm1853_vm0, %v18613_v58, %v13584_v2  ;;  %v18628_v58 = vld [vmem:[#allocation101_spill] sm:$0xff] }
 0x341   : > { %v2915_v39 = vsel %vm1853_vm0, %v18612_v16, %v18611_v43  ;;  %v2916_v50 = vsel %vm1853_vm0, %v18618_v61, %v18617_v37  ;;  %v2938_v9 = vmul.f32 %v2922_v44, %v13609_v59  ;;  %v18619_v2 = vld [vmem:[#allocation116_spill] sm:$0xff]  ;;  %v18629_v44 = vld [vmem:[#allocation103_spill] sm:$0xff] }
 0x342   : > { %v1901_v48 = vadd.f32 %v1885_v40, %v1740_v60  ;;  %v13884_v30 = vpop.permute.xlu1 %2724  ;;  %2864 = vrot.lane.b32.xlu1 %v2817_v18, %s12577_s26  ;;  %v18616_v40 = vld [vmem:[#allocation72_spill] sm:$0xff]  ;;  %v2932_v15 = vmul.f32 %v2916_v50, %v13427_v25  ;;  %v18632_v50 = vld [vmem:[#allocation105_spill] sm:$0xff] }
 0x343   : > { %18609 = vst [vmem:[#allocation34_spill] sm:$0xff] %v13884_v30  ;;  %2970 = vrot.lane.b32.xlu0 %v2934_v22, %s12577_s26  ;;  %v13888_v56 = vpop.permute.xlu0 %2726  ;;  %v2931_v18 = vmul.f32 %v2915_v39, %v18616_v40  ;;  %v2926_v22 = vsel %vm1853_vm0, %v18619_v2, %v13672_v41  ;;  %v18625_v43 = vld [vmem:[#allocation120_spill] sm:$0xff]  ;;  %v2919_v40 = vsel %vm1853_vm0, %v18629_v44, %v18628_v58 }
 0x344   : > { %18610 = vst [vmem:[#allocation36_spill] sm:$0xff] %v13888_v56  ;;  %v2085_v36 = vpack.c.bf16 %v1901_v48, %v1900_v53  ;;  %v18622_v53 = vld [vmem:[#allocation97_spill] sm:$0xff]  ;;  %v18623_v48 = vld [vmem:[#allocation99_spill] sm:$0xff]  ;;  %v2942_v59 = vmul.f32 %v2926_v22, %v13688_v26  ;;  %v2935_v61 = vmul.f32 %v2919_v40, %v13501_v29  ;;  %v18643_v40 = vld [vmem:[#allocation112_spill] sm:$0xff] }
 0x346   : > { %v13898_v60 = vpop.permute.xlu1 %2728  ;;  %2962 = vrot.lane.b32.xlu1 %v2930_v62, %s12577_s26  ;;  %10371 = vmatmul.mubr.msk.bf16.gmra.mrb[12].mxu1 %vm2094_vm1, %v2085_v36  ;;  %v2917_v62 = vsel %vm1853_vm0, %v18623_v48, %v18622_v53  ;;  %v18624_v36 = vld [vmem:[#allocation118_spill] sm:$0xff]  ;;  %v18636_v53 = vld [vmem:[#allocation108_spill] sm:$0xff] }
 0x347   : > { %18614 = vst [vmem:[#allocation38_spill] sm:$0xff] %v13898_v60  ;;  %2974 = vrot.lane.b32.xlu0 %v2936_v54, %s12577_s26  ;;  %v13903_v7 = vpop.permute.xlu0 %2730  ;;  %v2928_v41 = vsel %vm1853_vm0, %v18625_v43, %v18624_v36  ;;  %v2933_v54 = vmul.f32 %v2917_v62, %v13441_v32  ;;  %v18637_v48 = vld [vmem:[#allocation110_spill] sm:$0xff]  ;;  %v18640_v43 = vld [vmem:[#allocation111_spill] sm:$0xff] }
 0x348   : > { %18615 = vst [vmem:[#allocation100_spill] sm:$0xff] %v13903_v7  ;;  %v2944_v26 = vmul.f32 %v2928_v41, %v13726_v51  ;;  %v2923_v62 = vsel %vm1853_vm0, %v18637_v48, %v18636_v53  ;;  %v18641_v41 = vld [vmem:[#allocation113_spill] sm:$0xff] }
 0x349   : > { %v2939_v36 = vmul.f32 %v2923_v62, %v13622_v10 }
 0x34a   : > { %v13913_v0 = vpop.permute.xlu1 %2732  ;;  %2964 = vrot.lane.b32.xlu1 %v2931_v18, %s12577_s26 }
 0x34b   : > { %18620 = vst [vmem:[#allocation102_spill] sm:$0xff] %v13913_v0  ;;  %2978 = vrot.lane.b32.xlu0 %v2938_v9, %s12577_s26  ;;  %v13917_v19 = vpop.permute.xlu0 %2734  ;;  %v18633_v9 = vld [vmem:[#allocation107_spill] sm:$0xff] }
 0x34c   : > { %18621 = vst [vmem:[#allocation40_spill] sm:$0xff] %v13917_v19  ;;  %v2921_v2 = vsel %vm1853_vm0, %v18633_v9, %v18632_v50  ;;  %v18645_v50 = vld [vmem:[#allocation22_spill] sm:$0xff] }
 0x34d   : > { %v2937_v51 = vmul.f32 %v2921_v2, %v13561_v8  ;;  %v2771_v9 = vmul.f32 %v13884_v30, %v18645_v50  ;;  %v18646_v2 = vld [vmem:[#allocation20_spill] sm:$0xff] }
 0x34e   : > { %v13927_v16 = vpop.permute.xlu1 %2736  ;;  %2966 = vrot.lane.b32.xlu1 %v2932_v15, %s12577_s26  ;;  %v2770_v10 = vmul.f32 %v13869_v46, %v18646_v2 }
 0x34f   : > { %18626 = vst [vmem:[#allocation42_spill] sm:$0xff] %v13927_v16  ;;  %2986 = vrot.lane.b32.xlu0 %v2942_v59, %s12577_s26  ;;  %v13931_v39 = vpop.permute.xlu0 %2738 }
 0x350   : > { %18627 = vst [vmem:[#allocation91_spill] sm:$0xff] %v13931_v39 }
 0x352   : > { %v13938_v18 = vpop.permute.xlu1 %2740  ;;  %2968 = vrot.lane.b32.xlu1 %v2933_v54, %s12577_s26  ;;  %v2924_v54 = vsel %vm1853_vm0, %v18641_v41, %v18640_v43  ;;  %v18648_v43 = vld [vmem:[#allocation117_spill] sm:$0xff] }
 0x353   : > { %18630 = vst [vmem:[#allocation89_spill] sm:$0xff] %v13938_v18  ;;  %2990 = vrot.lane.b32.xlu0 %v2944_v26, %s12577_s26  ;;  %v13942_v37 = vpop.permute.xlu0 %2742  ;;  %v2940_v44 = vmul.f32 %v2924_v54, %v13648_v13  ;;  %v18644_v26 = vld [vmem:[#allocation114_spill] sm:$0xff]  ;;  %v18647_v13 = vld [vmem:[#allocation115_spill] sm:$0xff] }
 0x354   : > { %18631 = vst [vmem:[#allocation104_spill] sm:$0xff] %v13942_v37  ;;  %v2927_v41 = vsel %vm1853_vm0, %v18648_v43, %v18647_v13  ;;  %v12307_v13 = vld [vmem:[%s18187_s1 + $0x8] sm:$0xff]  ;;  %v18654_v43 = vld [vmem:[#allocation47_spill] sm:$0xff] }
 0x356   : > { %v13948_v22 = vpop.permute.xlu1 %2744  ;;  %2972 = vrot.lane.b32.xlu1 %v2935_v61, %s12577_s26  ;;  %v2925_v61 = vsel %vm1853_vm0, %v18644_v26, %v18643_v40 }
 0x357   : > { %18634 = vst [vmem:[#allocation106_spill] sm:$0xff] %v13948_v22  ;;  %v13951_v15 = vpop.permute.xlu0 %2746 }
 0x358   : > { %18635 = vst [vmem:[#allocation92_spill] sm:$0xff] %v13951_v15 }
 0x35a   : > { %v13957_v59 = vpop.permute.xlu1 %2748  ;;  %2976 = vrot.lane.b32.xlu1 %v2937_v51, %s12577_s26 }
 0x35b   : > { %18638 = vst [vmem:[#allocation94_spill] sm:$0xff] %v13957_v59  ;;  %v13960_v29 = vpop.permute.xlu0 %2750 }
 0x35c   : > { %18639 = vst [vmem:[#allocation109_spill] sm:$0xff] %v13960_v29 }
 0x35e   : > { %v13966_v58 = vpop.permute.xlu1 %2752  ;;  %2980 = vrot.lane.b32.xlu1 %v2939_v36, %s12577_s26  ;;  %v2941_v36 = vmul.f32 %v2925_v61, %v13662_v33  ;;  %v18649_v33 = vld [vmem:[#allocation119_spill] sm:$0xff]  ;;  %v18650_v61 = vld [vmem:[#allocation121_spill] sm:$0xff] }
 0x35f   : > { %18642 = vst [vmem:[#allocation72_spill] sm:$0xff] %v13966_v58  ;;  %v2837_v8 = vpop.permute.xlu0 %2836  ;;  %v2929_v50 = vsel %vm1853_vm0, %v18650_v61, %v18649_v33 }
 0x360   : > { %v2883_v53 = vadd.f32 %v2837_v8, %v2771_v9  ;;  %v2943_v8 = vmul.f32 %v2927_v41, %v13702_v28  ;;  %v14000_v9 = vld [vmem:[%s18188_s2] sm:$0xff]  ;;  %v3910_v41 = vmul.f32 %v12307_v13, %v18654_v43 }
 0x361   : > { %18651 = vst [vmem:[#allocation96_spill] sm:$0xff] %v14000_v9 }
 0x362   : > { %v2835_v51 = vpop.permute.xlu1 %2834  ;;  %2982 = vrot.lane.b32.xlu1 %v2940_v44, %s12577_s26 }
 0x363   : > { %v2882_v48 = vadd.f32 %v2835_v51, %v2770_v10  ;;  %v13978_v62 = vpop.permute.xlu0 %3941 }
 0x365   : > { %v3026_v54 = vpack.c.bf16 %v2883_v53, %v2882_v48  ;;  %v12306_v53 = vld [vmem:[%s18187_s1] sm:$0xff] }
 0x366   : > { %v13984_v40 = vpop.permute.xlu1 %3943  ;;  %2984 = vrot.lane.b32.xlu1 %v2941_v36, %s12577_s26  ;;  %v18653_v48 = vld [vmem:[#allocation45_spill] sm:$0xff] }
 0x367   : > { %v13987_v26 = vpop.permute.xlu0 %3989  ;;  %3050 = vrot.lane.b32.xlu0 %v3026_v54, %s12577_s26  ;;  %v3909_v36 = vmul.f32 %v12306_v53, %v18653_v48  ;;  %v2945_v54 = vmul.f32 %v2929_v50, %v13736_v45 }
 0x368   : > { %v4037_v44 = vsel %vm1853_vm0, %v13978_v62, %v13987_v26 }
 0x369   : > { %v4053_v2 = vmul.f32 %v14000_v9, %v4037_v44 }
 0x36a   : > { %v14003_v10 = vpop.permute.xlu1 %3991  ;;  %2988 = vrot.lane.b32.xlu1 %v2943_v8, %s12577_s26  ;;  %v14023_v8 = vld [vmem:[%s18188_s2 + $0x8] sm:$0xff] }
 0x36b   : > { %v4038_v28 = vsel %vm1853_vm0, %v13984_v40, %v14003_v10  ;;  %v14009_v51 = vpop.permute.xlu0 %3945  ;;  %v4069_v33 = vadd.f32 %v4053_v2, %v3909_v36 }
 0x36c   : > { %18652 = vst [vmem:[#allocation98_spill] sm:$0xff] %v14009_v51  ;;  %v4054_v44 = vmul.f32 %v14023_v8, %v4038_v28  ;;  %v18656_v28 = vld [vmem:[#allocation49_spill] sm:$0xff] }
 0x36d   : > { %v3911_v36 = vmul.f32 %v18656_v28, %v13394_v52 }
 0x36e   : > { %v4070_v61 = vadd.f32 %v4054_v44, %v3910_v41  ;;  %v14026_v4 = vpop.permute.xlu1 %3947  ;;  %2992 = vrot.lane.b32.xlu1 %v2945_v54, %s12577_s26  ;;  %v18657_v41 = vld [vmem:[#allocation51_spill] sm:$0xff] }
 0x36f   : > { %v14029_v53 = vpop.permute.xlu0 %3993  ;;  %v3912_v54 = vmul.f32 %v18657_v41, %v13417_v55 }
 0x370   : > { %18655 = vst [vmem:[#allocation116_spill] sm:$0xff] %v14029_v53  ;;  %v4039_v13 = vsel %vm1853_vm0, %v14009_v51, %v14029_v53  ;;  %v14034_v45 = vpack.c.bf16 %v4070_v61, %v4069_v33 }
 0x371   : > { %v4055_v50 = vmul.f32 %v4039_v13, %v13427_v25  ;;  %v2772_v25 = vmul.f32 %v13888_v56, %v13066_v27  ;;  %v2773_v13 = vmul.f32 %v13898_v60, %v13070_v47 }
 0x372   : > { %v14037_v12 = vpop.permute.xlu1 %3995 }
 0x373   : > { %v4040_v2 = vsel %vm1853_vm0, %v14026_v4, %v14037_v12  ;;  %v4071_v57 = vadd.f32 %v4055_v50, %v3911_v36 }
 0x374   : > { %v4056_v44 = vmul.f32 %v4040_v2, %v13441_v32  ;;  %v2774_v32 = vmul.f32 %v13903_v7, %v13074_v14 }
 0x376   : > { %v4072_v20 = vadd.f32 %v4056_v44, %v3912_v54  ;;  %v2778_v44 = vmul.f32 %v13931_v39, %v13090_v21 }
 0x378   : > { %v14047_v33 = vpack.c.bf16 %v4072_v20, %v4071_v57  ;;  %v2775_v20 = vmul.f32 %v13913_v0, %v13078_v38  ;;  %v18663_v38 = vld [vmem:[#allocation52_spill] sm:$0xff] }
 0x37a   : > { %18658 = vst [vmem:[#allocation97_spill] sm:$0xff] %v14047_v33 }
 0x381   : > { %v2839_v61 = vpop.permute.xlu1 %2838 }
 0x382   : > { %v2884_v31 = vadd.f32 %v2839_v61, %v2772_v25  ;;  %v2779_v61 = vmul.f32 %v13938_v18, %v13094_v23 }
 0x384   : > { %v2841_v24 = vpop.permute.xlu0 %2840 }
 0x385   : > { %v2885_v5 = vadd.f32 %v2841_v24, %v2773_v13 }
 0x387   : > { %v3027_v52 = vpack.c.bf16 %v2885_v5, %v2884_v31  ;;  %v2776_v5 = vmul.f32 %v13917_v19, %v13082_v63  ;;  %v2777_v31 = vmul.f32 %v13927_v16, %v13086_v17 }
 0x389   : > { %3052 = vrot.lane.b32.xlu1 %v3027_v52, %s12577_s26  ;;  %v2843_v55 = vpop.permute.xlu0 %2842 }
 0x38a   : > { %v14058_v50 = vadd.f32 %v2843_v55, %v2774_v32  ;;  %v2780_v55 = vmul.f32 %v13942_v37, %v18595_v1  ;;  %v2781_v32 = vmul.f32 %v13948_v22, %v18596_v49 }
 0x38c   : > { %v2845_v57 = vpop.permute.xlu1 %2844 }
 0x38d   : > { %v14060_v27 = vadd.f32 %v2845_v57, %v2775_v20 }
 0x391   : > { %v2847_v2 = vpop.permute.xlu0 %2846 }
 0x392   : > { %v14068_v14 = vadd.f32 %v2847_v2, %v2776_v5  ;;  %v2782_v5 = vmul.f32 %v13951_v15, %v18598_v3 }
 0x394   : > { %v2849_v24 = vpop.permute.xlu1 %2848 }
 0x395   : > { %v14070_v36 = vadd.f32 %v2849_v24, %v2777_v31  ;;  %v2783_v31 = vmul.f32 %v13957_v59, %v18599_v42 }
 0x399   : > { %v2851_v54 = vpop.permute.xlu1 %2850 }
 0x39a   : > { %v14078_v63 = vadd.f32 %v2851_v54, %v2778_v44 }
 0x39c   : > { %v2853_v25 = vpop.permute.xlu0 %2852 }
 0x39d   : > { %v14080_v13 = vadd.f32 %v2853_v25, %v2779_v61  ;;  %v2784_v61 = vmul.f32 %v13960_v29, %v18603_v35  ;;  %v2785_v25 = vmul.f32 %v13966_v58, %v18604_v6 }
 0x3a1   : > { %v2855_v52 = vpop.permute.xlu1 %2854 }
 0x3a2   : > { %v14088_v21 = vadd.f32 %v2855_v52, %v2780_v55 }
 0x3a4   : > { %v2857_v20 = vpop.permute.xlu0 %2856 }
 0x3a5   : > { %v14090_v57 = vadd.f32 %v2857_v20, %v2781_v32  ;;  %v18659_v20 = vld [vmem:[#allocation44_spill] sm:$0xff] }
 0x3a9   : > { %v2859_v2 = vpop.permute.xlu0 %2858 }
 0x3aa   : > { %v14098_v1 = vadd.f32 %v2859_v2, %v2782_v5  ;;  %v2898_v2 = vmul.f32 %v13869_v46, %v18659_v20  ;;  %v18660_v5 = vld [vmem:[#allocation46_spill] sm:$0xff] }
 0x3ac   : > { %v2861_v24 = vpop.permute.xlu1 %2860 }
 0x3ad   : > { %v14100_v54 = vadd.f32 %v2861_v24, %v2783_v31  ;;  %v2899_v31 = vmul.f32 %v13884_v30, %v18660_v5  ;;  %v2902_v5 = vmul.f32 %v13903_v7, %v18663_v38 }
 0x3b1   : > { %v2863_v44 = vpop.permute.xlu0 %2862 }
 0x3b2   : > { %v14108_v3 = vadd.f32 %v2863_v44, %v2784_v61  ;;  %v18661_v61 = vld [vmem:[#allocation48_spill] sm:$0xff] }
 0x3b4   : > { %v2865_v52 = vpop.permute.xlu1 %2864 }
 0x3b5   : > { %v14110_v55 = vadd.f32 %v2865_v52, %v2785_v25  ;;  %v2971_v44 = vpop.permute.xlu0 %2970  ;;  %v2900_v25 = vmul.f32 %v13888_v56, %v18661_v61  ;;  %v18662_v52 = vld [vmem:[#allocation50_spill] sm:$0xff] }
 0x3b6   : > { %v2901_v42 = vmul.f32 %v13898_v60, %v18662_v52  ;;  %v18666_v60 = vld [vmem:[#allocation58_spill] sm:$0xff] }
 0x3b8   : > { %v2963_v32 = vpop.permute.xlu1 %2962 }
 0x3b9   : > { %v3010_v35 = vadd.f32 %v2963_v32, %v2898_v2  ;;  %v18664_v32 = vld [vmem:[#allocation54_spill] sm:$0xff]  ;;  %v2975_v2 = vpop.permute.xlu0 %2974 }
 0x3bc   : > { %v2965_v24 = vpop.permute.xlu1 %2964 }
 0x3bd   : > { %v3011_v49 = vadd.f32 %v2965_v24, %v2899_v31 }
 0x3bf   : > { %v3034_v17 = vpack.c.bf16 %v3011_v49, %v3010_v35  ;;  %v2903_v49 = vmul.f32 %v13913_v0, %v18664_v32  ;;  %v18665_v35 = vld [vmem:[#allocation56_spill] sm:$0xff] }
 0x3c0   : > { %v2967_v6 = vpop.permute.xlu1 %2966  ;;  %v2904_v61 = vmul.f32 %v13917_v19, %v18665_v35  ;;  %v18670_v35 = vld [vmem:[#allocation66_spill] sm:$0xff] }
 0x3c1   : > { %3074 = vrot.lane.b32.xlu0 %v3034_v17, %s12577_s26  ;;  %v3012_v47 = vadd.f32 %v2967_v6, %v2900_v25  ;;  %v3014_v17 = vadd.f32 %v2971_v44, %v2902_v5  ;;  %v18667_v25 = vld [vmem:[#allocation60_spill] sm:$0xff]  ;;  %v18668_v5 = vld [vmem:[#allocation62_spill] sm:$0xff] }
 0x3c2   : > { %v3016_v6 = vadd.f32 %v2975_v2, %v2904_v61  ;;  %v18669_v2 = vld [vmem:[#allocation64_spill] sm:$0xff]  ;;  %v2909_v61 = vmul.f32 %v13948_v22, %v18670_v35 }
 0x3c4   : > { %v2969_v23 = vpop.permute.xlu1 %2968 }
 0x3c5   : > { %v3013_v20 = vadd.f32 %v2969_v23, %v2901_v42  ;;  %v2905_v23 = vmul.f32 %v13927_v16, %v18666_v60 }
 0x3c7   : > { %v3035_v11 = vpack.c.bf16 %v3013_v20, %v3012_v47  ;;  %v2979_v47 = vpop.permute.xlu0 %2978  ;;  %v2906_v20 = vmul.f32 %v13931_v39, %v18667_v25 }
 0x3c8   : > { %v2973_v31 = vpop.permute.xlu1 %2972 }
 0x3c9   : > { %v3015_v24 = vadd.f32 %v2973_v31, %v2903_v49  ;;  %3076 = vrot.lane.b32.xlu1 %v3035_v11, %s12577_s26  ;;  %v2907_v11 = vmul.f32 %v13938_v18, %v18668_v5  ;;  %v3018_v49 = vadd.f32 %v2979_v47, %v2906_v20  ;;  %v18672_v20 = vld [vmem:[#allocation70_spill] sm:$0xff] }
 0x3cb   : > { %v3036_v52 = vpack.c.bf16 %v3015_v24, %v3014_v17  ;;  %v2908_v24 = vmul.f32 %v13942_v37, %v18669_v2  ;;  %v18673_v2 = vld [vmem:[#allocation74_spill] sm:$0xff] }
 0x3cc   : > { %v2977_v42 = vpop.permute.xlu1 %2976 }
 0x3cd   : > { %v3017_v38 = vadd.f32 %v2977_v42, %v2905_v23  ;;  %3078 = vrot.lane.b32.xlu0 %v3036_v52, %s12577_s26  ;;  %v2987_v52 = vpop.permute.xlu0 %2986 }
 0x3cf   : > { %v3037_v44 = vpack.c.bf16 %v3017_v38, %v3016_v6  ;;  %v18671_v38 = vld [vmem:[#allocation68_spill] sm:$0xff] }
 0x3d0   : > { %v2981_v32 = vpop.permute.xlu1 %2980  ;;  %v2910_v47 = vmul.f32 %v13951_v15, %v18671_v38 }
 0x3d1   : > { %v3019_v31 = vadd.f32 %v2981_v32, %v2907_v11  ;;  %3080 = vrot.lane.b32.xlu1 %v3037_v44, %s12577_s26  ;;  %v2911_v44 = vmul.f32 %v13957_v59, %v18672_v20 }
 0x3d2   : > { %v3022_v11 = vadd.f32 %v2987_v52, %v2910_v47 }
 0x3d3   : > { %v3038_v17 = vpack.c.bf16 %v3019_v31, %v3018_v49  ;;  %v2991_v49 = vpop.permute.xlu0 %2990  ;;  %v2912_v31 = vmul.f32 %v13960_v29, %v13256_v34 }
 0x3d4   : > { %v2983_v60 = vpop.permute.xlu1 %2982 }
 0x3d5   : > { %3082 = vrot.lane.b32.xlu0 %v3038_v17, %s12577_s26  ;;  %v3020_v42 = vadd.f32 %v2983_v60, %v2908_v24  ;;  %v2913_v60 = vmul.f32 %v13966_v58, %v18673_v2  ;;  %v3024_v35 = vadd.f32 %v2991_v49, %v2912_v31 }
 0x3d8   : > { %v2985_v23 = vpop.permute.xlu1 %2984 }
 0x3d9   : > { %v3021_v6 = vadd.f32 %v2985_v23, %v2909_v61 }
 0x3db   : > { %v3039_v25 = vpack.c.bf16 %v3021_v6, %v3020_v42  ;;  %v18674_v42 = vld [vmem:[#allocation55_spill] sm:$0xff] }
 0x3dc   : > { %v2989_v5 = vpop.permute.xlu1 %2988 }
 0x3dd   : > { %v3023_v32 = vadd.f32 %v2989_v5, %v2911_v44  ;;  %3084 = vrot.lane.b32.xlu1 %v3039_v25, %s12577_s26 }
 0x3df   : > { %v3040_v17 = vpack.c.bf16 %v3023_v32, %v3022_v11 }
 0x3e0   : > { %v2993_v24 = vpop.permute.xlu1 %2992 }
 0x3e1   : > { %v3025_v61 = vadd.f32 %v2993_v24, %v2913_v60  ;;  %3086 = vrot.lane.b32.xlu0 %v3040_v17, %s12577_s26  ;;  %v18675_v24 = vld [vmem:[#allocation53_spill] sm:$0xff] }
 0x3e3   : > { %v3041_v23 = vpack.c.bf16 %v3025_v61, %v3024_v35  ;;  %v14187_v35 = vpop.permute.xlu0 %3050 }
 0x3e4   : > { %18676 = vst [vmem:[#allocation99_spill] sm:$0xff] %v14187_v35 }
 0x3e5   : > { %3088 = vrot.lane.b32.xlu1 %v3041_v23, %s12577_s26 }
 0x3e9   : > { %v10360_v52 = vpop.f32.mrb[0].mxu1  ;;  %3951 = vrot.lane.b32.xlu1 %v18674_v42, %s12575_s30 }
 0x3ea   : > { %v2177_v6 = vpop.f32.mrb[1].mxu1 }
 0x3eb   : > { %v10361_v38 = vpop.f32.mrb[2].mxu1 }
 0x3ec   : > { %v2180_v47 = vpop.f32.mrb[3].mxu1 }
 0x3f9   : > { %v14156_v34 = vpop.f32.mrb[4].mxu1 }
 0x3fa   : > { %v14158_v25 = vpop.f32.mrb[5].mxu1 }
 0x3fb   : > { %v14160_v20 = vpop.f32.mrb[6].mxu1  ;;  %v14200_v23 = vpop.permute.xlu1 %3052 }
 0x3fc   : > { %v14162_v44 = vpop.f32.mrb[7].mxu1  ;;  %18677 = vst [vmem:[#allocation118_spill] sm:$0xff] %v14200_v23 }
 0x400   : > { %2244 = vmax.xlane.f32.xlu0 %v10360_v52 }
 0x404   : > { %2240 = vmax.xlane.f32.xlu0 %v2177_v6 }
 0x408   : > { %2246 = vmax.xlane.f32.xlu0 %v10361_v38 }
 0x409   : > { %v14164_v5 = vpop.f32.mrb[8].mxu1 }
 0x40a   : > { %v14166_v11 = vpop.f32.mrb[9].mxu1 }
 0x40b   : > { %v14168_v32 = vpop.f32.mrb[10].mxu1 }
 0x40c   : > { %v14170_v49 = vpop.f32.mrb[11].mxu1 }
 0x40d   : > { %2242 = vmax.xlane.f32.xlu1 %v2180_v47 }
 0x411   : > { %2254 = vmax.xlane.f32.xlu1 %v14160_v20 }
 0x415   : > { %2250 = vmax.xlane.f32.xlu1 %v14162_v44 }
 0x419   : > { %v14174_v31 = vpop.f32.mrb[12].mxu1  ;;  %2262 = vmax.xlane.f32.xlu1 %v14168_v32 }
 0x41a   : > { %v14177_v17 = vpop.f32.mrb[13].mxu1 }
 0x41b   : > { %v14179_v2 = vpop.f32.mrb[14].mxu1 }
 0x41c   : > { %v14181_v60 = vpop.f32.mrb[15].mxu1 }
 0x41d   : > { %2258 = vmax.xlane.f32.xlu1 %v14170_v49 }
 0x41e   : > { %3949 = vrot.lane.b32.xlu0 %v18675_v24, %s12575_s30 }
 0x421   : > { %2266 = vmax.xlane.f32.xlu1 %v14181_v60 }
 0x433   : > { %v14189_v61 = vpop.permute.xlu0 %3074 }
 0x434   : > { %10830 = vmatprep.subr.msk.bf16.mxu1 %vm2094_vm1, %v14189_v61 }
 0x43b   : > { %v14204_v29 = vpop.permute.xlu1 %3076 }
 0x43d   : > { %2252 = vmax.xlane.f32.xlu0 %v14156_v34 }
 0x43f   : > { %v14202_v58 = vpop.permute.xlu0 %3078 }
 0x441   : > { %2248 = vmax.xlane.f32.xlu0 %v14158_v25 }
 0x443   : > { %v14208_v15 = vpop.permute.xlu1 %3080 }
 0x445   : > { %2260 = vmax.xlane.f32.xlu0 %v14164_v5 }
 0x447   : > { %v14206_v59 = vpop.permute.xlu0 %3082 }
 0x449   : > { %2256 = vmax.xlane.f32.xlu0 %v14166_v11 }
 0x44d   : > { %2268 = vmax.xlane.f32.xlu0 %v14174_v31 }
 0x44f   : > { %v14212_v37 = vpop.permute.xlu1 %3084 }
 0x451   : > { %2264 = vmax.xlane.f32.xlu0 %v14177_v17 }
 0x453   : > { %v14210_v22 = vpop.permute.xlu0 %3086 }
 0x455   : > { %2270 = vmax.xlane.f32.xlu0 %v14179_v2 }
 0x457   : > { %v14214_v16 = vpop.permute.xlu1 %3088 }
 0x45b   : > { %v14216_v28 = vpop.permute.xlu1 %3951 }
 0x48d   : > { %v2245_v18 = vpop.xlane.xlu0 %2244 }
 0x48e   : > { %v2274_v39 = vsub.f32 %v10360_v52, %v2245_v18 }
 0x490   : > { %v2292_v19 = vmul.f32 1.442695, %v2274_v39 }
 0x491   : > { %v2241_v0 = vpop.xlane.xlu0 %2240 }
 0x492   : > { %11601 = vpow2.f32 %v2292_v19  ;;  %v2272_v7 = vsub.f32 %v2177_v6, %v2241_v0 }
 0x494   : > { %v2288_v41 = vmul.f32 1.442695, %v2272_v7 }
 0x495   : > { %v2247_v56 = vpop.xlane.xlu0 %2246 }
 0x496   : > { %11603 = vpow2.f32 %v2288_v41  ;;  %v2275_v30 = vsub.f32 %v10361_v38, %v2247_v56 }
 0x498   : > { %v2294_v43 = vmul.f32 1.442695, %v2275_v30 }
 0x499   : > { %v14232_v30 = vpop.permute.xlu0 %3949 }
 0x49a   : > { %11605 = vpow2.f32 %v2294_v43  ;;  %v2243_v46 = vpop.xlane.xlu1 %2242 }
 0x49b   : > { %v2273_v48 = vsub.f32 %v2180_v47, %v2243_v46 }
 0x49c   : > { %v14218_v33 = vpop.eup %11601 }
 0x49d   : > { %v2290_v23 = vmul.f32 1.442695, %v2273_v48  ;;  %2324 = vadd.xlane.f32.xlu0 %v14218_v33 }
 0x49e   : > { %v2255_v46 = vpop.xlane.xlu1 %2254 }
 0x49f   : > { %11607 = vpow2.f32 %v2290_v23  ;;  %v2279_v41 = vsub.f32 %v14160_v20, %v2255_v46 }
 0x4a0   : > { %v14221_v39 = vpop.eup %11603 }
 0x4a1   : > { %2320 = vadd.xlane.f32.xlu0 %v14221_v39  ;;  %v2302_v23 = vmul.f32 1.442695, %v2279_v41 }
 0x4a2   : > { %v2251_v56 = vpop.xlane.xlu1 %2250 }
 0x4a3   : > { %v2277_v48 = vsub.f32 %v14162_v44, %v2251_v56 }
 0x4a4   : > { %v14224_v7 = vpop.eup %11605 }
 0x4a5   : > { %2326 = vadd.xlane.f32.xlu0 %v14224_v7  ;;  %v2298_v38 = vmul.f32 1.442695, %v2277_v48 }
 0x4a6   : > { %v2263_v53 = vpop.xlane.xlu1 %2262 }
 0x4a7   : > { %v2283_v20 = vsub.f32 %v14168_v32, %v2263_v53 }
 0x4a9   : > { %v14227_v0 = vpop.eup %11607 }
 0x4aa   : > { %2322 = vadd.xlane.f32.xlu1 %v14227_v0 }
 0x4bb   : > { %3999 = vrot.lane.b32.xlu1 %v18674_v42, %s12576_s12 }
 0x4ca   : > { %v2253_v19 = vpop.xlane.xlu0 %2252 }
 0x4cb   : > { %v2278_v18 = vsub.f32 %v14156_v34, %v2253_v19  ;;  %v2310_v19 = vmul.f32 1.442695, %v2283_v20 }
 0x4cd   : > { %v2300_v43 = vmul.f32 1.442695, %v2278_v18 }
 0x4ce   : > { %v2249_v52 = vpop.xlane.xlu0 %2248 }
 0x4cf   : > { %11609 = vpow2.f32 %v2300_v43  ;;  %v2276_v6 = vsub.f32 %v14158_v25, %v2249_v52  ;;  %v2259_v25 = vpop.xlane.xlu1 %2258  ;;  %v18678_v43 = vld [vmem:[#allocation59_spill] sm:$0xff] }
 0x4d0   : > { %v2281_v18 = vsub.f32 %v14170_v49, %v2259_v25 }
 0x4d1   : > { %v2296_v47 = vmul.f32 1.442695, %v2276_v6 }
 0x4d2   : > { %v2261_v35 = vpop.xlane.xlu0 %2260  ;;  %v2306_v53 = vmul.f32 1.442695, %v2281_v18 }
 0x4d3   : > { %11611 = vpow2.f32 %v2296_v47  ;;  %v2282_v51 = vsub.f32 %v14164_v5, %v2261_v35 }
 0x4d4   : > { %11613 = vpow2.f32 %v2298_v38 }
 0x4d5   : > { %v2308_v9 = vmul.f32 1.442695, %v2282_v51  ;;  %11615 = vpow2.f32 %v2302_v23 }
 0x4d6   : > { %v2257_v34 = vpop.xlane.xlu0 %2256 }
 0x4d7   : > { %11617 = vpow2.f32 %v2308_v9  ;;  %v2280_v44 = vsub.f32 %v14166_v11, %v2257_v34 }
 0x4d9   : > { %v14241_v46 = vpop.eup %11609  ;;  %v2304_v56 = vmul.f32 1.442695, %v2280_v44  ;;  %v2267_v44 = vpop.xlane.xlu1 %2266 }
 0x4da   : > { %2332 = vadd.xlane.f32.xlu0 %v14241_v46  ;;  %v2269_v48 = vpop.xlane.xlu0 %2268  ;;  %v2285_v25 = vsub.f32 %v14181_v60, %v2267_v44 }
 0x4db   : > { %11619 = vpow2.f32 %v2304_v56  ;;  %v2286_v52 = vsub.f32 %v14174_v31, %v2269_v48  ;;  %v18679_v48 = vld [vmem:[#allocation57_spill] sm:$0xff] }
 0x4dc   : > { %11621 = vpow2.f32 %v2310_v19  ;;  %v2314_v56 = vmul.f32 1.442695, %v2285_v25 }
 0x4dd   : > { %v14245_v5 = vpop.eup %11611  ;;  %11623 = vpow2.f32 %v2306_v53  ;;  %v2316_v6 = vmul.f32 1.442695, %v2286_v52  ;;  %v18680_v52 = vld [vmem:[#allocation63_spill] sm:$0xff] }
 0x4de   : > { %v14247_v51 = vpop.eup %11613  ;;  %2328 = vadd.xlane.f32.xlu0 %v14245_v5  ;;  %v2265_v41 = vpop.xlane.xlu0 %2264 }
 0x4df   : > { %2330 = vadd.xlane.f32.xlu1 %v14247_v51  ;;  %v14251_v9 = vpop.eup %11615  ;;  %v2284_v38 = vsub.f32 %v14177_v17, %v2265_v41  ;;  %11625 = vpow2.f32 %v2316_v6  ;;  %v18681_v6 = vld [vmem:[#allocation61_spill] sm:$0xff] }
 0x4e1   : > { %v14253_v11 = vpop.eup %11617  ;;  %v2312_v23 = vmul.f32 1.442695, %v2284_v38 }
 0x4e2   : > { %2334 = vadd.xlane.f32.xlu0 %v14251_v9  ;;  %v2271_v47 = vpop.xlane.xlu0 %2270 }
 0x4e3   : > { %2340 = vadd.xlane.f32.xlu1 %v14253_v11  ;;  %v2287_v34 = vsub.f32 %v14179_v2, %v2271_v47  ;;  %11627 = vpow2.f32 %v2312_v23 }
 0x4e5   : > { %v14257_v32 = vpop.eup %11619  ;;  %v2318_v20 = vmul.f32 1.442695, %v2287_v34  ;;  %v18682_v34 = vld [vmem:[#allocation67_spill] sm:$0xff] }
 0x4e6   : > { %v14260_v49 = vpop.eup %11621 }
 0x4e7   : > { %2336 = vadd.xlane.f32.xlu1 %v14257_v32  ;;  %v14263_v35 = vpop.eup %11623  ;;  %11629 = vpow2.f32 %v2318_v20 }
 0x4e8   : > { %11631 = vpow2.f32 %v2314_v56 }
 0x4e9   : > { %v14274_v19 = vpop.eup %11625 }
 0x4eb   : > { %2342 = vadd.xlane.f32.xlu1 %v14260_v49 }
 0x4ed   : > { %v14277_v31 = vpop.eup %11627 }
 0x4ef   : > { %2338 = vadd.xlane.f32.xlu1 %v14263_v35 }
 0x4f1   : > { %v14280_v17 = vpop.eup %11629 }
 0x4f2   : > { %v14283_v2 = vpop.eup %11631 }
 0x4f8   : > { %3997 = vrot.lane.b32.xlu0 %v18675_v24, %s12576_s12 }
 0x500   : > { %3955 = vrot.lane.b32.xlu1 %v18678_v43, %s12575_s30 }
 0x517   : > { %2348 = vadd.xlane.f32.xlu0 %v14274_v19 }
 0x51b   : > { %2344 = vadd.xlane.f32.xlu0 %v14277_v31 }
 0x51f   : > { %2350 = vadd.xlane.f32.xlu0 %v14280_v17 }
 0x524   : > { %2346 = vadd.xlane.f32.xlu1 %v14283_v2 }
 0x52a   : > { %v2325_v60 = vpop.xlane.xlu0 %2324 }
 0x52e   : > { %v2321_v18 = vpop.xlane.xlu0 %2320 }
 0x532   : > { %v2327_v53 = vpop.xlane.xlu0 %2326 }
 0x533   : > { %11633 = vrcp.f32 %v2327_v53 }
 0x534   : > { %11635 = vrcp.f32 %v2321_v18  ;;  %v18683_v18 = vld [vmem:[#allocation65_spill] sm:$0xff] }
 0x535   : > { %4003 = vrot.lane.b32.xlu1 %v18678_v43, %s12576_s12  ;;  %3953 = vrot.lane.b32.xlu0 %v18679_v48, %s12575_s30  ;;  %11637 = vrcp.f32 %v2325_v60 }
 0x537   : > { %v2323_v41 = vpop.xlane.xlu1 %2322 }
 0x538   : > { %11639 = vrcp.f32 %v2323_v41 }
 0x539   : > { %3959 = vrot.lane.b32.xlu1 %v18680_v52, %s12575_s30  ;;  %4001 = vrot.lane.b32.xlu0 %v18679_v48, %s12576_s12 }
 0x53d   : > { %4007 = vrot.lane.b32.xlu1 %v18680_v52, %s12576_s12  ;;  %3957 = vrot.lane.b32.xlu0 %v18681_v6, %s12575_s30  ;;  %v11634_v38 = vpop.eup %11633  ;;  %v3115_v52 = vsel %vm2094_vm1, %v14189_v61, 0  ;;  %v3118_v61 = vsel %vm2094_vm1, %v14204_v29, 0 }
 0x53e   : > { %v11636_v47 = vpop.eup %11635  ;;  %v2371_v20 = vmul.f32 %v11634_v38, %v14224_v7  ;;  %v18686_v7 = vpack.c.bf16 %v14060_v27, %v14058_v50  ;;  %v18689_v50 = vld [vmem:[#allocation75_spill] sm:$0xff]  ;;  %v18690_v27 = vpack.c.bf16 %v14080_v13, %v14078_v63  ;;  %v18694_v13 = vpack.c.bf16 %v14100_v54, %v14098_v1  ;;  %v18696_v54 = vld [vmem:[#allocation25_spill] sm:$0xff] }
 0x53f   : > { %v11638_v23 = vpop.eup %11637  ;;  %v2368_v25 = vmul.f32 %v11636_v47, %v14221_v39  ;;  %v18684_v39 = vpack.c.bf16 %v14070_v36, %v14068_v14  ;;  %v18687_v14 = vld [vmem:[#allocation69_spill] sm:$0xff]  ;;  %v18688_v36 = vpack.c.bf16 %v14090_v57, %v14088_v21  ;;  %v18692_v57 = vpack.c.bf16 %v14110_v55, %v14108_v3  ;;  %v18693_v63 = vld [vmem:[#allocation23_spill] sm:$0xff] }
 0x540   : > { %v2370_v60 = vmul.f32 %v11638_v23, %v14218_v33  ;;  %v18685_v33 = vld [vmem:[#allocation71_spill] sm:$0xff]  ;;  %v18691_v21 = vld [vmem:[#allocation73_spill] sm:$0xff]  ;;  %v3127_v3 = vsel %vm2094_vm1, %v14206_v59, 0  ;;  %v3130_v23 = vsel %vm2094_vm1, %v14212_v37, 0 }
 0x541   : > { %3963 = vrot.lane.b32.xlu1 %v18682_v34, %s12575_s30  ;;  %4005 = vrot.lane.b32.xlu0 %v18681_v6, %s12576_s12  ;;  %v18695_v55 = vld [vmem:[#allocation21_spill] sm:$0xff] }
 0x542   : > { %v11640_v44 = vpop.eup %11639  ;;  %v2385_v41 = vpack.c.bf16 %v2371_v20, %v2370_v60  ;;  %v14398_v20 = vld [vmem:[%s18188_s2 + $0x28] sm:$0xff] }
 0x543   : > { %v2369_v56 = vmul.f32 %v11640_v44, %v14227_v0  ;;  %v14370_v0 = vpop.permute.xlu1 %3999  ;;  %v18697_v44 = vld [vmem:[#allocation24_spill] sm:$0xff] }
 0x544   : > { %v4042_v38 = vsel %vm1853_vm0, %v14216_v28, %v14370_v0 }
 0x545   : > { %4011 = vrot.lane.b32.xlu1 %v18682_v34, %s12576_s12  ;;  %3961 = vrot.lane.b32.xlu0 %v18683_v18, %s12575_s30  ;;  %v2384_v53 = vpack.c.bf16 %v2369_v56, %v2368_v25  ;;  %v4058_v25 = vmul.f32 %v14398_v20, %v4042_v38 }
 0x547   : > { %10390 = vmatprep.mubr.bf16.mxu1 %v2384_v53  ;;  %v14409_v53 = vld [vmem:[%s18187_s1 + $0x20] sm:$0xff] }
 0x548   : > { %10391 = vmatmul.mubr.bf16.vlgmr.msra.gmra.mrb[16].mxu1 %v2385_v41  ;;  %v3913_v41 = vmul.f32 %v14409_v53, %v18675_v24 }
 0x549   : > { %10407 = vmatpush3.bf16.xpose.msra.mxu1 %v3115_v52  ;;  %3056 = vrot.lane.b32.xlu1 %v18684_v39, %s12577_s26  ;;  %v14416_v39 = vld [vmem:[%s18187_s1 + $0x28] sm:$0xff] }
 0x54a   : > { %4009 = vrot.lane.b32.xlu0 %v18683_v18, %s12576_s12  ;;  %10831 = vmatprep.subr.msk.bf16.mxu1 %vm2094_vm1, %v14204_v29  ;;  %v3121_v29 = vsel %vm2094_vm1, %v14202_v58, 0 }
 0x54d   : > { %3967 = vrot.lane.b32.xlu1 %v18685_v33, %s12575_s30 }
 0x54e   : > { %3054 = vrot.lane.b32.xlu0 %v18686_v7, %s12577_s26  ;;  %v3914_v7 = vmul.f32 %v14416_v39, %v18674_v42 }
 0x551   : > { %10409 = vmatpush3.bf16.xpose.msra.mxu1 %v3118_v61  ;;  %4015 = vrot.lane.b32.xlu1 %v18685_v33, %s12576_s12  ;;  %v14423_v61 = vld [vmem:[%s18188_s2 + $0x20] sm:$0xff] }
 0x552   : > { %3965 = vrot.lane.b32.xlu0 %v18687_v14, %s12575_s30  ;;  %10832 = vmatprep.subr.msk.bf16.mxu1 %vm2094_vm1, %v14202_v58  ;;  %v3124_v58 = vsel %vm2094_vm1, %v14208_v15, 0 }
 0x555   : > { %3060 = vrot.lane.b32.xlu1 %v18688_v36, %s12577_s26 }
 0x556   : > { %4013 = vrot.lane.b32.xlu0 %v18687_v14, %s12576_s12 }
 0x559   : > { %10411 = vmatpush3.bf16.xpose.msra.mxu1 %v3121_v29  ;;  %3971 = vrot.lane.b32.xlu1 %v18689_v50, %s12575_s30  ;;  %v18698_v29 = vld [vmem:[#allocation27_spill] sm:$0xff] }
 0x55a   : > { %3058 = vrot.lane.b32.xlu0 %v18690_v27, %s12577_s26  ;;  %10833 = vmatprep.subr.msk.bf16.mxu1 %vm2094_vm1, %v14208_v15 }
 0x55d   : > { %4019 = vrot.lane.b32.xlu1 %v18689_v50, %s12576_s12 }
 0x55e   : > { %3969 = vrot.lane.b32.xlu0 %v18691_v21, %s12575_s30 }
 0x561   : > { %10413 = vmatpush3.bf16.xpose.msra.mxu1 %v3124_v58  ;;  %3064 = vrot.lane.b32.xlu1 %v18692_v57, %s12577_s26  ;;  %v4074_v57 = vadd.f32 %v4058_v25, %v3914_v7  ;;  %v18699_v25 = vld [vmem:[#allocation26_spill] sm:$0xff] }
 0x562   : > { %4017 = vrot.lane.b32.xlu0 %v18691_v21, %s12576_s12  ;;  %10834 = vmatprep.subr.msk.bf16.mxu1 %vm2094_vm1, %v14206_v59 }
 0x565   : > { %3767 = vrot.lane.b32.xlu1 %v18693_v63, %s12575_s30 }
 0x566   : > { %3062 = vrot.lane.b32.xlu0 %v18694_v13, %s12577_s26 }
 0x567   : > { %v2333_v15 = vpop.xlane.xlu0 %2332 }
 0x569   : > { %10415 = vmatpush3.bf16.xpose.msra.mxu1 %v3127_v3  ;;  %3815 = vrot.lane.b32.xlu1 %v18693_v63, %s12576_s12 }
 0x56a   : > { %3765 = vrot.lane.b32.xlu0 %v18695_v55, %s12575_s30  ;;  %10835 = vmatprep.subr.msk.bf16.mxu1 %vm2094_vm1, %v14212_v37 }
 0x56b   : > { %v2329_v52 = vpop.xlane.xlu0 %2328 }
 0x56c   : > { %11641 = vrcp.f32 %v2329_v52  ;;  %v2331_v1 = vpop.xlane.xlu1 %2330 }
 0x56d   : > { %11643 = vrcp.f32 %v2331_v1  ;;  %3771 = vrot.lane.b32.xlu1 %v18696_v54, %s12575_s30  ;;  %v3133_v1 = vsel %vm2094_vm1, %v14210_v22, 0 }
 0x56e   : > { %11645 = vrcp.f32 %v2333_v15  ;;  %3813 = vrot.lane.b32.xlu0 %v18695_v55, %s12576_s12 }
 0x56f   : > { %v2335_v59 = vpop.xlane.xlu0 %2334 }
 0x570   : > { %11647 = vrcp.f32 %v2335_v59  ;;  %v2341_v47 = vpop.xlane.xlu1 %2340 }
 0x571   : > { %10417 = vmatpush3.bf16.xpose.msra.mxu1 %v3130_v23  ;;  %3819 = vrot.lane.b32.xlu1 %v18696_v54, %s12576_s12 }
 0x572   : > { %3769 = vrot.lane.b32.xlu0 %v18697_v44, %s12575_s30  ;;  %10836 = vmatprep.subr.msk.bf16.mxu1 %vm2094_vm1, %v14210_v22 }
 0x573   : > { %v14401_v56 = vpop.permute.xlu0 %3997 }
 0x574   : > { %v4041_v37 = vsel %vm1853_vm0, %v14232_v30, %v14401_v56  ;;  %v2337_v60 = vpop.xlane.xlu1 %2336 }
 0x575   : > { %v4057_v36 = vmul.f32 %v14423_v61, %v4041_v37  ;;  %3775 = vrot.lane.b32.xlu1 %v18698_v29, %s12575_s30 }
 0x576   : > { %v11642_v27 = vpop.eup %11641  ;;  %3817 = vrot.lane.b32.xlu0 %v18697_v44, %s12576_s12 }
 0x577   : > { %v11644_v58 = vpop.eup %11643  ;;  %v4073_v13 = vadd.f32 %v4057_v36, %v3913_v41  ;;  %v2372_v15 = vmul.f32 %v11642_v27, %v14245_v5  ;;  %v18700_v41 = vld [vmem:[#allocation29_spill] sm:$0xff]  ;;  %v3136_v36 = vsel %vm2094_vm1, %v14214_v16, 0 }
 0x578   : > { %v11646_v3 = vpop.eup %11645  ;;  %v2343_v52 = vpop.xlane.xlu1 %2342  ;;  %v2373_v59 = vmul.f32 %v11644_v58, %v14247_v51 }
 0x579   : > { %10419 = vmatpush3.bf16.xpose.msra.mxu1 %v3133_v1  ;;  %3823 = vrot.lane.b32.xlu1 %v18698_v29, %s12576_s12  ;;  %v14436_v38 = vpack.c.bf16 %v4074_v57, %v4073_v13  ;;  %11649 = vrcp.f32 %v2343_v52  ;;  %v2374_v22 = vmul.f32 %v11646_v3, %v14241_v46  ;;  %v18701_v46 = vld [vmem:[#allocation28_spill] sm:$0xff]  ;;  %v18703_v3 = vld [vmem:[#allocation30_spill] sm:$0xff] }
 0x57a   : > { %v11648_v23 = vpop.eup %11647  ;;  %3773 = vrot.lane.b32.xlu0 %v18699_v25, %s12575_s30  ;;  %10837 = vmatprep.subr.msk.bf16.mxu1 %vm2094_vm1, %v14214_v16  ;;  %v2386_v5 = vpack.c.bf16 %v2373_v59, %v2372_v15  ;;  %11651 = vrcp.f32 %v2337_v60  ;;  %v18702_v60 = vld [vmem:[#allocation31_spill] sm:$0xff] }
 0x57b   : > { %v2375_v51 = vmul.f32 %v11648_v23, %v14251_v9  ;;  %11653 = vrcp.f32 %v2341_v47  ;;  %v18704_v59 = vld [vmem:[#allocation35_spill] sm:$0xff] }
 0x57c   : > { %v2339_v37 = vpop.xlane.xlu1 %2338  ;;  %10394 = vmatprep.mubr.bf16.mxu1 %v2386_v5  ;;  %v18706_v23 = vld [vmem:[#allocation39_spill] sm:$0xff] }
 0x57d   : > { %11655 = vrcp.f32 %v2339_v37  ;;  %3779 = vrot.lane.b32.xlu1 %v18700_v41, %s12575_s30  ;;  %v2387_v7 = vpack.c.bf16 %v2375_v51, %v2374_v22  ;;  %v11092_v5 = vld [vmem:[%s18191_s5 + $0x10] ss:$8 sps:$4 sm:$0xff]   ;;  %v11097_v22 = vld [vmem:[%s18191_s5 + $0x24] ss:$8 sps:$4 sm:$0xff]   ;;  %v11095_v51 = vld [vmem:[%s18191_s5 + $0x20] ss:$8 sps:$4 sm:$0xff]  }
 0x57e   : > { %3821 = vrot.lane.b32.xlu0 %v18699_v25, %s12576_s12  ;;  %v18707_v37 = vld [vmem:[#allocation37_spill] sm:$0xff] }
 0x57f   : > { %10395 = vmatmul.mubr.bf16.gmra.mrb[20].mxu1 %v2387_v7  ;;  %v11100_v7 = vld [vmem:[%s18191_s5 + $0x34] ss:$8 sps:$4 sm:$0xff]  }
 0x581   : > { %10421 = vmatpush3.bf16.xpose.msra.mxu1 %v3136_v36  ;;  %3827 = vrot.lane.b32.xlu1 %v18700_v41, %s12576_s12  ;;  %v18708_v36 = vld [vmem:[#allocation43_spill] sm:$0xff] }
 0x582   : > { %3777 = vrot.lane.b32.xlu0 %v18701_v46, %s12575_s30  ;;  %10838 = vmatprep.subr.msk.bf16.mxu1 %vm2094_vm1, %v14034_v45 }
 0x583   : > { %v11650_v9 = vpop.eup %11649 }
 0x584   : > { %v11652_v47 = vpop.eup %11651  ;;  %v2379_v58 = vmul.f32 %v11650_v9, %v14260_v49  ;;  %v18705_v49 = vld [vmem:[#allocation33_spill] sm:$0xff]  ;;  %v11098_v9 = vld [vmem:[%s18191_s5 + $0x30] ss:$8 sps:$4 sm:$0xff]  }
 0x585   : > { %3783 = vrot.lane.b32.xlu1 %v18702_v60, %s12575_s30  ;;  %v11654_v27 = vpop.eup %11653  ;;  %v2376_v57 = vmul.f32 %v11652_v47, %v14257_v32  ;;  %v11091_v32 = vld [vmem:[%s18191_s5 + $0x4] ss:$8 sps:$4 sm:$0xff]   ;;  %v4857_v47 = vsel %vm1853_vm0, %v14003_v10, %v13984_v40  ;;  %v4856_v40 = vsel %vm1853_vm0, %v13987_v26, %v13978_v62  ;;  %v14533_v10 = vld [vmem:[%s18188_s2 + $0x18] sm:$0xff] }
 0x586   : > { %3825 = vrot.lane.b32.xlu0 %v18701_v46, %s12576_s12  ;;  %v2378_v15 = vmul.f32 %v11654_v27, %v14253_v11  ;;  %v11089_v11 = vld [vmem:[%s18191_s5] ss:$8 sps:$4 sm:$0xff]   ;;  %2561 = vmatprep.subr.bf16.mxu0 %v11091_v32  ;;  %v18361_v27 = vmov 0   ;;  %v18712_v26 = vld [vmem:[#allocation116_spill] sm:$0xff] }
 0x587   : > { %v11656_v16 = vpop.eup %11655  ;;  %2562 = vmatpush1.bf16.msra.mxu0 %v11089_v11  ;;  %2593 = vmatprep.mubr.bf16.mxu0 %v18361_v27  ;;  %v18711_v62 = vld [vmem:[#allocation98_spill] sm:$0xff]  ;;  %v14549_v11 = vld [vmem:[%s18188_s2 + $0x10] sm:$0xff] }
 0x588   : > { %v2377_v13 = vmul.f32 %v11656_v16, %v14263_v35  ;;  %v2389_v1 = vpack.c.bf16 %v2379_v58, %v2378_v15  ;;  %v11094_v35 = vld [vmem:[%s18191_s5 + $0x14] ss:$8 sps:$4 sm:$0xff]   ;;  %v18709_v16 = vld [vmem:[#allocation41_spill] sm:$0xff]  ;;  %v4873_v58 = vmul.f32 %v14023_v8, %v4857_v47 }
 0x589   : > { %3831 = vrot.lane.b32.xlu1 %v18702_v60, %s12576_s12  ;;  %2563 = vmatprep.subr.bf16.mxu0 %v11094_v35  ;;  %v18710_v15 = vld [vmem:[#allocation96_spill] sm:$0xff]  ;;  %v18714_v27 = vld [vmem:[#allocation99_spill] sm:$0xff] }
 0x58a   : > { %3781 = vrot.lane.b32.xlu0 %v18703_v3, %s12575_s30  ;;  %v2388_v52 = vpack.c.bf16 %v2377_v13, %v2376_v57  ;;  %v4859_v57 = vsel %vm1853_vm0, %v14037_v12, %v14026_v4  ;;  %v4860_v4 = vsel %vm1853_vm0, %v14401_v56, %v14232_v30  ;;  %v4861_v30 = vsel %vm1853_vm0, %v14370_v0, %v14216_v28  ;;  %v14562_v28 = vld [vmem:[%s18187_s1 + $0x30] sm:$0xff] }
 0x58b   : > { %2564 = vmatpush1.bf16.msra.mxu0 %v11092_v5  ;;  %v4875_v8 = vmul.f32 %v14533_v10, %v4859_v57  ;;  %v4876_v32 = vmul.f32 %v14423_v61, %v4860_v4  ;;  %v3956_v5 = vpop.permute.xlu1 %3955  ;;  %v3915_v0 = vmul.f32 %v14562_v28, %v18679_v48  ;;  %v14580_v4 = vld [vmem:[%s18187_s1 + $0x38] sm:$0xff] }
 0x58c   : > { %10398 = vmatprep.mubr.bf16.mxu1 %v2388_v52  ;;  %2565 = vmatprep.subr.bf16.mxu0 %v11097_v22  ;;  %v4872_v52 = vmul.f32 %v18710_v15, %v4856_v40  ;;  %v4877_v22 = vmul.f32 %v14398_v20, %v4861_v30 }
 0x58d   : > { %3787 = vrot.lane.b32.xlu1 %v18704_v59, %s12575_s30  ;;  %10399 = vmatmul.mubr.bf16.gmra.mrb[24].mxu1 %v2389_v1  ;;  %v4858_v1 = vsel %vm1853_vm0, %v18712_v26, %v18711_v62  ;;  %v14587_v62 = vld [vmem:[%s18188_s2 + $0x38] sm:$0xff] }
 0x58e   : > { %3829 = vrot.lane.b32.xlu0 %v18703_v3, %s12576_s12  ;;  %v4874_v35 = vmul.f32 %v14549_v11, %v4858_v1 }
 0x58f   : > { %2566 = vmatpush1.bf16.msra.mxu0 %v11095_v51 }
 0x590   : > { %2567 = vmatprep.subr.bf16.mxu0 %v11100_v7 }
 0x591   : > { %3835 = vrot.lane.b32.xlu1 %v18704_v59, %s12576_s12 }
 0x592   : > { %3785 = vrot.lane.b32.xlu0 %v18705_v49, %s12575_s30 }
 0x593   : > { %2568 = vmatpush1.bf16.msra.mxu0 %v11098_v9 }
 0x595   : > { %3791 = vrot.lane.b32.xlu1 %v18706_v23, %s12575_s30 }
 0x596   : > { %3833 = vrot.lane.b32.xlu0 %v18705_v49, %s12576_s12 }
 0x599   : > { %3839 = vrot.lane.b32.xlu1 %v18706_v23, %s12576_s12 }
 0x59a   : > { %3789 = vrot.lane.b32.xlu0 %v18707_v37, %s12575_s30 }
 0x59d   : > { %3795 = vrot.lane.b32.xlu1 %v18708_v36, %s12575_s30 }
 0x59e   : > { %3837 = vrot.lane.b32.xlu0 %v18707_v37, %s12576_s12 }
 0x5a1   : > { %3843 = vrot.lane.b32.xlu1 %v18708_v36, %s12576_s12 }
 0x5a2   : > { %3793 = vrot.lane.b32.xlu0 %v18709_v16, %s12575_s30 }
 0x5a4   : > { %v2349_v13 = vpop.xlane.xlu0 %2348 }
 0x5a5   : > { %4906 = vrot.lane.b32.xlu1 %v4873_v58, %s12577_s26  ;;  %11657 = vrcp.f32 %v2349_v13  ;;  %v14571_v13 = vld [vmem:[%s18188_s2 + $0x30] sm:$0xff] }
 0x5a6   : > { %3841 = vrot.lane.b32.xlu0 %v18709_v16, %s12576_s12 }
 0x5a8   : > { %v2345_v12 = vpop.xlane.xlu0 %2344 }
 0x5a9   : > { %4910 = vrot.lane.b32.xlu1 %v4875_v8, %s12577_s26 }
 0x5aa   : > { %4904 = vrot.lane.b32.xlu0 %v4872_v52, %s12577_s26 }
 0x5ac   : > { %v2351_v56 = vpop.xlane.xlu0 %2350 }
 0x5ad   : > { %4912 = vrot.lane.b32.xlu1 %v4876_v32, %s12577_s26  ;;  %11659 = vrcp.f32 %v2351_v56 }
 0x5ae   : > { %4908 = vrot.lane.b32.xlu0 %v4874_v35, %s12577_s26  ;;  %11661 = vrcp.f32 %v2345_v12  ;;  %v3916_v12 = vmul.f32 %v14580_v4, %v18678_v43 }
 0x5af   : > { %v11658_v32 = vpop.eup %11657 }
 0x5b0   : > { %v3954_v51 = vpop.permute.xlu0 %3953 }
 0x5b1   : > { %v2347_v7 = vpop.xlane.xlu1 %2346  ;;  %4914 = vrot.lane.b32.xlu1 %v4877_v22, %s12577_s26 }
 0x5b2   : > { %11663 = vrcp.f32 %v2347_v7 }
 0x5b4   : > { %v4002_v9 = vpop.permute.xlu0 %4001 }
 0x5b5   : > { %v4043_v47 = vsel %vm1853_vm0, %v3954_v51, %v4002_v9  ;;  %v4862_v58 = vsel %vm1853_vm0, %v4002_v9, %v3954_v51  ;;  %v4004_v57 = vpop.permute.xlu1 %4003 }
 0x5b6   : > { %v4059_v40 = vmul.f32 %v14571_v13, %v4043_v47  ;;  %v4878_v8 = vmul.f32 %v14571_v13, %v4862_v58  ;;  %v4044_v15 = vsel %vm1853_vm0, %v3956_v5, %v4004_v57  ;;  %v4863_v52 = vsel %vm1853_vm0, %v4004_v57, %v3956_v5  ;;  %v14598_v47 = vld [vmem:[%s18187_s1 + $0x40] sm:$0xff] }
 0x5b7   : > { %v4060_v26 = vmul.f32 %v14587_v62, %v4044_v15  ;;  %v4879_v1 = vmul.f32 %v14587_v62, %v4863_v52  ;;  %v11660_v56 = vpop.eup %11659  ;;  %v2382_v57 = vmul.f32 %v11658_v32, %v14274_v19 }
 0x5b8   : > { %v4075_v35 = vadd.f32 %v4059_v40, %v3915_v0  ;;  %4916 = vrot.lane.b32.xlu0 %v4878_v8, %s12577_s26  ;;  %v3958_v30 = vpop.permute.xlu0 %3957  ;;  %v11662_v51 = vpop.eup %11661  ;;  %v3917_v0 = vmul.f32 %v14598_v47, %v18681_v6  ;;  %v2383_v40 = vmul.f32 %v11660_v56, %v14280_v17  ;;  %v14627_v56 = vld [vmem:[%s18188_s2 + $0x48] sm:$0xff] }
 0x5b9   : > { %v4076_v5 = vadd.f32 %v4060_v26, %v3916_v12  ;;  %v3960_v22 = vpop.permute.xlu1 %3959  ;;  %4918 = vrot.lane.b32.xlu1 %v4879_v1, %s12577_s26  ;;  %v2380_v12 = vmul.f32 %v11662_v51, %v14277_v31  ;;  %v14611_v1 = vld [vmem:[%s18188_s2 + $0x40] sm:$0xff]  ;;  %v18713_v31 = vld [vmem:[#allocation63_spill] sm:$0xff] }
 0x5bb   : > { %v14593_v7 = vpack.c.bf16 %v4076_v5, %v4075_v35 }
 0x5bc   : > { %v11664_v9 = vpop.eup %11663  ;;  %v4006_v58 = vpop.permute.xlu0 %4005 }
 0x5bd   : > { %v4045_v8 = vsel %vm1853_vm0, %v3958_v30, %v4006_v58  ;;  %v4864_v15 = vsel %vm1853_vm0, %v4006_v58, %v3958_v30  ;;  %v4008_v52 = vpop.permute.xlu1 %4007  ;;  %v2381_v26 = vmul.f32 %v11664_v9, %v14283_v2  ;;  %v14620_v30 = vld [vmem:[%s18187_s1 + $0x48] sm:$0xff] }
 0x5be   : > { %v4061_v35 = vmul.f32 %v14611_v1, %v4045_v8  ;;  %v4880_v19 = vmul.f32 %v14611_v1, %v4864_v15  ;;  %v4046_v17 = vsel %vm1853_vm0, %v3960_v22, %v4008_v52  ;;  %v4865_v32 = vsel %vm1853_vm0, %v4008_v52, %v3960_v22 }
 0x5bf   : > { %v3918_v2 = vmul.f32 %v14620_v30, %v18713_v31  ;;  %v4062_v5 = vmul.f32 %v14627_v56, %v4046_v17  ;;  %v4881_v51 = vmul.f32 %v14627_v56, %v4865_v32  ;;  %v2390_v9 = vpack.c.bf16 %v2381_v26, %v2380_v12 }
 0x5c0   : > { %v4077_v58 = vadd.f32 %v4061_v35, %v3917_v0  ;;  %4920 = vrot.lane.b32.xlu0 %v4880_v19, %s12577_s26  ;;  %v3962_v22 = vpop.permute.xlu0 %3961  ;;  %v2391_v8 = vpack.c.bf16 %v2383_v40, %v2382_v57  ;;  %v14640_v0 = vld [vmem:[%s18187_s1 + $0x50] sm:$0xff] }
 0x5c1   : > { %v4078_v15 = vadd.f32 %v4062_v5, %v3918_v2  ;;  %v3964_v52 = vpop.permute.xlu1 %3963  ;;  %4922 = vrot.lane.b32.xlu1 %v4881_v51, %s12577_s26  ;;  %10402 = vmatprep.mubr.bf16.mxu1 %v2390_v9  ;;  %v3919_v57 = vmul.f32 %v14640_v0, %v18683_v18  ;;  %v14658_v5 = vld [vmem:[%s18187_s1 + $0x58] sm:$0xff] }
 0x5c2   : > { %10403 = vmatmul.mubr.bf16.gmra.mrb[28].mxu1 %v2391_v8  ;;  %v3920_v51 = vmul.f32 %v14658_v5, %v18682_v34  ;;  %v14665_v9 = vld [vmem:[%s18188_s2 + $0x58] sm:$0xff] }
 0x5c3   : > { %10422 = vmatprep.mubr.msk.bf16.mxu1 %vm2094_vm1, %v18714_v27  ;;  %v14635_v31 = vpack.c.bf16 %v4078_v15, %v4077_v58  ;;  %v14649_v27 = vld [vmem:[%s18188_s2 + $0x50] sm:$0xff] }
 0x5c4   : > { %v4010_v17 = vpop.permute.xlu0 %4009 }
 0x5c5   : > { %v4047_v40 = vsel %vm1853_vm0, %v3962_v22, %v4010_v17  ;;  %v4866_v12 = vsel %vm1853_vm0, %v4010_v17, %v3962_v22  ;;  %v4012_v26 = vpop.permute.xlu1 %4011 }
 0x5c6   : > { %v4063_v35 = vmul.f32 %v14649_v27, %v4047_v40  ;;  %v4882_v19 = vmul.f32 %v14649_v27, %v4866_v12  ;;  %v4048_v32 = vsel %vm1853_vm0, %v3964_v52, %v4012_v26  ;;  %v4867_v2 = vsel %vm1853_vm0, %v4012_v26, %v3964_v52  ;;  %v18715_v40 = vld [vmem:[#allocation118_spill] sm:$0xff] }
 0x5c7   : > { %v4064_v58 = vmul.f32 %v14665_v9, %v4048_v32  ;;  %v4883_v22 = vmul.f32 %v14665_v9, %v4867_v2  ;;  %v4126_v12 = vsel %vm2094_vm1, %v14034_v45, 0  ;;  %v18716_v32 = vld [vmem:[#allocation97_spill] sm:$0xff] }
 0x5c8   : > { %v4079_v8 = vadd.f32 %v4063_v35, %v3919_v57  ;;  %4924 = vrot.lane.b32.xlu0 %v4882_v19, %s12577_s26  ;;  %v3055_v15 = vpop.permute.xlu0 %3054  ;;  %v14683_v2 = vld [vmem:[%s18187_s1 + $0x60] sm:$0xff] }
 0x5c9   : > { %v4080_v52 = vadd.f32 %v4064_v58, %v3920_v51  ;;  %v3057_v17 = vpop.permute.xlu1 %3056  ;;  %4926 = vrot.lane.b32.xlu1 %v4883_v22, %s12577_s26  ;;  %v3921_v51 = vmul.f32 %v14683_v2, %v18687_v14 }
 0x5ca   : > { %10423 = vmatmul.mubr.msk.bf16.vlgmr.msra.gmra.mrb[32].mxu1 %vm2094_vm1, %v18715_v40 }
 0x5cb   : > { %10471 = vmatpush3.bf16.xpose.msra.mxu1 %v4126_v12  ;;  %10426 = vmatprep.mubr.msk.bf16.mxu1 %vm2094_vm1, %v3055_v15  ;;  %v14676_v26 = vpack.c.bf16 %v4080_v52, %v4079_v8  ;;  %v14692_v8 = vld [vmem:[%s18188_s2 + $0x60] sm:$0xff]  ;;  %v4129_v12 = vsel %vm2094_vm1, %v18716_v32, 0 }
 0x5cc   : > { %10839 = vmatprep.subr.msk.bf16.mxu1 %vm2094_vm1, %v18716_v32  ;;  %v3966_v57 = vpop.permute.xlu0 %3965 }
 0x5cd   : > { %v3968_v35 = vpop.permute.xlu1 %3967 }
 0x5d0   : > { %v4014_v19 = vpop.permute.xlu0 %4013 }
 0x5d1   : > { %v4049_v45 = vsel %vm1853_vm0, %v3966_v57, %v4014_v19  ;;  %v4868_v58 = vsel %vm1853_vm0, %v4014_v19, %v3966_v57  ;;  %v4016_v22 = vpop.permute.xlu1 %4015  ;;  %v14703_v57 = vld [vmem:[%s18187_s1 + $0x68] sm:$0xff] }
 0x5d2   : > { %v4065_v15 = vmul.f32 %v14692_v8, %v4049_v45  ;;  %v4884_v52 = vmul.f32 %v14692_v8, %v4868_v58  ;;  %v4050_v40 = vsel %vm1853_vm0, %v3968_v35, %v4016_v22  ;;  %10427 = vmatmul.mubr.msk.bf16.gmra.mrb[36].mxu1 %vm2094_vm1, %v3057_v17  ;;  %v3922_v19 = vmul.f32 %v14703_v57, %v18685_v33  ;;  %v14710_v45 = vld [vmem:[%s18188_s2 + $0x68] sm:$0xff] }
 0x5d3   : > { %18717 = vst [vmem:[#allocation120_spill] sm:$0xff] %v14710_v45  ;;  %v4066_v58 = vmul.f32 %v14710_v45, %v4050_v40  ;;  %v4869_v17 = vsel %vm1853_vm0, %v4016_v22, %v3968_v35  ;;  %10473 = vmatpush3.bf16.xpose.msra.mxu1 %v4129_v12 }
 0x5d4   : > { %v4081_v14 = vadd.f32 %v4065_v15, %v3921_v51  ;;  %10840 = vmatprep.subr.msk.bf16.mxu1 %vm2094_vm1, %v14436_v38  ;;  %4928 = vrot.lane.b32.xlu1 %v4884_v52, %s12577_s26  ;;  %v3059_v32 = vpop.permute.xlu0 %3058  ;;  %v4885_v33 = vmul.f32 %v14710_v45, %v4869_v17  ;;  %v4132_v51 = vsel %vm2094_vm1, %v14436_v38, 0  ;;  %v14730_v15 = vld [vmem:[%s18187_s1 + $0x70] sm:$0xff]  ;;  %v14748_v17 = vld [vmem:[%s18187_s1 + $0x78] sm:$0xff] }
 0x5d5   : > { %v4082_v34 = vadd.f32 %v4066_v58, %v3922_v19  ;;  %v3061_v18 = vpop.permute.xlu1 %3060  ;;  %10430 = vmatprep.mubr.msk.bf16.mxu1 %vm2094_vm1, %v3059_v32  ;;  %v14739_v38 = vld [vmem:[%s18188_s2 + $0x70] sm:$0xff]  ;;  %v3924_v32 = vmul.f32 %v14748_v17, %v18689_v50  ;;  %v4135_v50 = vsel %vm2094_vm1, %v14593_v7, 0 }
 0x5d7   : > { %v14719_v6 = vpack.c.bf16 %v4082_v34, %v4081_v14  ;;  %v3923_v34 = vmul.f32 %v14730_v15, %v18691_v21 }
 0x5d8   : > { %4930 = vrot.lane.b32.xlu1 %v4885_v33, %s12577_s26  ;;  %v3970_v40 = vpop.permute.xlu0 %3969 }
 0x5d9   : > { %v3972_v35 = vpop.permute.xlu1 %3971 }
 0x5da   : > { %10431 = vmatmul.mubr.msk.bf16.gmra.mrb[40].mxu1 %vm2094_vm1, %v3061_v18 }
 0x5db   : > { %10475 = vmatpush3.bf16.xpose.msra.mxu1 %v4132_v51 }
 0x5dc   : > { %10841 = vmatprep.subr.msk.bf16.mxu1 %vm2094_vm1, %v14593_v7  ;;  %v4018_v22 = vpop.permute.xlu0 %4017 }
 0x5dd   : > { %v4051_v33 = vsel %vm1853_vm0, %v3970_v40, %v4018_v22  ;;  %v4870_v18 = vsel %vm1853_vm0, %v4018_v22, %v3970_v40  ;;  %v4020_v14 = vpop.permute.xlu1 %4019  ;;  %v14755_v40 = vld [vmem:[%s18188_s2 + $0x78] sm:$0xff] }
 0x5de   : > { %v4067_v52 = vmul.f32 %v14739_v38, %v4051_v33  ;;  %v4886_v12 = vmul.f32 %v14739_v38, %v4870_v18  ;;  %v4052_v19 = vsel %vm1853_vm0, %v3972_v35, %v4020_v14  ;;  %v4871_v58 = vsel %vm1853_vm0, %v4020_v14, %v3972_v35  ;;  %18718 = vst [vmem:[#allocation101_spill] sm:$0xff] %v14755_v40 }
 0x5df   : > { %v4068_v51 = vmul.f32 %v14755_v40, %v4052_v19  ;;  %v4887_v22 = vmul.f32 %v14755_v40, %v4871_v58  ;;  %v12335_v19 = vld [vmem:[%s18187_s1] sm:$0xff] }
 0x5e0   : > { %v4083_v33 = vadd.f32 %v4067_v52, %v3923_v34  ;;  %4932 = vrot.lane.b32.xlu0 %v4886_v12, %s12577_s26  ;;  %v3063_v35 = vpop.permute.xlu0 %3062  ;;  %v3733_v58 = vmul.f32 %v12335_v19, %v18695_v55  ;;  %v12338_v19 = vld [vmem:[%s18188_s2 + $0x8] sm:$0xff] }
 0x5e1   : > { %v4084_v18 = vadd.f32 %v4068_v51, %v3924_v32  ;;  %v3065_v14 = vpop.permute.xlu1 %3064  ;;  %4934 = vrot.lane.b32.xlu1 %v4887_v22, %s12577_s26  ;;  %10434 = vmatprep.mubr.msk.bf16.mxu1 %vm2094_vm1, %v3063_v35  ;;  %v14783_v32 = vld [vmem:[%s18188_s2] sm:$0xff]  ;;  %v4138_v35 = vsel %vm2094_vm1, %v14635_v31, 0 }
 0x5e2   : > { %10435 = vmatmul.mubr.msk.bf16.gmra.mrb[44].mxu1 %vm2094_vm1, %v3065_v14 }
 0x5e3   : > { %10477 = vmatpush3.bf16.xpose.msra.mxu1 %v4135_v50  ;;  %v14765_v21 = vpack.c.bf16 %v4084_v18, %v4083_v33  ;;  %v12337_v18 = vld [vmem:[%s18187_s1 + $0x8] sm:$0xff] }
 0x5e4   : > { %10842 = vmatprep.subr.msk.bf16.mxu1 %vm2094_vm1, %v14635_v31  ;;  %v14769_v34 = vpop.permute.xlu0 %3765  ;;  %v3734_v14 = vmul.f32 %v12337_v18, %v18693_v63  ;;  %v12339_v18 = vld [vmem:[%s18187_s1 + $0x10] sm:$0xff] }
 0x5e5   : > { %v3768_v52 = vpop.permute.xlu1 %3767 }
 0x5e8   : > { %v14771_v12 = vpop.permute.xlu0 %3813 }
 0x5e9   : > { %v3861_v50 = vsel %vm1853_vm0, %v14769_v34, %v14771_v12  ;;  %v3816_v7 = vpop.permute.xlu1 %3815 }
 0x5ea   : > { %v3877_v51 = vmul.f32 %v14783_v32, %v3861_v50  ;;  %v3862_v22 = vsel %vm1853_vm0, %v3768_v52, %v3816_v7  ;;  %v4729_v33 = vsel %vm1853_vm0, %v3816_v7, %v3768_v52 }
 0x5eb   : > { %v3878_v55 = vmul.f32 %v12338_v19, %v3862_v22  ;;  %v4745_v43 = vmul.f32 %v12338_v19, %v4729_v33  ;;  %10479 = vmatpush3.bf16.xpose.msra.mxu1 %v4138_v35  ;;  %v3735_v22 = vmul.f32 %v12339_v18, %v18697_v44  ;;  %v4141_v35 = vsel %vm2094_vm1, %v14676_v26, 0 }
 0x5ec   : > { %v3893_v50 = vadd.f32 %v3877_v51, %v3733_v58  ;;  %10843 = vmatprep.subr.msk.bf16.mxu1 %vm2094_vm1, %v14676_v26  ;;  %v14799_v52 = vpop.permute.xlu0 %3769 }
 0x5ed   : > { %v3894_v31 = vadd.f32 %v3878_v55, %v3734_v14  ;;  %v3772_v7 = vpop.permute.xlu1 %3771  ;;  %4778 = vrot.lane.b32.xlu0 %v4745_v43, %s12577_s26  ;;  %v12340_v14 = vld [vmem:[%s18187_s1 + $0x18] sm:$0xff] }
 0x5ee   : > { %v3736_v19 = vmul.f32 %v12340_v14, %v18696_v54  ;;  %v3738_v14 = vmul.f32 %v14416_v39, %v18698_v29 }
 0x5ef   : > { %v4085_v48 = vpack.c.bf16 %v3894_v31, %v3893_v50 }
 0x5f0   : > { %v14802_v42 = vpop.permute.xlu0 %3817 }
 0x5f1   : > { %v3863_v58 = vsel %vm1853_vm0, %v14799_v52, %v14802_v42  ;;  %v3820_v51 = vpop.permute.xlu1 %3819  ;;  %10486 = vmatprep.mubr.msk.bf16.mxu1 %vm2094_vm1, %v4085_v48 }
 0x5f2   : > { %v3879_v55 = vmul.f32 %v14549_v11, %v3863_v58  ;;  %v3864_v43 = vsel %vm1853_vm0, %v3772_v7, %v3820_v51  ;;  %v4731_v33 = vsel %vm1853_vm0, %v3820_v51, %v3772_v7 }
 0x5f3   : > { %v3880_v50 = vmul.f32 %v14533_v10, %v3864_v43  ;;  %v4747_v31 = vmul.f32 %v14533_v10, %v4731_v33  ;;  %10481 = vmatpush3.bf16.xpose.msra.mxu1 %v4141_v35  ;;  %v4144_v35 = vsel %vm2094_vm1, %v14719_v6, 0 }
 0x5f4   : > { %v3895_v48 = vadd.f32 %v3879_v55, %v3735_v22  ;;  %10844 = vmatprep.subr.msk.bf16.mxu1 %vm2094_vm1, %v14719_v6  ;;  %v14825_v18 = vpop.permute.xlu0 %3773  ;;  %v3737_v22 = vmul.f32 %v14409_v53, %v18699_v25 }
 0x5f5   : > { %v3896_v7 = vadd.f32 %v3880_v50, %v3736_v19  ;;  %v14827_v58 = vpop.permute.xlu1 %3775  ;;  %4782 = vrot.lane.b32.xlu0 %v4747_v31, %s12577_s26 }
 0x5f7   : > { %v4086_v26 = vpack.c.bf16 %v3896_v7, %v3895_v48 }
 0x5f8   : > { %v14830_v51 = vpop.permute.xlu0 %3821 }
 0x5f9   : > { %v3865_v43 = vsel %vm1853_vm0, %v14825_v18, %v14830_v51  ;;  %v14835_v10 = vpop.permute.xlu1 %3823 }
 0x5fa   : > { %v3881_v55 = vmul.f32 %v14423_v61, %v3865_v43  ;;  %v3866_v33 = vsel %vm1853_vm0, %v14827_v58, %v14835_v10 }
 0x5fb   : > { %v3882_v19 = vmul.f32 %v14398_v20, %v3866_v33  ;;  %10483 = vmatpush3.bf16.xpose.msra.mxu1 %v4144_v35  ;;  %v4147_v35 = vsel %vm2094_vm1, %v14765_v21, 0 }
 0x5fc   : > { %v3897_v50 = vadd.f32 %v3881_v55, %v3737_v22  ;;  %10845 = vmatprep.subr.msk.bf16.mxu1 %vm2094_vm1, %v14765_v21  ;;  %v14850_v53 = vpop.permute.xlu0 %3777  ;;  %v3739_v22 = vmul.f32 %v14562_v28, %v18701_v46 }
 0x5fd   : > { %v3898_v31 = vadd.f32 %v3882_v19, %v3738_v14  ;;  %v14852_v48 = vpop.permute.xlu1 %3779  ;;  %v3740_v14 = vmul.f32 %v14580_v4, %v18700_v41  ;;  %v3741_v4 = vmul.f32 %v14598_v47, %v18703_v3 }
 0x5ff   : > { %v4087_v7 = vpack.c.bf16 %v3898_v31, %v3897_v50  ;;  %v18719_v31 = vld [vmem:[#allocation77_spill] sm:$0xff] }
 0x600   : > { %v14854_v43 = vpop.permute.xlu0 %3825 }
 0x601   : > { %v3867_v6 = vsel %vm1853_vm0, %v14850_v53, %v14854_v43  ;;  %v14859_v39 = vpop.permute.xlu1 %3827 }
 0x602   : > { %v3883_v55 = vmul.f32 %v14571_v13, %v3867_v6  ;;  %v3868_v33 = vsel %vm1853_vm0, %v14852_v48, %v14859_v39 }
 0x603   : > { %v3884_v19 = vmul.f32 %v14587_v62, %v3868_v33  ;;  %10485 = vmatpush3.bf16.xpose.msra.mxu1 %v4147_v35  ;;  %v3742_v33 = vmul.f32 %v14620_v30, %v18702_v60 }
 0x604   : > { %v3899_v50 = vadd.f32 %v3883_v55, %v3739_v22  ;;  %10502 = vmatprep.subr.bf16.mxu1 %v18719_v31  ;;  %v14873_v29 = vpop.permute.xlu0 %3781 }
 0x605   : > { %v3900_v28 = vadd.f32 %v3884_v19, %v3740_v14  ;;  %v14875_v6 = vpop.permute.xlu1 %3783  ;;  %v18720_v19 = vld [vmem:[#allocation79_spill] sm:$0xff] }
 0x607   : > { %v4088_v25 = vpack.c.bf16 %v3900_v28, %v3899_v50 }
 0x608   : > { %v14877_v46 = vpop.permute.xlu0 %3829 }
 0x609   : > { %v3869_v21 = vsel %vm1853_vm0, %v14873_v29, %v14877_v46  ;;  %v14882_v44 = vpop.permute.xlu1 %3831 }
 0x60a   : > { %v3885_v22 = vmul.f32 %v14611_v1, %v3869_v21  ;;  %v3870_v55 = vsel %vm1853_vm0, %v14875_v6, %v14882_v44  ;;  %10487 = vmatmul.mubr.msk.bf16.vlgmr.msra.gmra.mrb[48].mxu1 %vm2094_vm1, %v4086_v26  ;;  %v18721_v21 = vld [vmem:[#allocation81_spill] sm:$0xff] }
 0x60b   : > { %v3886_v35 = vmul.f32 %v14627_v56, %v3870_v55  ;;  %10490 = vmatprep.mubr.msk.bf16.mxu1 %vm2094_vm1, %v4087_v7  ;;  %10503 = vmatpush3.bf16.msra.mxu1 %v18719_v31  ;;  %v18722_v31 = vld [vmem:[#allocation83_spill] sm:$0xff] }
 0x60c   : > { %v3901_v14 = vadd.f32 %v3885_v22, %v3741_v4  ;;  %10504 = vmatprep.subr.bf16.mxu1 %v18720_v19  ;;  %v14897_v47 = vpop.permute.xlu0 %3785  ;;  %v3743_v4 = vmul.f32 %v14640_v0, %v18705_v49  ;;  %v18723_v49 = vld [vmem:[#allocation85_spill] sm:$0xff] }
 0x60d   : > { %v3902_v50 = vadd.f32 %v3886_v35, %v3742_v33  ;;  %v14899_v28 = vpop.permute.xlu1 %3787  ;;  %v3744_v35 = vmul.f32 %v14658_v5, %v18704_v59 }
 0x60f   : > { %10505 = vmatpush3.bf16.msra.mxu1 %v18720_v19  ;;  %v4089_v26 = vpack.c.bf16 %v3902_v50, %v3901_v14 }
 0x610   : > { %10506 = vmatprep.subr.bf16.mxu1 %v18721_v21  ;;  %v14903_v30 = vpop.permute.xlu0 %3833 }
 0x611   : > { %v3871_v7 = vsel %vm1853_vm0, %v14897_v47, %v14903_v30  ;;  %v14908_v55 = vpop.permute.xlu1 %3835 }
 0x612   : > { %v3887_v22 = vmul.f32 %v14649_v27, %v3871_v7  ;;  %v3872_v33 = vsel %vm1853_vm0, %v14899_v28, %v14908_v55  ;;  %10491 = vmatmul.mubr.msk.bf16.gmra.mrb[52].mxu1 %vm2094_vm1, %v4088_v25 }
 0x613   : > { %v3888_v14 = vmul.f32 %v14665_v9, %v3872_v33  ;;  %10494 = vmatprep.mubr.msk.bf16.mxu1 %vm2094_vm1, %v4089_v26  ;;  %10507 = vmatpush3.bf16.msra.mxu1 %v18721_v21  ;;  %v18724_v21 = vld [vmem:[#allocation87_spill] sm:$0xff] }
 0x614   : > { %v3903_v50 = vadd.f32 %v3887_v22, %v3743_v4  ;;  %10508 = vmatprep.subr.bf16.mxu1 %v18722_v31  ;;  %v14923_v0 = vpop.permute.xlu0 %3789  ;;  %v3745_v4 = vmul.f32 %v14683_v2, %v18707_v37 }
 0x615   : > { %v3904_v7 = vadd.f32 %v3888_v14, %v3744_v35  ;;  %v14925_v19 = vpop.permute.xlu1 %3791  ;;  %v3746_v14 = vmul.f32 %v14703_v57, %v18706_v23 }
 0x617   : > { %10509 = vmatpush3.bf16.msra.mxu1 %v18722_v31  ;;  %v4090_v25 = vpack.c.bf16 %v3904_v7, %v3903_v50 }
 0x618   : > { %10510 = vmatprep.subr.bf16.mxu1 %v18723_v49  ;;  %v14929_v5 = vpop.permute.xlu0 %3837 }
 0x619   : > { %v3873_v26 = vsel %vm1853_vm0, %v14923_v0, %v14929_v5  ;;  %v14934_v33 = vpop.permute.xlu1 %3839 }
 0x61a   : > { %v3889_v22 = vmul.f32 %v14692_v8, %v3873_v26  ;;  %v3874_v35 = vsel %vm1853_vm0, %v14925_v19, %v14934_v33  ;;  %10495 = vmatmul.mubr.msk.bf16.gmra.mrb[56].mxu1 %vm2094_vm1, %v4090_v25 }
 0x61b   : > { %v3890_v50 = vmul.f32 %v14710_v45, %v3874_v35  ;;  %10511 = vmatpush3.bf16.msra.mxu1 %v18723_v49  ;;  %v10392_v7 = vpop.f32.mrb[16].mxu1  ;;  %v18726_v35 = vld [vmem:[#allocation90_spill] sm:$0xff] }
 0x61c   : > { %v3905_v31 = vadd.f32 %v3889_v22, %v3745_v4  ;;  %10512 = vmatprep.subr.bf16.mxu1 %v18724_v21  ;;  %v2426_v2 = vpop.f32.mrb[17].mxu1  ;;  %v14948_v37 = vpop.permute.xlu0 %3793 }
 0x61d   : > { %v3906_v26 = vadd.f32 %v3890_v50, %v3746_v14  ;;  %v14950_v59 = vpop.permute.xlu1 %3795  ;;  %v10393_v3 = vpop.f32.mrb[18].mxu1  ;;  %v18728_v50 = vmov 0  }
 0x61e   : > { %18725 = vst [vmem:[#allocation103_spill] sm:$0xff] %v14950_v59  ;;  %v2490_v60 = vpack.c.bf16 %v10393_v3, %v10392_v7  ;;  %v2429_v25 = vpop.f32.mrb[19].mxu1  ;;  %v3747_v3 = vmul.f32 %v14730_v15, %v18709_v16  ;;  %v3748_v7 = vmul.f32 %v14748_v17, %v18708_v36  ;;  %v18731_v15 = vld [vmem:[#allocation95_spill] sm:$0xff]  ;;  %v18733_v16 = vld [vmem:[#allocation34_spill] sm:$0xff]  ;;  %v18734_v17 = vld [vmem:[#allocation49_spill] sm:$0xff] }
 0x61f   : > { %v2489_v41 = vpack.c.bf16 %v2429_v25, %v2426_v2  ;;  %10513 = vmatpush3.bf16.msra.mxu1 %v18724_v21  ;;  %v4091_v57 = vpack.c.bf16 %v3906_v26, %v3905_v31  ;;  %v18730_v26 = vld [vmem:[#allocation32_spill] sm:$0xff]  ;;  %v18732_v21 = vld [vmem:[#allocation47_spill] sm:$0xff] }
 0x620   : > { %10514 = vmatprep.subr.bf16.mxu1 %v18726_v35  ;;  %v14954_v49 = vpop.permute.xlu0 %3841  ;;  %v4841_v23 = vmul.f32 %v18733_v16, %v18732_v21 }
 0x621   : > { %v3875_v4 = vsel %vm1853_vm0, %v14948_v37, %v14954_v49  ;;  %v14959_v22 = vpop.permute.xlu1 %3843  ;;  %9839 = vmatmul.mubr.msk.bf16.vlgmr.msra.gmra.mrb[96].mxu0 %vm2094_vm1, %v2489_v41  ;;  %10498 = vmatprep.mubr.msk.bf16.mxu1 %vm2094_vm1, %v4091_v57  ;;  %v18729_v41 = vld [vmem:[#allocation45_spill] sm:$0xff] }
 0x622   : > { %18727 = vst [vmem:[#allocation105_spill] sm:$0xff] %v14959_v22  ;;  %v3891_v14 = vmul.f32 %v14739_v38, %v3875_v4  ;;  %v3876_v31 = vsel %vm1853_vm0, %v14950_v59, %v14959_v22  ;;  %2603 = vmatprep.mubr.bf16.mxu0 %v18728_v50  ;;  %v4840_v25 = vmul.f32 %v18730_v26, %v18729_v41  ;;  %v18736_v41 = vld [vmem:[#allocation51_spill] sm:$0xff] }
 0x623   : > { %v3892_v2 = vmul.f32 %v14755_v40, %v3876_v31  ;;  %10515 = vmatpush3.bf16.msra.mxu1 %v18726_v35  ;;  %v18735_v31 = vld [vmem:[#allocation36_spill] sm:$0xff]  ;;  %v4728_v26 = vsel %vm1853_vm0, %v14771_v12, %v14769_v34 }
 0x624   : > { %v3907_v57 = vadd.f32 %v3891_v14, %v3747_v3  ;;  %10516 = vmatprep.subr.bf16.mxu1 %v18731_v15  ;;  %v4905_v4 = vpop.permute.xlu0 %4904  ;;  %v4842_v36 = vmul.f32 %v18735_v31, %v18734_v17  ;;  %v18737_v3 = vld [vmem:[#allocation38_spill] sm:$0xff]  ;;  %v18738_v34 = vld [vmem:[#allocation100_spill] sm:$0xff] }
 0x625   : > { %v3908_v54 = vadd.f32 %v3892_v2, %v3748_v7  ;;  %v4952_v63 = vadd.f32 %v4905_v4, %v4840_v25  ;;  %v4907_v22 = vpop.permute.xlu1 %4906  ;;  %v4843_v14 = vmul.f32 %v18737_v3, %v18736_v41  ;;  %v4844_v12 = vmul.f32 %v18738_v34, %v18675_v24  ;;  %v18741_v2 = vld [vmem:[#allocation57_spill] sm:$0xff]  ;;  %v18744_v4 = vld [vmem:[#allocation42_spill] sm:$0xff] }
 0x626   : > { %v4953_v59 = vadd.f32 %v4907_v22, %v4841_v23 }
 0x627   : > { %10517 = vmatpush3.bf16.msra.mxu1 %v18731_v15  ;;  %v4092_v35 = vpack.c.bf16 %v3908_v54, %v3907_v57  ;;  %v18743_v57 = vld [vmem:[#allocation59_spill] sm:$0xff] }
 0x628   : > { %v4976_v40 = vpack.c.bf16 %v4953_v59, %v4952_v63  ;;  %v4909_v45 = vpop.permute.xlu0 %4908  ;;  %v4744_v63 = vmul.f32 %v14783_v32, %v4728_v26  ;;  %v4730_v59 = vsel %vm1853_vm0, %v14802_v42, %v14799_v52  ;;  %v18739_v32 = vld [vmem:[#allocation55_spill] sm:$0xff]  ;;  %v4735_v42 = vsel %vm1853_vm0, %v14859_v39, %v14852_v48  ;;  %v18742_v26 = vld [vmem:[#allocation40_spill] sm:$0xff] }
 0x629   : > { %v4954_v21 = vadd.f32 %v4909_v45, %v4842_v36  ;;  %v4911_v7 = vpop.permute.xlu1 %4910  ;;  %9840 = vmatmul.mubr.msk.bf16.gmra.mrb[100].mxu0 %vm2094_vm1, %v2490_v60  ;;  %10499 = vmatmul.mubr.msk.bf16.gmra.mrb[60].mxu1 %vm2094_vm1, %v4092_v35  ;;  %v4734_v36 = vsel %vm1853_vm0, %v14854_v43, %v14850_v53  ;;  %v4746_v60 = vmul.f32 %v14549_v11, %v4730_v59  ;;  %v18740_v35 = vld [vmem:[#allocation102_spill] sm:$0xff]  ;;  %v18747_v59 = vld [vmem:[#allocation63_spill] sm:$0xff] }
 0x62a   : > { %v4955_v23 = vadd.f32 %v4911_v7, %v4843_v14  ;;  %5016 = vrot.lane.b32.xlu1 %v4976_v40, %s12577_s26  ;;  %2613 = vmatprep.mubr.bf16.mxu0 %v18728_v50  ;;  %v4750_v40 = vmul.f32 %v14571_v13, %v4734_v36  ;;  %v4845_v22 = vmul.f32 %v18740_v35, %v18739_v32  ;;  %v18745_v7 = vld [vmem:[#allocation61_spill] sm:$0xff] }
 0x62b   : > { %v4751_v13 = vmul.f32 %v14587_v62, %v4735_v42  ;;  %v4846_v24 = vmul.f32 %v18742_v26, %v18741_v2  ;;  %v4847_v17 = vmul.f32 %v18744_v4, %v18743_v57  ;;  %v4732_v48 = vsel %vm1853_vm0, %v14830_v51, %v14825_v18  ;;  %v18748_v36 = vld [vmem:[#allocation89_spill] sm:$0xff]  ;;  %v18750_v42 = vld [vmem:[#allocation104_spill] sm:$0xff] }
 0x62c   : > { %v4977_v54 = vpack.c.bf16 %v4955_v23, %v4954_v21  ;;  %v4917_v11 = vpop.permute.xlu0 %4916  ;;  %v4748_v62 = vmul.f32 %v14423_v61, %v4732_v48  ;;  %v18746_v23 = vld [vmem:[#allocation91_spill] sm:$0xff]  ;;  %v4733_v18 = vsel %vm1853_vm0, %v14835_v10, %v14827_v58  ;;  %v4738_v57 = vsel %vm1853_vm0, %v14903_v30, %v14897_v47  ;;  %v18754_v47 = vld [vmem:[#allocation92_spill] sm:$0xff] }
 0x62d   : > { %v4913_v45 = vpop.permute.xlu1 %4912  ;;  %v4958_v41 = vadd.f32 %v4917_v11, %v4846_v24  ;;  %v4749_v32 = vmul.f32 %v14398_v20, %v4733_v18  ;;  %v18755_v48 = vld [vmem:[#allocation71_spill] sm:$0xff] }
 0x62e   : > { %4776 = vrot.lane.b32.xlu1 %v4744_v63, %s12577_s26  ;;  %5018 = vrot.lane.b32.xlu0 %v4977_v54, %s12577_s26  ;;  %v4956_v53 = vadd.f32 %v4913_v45, %v4844_v12  ;;  %v4848_v63 = vmul.f32 %v18746_v23, %v18745_v7  ;;  %v4849_v45 = vmul.f32 %v18748_v36, %v18747_v59 }
 0x631   : > { %v4915_v52 = vpop.permute.xlu1 %4914 }
 0x632   : > { %v4957_v43 = vadd.f32 %v4915_v52, %v4845_v22  ;;  %4780 = vrot.lane.b32.xlu1 %v4746_v60, %s12577_s26  ;;  %4788 = vrot.lane.b32.xlu0 %v4750_v40, %s12577_s26  ;;  %v4921_v21 = vpop.permute.xlu0 %4920  ;;  %v18749_v22 = vld [vmem:[#allocation65_spill] sm:$0xff] }
 0x633   : > { %v4960_v60 = vadd.f32 %v4921_v21, %v4848_v63  ;;  %v4850_v52 = vmul.f32 %v18750_v42, %v18749_v22  ;;  %v18757_v63 = vld [vmem:[#allocation73_spill] sm:$0xff] }
 0x634   : > { %v4978_v25 = vpack.c.bf16 %v4957_v43, %v4956_v53  ;;  %v18751_v53 = vld [vmem:[#allocation67_spill] sm:$0xff]  ;;  %v18752_v43 = vld [vmem:[#allocation106_spill] sm:$0xff] }
 0x635   : > { %v4919_v39 = vpop.permute.xlu1 %4918  ;;  %v4851_v11 = vmul.f32 %v18752_v43, %v18751_v53 }
 0x636   : > { %v4959_v14 = vadd.f32 %v4919_v39, %v4847_v17  ;;  %5020 = vrot.lane.b32.xlu1 %v4978_v25, %s12577_s26  ;;  %4790 = vrot.lane.b32.xlu0 %v4751_v13, %s12577_s26  ;;  %v4737_v13 = vsel %vm1853_vm0, %v14882_v44, %v14875_v6  ;;  %v4736_v25 = vsel %vm1853_vm0, %v14877_v46, %v14873_v29  ;;  %v18753_v46 = vld [vmem:[#allocation69_spill] sm:$0xff]  ;;  %v18756_v39 = vld [vmem:[#allocation94_spill] sm:$0xff] }
 0x637   : > { %v4753_v20 = vmul.f32 %v14627_v56, %v4737_v13  ;;  %v4752_v44 = vmul.f32 %v14611_v1, %v4736_v25  ;;  %v4754_v6 = vmul.f32 %v14649_v27, %v4738_v57  ;;  %v4739_v56 = vsel %vm1853_vm0, %v14908_v55, %v14899_v28 }
 0x638   : > { %v4979_v54 = vpack.c.bf16 %v4959_v14, %v4958_v41  ;;  %v4755_v29 = vmul.f32 %v14665_v9, %v4739_v56  ;;  %v4852_v30 = vmul.f32 %v18754_v47, %v18753_v46  ;;  %v4853_v41 = vmul.f32 %v18756_v39, %v18755_v48 }
 0x639   : > { %v4923_v51 = vpop.permute.xlu1 %4922  ;;  %v4740_v28 = vsel %vm1853_vm0, %v14929_v5, %v14923_v0  ;;  %v4742_v9 = vsel %vm1853_vm0, %v14954_v49, %v14948_v37  ;;  %v18759_v49 = vld [vmem:[#allocation75_spill] sm:$0xff]  ;;  %v18760_v37 = vld [vmem:[#allocation72_spill] sm:$0xff] }
 0x63a   : > { %v4961_v40 = vadd.f32 %v4923_v51, %v4849_v45  ;;  %4784 = vrot.lane.b32.xlu1 %v4748_v62, %s12577_s26  ;;  %v4925_v12 = vpop.permute.xlu0 %4924  ;;  %v4756_v21 = vmul.f32 %v14692_v8, %v4740_v28  ;;  %v4741_v62 = vsel %vm1853_vm0, %v14934_v33, %v14925_v19  ;;  %v4758_v7 = vmul.f32 %v14739_v38, %v4742_v9  ;;  %v18761_v8 = vld [vmem:[#allocation120_spill] sm:$0xff]  ;;  %v18762_v38 = vld [vmem:[#allocation103_spill] sm:$0xff] }
 0x63b   : > { %v4962_v10 = vadd.f32 %v4925_v12, %v4850_v52  ;;  %v4855_v45 = vmul.f32 %v18760_v37, %v18759_v49  ;;  %v18763_v12 = vld [vmem:[#allocation105_spill] sm:$0xff]  ;;  %v18767_v9 = vld [vmem:[#allocation32_spill] sm:$0xff] }
 0x63c   : > { %v4980_v61 = vpack.c.bf16 %v4961_v40, %v4960_v60  ;;  %v4757_v40 = vmul.f32 %v18761_v8, %v4741_v62 }
 0x63d   : > { %v4927_v58 = vpop.permute.xlu1 %4926 }
 0x63e   : > { %v4963_v2 = vadd.f32 %v4927_v58, %v4851_v11  ;;  %4786 = vrot.lane.b32.xlu1 %v4749_v32, %s12577_s26  ;;  %5024 = vrot.lane.b32.xlu0 %v4980_v61, %s12577_s26  ;;  %v4743_v32 = vsel %vm1853_vm0, %v18763_v12, %v18762_v38  ;;  %v18764_v11 = vld [vmem:[#allocation101_spill] sm:$0xff] }
 0x63f   : > { %v4759_v13 = vmul.f32 %v18764_v11, %v4743_v32  ;;  %v18772_v11 = vld [vmem:[#allocation76_spill] sm:$0xff] }
 0x640   : > { %v4981_v24 = vpack.c.bf16 %v4963_v2, %v4962_v10 }
 0x642   : > { %5022 = vrot.lane.b32.xlu1 %v4979_v54, %s12577_s26  ;;  %4794 = vrot.lane.b32.xlu0 %v4753_v20, %s12577_s26  ;;  %v18758_v54 = vld [vmem:[#allocation109_spill] sm:$0xff] }
 0x643   : > { %v4854_v0 = vmul.f32 %v18758_v54, %v18757_v63 }
 0x646   : > { %v4929_v17 = vpop.permute.xlu1 %4928  ;;  %4792 = vrot.lane.b32.xlu1 %v4752_v44, %s12577_s26  ;;  %4796 = vrot.lane.b32.xlu0 %v4754_v6, %s12577_s26 }
 0x647   : > { %v4964_v27 = vadd.f32 %v4929_v17, %v4852_v30 }
 0x64a   : > { %v4931_v1 = vpop.permute.xlu1 %4930  ;;  %4798 = vrot.lane.b32.xlu0 %v4755_v29, %s12577_s26 }
 0x64b   : > { %v4965_v14 = vadd.f32 %v4931_v1, %v4853_v41 }
 0x64d   : > { %v4982_v55 = vpack.c.bf16 %v4965_v14, %v4964_v27  ;;  %v18765_v27 = vld [vmem:[#allocation23_spill] sm:$0xff] }
 0x64e   : > { %5026 = vrot.lane.b32.xlu0 %v4981_v24, %s12577_s26  ;;  %v4713_v14 = vmul.f32 %v18733_v16, %v18765_v27 }
 0x64f   : > { %5028 = vrot.lane.b32.xlu1 %v4982_v55, %s12577_s26  ;;  %v18766_v55 = vld [vmem:[#allocation21_spill] sm:$0xff] }
 0x652   : > { %v10396_v5 = vpop.f32.mrb[20].mxu1  ;;  %4800 = vrot.lane.b32.xlu0 %v4756_v21, %s12577_s26  ;;  %v4933_v59 = vpop.permute.xlu0 %4932  ;;  %v4712_v21 = vmul.f32 %v18767_v9, %v18766_v55  ;;  %v18775_v9 = vld [vmem:[#allocation31_spill] sm:$0xff] }
 0x653   : > { %v4966_v18 = vadd.f32 %v4933_v59, %v4854_v0  ;;  %v2442_v51 = vpop.f32.mrb[21].mxu1  ;;  %v4935_v60 = vpop.permute.xlu1 %4934  ;;  %4804 = vrot.lane.b32.xlu1 %v4758_v7, %s12577_s26  ;;  %v18768_v59 = vld [vmem:[#allocation25_spill] sm:$0xff] }
 0x654   : > { %v4967_v19 = vadd.f32 %v4935_v60, %v4855_v45  ;;  %v10397_v33 = vpop.f32.mrb[22].mxu1  ;;  %v4715_v49 = vmul.f32 %v18737_v3, %v18768_v59  ;;  %v18770_v3 = vld [vmem:[#allocation28_spill] sm:$0xff] }
 0x655   : > { %v2492_v61 = vpack.c.bf16 %v10397_v33, %v10396_v5  ;;  %v2445_v22 = vpop.f32.mrb[23].mxu1  ;;  %v4718_v32 = vmul.f32 %v18742_v26, %v18770_v3 }
 0x656   : > { %v4983_v52 = vpack.c.bf16 %v4967_v19, %v4966_v18  ;;  %v2491_v53 = vpack.c.bf16 %v2445_v22, %v2442_v51  ;;  %4802 = vrot.lane.b32.xlu0 %v4757_v40, %s12577_s26  ;;  %v18769_v18 = vld [vmem:[#allocation24_spill] sm:$0xff] }
 0x657   : > { %v4714_v16 = vmul.f32 %v18735_v31, %v18769_v18  ;;  %v18771_v31 = vld [vmem:[#allocation29_spill] sm:$0xff] }
 0x658   : > { %9841 = vmatmul.mubr.msk.bf16.gmra.mrb[104].mxu0 %vm2094_vm1, %v2491_v53  ;;  %5030 = vrot.lane.b32.xlu1 %v4983_v52, %s12577_s26  ;;  %v4719_v52 = vmul.f32 %v18744_v4, %v18771_v31 }
 0x659   : > { %2623 = vmatprep.mubr.bf16.mxu0 %v18728_v50 }
 0x65a   : > { %4806 = vrot.lane.b32.xlu0 %v4759_v13, %s12577_s26 }
 0x65f   : > { %v4779_v29 = vpop.permute.xlu0 %4778 }
 0x660   : > { %v10400_v58 = vpop.f32.mrb[24].mxu1  ;;  %9842 = vmatmul.mubr.msk.bf16.gmra.mrb[108].mxu0 %vm2094_vm1, %v2492_v61  ;;  %v4825_v63 = vadd.f32 %v4779_v29, %v4713_v14 }
 0x661   : > { %v2458_v10 = vpop.f32.mrb[25].mxu1  ;;  %2633 = vmatprep.mubr.bf16.mxu0 %v18728_v50 }
 0x662   : > { %v10401_v2 = vpop.f32.mrb[26].mxu1 }
 0x663   : > { %v2494_v20 = vpack.c.bf16 %v10401_v2, %v10400_v58  ;;  %v2461_v24 = vpop.f32.mrb[27].mxu1 }
 0x664   : > { %v2493_v25 = vpack.c.bf16 %v2461_v24, %v2458_v10  ;;  %v18773_v24 = vld [vmem:[#allocation26_spill] sm:$0xff] }
 0x667   : > { %v4783_v48 = vpop.permute.xlu0 %4782 }
 0x668   : > { %9843 = vmatmul.mubr.msk.bf16.gmra.mrb[112].mxu0 %vm2094_vm1, %v2493_v25  ;;  %v4827_v60 = vadd.f32 %v4783_v48, %v4715_v49  ;;  %v4716_v25 = vmul.f32 %v18738_v34, %v18773_v24 }
 0x669   : > { %2643 = vmatprep.mubr.bf16.mxu0 %v18728_v50 }
 0x670   : > { %9844 = vmatmul.mubr.msk.bf16.gmra.mrb[116].mxu0 %vm2094_vm1, %v2494_v20 }
 0x671   : > { %2653 = vmatprep.mubr.bf16.mxu0 %v18728_v50 }
 0x695   : > { %v10404_v57 = vpop.f32.mrb[28].mxu1 }
 0x696   : > { %v2474_v44 = vpop.f32.mrb[29].mxu1 }
 0x697   : > { %v10405_v6 = vpop.f32.mrb[30].mxu1 }
 0x698   : > { %v2496_v56 = vpack.c.bf16 %v10405_v6, %v10404_v57  ;;  %v2477_v17 = vpop.f32.mrb[31].mxu1  ;;  %v18774_v57 = vld [vmem:[#allocation27_spill] sm:$0xff] }
 0x699   : > { %v2495_v46 = vpack.c.bf16 %v2477_v17, %v2474_v44  ;;  %v4717_v44 = vmul.f32 %v18740_v35, %v18774_v57  ;;  %v4721_v35 = vmul.f32 %v18748_v36, %v18775_v9  ;;  %v18778_v36 = vld [vmem:[#allocation33_spill] sm:$0xff] }
 0x69a   : > { %v18785_v57 = vld [vmem:[#allocation41_spill] sm:$0xff] }
 0x69b   : > { %9845 = vmatmul.mubr.msk.bf16.gmra.mrb[120].mxu0 %vm2094_vm1, %v2495_v46 }
 0x69c   : > { %v15098_v30 = vpop.permute.xlu1 %5016  ;;  %2663 = vmatprep.mubr.bf16.mxu0 %v18728_v50 }
 0x69d   : > { %v15101_v41 = vpop.f32.mrb[32].mxu1  ;;  %10846 = vmatprep.subr.msk.bf16.mxu1 %vm2094_vm1, %v15098_v30 }
 0x69e   : > { %v15105_v1 = vpop.f32.mrb[33].mxu1 }
 0x69f   : > { %v15109_v28 = vpop.f32.mrb[34].mxu1 }
 0x6a0   : > { %v15113_v62 = vpop.f32.mrb[35].mxu1  ;;  %v4777_v7 = vpop.permute.xlu1 %4776 }
 0x6a1   : > { %v4824_v0 = vadd.f32 %v4777_v7, %v4712_v21  ;;  %v15115_v5 = vpop.permute.xlu0 %5018  ;;  %v18776_v7 = vld [vmem:[#allocation30_spill] sm:$0xff] }
 0x6a3   : > { %v4968_v45 = vpack.c.bf16 %v4825_v63, %v4824_v0  ;;  %9846 = vmatmul.mubr.msk.bf16.gmra.mrb[124].mxu0 %vm2094_vm1, %v2496_v56  ;;  %v4720_v63 = vmul.f32 %v18746_v23, %v18776_v7 }
 0x6a4   : > { %v4781_v51 = vpop.permute.xlu1 %4780 }
 0x6a5   : > { %v4826_v8 = vadd.f32 %v4781_v51, %v4714_v16  ;;  %v4789_v40 = vpop.permute.xlu0 %4788  ;;  %v15122_v19 = vpop.f32.mrb[36].mxu1  ;;  %4992 = vrot.lane.b32.xlu0 %v4968_v45, %s12577_s26  ;;  %v18777_v16 = vld [vmem:[#allocation78_spill] sm:$0xff] }
 0x6a6   : > { %v15125_v33 = vpop.f32.mrb[37].mxu1  ;;  %v4830_v13 = vadd.f32 %v4789_v40, %v4718_v32 }
 0x6a7   : > { %v4969_v38 = vpack.c.bf16 %v4827_v60, %v4826_v8  ;;  %v15127_v12 = vpop.f32.mrb[38].mxu1  ;;  %v4722_v60 = vmul.f32 %v18750_v42, %v18778_v36  ;;  %v18779_v8 = vld [vmem:[#allocation35_spill] sm:$0xff]  ;;  %v18783_v42 = vld [vmem:[#allocation37_spill] sm:$0xff] }
 0x6a8   : > { %v15131_v61 = vpop.f32.mrb[39].mxu1  ;;  %v15133_v22 = vpop.permute.xlu1 %5020  ;;  %v4723_v23 = vmul.f32 %v18752_v43, %v18779_v8  ;;  %v18784_v43 = vld [vmem:[#allocation39_spill] sm:$0xff] }
 0x6a9   : > { %v4791_v53 = vpop.permute.xlu0 %4790  ;;  %3395 = vrot.lane.b32.xlu0 %v18772_v11, %s12577_s26  ;;  %4994 = vrot.lane.b32.xlu1 %v4969_v38, %s12577_s26  ;;  %v18780_v38 = vld [vmem:[#allocation80_spill] sm:$0xff] }
 0x6aa   : > { %v4831_v58 = vadd.f32 %v4791_v53, %v4719_v52 }
 0x6ac   : > { %v4971_v10 = vpack.c.bf16 %v4831_v58, %v4830_v13  ;;  %v4785_v2 = vpop.permute.xlu1 %4784  ;;  %v4724_v13 = vmul.f32 %v18754_v47, %v18783_v42  ;;  %v4725_v58 = vmul.f32 %v18756_v39, %v18784_v43 }
 0x6ad   : > { %v15140_v20 = vpop.f32.mrb[40].mxu1  ;;  %v4828_v17 = vadd.f32 %v4785_v2, %v4716_v25 }
 0x6ae   : > { %4998 = vrot.lane.b32.xlu1 %v4971_v10, %s12577_s26  ;;  %v15143_v26 = vpop.f32.mrb[41].mxu1 }
 0x6af   : > { %v15147_v4 = vpop.f32.mrb[42].mxu1 }
 0x6b0   : > { %v15151_v6 = vpop.f32.mrb[43].mxu1  ;;  %v4787_v56 = vpop.permute.xlu1 %4786 }
 0x6b1   : > { %v4829_v29 = vadd.f32 %v4787_v56, %v4717_v44  ;;  %v15153_v46 = vpop.permute.xlu0 %5024  ;;  %v4726_v44 = vmul.f32 %v18758_v54, %v18785_v57 }
 0x6b3   : > { %v4970_v48 = vpack.c.bf16 %v4829_v29, %v4828_v17  ;;  %v18786_v17 = vld [vmem:[#allocation43_spill] sm:$0xff] }
 0x6b4   : > { %v15155_v27 = vpop.permute.xlu1 %5022  ;;  %v4727_v29 = vmul.f32 %v18760_v37, %v18786_v17 }
 0x6b5   : > { %v4795_v14 = vpop.permute.xlu0 %4794  ;;  %v15157_v55 = vpop.f32.mrb[44].mxu1  ;;  %4996 = vrot.lane.b32.xlu0 %v4970_v48, %s12577_s26 }
 0x6b6   : > { %v15160_v34 = vpop.f32.mrb[45].mxu1  ;;  %v15170_v49 = vadd.f32 %v4795_v14, %v4721_v35 }
 0x6b7   : > { %v15164_v21 = vpop.f32.mrb[46].mxu1 }
 0x6b8   : > { %v15168_v0 = vpop.f32.mrb[47].mxu1  ;;  %v4793_v59 = vpop.permute.xlu1 %4792 }
 0x6b9   : > { %v15172_v45 = vadd.f32 %v4793_v59, %v4720_v63  ;;  %v4797_v18 = vpop.permute.xlu0 %4796  ;;  %3397 = vrot.lane.b32.xlu0 %v18777_v16, %s12577_s26 }
 0x6ba   : > { %v15184_v3 = vadd.f32 %v4797_v18, %v4722_v60 }
 0x6bb   : > { %v4972_v51 = vpack.c.bf16 %v15170_v49, %v15172_v45 }
 0x6bd   : > { %v4799_v40 = vpop.permute.xlu0 %4798  ;;  %3399 = vrot.lane.b32.xlu0 %v18780_v38, %s12577_s26  ;;  %v18787_v38 = vld [vmem:[#allocation82_spill] sm:$0xff] }
 0x6be   : > { %v15186_v32 = vadd.f32 %v4799_v40, %v4723_v23 }
 0x6c1   : > { %v15190_v52 = vpop.permute.xlu0 %5026  ;;  %v15192_v53 = vpop.permute.xlu1 %5028 }
 0x6c2   : > { %18781 = vst [vmem:[#allocation107_spill] sm:$0xff] %v15190_v52  ;;  %18782 = vst [vmem:[#allocation108_spill] sm:$0xff] %v15192_v53 }
 0x6c5   : > { %v4801_v11 = vpop.permute.xlu0 %4800  ;;  %v4805_v25 = vpop.permute.xlu1 %4804 }
 0x6c6   : > { %v15198_v2 = vadd.f32 %v4801_v11, %v4724_v13  ;;  %v15208_v47 = vadd.f32 %v4805_v25, %v4726_v44  ;;  %v18788_v11 = vld [vmem:[#allocation84_spill] sm:$0xff] }
 0x6c9   : > { %v4803_v10 = vpop.permute.xlu0 %4802 }
 0x6ca   : > { %v15200_v24 = vadd.f32 %v4803_v10, %v4725_v58 }
 0x6cd   : > { %v4807_v48 = vpop.permute.xlu0 %4806 }
 0x6ce   : > { %v15210_v14 = vadd.f32 %v4807_v48, %v4727_v29 }
 0x6d2   : > { %3237 = vmax.xlane.f32.xlu1 %v15113_v62 }
 0x6d6   : > { %3247 = vmax.xlane.f32.xlu1 %v15122_v19 }
 0x6da   : > { %3243 = vmax.xlane.f32.xlu1 %v15125_v33 }
 0x6dc   : > { %3239 = vmax.xlane.f32.xlu0 %v15101_v41 }
 0x6dd   : > { %v15218_v54 = vpop.f32.mrb[48].mxu1 }
 0x6de   : > { %v15220_v9 = vpop.f32.mrb[49].mxu1  ;;  %3249 = vmax.xlane.f32.xlu1 %v15127_v12 }
 0x6df   : > { %v15223_v37 = vpop.f32.mrb[50].mxu1 }
 0x6e0   : > { %v15225_v35 = vpop.f32.mrb[51].mxu1  ;;  %3235 = vmax.xlane.f32.xlu0 %v15105_v1 }
 0x6e2   : > { %3251 = vmax.xlane.f32.xlu1 %v15143_v26 }
 0x6e4   : > { %3241 = vmax.xlane.f32.xlu0 %v15109_v28 }
 0x6e5   : > { %v15230_v7 = vpop.f32.mrb[52].mxu1 }
 0x6e6   : > { %v15232_v63 = vpop.f32.mrb[53].mxu1  ;;  %3257 = vmax.xlane.f32.xlu1 %v15147_v4 }
 0x6e7   : > { %v15235_v59 = vpop.f32.mrb[54].mxu1 }
 0x6e8   : > { %v15237_v49 = vpop.f32.mrb[55].mxu1  ;;  %3245 = vmax.xlane.f32.xlu0 %v15131_v61 }
 0x6ea   : > { %3253 = vmax.xlane.f32.xlu1 %v15151_v6 }
 0x6ec   : > { %3255 = vmax.xlane.f32.xlu0 %v15140_v20 }
 0x6ed   : > { %v15242_v45 = vpop.f32.mrb[56].mxu1 }
 0x6ee   : > { %v15244_v18 = vpop.f32.mrb[57].mxu1  ;;  %3263 = vmax.xlane.f32.xlu1 %v15157_v55 }
 0x6ef   : > { %v15247_v16 = vpop.f32.mrb[58].mxu1 }
 0x6f0   : > { %v15249_v36 = vpop.f32.mrb[59].mxu1  ;;  %3261 = vmax.xlane.f32.xlu0 %v15168_v0 }
 0x6f2   : > { %3259 = vmax.xlane.f32.xlu1 %v15160_v34 }
 0x6f4   : > { %4250 = vmax.xlane.f32.xlu0 %v15218_v54 }
 0x6f6   : > { %3265 = vmax.xlane.f32.xlu1 %v15164_v21 }
 0x6f8   : > { %4246 = vmax.xlane.f32.xlu0 %v15220_v9 }
 0x6fa   : > { %4248 = vmax.xlane.f32.xlu1 %v15225_v35 }
 0x6fc   : > { %v15257_v60 = vpop.f32.mrb[60].mxu1  ;;  %4252 = vmax.xlane.f32.xlu0 %v15223_v37 }
 0x6fd   : > { %v15260_v8 = vpop.f32.mrb[61].mxu1 }
 0x6fe   : > { %v15262_v23 = vpop.f32.mrb[62].mxu1 }
 0x6ff   : > { %v15264_v40 = vpop.f32.mrb[63].mxu1 }
 0x70b   : > { %3401 = vrot.lane.b32.xlu1 %v18787_v38, %s12577_s26 }
 0x712   : > { %3403 = vrot.lane.b32.xlu0 %v18788_v11, %s12577_s26 }
 0x716   : > { %5000 = vrot.lane.b32.xlu0 %v4972_v51, %s12577_s26  ;;  %v15287_v51 = vpop.permute.xlu1 %5030 }
 0x717   : > { %v15271_v42 = vpop.permute.xlu0 %4992  ;;  %18791 = vst [vmem:[#allocation113_spill] sm:$0xff] %v15287_v51 }
 0x718   : > { %18789 = vst [vmem:[#allocation110_spill] sm:$0xff] %v15271_v42 }
 0x71b   : > { %v3396_v13 = vpop.permute.xlu0 %3395  ;;  %v15289_v25 = vpop.permute.xlu1 %4994 }
 0x71c   : > { %10438 = vmatprep.subr.bf16.mxu0 %v3396_v13  ;;  %18792 = vst [vmem:[#allocation112_spill] sm:$0xff] %v15289_v25 }
 0x71d   : > { %10439 = vmatpush3.bf16.msra.mxu0 %v3396_v13 }
 0x720   : > { %v15291_v57 = vpop.permute.xlu1 %4998 }
 0x721   : > { %18793 = vst [vmem:[#allocation114_spill] sm:$0xff] %v15291_v57 }
 0x727   : > { %v15273_v43 = vpop.permute.xlu0 %4996 }
 0x728   : > { %18790 = vst [vmem:[#allocation111_spill] sm:$0xff] %v15273_v43 }
 0x72b   : > { %v3398_v58 = vpop.permute.xlu0 %3397 }
 0x72c   : > { %10440 = vmatprep.subr.bf16.mxu0 %v3398_v58 }
 0x72d   : > { %10441 = vmatpush3.bf16.msra.mxu0 %v3398_v58 }
 0x72f   : > { %4260 = vmax.xlane.f32.xlu1 %v15235_v59  ;;  %v3400_v10 = vpop.permute.xlu0 %3399 }
 0x730   : > { %10442 = vmatprep.subr.bf16.mxu0 %v3400_v10 }
 0x731   : > { %10443 = vmatpush3.bf16.msra.mxu0 %v3400_v10 }
 0x733   : > { %4256 = vmax.xlane.f32.xlu1 %v15237_v49 }
 0x735   : > { %4258 = vmax.xlane.f32.xlu0 %v15230_v7 }
 0x737   : > { %4268 = vmax.xlane.f32.xlu1 %v15247_v16 }
 0x739   : > { %4254 = vmax.xlane.f32.xlu0 %v15232_v63 }
 0x73b   : > { %4264 = vmax.xlane.f32.xlu1 %v15249_v36 }
 0x73d   : > { %4266 = vmax.xlane.f32.xlu0 %v15242_v45 }
 0x73f   : > { %4270 = vmax.xlane.f32.xlu1 %v15260_v8 }
 0x741   : > { %4262 = vmax.xlane.f32.xlu0 %v15244_v18 }
 0x743   : > { %4276 = vmax.xlane.f32.xlu1 %v15262_v23 }
 0x745   : > { %4274 = vmax.xlane.f32.xlu0 %v15257_v60 }
 0x749   : > { %4272 = vmax.xlane.f32.xlu0 %v15264_v40 }
 0x75f   : > { %v3238_v44 = vpop.xlane.xlu1 %3237 }
 0x760   : > { %v3268_v17 = vsub.f32 %v15113_v62, %v3238_v44 }
 0x762   : > { %v3285_v29 = vmul.f32 1.442695, %v3268_v17 }
 0x763   : > { %v3248_v48 = vpop.xlane.xlu1 %3247 }
 0x764   : > { %11665 = vpow2.f32 %v3285_v29  ;;  %v3273_v44 = vsub.f32 %v15122_v19, %v3248_v48 }
 0x767   : > { %v3244_v38 = vpop.xlane.xlu1 %3243 }
 0x769   : > { %v3240_v11 = vpop.xlane.xlu0 %3239 }
 0x76a   : > { %v3269_v13 = vsub.f32 %v15101_v41, %v3240_v11 }
 0x76b   : > { %v3250_v58 = vpop.xlane.xlu1 %3249 }
 0x76c   : > { %v3287_v10 = vmul.f32 1.442695, %v3269_v13  ;;  %v3295_v13 = vmul.f32 1.442695, %v3273_v44  ;;  %v3274_v48 = vsub.f32 %v15127_v12, %v3250_v58 }
 0x76d   : > { %v3236_v56 = vpop.xlane.xlu0 %3235 }
 0x76e   : > { %v15295_v39 = vpop.eup %11665  ;;  %11667 = vpow2.f32 %v3287_v10  ;;  %v3267_v31 = vsub.f32 %v15105_v1, %v3236_v56  ;;  %v3271_v10 = vsub.f32 %v15125_v33, %v3244_v38 }
 0x76f   : > { %v15298_v15 = vpop.xlane.xlu1 %3251  ;;  %3317 = vadd.xlane.f32.xlu0 %v15295_v39 }
 0x770   : > { %v3283_v62 = vmul.f32 1.442695, %v3267_v31 }
 0x771   : > { %v3242_v17 = vpop.xlane.xlu0 %3241 }
 0x772   : > { %11669 = vpow2.f32 %v3283_v62  ;;  %v3270_v29 = vsub.f32 %v15109_v28, %v3242_v17  ;;  %v3291_v28 = vmul.f32 1.442695, %v3271_v10 }
 0x773   : > { %v15303_v41 = vpop.xlane.xlu1 %3257 }
 0x774   : > { %v3289_v11 = vmul.f32 1.442695, %v3270_v29 }
 0x775   : > { %v3246_v50 = vpop.xlane.xlu0 %3245 }
 0x776   : > { %11671 = vpow2.f32 %v3289_v11  ;;  %v3272_v1 = vsub.f32 %v15131_v61, %v3246_v50  ;;  %v3297_v61 = vmul.f32 1.442695, %v3274_v48 }
 0x777   : > { %v15307_v56 = vpop.xlane.xlu1 %3253  ;;  %11673 = vpow2.f32 %v3295_v13 }
 0x778   : > { %v15309_v57 = vpop.eup %11667  ;;  %v3293_v31 = vmul.f32 1.442695, %v3272_v1 }
 0x779   : > { %3319 = vadd.xlane.f32.xlu1 %v15309_v57  ;;  %v15312_v19 = vpop.xlane.xlu0 %3255 }
 0x77a   : > { %11675 = vpow2.f32 %v3293_v31 }
 0x77b   : > { %v15315_v62 = vpop.xlane.xlu1 %3263  ;;  %11677 = vpow2.f32 %v3291_v28 }
 0x77c   : > { %v15317_v33 = vpop.eup %11669  ;;  %11679 = vpow2.f32 %v3297_v61 }
 0x77d   : > { %3315 = vadd.xlane.f32.xlu1 %v15317_v33  ;;  %v15320_v50 = vpop.xlane.xlu0 %3261 }
 0x77f   : > { %v15322_v38 = vpop.xlane.xlu1 %3259 }
 0x780   : > { %v15324_v44 = vpop.eup %11671 }
 0x781   : > { %3321 = vadd.xlane.f32.xlu1 %v15324_v44  ;;  %v4251_v17 = vpop.xlane.xlu0 %4250  ;;  %v15328_v58 = vpop.eup %11673 }
 0x782   : > { %v4280_v12 = vsub.f32 %v15218_v54, %v4251_v17 }
 0x783   : > { %v15330_v29 = vpop.xlane.xlu1 %3265 }
 0x784   : > { %v15332_v11 = vpop.eup %11675  ;;  %v4298_v13 = vmul.f32 1.442695, %v4280_v12 }
 0x785   : > { %3327 = vadd.xlane.f32.xlu1 %v15328_v58  ;;  %3325 = vadd.xlane.f32.xlu0 %v15332_v11  ;;  %v4247_v10 = vpop.xlane.xlu0 %4246  ;;  %v15337_v28 = vpop.eup %11677 }
 0x786   : > { %11681 = vpow2.f32 %v4298_v13  ;;  %v4278_v1 = vsub.f32 %v15220_v9, %v4247_v10  ;;  %v15342_v25 = vpop.eup %11679 }
 0x787   : > { %v4249_v31 = vpop.xlane.xlu1 %4248 }
 0x788   : > { %v4294_v48 = vmul.f32 1.442695, %v4278_v1  ;;  %v4279_v54 = vsub.f32 %v15225_v35, %v4249_v31  ;;  %v18795_v31 = vld [vmem:[#allocation86_spill] sm:$0xff] }
 0x789   : > { %3323 = vadd.xlane.f32.xlu1 %v15337_v28  ;;  %v4253_v61 = vpop.xlane.xlu0 %4252 }
 0x78a   : > { %11683 = vpow2.f32 %v4294_v48  ;;  %v4296_v17 = vmul.f32 1.442695, %v4279_v54  ;;  %v4281_v12 = vsub.f32 %v15223_v37, %v4253_v61 }
 0x78b   : > { %v3402_v43 = vpop.permute.xlu1 %3401 }
 0x78c   : > { %11685 = vpow2.f32 %v4296_v17  ;;  %v4300_v13 = vmul.f32 1.442695, %v4281_v12  ;;  %10444 = vmatprep.subr.bf16.mxu0 %v3402_v43 }
 0x78d   : > { %10445 = vmatpush3.bf16.msra.mxu0 %v3402_v43  ;;  %3329 = vadd.xlane.f32.xlu1 %v15342_v25  ;;  %v3404_v9 = vpop.permute.xlu0 %3403  ;;  %v18794_v43 = vpack.c.bf16 %v15186_v32, %v15184_v3 }
 0x78e   : > { %11687 = vpow2.f32 %v4300_v13  ;;  %10446 = vmatprep.subr.bf16.mxu0 %v3404_v9 }
 0x790   : > { %v15345_v35 = vpop.eup %11681 }
 0x791   : > { %10447 = vmatpush3.bf16.msra.mxu0 %v3404_v9  ;;  %4330 = vadd.xlane.f32.xlu0 %v15345_v35  ;;  %v15364_v61 = vpop.permute.xlu0 %5000 }
 0x794   : > { %v15348_v10 = vpop.eup %11683 }
 0x795   : > { %4326 = vadd.xlane.f32.xlu0 %v15348_v10 }
 0x796   : > { %v15351_v37 = vpop.eup %11685 }
 0x797   : > { %4328 = vadd.xlane.f32.xlu1 %v15351_v37 }
 0x798   : > { %v15354_v1 = vpop.eup %11687 }
 0x799   : > { %4332 = vadd.xlane.f32.xlu0 %v15354_v1 }
 0x7a8   : > { %5002 = vrot.lane.b32.xlu1 %v18794_v43, %s12577_s26 }
 0x7af   : > { %3405 = vrot.lane.b32.xlu0 %v18795_v31, %s12577_s26 }
 0x7bc   : > { %v4261_v48 = vpop.xlane.xlu1 %4260 }
 0x7bd   : > { %v4285_v54 = vsub.f32 %v15235_v59, %v4261_v48 }
 0x7bf   : > { %v4308_v17 = vmul.f32 1.442695, %v4285_v54 }
 0x7c0   : > { %v4257_v12 = vpop.xlane.xlu1 %4256 }
 0x7c1   : > { %11689 = vpow2.f32 %v4308_v17  ;;  %v4283_v53 = vsub.f32 %v15237_v49, %v4257_v12 }
 0x7c2   : > { %v4259_v13 = vpop.xlane.xlu0 %4258 }
 0x7c3   : > { %v4284_v9 = vsub.f32 %v15230_v7, %v4259_v13  ;;  %v4304_v52 = vmul.f32 1.442695, %v4283_v53 }
 0x7c4   : > { %v4269_v42 = vpop.xlane.xlu1 %4268 }
 0x7c5   : > { %v4306_v51 = vmul.f32 1.442695, %v4284_v9  ;;  %v4289_v13 = vsub.f32 %v15247_v16, %v4269_v42 }
 0x7c6   : > { %v4255_v3 = vpop.xlane.xlu0 %4254 }
 0x7c7   : > { %11691 = vpow2.f32 %v4306_v51  ;;  %v4282_v32 = vsub.f32 %v15232_v63, %v4255_v3  ;;  %v4316_v9 = vmul.f32 1.442695, %v4289_v13 }
 0x7c8   : > { %v4265_v43 = vpop.xlane.xlu1 %4264 }
 0x7c9   : > { %v4302_v31 = vmul.f32 1.442695, %v4282_v32  ;;  %v4287_v59 = vsub.f32 %v15249_v36, %v4265_v43 }
 0x7ca   : > { %v4267_v48 = vpop.xlane.xlu0 %4266 }
 0x7cb   : > { %11693 = vpow2.f32 %v4302_v31  ;;  %v4288_v54 = vsub.f32 %v15242_v45, %v4267_v48  ;;  %v15371_v17 = vpop.eup %11689  ;;  %v4312_v49 = vmul.f32 1.442695, %v4287_v59 }
 0x7cc   : > { %11695 = vpow2.f32 %v4304_v52  ;;  %v4271_v12 = vpop.xlane.xlu1 %4270 }
 0x7cd   : > { %v4314_v7 = vmul.f32 1.442695, %v4288_v54  ;;  %v4290_v52 = vsub.f32 %v15260_v8, %v4271_v12 }
 0x7ce   : > { %4340 = vadd.xlane.f32.xlu0 %v15371_v17  ;;  %v4263_v63 = vpop.xlane.xlu0 %4262 }
 0x7cf   : > { %11697 = vpow2.f32 %v4314_v7  ;;  %v4286_v53 = vsub.f32 %v15244_v18, %v4263_v63  ;;  %v4318_v18 = vmul.f32 1.442695, %v4290_v52 }
 0x7d0   : > { %11699 = vpow2.f32 %v4312_v49  ;;  %v4277_v42 = vpop.xlane.xlu1 %4276 }
 0x7d1   : > { %v15376_v51 = vpop.eup %11691  ;;  %v4310_v36 = vmul.f32 1.442695, %v4286_v53  ;;  %v4293_v43 = vsub.f32 %v15262_v23, %v4277_v42  ;;  %v18796_v53 = vld [vmem:[#allocation93_spill] sm:$0xff]  ;;  %v3277_v42 = vsub.f32 %v15140_v20, %v15312_v19 }
 0x7d2   : > { %4338 = vadd.xlane.f32.xlu1 %v15376_v51  ;;  %v4275_v45 = vpop.xlane.xlu0 %4274 }
 0x7d3   : > { %11701 = vpow2.f32 %v4310_v36  ;;  %v4292_v16 = vsub.f32 %v15257_v60, %v4275_v45  ;;  %v4324_v60 = vmul.f32 1.442695, %v4293_v43  ;;  %v3276_v36 = vsub.f32 %v15151_v6, %v15307_v56 }
 0x7d4   : > { %11703 = vpow2.f32 %v4316_v9  ;;  %v18797_v9 = vld [vmem:[#allocation88_spill] sm:$0xff]  ;;  %v3303_v43 = vmul.f32 1.442695, %v3277_v42  ;;  %v3275_v6 = vsub.f32 %v15143_v26, %v15298_v15 }
 0x7d5   : > { %v15381_v3 = vpop.eup %11693  ;;  %v4322_v32 = vmul.f32 1.442695, %v4292_v16  ;;  %v3301_v16 = vmul.f32 1.442695, %v3276_v36 }
 0x7d6   : > { %4334 = vadd.xlane.f32.xlu1 %v15381_v3  ;;  %v15385_v31 = vpop.eup %11695  ;;  %v4273_v59 = vpop.xlane.xlu0 %4272  ;;  %v3299_v20 = vmul.f32 1.442695, %v3275_v6 }
 0x7d7   : > { %11705 = vpow2.f32 %v4322_v32  ;;  %v4291_v8 = vsub.f32 %v15264_v40, %v4273_v59 }
 0x7d8   : > { %11707 = vpow2.f32 %v4318_v18  ;;  %v3278_v18 = vsub.f32 %v15147_v4, %v15303_v41 }
 0x7d9   : > { %v15387_v48 = vpop.eup %11697  ;;  %11709 = vpow2.f32 %v4324_v60  ;;  %v4320_v23 = vmul.f32 1.442695, %v4291_v8 }
 0x7da   : > { %4336 = vadd.xlane.f32.xlu1 %v15385_v31  ;;  %4346 = vadd.xlane.f32.xlu0 %v15387_v48  ;;  %v15392_v54 = vpop.eup %11699  ;;  %v3305_v56 = vmul.f32 1.442695, %v3278_v18 }
 0x7db   : > { %11711 = vpow2.f32 %v4320_v23 }
 0x7dd   : > { %v15394_v7 = vpop.eup %11701 }
 0x7de   : > { %4344 = vadd.xlane.f32.xlu0 %v15392_v54  ;;  %4342 = vadd.xlane.f32.xlu1 %v15394_v7  ;;  %v15398_v13 = vpop.eup %11703 }
 0x7e1   : > { %v15400_v49 = vpop.eup %11705 }
 0x7e2   : > { %4348 = vadd.xlane.f32.xlu1 %v15398_v13  ;;  %4354 = vadd.xlane.f32.xlu0 %v15400_v49  ;;  %v15404_v40 = vpop.eup %11707 }
 0x7e3   : > { %v15407_v12 = vpop.eup %11709 }
 0x7e5   : > { %v15410_v63 = vpop.eup %11711 }
 0x7e6   : > { %4350 = vadd.xlane.f32.xlu0 %v15404_v40 }
 0x7ea   : > { %4356 = vadd.xlane.f32.xlu0 %v15407_v12 }
 0x7ee   : > { %4352 = vadd.xlane.f32.xlu0 %v15410_v63 }
 0x7f3   : > { %3409 = vrot.lane.b32.xlu1 %v18796_v53, %s12577_s26 }
 0x7fc   : > { %v3318_v45 = vpop.xlane.xlu0 %3317 }
 0x7fd   : > { %11713 = vrcp.f32 %v3318_v45 }
 0x804   : > { %3407 = vrot.lane.b32.xlu0 %v18797_v9, %s12577_s26 }
 0x806   : > { %v3320_v52 = vpop.xlane.xlu1 %3319 }
 0x807   : > { %v11714_v23 = vpop.eup %11713 }
 0x808   : > { %v3364_v36 = vmul.f32 %v11714_v23, %v15295_v39 }
 0x80a   : > { %v3316_v32 = vpop.xlane.xlu1 %3315 }
 0x80b   : > { %11715 = vrcp.f32 %v3316_v32 }
 0x80c   : > { %11717 = vpow2.f32 %v3301_v16 }
 0x80d   : > { %11719 = vrcp.f32 %v3320_v52 }
 0x80e   : > { %v3322_v59 = vpop.xlane.xlu1 %3321 }
 0x80f   : > { %11721 = vrcp.f32 %v3322_v59 }
 0x810   : > { %11723 = vpow2.f32 %v3303_v43 }
 0x811   : > { %11725 = vpow2.f32 %v3305_v56 }
 0x812   : > { %v3328_v60 = vpop.xlane.xlu1 %3327  ;;  %v3326_v8 = vpop.xlane.xlu0 %3325 }
 0x813   : > { %11727 = vrcp.f32 %v3326_v8 }
 0x815   : > { %v11716_v19 = vpop.eup %11715 }
 0x816   : > { %v15425_v53 = vpop.eup %11717  ;;  %v3324_v4 = vpop.xlane.xlu1 %3323  ;;  %v3363_v41 = vmul.f32 %v11716_v19, %v15317_v33 }
 0x817   : > { %v11720_v9 = vpop.eup %11719  ;;  %11729 = vrcp.f32 %v3324_v4  ;;  %3333 = vadd.xlane.f32.xlu1 %v15425_v53 }
 0x818   : > { %11731 = vpow2.f32 %v3299_v20  ;;  %v3379_v15 = vpack.c.bf16 %v3364_v36, %v3363_v41  ;;  %v15433_v52 = vmul.f32 %v11720_v9, %v15309_v57 }
 0x819   : > { %v11722_v26 = vpop.eup %11721  ;;  %11733 = vrcp.f32 %v3328_v60 }
 0x81a   : > { %v15430_v45 = vpop.eup %11723  ;;  %v15436_v16 = vmul.f32 %v11722_v26, %v15324_v44  ;;  %v3330_v42 = vpop.xlane.xlu1 %3329  ;;  %10454 = vmatprep.mubr.bf16.mxu0 %v3379_v15 }
 0x81b   : > { %11735 = vrcp.f32 %v3330_v42  ;;  %3335 = vadd.xlane.f32.xlu1 %v15430_v45  ;;  %v15441_v33 = vpop.eup %11725 }
 0x81c   : > { %v3380_v39 = vpack.c.bf16 %v15436_v16, %v15433_v52 }
 0x81d   : > { %v11728_v18 = vpop.eup %11727 }
 0x81e   : > { %v4331_v32 = vpop.xlane.xlu0 %4330  ;;  %v15450_v6 = vmul.f32 %v11728_v18, %v15332_v11 }
 0x81f   : > { %3337 = vadd.xlane.f32.xlu1 %v15441_v33 }
 0x821   : > { %v11730_v43 = vpop.eup %11729 }
 0x822   : > { %v15444_v57 = vpop.eup %11731  ;;  %v4327_v59 = vpop.xlane.xlu0 %4326  ;;  %v15447_v44 = vmul.f32 %v11730_v43, %v15337_v28 }
 0x823   : > { %v11734_v56 = vpop.eup %11733  ;;  %11737 = vrcp.f32 %v4327_v59  ;;  %3331 = vadd.xlane.f32.xlu0 %v15444_v57 }
 0x824   : > { %11739 = vrcp.f32 %v4331_v32  ;;  %v4329_v60 = vpop.xlane.xlu1 %4328  ;;  %v3381_v8 = vpack.c.bf16 %v15450_v6, %v15447_v44  ;;  %v15456_v19 = vmul.f32 %v11734_v56, %v15328_v58  ;;  %v18798_v58 = vpack.c.bf16 %v15210_v14, %v15208_v47  ;;  %v18801_v56 = vld [vmem:[#allocation108_spill] sm:$0xff] }
 0x825   : > { %v11736_v23 = vpop.eup %11735  ;;  %11741 = vrcp.f32 %v4329_v60  ;;  %v18799_v47 = vpack.c.bf16 %v15200_v24, %v15198_v2  ;;  %v5060_v14 = vsel %vm2094_vm1, %v15115_v5, 0 }
 0x826   : > { %v4333_v20 = vpop.xlane.xlu0 %4332  ;;  %v15459_v28 = vmul.f32 %v11736_v23, %v15342_v25 }
 0x827   : > { %11743 = vrcp.f32 %v4333_v20  ;;  %v18802_v20 = vld [vmem:[#allocation79_spill] sm:$0xff] }
 0x828   : > { %v3382_v11 = vpack.c.bf16 %v15459_v28, %v15456_v19 }
 0x82a   : > { %v3406_v4 = vpop.permute.xlu0 %3405 }
 0x82b   : > { %10448 = vmatprep.subr.bf16.mxu0 %v3406_v4 }
 0x82c   : > { %10449 = vmatpush3.bf16.msra.mxu0 %v3406_v4  ;;  %v5075_v4 = vsel %vm2094_vm1, %v18801_v56, 0 }
 0x82d   : > { %v11738_v41 = vpop.eup %11737 }
 0x82e   : > { %v11740_v36 = vpop.eup %11739  ;;  %v4374_v9 = vmul.f32 %v11738_v41, %v15348_v10  ;;  %v5057_v10 = vsel %vm2094_vm1, %v15098_v30, 0 }
 0x82f   : > { %v11742_v15 = vpop.eup %11741  ;;  %v4376_v42 = vmul.f32 %v11740_v36, %v15345_v35  ;;  %v3280_v35 = vsub.f32 %v15168_v0, %v15320_v50  ;;  %v3282_v0 = vsub.f32 %v15164_v21, %v15330_v29  ;;  %v18800_v21 = vld [vmem:[#allocation107_spill] sm:$0xff] }
 0x830   : > { %5006 = vrot.lane.b32.xlu1 %v18798_v58, %s12577_s26  ;;  %v4375_v25 = vmul.f32 %v11742_v15, %v15351_v37  ;;  %v3279_v37 = vsub.f32 %v15160_v34, %v15322_v38  ;;  %v5066_v34 = vsel %vm2094_vm1, %v15155_v27, 0  ;;  %v15511_v38 = vpop.permute.xlu1 %5002  ;;  %v5072_v29 = vsel %vm2094_vm1, %v18800_v21, 0 }
 0x831   : > { %v11744_v26 = vpop.eup %11743  ;;  %v3309_v30 = vmul.f32 1.442695, %v3280_v35 }
 0x832   : > { %v4377_v32 = vmul.f32 %v11744_v26, %v15354_v1  ;;  %v4390_v18 = vpack.c.bf16 %v4375_v25, %v4374_v9  ;;  %v5063_v1 = vsel %vm2094_vm1, %v15133_v22, 0  ;;  %v3307_v2 = vmul.f32 1.442695, %v3279_v37  ;;  %v18803_v9 = vld [vmem:[#allocation113_spill] sm:$0xff] }
 0x833   : > { %11745 = vpow2.f32 %v3309_v30  ;;  %v5078_v25 = vsel %vm2094_vm1, %v18803_v9, 0 }
 0x834   : > { %10518 = vmatprep.mubr.bf16.mxu1 %v4390_v18  ;;  %v4391_v43 = vpack.c.bf16 %v4377_v32, %v4376_v42  ;;  %11747 = vpow2.f32 %v3307_v2  ;;  %v18804_v2 = vld [vmem:[#allocation77_spill] sm:$0xff] }
 0x836   : > { %10519 = vmatmul.mubr.bf16.vlgmr.msra.gmra.mrb[64].mxu1 %v4391_v43 }
 0x837   : > { %10535 = vmatpush3.bf16.xpose.msra.mxu1 %v5057_v10 }
 0x838   : > { %10847 = vmatprep.subr.msk.bf16.mxu1 %vm2094_vm1, %v15115_v5  ;;  %v3281_v5 = vsub.f32 %v15157_v55, %v15315_v62  ;;  %v5069_v55 = vsel %vm2094_vm1, %v15153_v46, 0 }
 0x839   : > { %5004 = vrot.lane.b32.xlu0 %v18799_v47, %s12577_s26 }
 0x83a   : > { %v3311_v24 = vmul.f32 1.442695, %v3281_v5 }
 0x83c   : > { %11749 = vpow2.f32 %v3311_v24 }
 0x83d   : > { %v15499_v50 = vpop.eup %11745 }
 0x83e   : > { %v15504_v62 = vpop.eup %11747 }
 0x83f   : > { %10537 = vmatpush3.bf16.xpose.msra.mxu1 %v5060_v14 }
 0x840   : > { %10848 = vmatprep.subr.msk.bf16.mxu1 %vm2094_vm1, %v15133_v22  ;;  %v3313_v22 = vmul.f32 1.442695, %v3282_v0 }
 0x842   : > { %11751 = vpow2.f32 %v3313_v22 }
 0x847   : > { %10539 = vmatpush3.bf16.xpose.msra.mxu1 %v5063_v1 }
 0x848   : > { %10849 = vmatprep.subr.msk.bf16.mxu1 %vm2094_vm1, %v15155_v27  ;;  %v15509_v27 = vpop.eup %11749 }
 0x84c   : > { %v15516_v59 = vpop.eup %11751 }
 0x84f   : > { %10541 = vmatpush3.bf16.xpose.msra.mxu1 %v5066_v34 }
 0x850   : > { %10850 = vmatprep.subr.msk.bf16.mxu1 %vm2094_vm1, %v15153_v46 }
 0x854   : > { %3341 = vadd.xlane.f32.xlu1 %v15499_v50 }
 0x857   : > { %10543 = vmatpush3.bf16.xpose.msra.mxu1 %v5069_v55 }
 0x858   : > { %10851 = vmatprep.subr.msk.bf16.mxu1 %vm2094_vm1, %v18800_v21  ;;  %3339 = vadd.xlane.f32.xlu0 %v15504_v62 }
 0x85b   : > { %v4341_v60 = vpop.xlane.xlu0 %4340 }
 0x85c   : > { %3343 = vadd.xlane.f32.xlu0 %v15509_v27 }
 0x85f   : > { %10545 = vmatpush3.bf16.xpose.msra.mxu1 %v5072_v29  ;;  %v4339_v46 = vpop.xlane.xlu1 %4338 }
 0x860   : > { %10852 = vmatprep.subr.msk.bf16.mxu1 %vm2094_vm1, %v18801_v56  ;;  %3345 = vadd.xlane.f32.xlu0 %v15516_v59  ;;  %11753 = vrcp.f32 %v4339_v46  ;;  %v18806_v56 = vld [vmem:[#allocation83_spill] sm:$0xff] }
 0x863   : > { %v4335_v23 = vpop.xlane.xlu1 %4334 }
 0x864   : > { %11755 = vrcp.f32 %v4335_v23 }
 0x865   : > { %5339 = vrot.lane.b32.xlu1 %v18802_v20, %s12577_s26  ;;  %11757 = vrcp.f32 %v4341_v60 }
 0x867   : > { %10547 = vmatpush3.bf16.xpose.msra.mxu1 %v5075_v4  ;;  %v4337_v41 = vpop.xlane.xlu1 %4336  ;;  %v4347_v36 = vpop.xlane.xlu0 %4346 }
 0x868   : > { %11759 = vrcp.f32 %v4337_v41  ;;  %10853 = vmatprep.subr.msk.bf16.mxu1 %vm2094_vm1, %v18803_v9 }
 0x86a   : > { %v11754_v26 = vpop.eup %11753 }
 0x86b   : > { %v4343_v15 = vpop.xlane.xlu1 %4342  ;;  %v4345_v58 = vpop.xlane.xlu0 %4344  ;;  %v4380_v47 = vmul.f32 %v11754_v26, %v15376_v51 }
 0x86c   : > { %11761 = vrcp.f32 %v4343_v15 }
 0x86d   : > { %11763 = vrcp.f32 %v4345_v58 }
 0x86e   : > { %11765 = vrcp.f32 %v4347_v36  ;;  %v11756_v18 = vpop.eup %11755 }
 0x86f   : > { %10549 = vmatpush3.bf16.xpose.msra.mxu1 %v5078_v25  ;;  %v4349_v42 = vpop.xlane.xlu1 %4348  ;;  %v4355_v32 = vpop.xlane.xlu0 %4354  ;;  %v4378_v35 = vmul.f32 %v11756_v18, %v15381_v3  ;;  %v18807_v25 = vld [vmem:[#allocation110_spill] sm:$0xff] }
 0x870   : > { %11767 = vrcp.f32 %v4349_v42  ;;  %v11758_v43 = vpop.eup %11757 }
 0x871   : > { %v4381_v37 = vmul.f32 %v11758_v43, %v15371_v17  ;;  %v18805_v17 = vld [vmem:[#allocation81_spill] sm:$0xff] }
 0x872   : > { %v11760_v10 = vpop.eup %11759  ;;  %v11101_v43 = vld [vmem:[%s18191_s5 + $0x40] ss:$8 sps:$4 sm:$0xff]  }
 0x873   : > { %v4351_v14 = vpop.xlane.xlu0 %4350  ;;  %v4379_v30 = vmul.f32 %v11760_v10, %v15385_v31  ;;  %v4393_v24 = vpack.c.bf16 %v4381_v37, %v4380_v47  ;;  %v3410_v60 = vpop.permute.xlu1 %3409  ;;  %v11103_v10 = vld [vmem:[%s18191_s5 + $0x44] ss:$8 sps:$4 sm:$0xff]   ;;  %v11110_v47 = vld [vmem:[%s18191_s5 + $0x70] ss:$8 sps:$4 sm:$0xff]  }
 0x875   : > { %v4392_v1 = vpack.c.bf16 %v4379_v30, %v4378_v35  ;;  %v11115_v35 = vld [vmem:[%s18191_s5 + $0x84] ss:$8 sps:$4 sm:$0xff]  }
 0x876   : > { %v11762_v5 = vpop.eup %11761  ;;  %5337 = vrot.lane.b32.xlu0 %v18804_v2, %s12577_s26 }
 0x877   : > { %v11764_v0 = vpop.eup %11763  ;;  %10522 = vmatprep.mubr.bf16.mxu1 %v4392_v1  ;;  %v4357_v34 = vpop.xlane.xlu0 %4356  ;;  %v4382_v22 = vmul.f32 %v11762_v5, %v15394_v7 }
 0x878   : > { %v11766_v55 = vpop.eup %11765  ;;  %10523 = vmatmul.mubr.bf16.gmra.mrb[68].mxu1 %v4393_v24  ;;  %v4383_v51 = vmul.f32 %v11764_v0, %v15392_v54  ;;  %11769 = vrcp.f32 %v4357_v34 }
 0x879   : > { %11771 = vrcp.f32 %v4351_v14  ;;  %v4384_v29 = vmul.f32 %v11766_v55, %v15387_v48  ;;  %v11112_v14 = vld [vmem:[%s18191_s5 + $0x74] ss:$8 sps:$4 sm:$0xff]  }
 0x87a   : > { %v11768_v3 = vpop.eup %11767  ;;  %5341 = vrot.lane.b32.xlu0 %v18805_v17, %s12577_s26  ;;  %v4394_v31 = vpack.c.bf16 %v4383_v51, %v4382_v22  ;;  %11773 = vrcp.f32 %v4355_v32 }
 0x87b   : > { %v4353_v21 = vpop.xlane.xlu0 %4352  ;;  %v4385_v46 = vmul.f32 %v11768_v3, %v15398_v13 }
 0x87c   : > { %10526 = vmatprep.mubr.bf16.mxu1 %v4394_v31  ;;  %11775 = vrcp.f32 %v4353_v21  ;;  %v18811_v21 = vmov 0  }
 0x87d   : > { %v4395_v7 = vpack.c.bf16 %v4385_v46, %v4384_v29 }
 0x87e   : > { %5343 = vrot.lane.b32.xlu0 %v18806_v56, %s12577_s26 }
 0x87f   : > { %v3408_v54 = vpop.permute.xlu0 %3407 }
 0x880   : > { %10450 = vmatprep.subr.bf16.mxu0 %v3408_v54  ;;  %10527 = vmatmul.mubr.bf16.gmra.mrb[72].mxu1 %v4395_v7 }
 0x881   : > { %10451 = vmatpush3.bf16.msra.mxu0 %v3408_v54 }
 0x882   : > { %10452 = vmatprep.subr.bf16.mxu0 %v3410_v60  ;;  %v11770_v23 = vpop.eup %11769 }
 0x883   : > { %v11772_v20 = vpop.eup %11771  ;;  %v4389_v48 = vmul.f32 %v11770_v23, %v15407_v12  ;;  %v18809_v12 = vld [vmem:[#allocation111_spill] sm:$0xff] }
 0x884   : > { %v11774_v4 = vpop.eup %11773  ;;  %v4386_v13 = vmul.f32 %v11772_v20, %v15404_v40  ;;  %v18808_v40 = vld [vmem:[#allocation112_spill] sm:$0xff] }
 0x885   : > { %10453 = vmatpush3.bf16.msra.mxu0 %v3410_v60  ;;  %v4388_v9 = vmul.f32 %v11774_v4, %v15400_v49  ;;  %v18810_v49 = vld [vmem:[#allocation114_spill] sm:$0xff] }
 0x886   : > { %v11776_v41 = vpop.eup %11775  ;;  %3588 = vmatprep.subr.bf16.mxu0 %v11103_v10 }
 0x887   : > { %v4387_v36 = vmul.f32 %v11776_v41, %v15410_v63  ;;  %v4397_v58 = vpack.c.bf16 %v4389_v48, %v4388_v9 }
 0x888   : > { %10455 = vmatmul.mubr.bf16.vlgmr.msra.gmra.mrb[128].mxu0 %v3380_v39 }
 0x889   : > { %10458 = vmatprep.mubr.bf16.mxu0 %v3381_v8  ;;  %v4396_v15 = vpack.c.bf16 %v4387_v36, %v4386_v13  ;;  %3589 = vmatpush1.bf16.msra.mxu0 %v11101_v43 }
 0x88b   : > { %10530 = vmatprep.mubr.bf16.mxu1 %v4396_v15 }
 0x88c   : > { %10531 = vmatmul.mubr.bf16.gmra.mrb[76].mxu1 %v4397_v58 }
 0x88d   : > { %10550 = vmatprep.mubr.msk.bf16.mxu1 %vm2094_vm1, %v18807_v25 }
 0x890   : > { %10459 = vmatmul.mubr.bf16.gmra.mrb[132].mxu0 %v3382_v11 }
 0x894   : > { %10551 = vmatmul.mubr.msk.bf16.vlgmr.msra.gmra.mrb[80].mxu1 %vm2094_vm1, %v18808_v40 }
 0x895   : > { %10554 = vmatprep.mubr.msk.bf16.mxu1 %vm2094_vm1, %v18809_v12 }
 0x89c   : > { %10555 = vmatmul.mubr.msk.bf16.gmra.mrb[84].mxu1 %vm2094_vm1, %v18810_v49  ;;  %v11113_v49 = vld [vmem:[%s18191_s5 + $0x80] ss:$8 sps:$4 sm:$0xff]  }
 0x89d   : > { %10558 = vmatprep.mubr.msk.bf16.mxu1 %vm2094_vm1, %v15364_v61 }
 0x8a4   : > { %v3334_v63 = vpop.xlane.xlu1 %3333  ;;  %10559 = vmatmul.mubr.msk.bf16.gmra.mrb[88].mxu1 %vm2094_vm1, %v15511_v38 }
 0x8a8   : > { %v3336_v52 = vpop.xlane.xlu1 %3335 }
 0x8ac   : > { %v3338_v16 = vpop.xlane.xlu1 %3337 }
 0x8ad   : > { %11777 = vrcp.f32 %v3338_v16  ;;  %v11118_v16 = vld [vmem:[%s18191_s5 + $0x94] ss:$8 sps:$4 sm:$0xff]  }
 0x8ae   : > { %11779 = vrcp.f32 %v3334_v63 }
 0x8af   : > { %11781 = vrcp.f32 %v3336_v52 }
 0x8b0   : > { %v3332_v39 = vpop.xlane.xlu0 %3331  ;;  %v5007_v6 = vpop.permute.xlu1 %5006 }
 0x8b1   : > { %11783 = vrcp.f32 %v3332_v39 }
 0x8b4   : > { %v5005_v44 = vpop.permute.xlu0 %5004 }
 0x8b5   : > { %10562 = vmatprep.mubr.msk.bf16.mxu1 %vm2094_vm1, %v5005_v44 }
 0x8b6   : > { %10563 = vmatmul.mubr.msk.bf16.gmra.mrb[92].mxu1 %vm2094_vm1, %v5007_v6 }
 0x8b7   : > { %v11778_v8 = vpop.eup %11777 }
 0x8b8   : > { %v11780_v19 = vpop.eup %11779  ;;  %v3374_v11 = vmul.f32 %v11778_v8, %v15441_v33  ;;  %v11107_v33 = vld [vmem:[%s18191_s5 + $0x60] ss:$8 sps:$4 sm:$0xff]  }
 0x8b9   : > { %v11782_v61 = vpop.eup %11781  ;;  %v3372_v26 = vmul.f32 %v11780_v19, %v15425_v53  ;;  %v11104_v53 = vld [vmem:[%s18191_s5 + $0x50] ss:$8 sps:$4 sm:$0xff]  }
 0x8ba   : > { %v3373_v42 = vmul.f32 %v11782_v61, %v15430_v45  ;;  %v11106_v45 = vld [vmem:[%s18191_s5 + $0x54] ss:$8 sps:$4 sm:$0xff]   ;;  %v11116_v19 = vld [vmem:[%s18191_s5 + $0x90] ss:$8 sps:$4 sm:$0xff]  }
 0x8bb   : > { %v11784_v28 = vpop.eup %11783  ;;  %3590 = vmatprep.subr.bf16.mxu0 %v11106_v45 }
 0x8bc   : > { %v3371_v38 = vmul.f32 %v11784_v28, %v15444_v57  ;;  %v3384_v18 = vpack.c.bf16 %v3374_v11, %v3373_v42  ;;  %3591 = vmatpush1.bf16.msra.mxu0 %v11104_v53  ;;  %v11109_v57 = vld [vmem:[%s18191_s5 + $0x64] ss:$8 sps:$4 sm:$0xff]   ;;  %v11124_v53 = vld [vmem:[%s18191_s5 + $0xb4] ss:$8 sps:$4 sm:$0xff]  }
 0x8bd   : > { %3592 = vmatprep.subr.bf16.mxu0 %v11109_v57  ;;  %v11121_v11 = vld [vmem:[%s18191_s5 + $0xa4] ss:$8 sps:$4 sm:$0xff]  }
 0x8be   : > { %v3383_v32 = vpack.c.bf16 %v3372_v26, %v3371_v38 }
 0x8c0   : > { %10462 = vmatprep.mubr.bf16.mxu0 %v3383_v32  ;;  %3593 = vmatpush1.bf16.msra.mxu0 %v11107_v33 }
 0x8c1   : > { %10463 = vmatmul.mubr.bf16.gmra.mrb[136].mxu0 %v3384_v18  ;;  %3594 = vmatprep.subr.bf16.mxu0 %v11112_v14  ;;  %v11119_v18 = vld [vmem:[%s18191_s5 + $0xa0] ss:$8 sps:$4 sm:$0xff]  }
 0x8c4   : > { %3595 = vmatpush1.bf16.msra.mxu0 %v11110_v47  ;;  %v11122_v47 = vld [vmem:[%s18191_s5 + $0xb0] ss:$8 sps:$4 sm:$0xff]  }
 0x8c5   : > { %4567 = vmatprep.subr.bf16.mxu0 %v11115_v35 }
 0x8e1   : > { %v3342_v30 = vpop.xlane.xlu1 %3341 }
 0x8e2   : > { %11785 = vrcp.f32 %v3342_v30 }
 0x8e5   : > { %v3340_v37 = vpop.xlane.xlu0 %3339 }
 0x8e6   : > { %11787 = vrcp.f32 %v3340_v37 }
 0x8e9   : > { %v3344_v1 = vpop.xlane.xlu0 %3343 }
 0x8ea   : > { %11789 = vrcp.f32 %v3344_v1 }
 0x8ec   : > { %v11786_v2 = vpop.eup %11785 }
 0x8ed   : > { %v3346_v5 = vpop.xlane.xlu0 %3345  ;;  %v3376_v34 = vmul.f32 %v11786_v2, %v15499_v50 }
 0x8ee   : > { %11791 = vrcp.f32 %v3346_v5 }
 0x8f0   : > { %v11788_v24 = vpop.eup %11787 }
 0x8f1   : > { %v3375_v0 = vmul.f32 %v11788_v24, %v15504_v62  ;;  %v5338_v14 = vpop.permute.xlu0 %5337 }
 0x8f3   : > { %v3385_v22 = vpack.c.bf16 %v3376_v34, %v3375_v0 }
 0x8f4   : > { %v11790_v55 = vpop.eup %11789 }
 0x8f5   : > { %10466 = vmatprep.mubr.bf16.mxu0 %v3385_v22  ;;  %v3377_v3 = vmul.f32 %v11790_v55, %v15509_v27 }
 0x8f8   : > { %v11792_v51 = vpop.eup %11791 }
 0x8f9   : > { %v3378_v17 = vmul.f32 %v11792_v51, %v15516_v59 }
 0x8fb   : > { %v3386_v31 = vpack.c.bf16 %v3378_v17, %v3377_v3  ;;  %v18812_v3 = vld [vmem:[#allocation87_spill] sm:$0xff] }
 0x8fd   : > { %10467 = vmatmul.mubr.bf16.gmra.mrb[140].mxu0 %v3386_v31 }
 0x8fe   : > { %3620 = vmatprep.mubr.bf16.mxu0 %v18811_v21 }
 0x909   : > { %v15606_v29 = vpop.f32.mrb[64].mxu1 }
 0x90a   : > { %v15608_v46 = vpop.f32.mrb[65].mxu1 }
 0x90b   : > { %v15610_v7 = vpop.f32.mrb[66].mxu1 }
 0x90c   : > { %v4496_v50 = vpack.c.bf16 %v15610_v7, %v15606_v29  ;;  %v15614_v62 = vpop.f32.mrb[67].mxu1 }
 0x90d   : > { %v4495_v27 = vpack.c.bf16 %v15614_v62, %v15608_v46 }
 0x94b   : > { %v15618_v56 = vpop.f32.mrb[68].mxu1 }
 0x94c   : > { %v15620_v59 = vpop.f32.mrb[69].mxu1 }
 0x94d   : > { %v15622_v54 = vpop.f32.mrb[70].mxu1 }
 0x94e   : > { %v4498_v60 = vpack.c.bf16 %v15622_v54, %v15618_v56  ;;  %v15626_v23 = vpop.f32.mrb[71].mxu1 }
 0x94f   : > { %v4497_v20 = vpack.c.bf16 %v15626_v23, %v15620_v59 }
 0x953   : > { %v15630_v4 = vpop.f32.mrb[72].mxu1 }
 0x954   : > { %v15632_v41 = vpop.f32.mrb[73].mxu1 }
 0x955   : > { %v15634_v48 = vpop.f32.mrb[74].mxu1 }
 0x956   : > { %v4500_v13 = vpack.c.bf16 %v15634_v48, %v15630_v4  ;;  %v15638_v36 = vpop.f32.mrb[75].mxu1 }
 0x957   : > { %v4499_v9 = vpack.c.bf16 %v15638_v36, %v15632_v41 }
 0x95b   : > { %v10456_v15 = vpop.f32.mrb[128].mxu0 }
 0x95c   : > { %v3453_v58 = vpop.f32.mrb[129].mxu0 }
 0x95d   : > { %v10457_v25 = vpop.f32.mrb[130].mxu0 }
 0x95e   : > { %v3517_v40 = vpack.c.bf16 %v10457_v25, %v10456_v15  ;;  %v3456_v12 = vpop.f32.mrb[131].mxu0 }
 0x95f   : > { %v3516_v63 = vpack.c.bf16 %v3456_v12, %v3453_v58  ;;  %v15645_v52 = vpop.f32.mrb[76].mxu1  ;;  %v18813_v12 = vld [vmem:[#allocation85_spill] sm:$0xff] }
 0x960   : > { %v15650_v39 = vpop.f32.mrb[77].mxu1 }
 0x961   : > { %9863 = vmatmul.mubr.msk.bf16.vlgmr.msra.gmra.mrb[96].mxu0 %vm2094_vm1, %v3516_v63  ;;  %v15653_v44 = vpop.f32.mrb[78].mxu1 }
 0x962   : > { %v4502_v6 = vpack.c.bf16 %v15653_v44, %v15645_v52  ;;  %4568 = vmatpush1.bf16.msra.mxu0 %v11113_v49  ;;  %v15657_v8 = vpop.f32.mrb[79].mxu1  ;;  %3630 = vmatprep.mubr.bf16.mxu0 %v18811_v21 }
 0x963   : > { %v4501_v61 = vpack.c.bf16 %v15657_v8, %v15650_v39  ;;  %v10460_v28 = vpop.f32.mrb[132].mxu0  ;;  %4569 = vmatprep.subr.bf16.mxu0 %v11118_v16  ;;  %v18814_v39 = vld [vmem:[#allocation95_spill] sm:$0xff]  ;;  %v18815_v8 = vld [vmem:[#allocation90_spill] sm:$0xff] }
 0x964   : > { %v3469_v38 = vpop.f32.mrb[133].mxu0 }
 0x965   : > { %v10461_v26 = vpop.f32.mrb[134].mxu0 }
 0x966   : > { %v3519_v42 = vpack.c.bf16 %v10461_v26, %v10460_v28  ;;  %4570 = vmatpush1.bf16.msra.mxu0 %v11116_v19  ;;  %v3472_v32 = vpop.f32.mrb[135].mxu0  ;;  %v5342_v26 = vpop.permute.xlu0 %5341 }
 0x967   : > { %v3518_v43 = vpack.c.bf16 %v3472_v32, %v3469_v38  ;;  %v15671_v10 = vpop.f32.mrb[80].mxu1  ;;  %4571 = vmatprep.subr.bf16.mxu0 %v11121_v11  ;;  %v5340_v38 = vpop.permute.xlu1 %5339 }
 0x968   : > { %5181 = vmax.xlane.f32.xlu0 %v15671_v10  ;;  %v15677_v45 = vpop.f32.mrb[81].mxu1 }
 0x969   : > { %9864 = vmatmul.mubr.msk.bf16.gmra.mrb[100].mxu0 %vm2094_vm1, %v3517_v40  ;;  %v15680_v33 = vpop.f32.mrb[82].mxu1 }
 0x96a   : > { %4572 = vmatpush1.bf16.msra.mxu0 %v11119_v18  ;;  %5183 = vmax.xlane.f32.xlu1 %v15680_v33  ;;  %v15683_v57 = vpop.f32.mrb[83].mxu1 }
 0x96b   : > { %4573 = vmatprep.subr.bf16.mxu0 %v11124_v53  ;;  %3640 = vmatprep.mubr.bf16.mxu0 %v18811_v21 }
 0x96c   : > { %5177 = vmax.xlane.f32.xlu0 %v15677_v45 }
 0x96e   : > { %4574 = vmatpush1.bf16.msra.mxu0 %v11122_v47 }
 0x96f   : > { %10566 = vmatprep.subr.bf16.mxu0 %v5338_v14  ;;  %v15690_v35 = vpop.f32.mrb[84].mxu1 }
 0x970   : > { %5179 = vmax.xlane.f32.xlu0 %v15683_v57  ;;  %v15693_v30 = vpop.f32.mrb[85].mxu1 }
 0x971   : > { %9865 = vmatmul.mubr.msk.bf16.gmra.mrb[104].mxu0 %vm2094_vm1, %v3518_v43  ;;  %v15696_v37 = vpop.f32.mrb[86].mxu1 }
 0x972   : > { %5191 = vmax.xlane.f32.xlu1 %v15696_v37  ;;  %v15699_v1 = vpop.f32.mrb[87].mxu1  ;;  %3650 = vmatprep.mubr.bf16.mxu0 %v18811_v21 }
 0x974   : > { %5189 = vmax.xlane.f32.xlu0 %v15690_v35 }
 0x976   : > { %5187 = vmax.xlane.f32.xlu1 %v15699_v1 }
 0x977   : > { %v15704_v5 = vpop.f32.mrb[88].mxu1 }
 0x978   : > { %5185 = vmax.xlane.f32.xlu0 %v15693_v30  ;;  %v15707_v2 = vpop.f32.mrb[89].mxu1 }
 0x979   : > { %9866 = vmatmul.mubr.msk.bf16.gmra.mrb[108].mxu0 %vm2094_vm1, %v3519_v42  ;;  %v15710_v24 = vpop.f32.mrb[90].mxu1  ;;  %v5344_v42 = vpop.permute.xlu0 %5343 }
 0x97a   : > { %5199 = vmax.xlane.f32.xlu1 %v15710_v24  ;;  %v15713_v0 = vpop.f32.mrb[91].mxu1  ;;  %3660 = vmatprep.mubr.bf16.mxu0 %v18811_v21 }
 0x97c   : > { %5197 = vmax.xlane.f32.xlu0 %v15704_v5 }
 0x97e   : > { %5195 = vmax.xlane.f32.xlu1 %v15713_v0 }
 0x980   : > { %5193 = vmax.xlane.f32.xlu0 %v15707_v2 }
 0x989   : > { %v15719_v34 = vpop.f32.mrb[92].mxu1 }
 0x98a   : > { %5205 = vmax.xlane.f32.xlu0 %v15719_v34  ;;  %v15722_v22 = vpop.f32.mrb[93].mxu1 }
 0x98b   : > { %v15724_v55 = vpop.f32.mrb[94].mxu1 }
 0x98c   : > { %v15726_v51 = vpop.f32.mrb[95].mxu1 }
 0x98e   : > { %5201 = vmax.xlane.f32.xlu0 %v15722_v22 }
 0x98f   : > { %5347 = vrot.lane.b32.xlu1 %v18812_v3, %s12577_s26 }
 0x994   : > { %v10464_v17 = vpop.f32.mrb[136].mxu0 }
 0x995   : > { %v3485_v31 = vpop.f32.mrb[137].mxu0 }
 0x996   : > { %v10465_v15 = vpop.f32.mrb[138].mxu0 }
 0x997   : > { %v3521_v58 = vpack.c.bf16 %v10465_v15, %v10464_v17  ;;  %v3488_v25 = vpop.f32.mrb[139].mxu0 }
 0x998   : > { %v3520_v40 = vpack.c.bf16 %v3488_v25, %v3485_v31 }
 0x99a   : > { %9867 = vmatmul.mubr.msk.bf16.gmra.mrb[112].mxu0 %vm2094_vm1, %v3520_v40 }
 0x99b   : > { %3670 = vmatprep.mubr.bf16.mxu0 %v18811_v21 }
 0x9a2   : > { %9868 = vmatmul.mubr.msk.bf16.gmra.mrb[116].mxu0 %vm2094_vm1, %v3521_v58 }
 0x9a3   : > { %3680 = vmatprep.mubr.bf16.mxu0 %v18811_v21 }
 0x9a4   : > { %5345 = vrot.lane.b32.xlu0 %v18813_v12, %s12577_s26 }
 0x9b3   : > { %5207 = vmax.xlane.f32.xlu1 %v15724_v55 }
 0x9b7   : > { %5203 = vmax.xlane.f32.xlu1 %v15726_v51 }
 0x9d0   : > { %v10468_v49 = vpop.f32.mrb[140].mxu0 }
 0x9d1   : > { %v3501_v63 = vpop.f32.mrb[141].mxu0 }
 0x9d2   : > { %v10469_v16 = vpop.f32.mrb[142].mxu0 }
 0x9d3   : > { %v3523_v19 = vpack.c.bf16 %v10469_v16, %v10468_v49  ;;  %v3504_v28 = vpop.f32.mrb[143].mxu0 }
 0x9d4   : > { %v3522_v11 = vpack.c.bf16 %v3504_v28, %v3501_v63 }
 0x9d6   : > { %9869 = vmatmul.mubr.msk.bf16.gmra.mrb[120].mxu0 %vm2094_vm1, %v3522_v11 }
 0x9d7   : > { %3690 = vmatprep.mubr.bf16.mxu0 %v18811_v21 }
 0x9de   : > { %9870 = vmatmul.mubr.msk.bf16.gmra.mrb[124].mxu0 %vm2094_vm1, %v3523_v19 }
 0x9df   : > { %4599 = vmatprep.mubr.bf16.mxu0 %v18811_v21 }
 0x9e6   : > { %9887 = vmatmul.mubr.msk.bf16.vlgmr.msra.gmra.mrb[96].mxu0 %vm2094_vm1, %v4495_v27 }
 0x9e7   : > { %10567 = vmatpush3.bf16.msra.mxu0 %v5338_v14  ;;  %4609 = vmatprep.mubr.bf16.mxu0 %v18811_v21 }
 0x9e8   : > { %10568 = vmatprep.subr.bf16.mxu0 %v5340_v38 }
 0x9eb   : > { %10569 = vmatpush3.bf16.msra.mxu0 %v5340_v38 }
 0x9ec   : > { %10570 = vmatprep.subr.bf16.mxu0 %v5342_v26 }
 0x9ee   : > { %9888 = vmatmul.mubr.msk.bf16.gmra.mrb[100].mxu0 %vm2094_vm1, %v4496_v50 }
 0x9ef   : > { %10571 = vmatpush3.bf16.msra.mxu0 %v5342_v26  ;;  %4619 = vmatprep.mubr.bf16.mxu0 %v18811_v21 }
 0x9f0   : > { %10572 = vmatprep.subr.bf16.mxu0 %v5344_v42 }
 0x9f3   : > { %10573 = vmatpush3.bf16.msra.mxu0 %v5344_v42 }
 0x9f5   : > { %v5182_v46 = vpop.xlane.xlu0 %5181 }
 0x9f6   : > { %v5211_v62 = vsub.f32 %v15671_v10, %v5182_v46  ;;  %9889 = vmatmul.mubr.msk.bf16.gmra.mrb[104].mxu0 %vm2094_vm1, %v4497_v20 }
 0x9f7   : > { %v5184_v27 = vpop.xlane.xlu1 %5183  ;;  %4629 = vmatprep.mubr.bf16.mxu0 %v18811_v21 }
 0x9f8   : > { %v5229_v29 = vmul.f32 1.442695, %v5211_v62  ;;  %v5212_v50 = vsub.f32 %v15680_v33, %v5184_v27 }
 0x9f9   : > { %v5178_v7 = vpop.xlane.xlu0 %5177 }
 0x9fa   : > { %11793 = vpow2.f32 %v5229_v29  ;;  %v5209_v32 = vsub.f32 %v15677_v45, %v5178_v7  ;;  %v5231_v53 = vmul.f32 1.442695, %v5212_v50 }
 0x9fc   : > { %v5225_v18 = vmul.f32 1.442695, %v5209_v32 }
 0x9fd   : > { %v5180_v43 = vpop.xlane.xlu0 %5179 }
 0x9fe   : > { %11795 = vpow2.f32 %v5225_v18  ;;  %v5210_v10 = vsub.f32 %v15683_v57, %v5180_v43  ;;  %9890 = vmatmul.mubr.msk.bf16.gmra.mrb[108].mxu0 %vm2094_vm1, %v4498_v60 }
 0x9ff   : > { %v5192_v59 = vpop.xlane.xlu1 %5191  ;;  %4639 = vmatprep.mubr.bf16.mxu0 %v18811_v21  ;;  %11797 = vpow2.f32 %v5231_v53 }
 0xa00   : > { %v5227_v23 = vmul.f32 1.442695, %v5210_v10  ;;  %v5216_v20 = vsub.f32 %v15696_v37, %v5192_v59 }
 0xa01   : > { %v5190_v33 = vpop.xlane.xlu0 %5189 }
 0xa02   : > { %v5215_v45 = vsub.f32 %v15690_v35, %v5190_v33  ;;  %11799 = vpow2.f32 %v5227_v23  ;;  %v5239_v57 = vmul.f32 1.442695, %v5216_v20 }
 0xa03   : > { %v5188_v47 = vpop.xlane.xlu1 %5187 }
 0xa04   : > { %v15769_v14 = vpop.eup %11793  ;;  %v5237_v3 = vmul.f32 1.442695, %v5215_v45  ;;  %v5214_v54 = vsub.f32 %v15699_v1, %v5188_v47 }
 0xa05   : > { %5261 = vadd.xlane.f32.xlu1 %v15769_v14  ;;  %v5186_v56 = vpop.xlane.xlu0 %5185 }
 0xa06   : > { %11801 = vpow2.f32 %v5237_v3  ;;  %v5213_v60 = vsub.f32 %v15693_v30, %v5186_v56  ;;  %9891 = vmatmul.mubr.msk.bf16.gmra.mrb[112].mxu0 %vm2094_vm1, %v4499_v9  ;;  %v5235_v17 = vmul.f32 1.442695, %v5214_v54 }
 0xa07   : > { %4649 = vmatprep.mubr.bf16.mxu0 %v18811_v21  ;;  %11803 = vpow2.f32 %v5239_v57  ;;  %v5200_v58 = vpop.xlane.xlu1 %5199 }
 0xa08   : > { %v15779_v35 = vpop.eup %11795  ;;  %v5233_v37 = vmul.f32 1.442695, %v5213_v60  ;;  %v5220_v49 = vsub.f32 %v15710_v24, %v5200_v58 }
 0xa09   : > { %5257 = vadd.xlane.f32.xlu1 %v15779_v35  ;;  %v15782_v31 = vpop.eup %11797  ;;  %v5198_v1 = vpop.xlane.xlu0 %5197 }
 0xa0a   : > { %11805 = vpow2.f32 %v5233_v37  ;;  %v5219_v63 = vsub.f32 %v15704_v5, %v5198_v1 }
 0xa0b   : > { %11807 = vpow2.f32 %v5235_v17  ;;  %v11127_v17 = vld [vmem:[%s18191_s5 + $0xc4] ss:$8 sps:$4 sm:$0xff]  }
 0xa0c   : > { %v15789_v41 = vpop.eup %11799  ;;  %v5245_v28 = vmul.f32 1.442695, %v5219_v63 }
 0xa0d   : > { %5263 = vadd.xlane.f32.xlu1 %v15782_v31  ;;  %v5194_v30 = vpop.xlane.xlu0 %5193 }
 0xa0e   : > { %9892 = vmatmul.mubr.msk.bf16.gmra.mrb[116].mxu0 %vm2094_vm1, %v4500_v13  ;;  %v5196_v13 = vpop.xlane.xlu1 %5195 }
 0xa0f   : > { %4659 = vmatprep.mubr.bf16.mxu0 %v18811_v21  ;;  %v5218_v52 = vsub.f32 %v15713_v0, %v5196_v13 }
 0xa10   : > { %v15792_v36 = vpop.eup %11801 }
 0xa11   : > { %5259 = vadd.xlane.f32.xlu1 %v15789_v41  ;;  %5269 = vadd.xlane.f32.xlu0 %v15792_v36  ;;  %v15796_v9 = vpop.eup %11803  ;;  %v5243_v16 = vmul.f32 1.442695, %v5218_v52 }
 0xa12   : > { %v5348_v12 = vpop.permute.xlu1 %5347 }
 0xa14   : > { %v15798_v15 = vpop.eup %11805 }
 0xa15   : > { %5271 = vadd.xlane.f32.xlu0 %v15796_v9  ;;  %5265 = vadd.xlane.f32.xlu1 %v15798_v15  ;;  %v15807_v48 = vpop.eup %11807 }
 0xa16   : > { %9893 = vmatmul.mubr.msk.bf16.gmra.mrb[120].mxu0 %vm2094_vm1, %v4501_v61  ;;  %v5217_v61 = vsub.f32 %v15707_v2, %v5194_v30 }
 0xa17   : > { %v5206_v4 = vpop.xlane.xlu0 %5205  ;;  %4669 = vmatprep.mubr.bf16.mxu0 %v18811_v21 }
 0xa18   : > { %v5241_v44 = vmul.f32 1.442695, %v5217_v61  ;;  %v5223_v24 = vsub.f32 %v15719_v34, %v5206_v4 }
 0xa19   : > { %5267 = vadd.xlane.f32.xlu0 %v15807_v48 }
 0xa1a   : > { %11809 = vpow2.f32 %v5241_v44  ;;  %v5253_v62 = vmul.f32 1.442695, %v5223_v24 }
 0xa1b   : > { %v5202_v25 = vpop.xlane.xlu0 %5201 }
 0xa1c   : > { %v5221_v11 = vsub.f32 %v15722_v22, %v5202_v25 }
 0xa1e   : > { %9894 = vmatmul.mubr.msk.bf16.gmra.mrb[124].mxu0 %vm2094_vm1, %v4502_v6  ;;  %v5247_v6 = vmul.f32 1.442695, %v5220_v49  ;;  %v5249_v0 = vmul.f32 1.442695, %v5221_v11 }
 0xa1f   : > { %v5346_v40 = vpop.permute.xlu0 %5345 }
 0xa20   : > { %10574 = vmatprep.subr.bf16.mxu0 %v5346_v40  ;;  %11811 = vpow2.f32 %v5247_v6 }
 0xa21   : > { %10575 = vmatpush3.bf16.msra.mxu0 %v5346_v40  ;;  %11813 = vpow2.f32 %v5243_v16 }
 0xa22   : > { %10576 = vmatprep.subr.bf16.mxu0 %v5348_v12  ;;  %11815 = vpow2.f32 %v5245_v28 }
 0xa24   : > { %v15826_v46 = vpop.eup %11809 }
 0xa25   : > { %10577 = vmatpush3.bf16.msra.mxu0 %v5348_v12  ;;  %v11128_v12 = vld [vmem:[%s18191_s5 + $0xd0] ss:$8 sps:$4 sm:$0xff]  }
 0xa26   : > { %5351 = vrot.lane.b32.xlu1 %v18814_v39, %s12577_s26 }
 0xa2a   : > { %v15829_v27 = vpop.eup %11811 }
 0xa2b   : > { %v15831_v22 = vpop.eup %11813 }
 0xa2c   : > { %v15835_v34 = vpop.eup %11815 }
 0xa2f   : > { %5349 = vrot.lane.b32.xlu0 %v18815_v8, %s12577_s26  ;;  %v11133_v8 = vld [vmem:[%s18191_s5 + $0xe4] ss:$8 sps:$4 sm:$0xff]   ;;  %s18043_s26 = scalar_lea.vmem [#allocation10], %s9722_s18  ;;  %s10213_s18 = sshll.u32 %s12668_s11, 12 }
 0xa30   : > { %s9610_s17 = sshll.u32 %s18043_s26, 4  ;;  %s9597_s11 = scalar_lea.sflag [#allocation4], %s12837_s29  ;;  %s18138_s17 = int_to_ptr.vmem [resolvable:$true] %s9610_s17 }
 0xa31   : > { %s12487_s28 = scalar_lea.vmem %s18138_s17, 4096  ;;  %p12494_p12 = scmp.lt.s32.totalorder %s18138_s17, %s12492_s25 }
 0xa32   : > { %p12488_p10 = scmp.ne.s32.totalorder %s18138_s17, %s12487_s28  ;;  %p12495_p2 = scmp.lt.s32.totalorder %s12493_s16, %s12487_s28 }
 0xa34   : > { %p12489_p3 = pnand %p12488_p10, %p12789_p5  ;;  %p12496_p1 = por %p12495_p2, %p12494_p12 }
 0xa36   : > { %p12490_p7 = pneg %p12489_p3 }
 0xa38   : > { %p12497_p4 = pnand %p12496_p1, %p12490_p7 }
 0xa40   : > { %v5208_v19 = vpop.xlane.xlu1 %5207 }
 0xa41   : > { %v5224_v26 = vsub.f32 %v15724_v55, %v5208_v19 }
 0xa43   : > { %v5255_v5 = vmul.f32 1.442695, %v5224_v26 }
 0xa44   : > { %v5204_v38 = vpop.xlane.xlu1 %5203 }
 0xa45   : > { %v5222_v2 = vsub.f32 %v15726_v51, %v5204_v38 }
 0xa47   : > { %v5251_v42 = vmul.f32 1.442695, %v5222_v2 }
 0xa49   : > { %11817 = vpow2.f32 %v5251_v42 }
 0xa4a   : > { %5273 = vadd.xlane.f32.xlu1 %v15826_v46  ;;  %11819 = vpow2.f32 %v5249_v0 }
 0xa4b   : > { %11821 = vpow2.f32 %v5255_v5 }
 0xa4c   : > { %11823 = vpow2.f32 %v5253_v62 }
 0xa4e   : > { %5275 = vadd.xlane.f32.xlu0 %v15831_v22  ;;  %5279 = vadd.xlane.f32.xlu1 %v15829_v27 }
 0xa52   : > { %5277 = vadd.xlane.f32.xlu0 %v15835_v34 }
 0xa53   : > { %v15838_v55 = vpop.eup %11817 }
 0xa54   : > { %5283 = vadd.xlane.f32.xlu1 %v15838_v55  ;;  %v15841_v51 = vpop.eup %11819 }
 0xa55   : > { %v15844_v29 = vpop.eup %11821 }
 0xa56   : > { %5281 = vadd.xlane.f32.xlu0 %v15841_v51  ;;  %v15847_v7 = vpop.eup %11823 }
 0xa58   : > { %5287 = vadd.xlane.f32.xlu1 %v15844_v29 }
 0xa5a   : > { %5285 = vadd.xlane.f32.xlu0 %v15847_v7 }
 0xa92   : > { %v5262_v50 = vpop.xlane.xlu1 %5261 }
 0xa96   : > { %v5258_v32 = vpop.xlane.xlu1 %5257 }
 0xa97   : > { %11825 = vrcp.f32 %v5258_v32 }
 0xa9a   : > { %v5264_v18 = vpop.xlane.xlu1 %5263 }
 0xa9e   : > { %v5260_v43 = vpop.xlane.xlu1 %5259  ;;  %v5270_v53 = vpop.xlane.xlu0 %5269 }
 0xa9f   : > { %11827 = vrcp.f32 %v5260_v43 }
 0xaa0   : > { %11829 = vrcp.f32 %v5264_v18 }
 0xaa1   : > { %11831 = vrcp.f32 %v5262_v50  ;;  %v11826_v20 = vpop.eup %11825 }
 0xaa2   : > { %v5266_v10 = vpop.xlane.xlu1 %5265  ;;  %v5272_v59 = vpop.xlane.xlu0 %5271  ;;  %v5305_v3 = vmul.f32 %v11826_v20, %v15779_v35  ;;  %v11125_v35 = vld [vmem:[%s18191_s5 + $0xc0] ss:$8 sps:$4 sm:$0xff]  }
 0xaa3   : > { %11833 = vrcp.f32 %v5266_v10 }
 0xaa6   : > { %v5268_v23 = vpop.xlane.xlu0 %5267  ;;  %v5352_v54 = vpop.permute.xlu1 %5351 }
 0xaa7   : > { %11835 = vrcp.f32 %v5268_v23 }
 0xaa8   : > { %11837 = vrcp.f32 %v5272_v59 }
 0xaa9   : > { %v11828_v33 = vpop.eup %11827  ;;  %11839 = vrcp.f32 %v5270_v53 }
 0xaaa   : > { %v11830_v45 = vpop.eup %11829  ;;  %v5350_v47 = vpop.permute.xlu0 %5349  ;;  %v5306_v57 = vmul.f32 %v11828_v33, %v15789_v41 }
 0xaab   : > { %10578 = vmatprep.subr.bf16.mxu0 %v5350_v47  ;;  %v11832_v56 = vpop.eup %11831  ;;  %v5308_v37 = vmul.f32 %v11830_v45, %v15782_v31  ;;  %v11130_v31 = vld [vmem:[%s18191_s5 + $0xd4] ss:$8 sps:$4 sm:$0xff]  }
 0xaac   : > { %10579 = vmatpush3.bf16.msra.mxu0 %v5350_v47  ;;  %v5321_v60 = vpack.c.bf16 %v5306_v57, %v5305_v3  ;;  %v5307_v30 = vmul.f32 %v11832_v56, %v15769_v14 }
 0xaad   : > { %10580 = vmatprep.subr.bf16.mxu0 %v5352_v54  ;;  %v11834_v1 = vpop.eup %11833 }
 0xaae   : > { %10582 = vmatprep.mubr.bf16.mxu0 %v5321_v60  ;;  %v5322_v58 = vpack.c.bf16 %v5308_v37, %v5307_v30  ;;  %v5309_v13 = vmul.f32 %v11834_v1, %v15798_v15 }
 0xab0   : > { %10581 = vmatpush3.bf16.msra.mxu0 %v5352_v54 }
 0xab1   : > { %v11836_v41 = vpop.eup %11835  ;;  %5530 = vmatprep.subr.bf16.mxu0 %v11127_v17 }
 0xab2   : > { %v11838_v4 = vpop.eup %11837  ;;  %v5310_v25 = vmul.f32 %v11836_v41, %v15807_v48  ;;  %v11131_v48 = vld [vmem:[%s18191_s5 + $0xe0] ss:$8 sps:$4 sm:$0xff]  }
 0xab3   : > { %10583 = vmatmul.mubr.bf16.vlgmr.msra.gmra.mrb[144].mxu0 %v5322_v58  ;;  %v11840_v40 = vpop.eup %11839  ;;  %v5312_v39 = vmul.f32 %v11838_v4, %v15796_v9 }
 0xab4   : > { %v5323_v14 = vpack.c.bf16 %v5310_v25, %v5309_v13  ;;  %5531 = vmatpush1.bf16.msra.mxu0 %v11125_v35  ;;  %v5311_v15 = vmul.f32 %v11840_v40, %v15792_v36  ;;  %v11137_v25 = vld [vmem:[#allocation7] ss:$48 sps:$4 sm:$0xff]   ;;  %v11139_v40 = vld [vmem:[#allocation7 + $0x4] ss:$48 sps:$4 sm:$0xff]  }
 0xab5   : > { %5532 = vmatprep.subr.bf16.mxu0 %v11130_v31  ;;  %7111 = vmatprep.subr.bf16.mxu1 %v11139_v40 }
 0xab6   : > { %10586 = vmatprep.mubr.bf16.mxu0 %v5323_v14  ;;  %v5324_v61 = vpack.c.bf16 %v5312_v39, %v5311_v15  ;;  %v11140_v14 = vld [vmem:[#allocation7 + $0x8] ss:$48 sps:$4 sm:$0xff]   ;;  %v11145_v39 = vld [vmem:[#allocation7 + $0x64] ss:$48 sps:$4 sm:$0xff]   ;;  %7112 = vmatpush1.bf16.msra.mxu1 %v11137_v25  ;;  %v11143_v15 = vld [vmem:[#allocation7 + $0x60] ss:$48 sps:$4 sm:$0xff]  }
 0xab7   : > { %7113 = vmatprep.subr.bf16.mxu1 %v11145_v39 }
 0xab8   : > { %5533 = vmatpush1.bf16.msra.mxu0 %v11128_v12  ;;  %v11142_v12 = vld [vmem:[#allocation7 + $0xc] ss:$48 sps:$4 sm:$0xff]  }
 0xab9   : > { %5534 = vmatprep.subr.bf16.mxu0 %v11133_v8  ;;  %v11148_v8 = vld [vmem:[#allocation7 + $0x6c] ss:$48 sps:$4 sm:$0xff]  }
 0xaba   : > { %7114 = vmatpush1.bf16.msra.mxu1 %v11143_v15  ;;  %v12348_v15 = vld [vmem:[%s12843_s13 + $0x38] sm:$0xff] }
 0xabb   : > { %10587 = vmatmul.mubr.bf16.gmra.mrb[148].mxu0 %v5324_v61  ;;  %v11151_v61 = vld [vmem:[#allocation7 + $0xc4] ss:$48 sps:$4 sm:$0xff]  }
 0xabc   : > { %5535 = vmatpush1.bf16.msra.mxu0 %v11131_v48  ;;  %v11146_v48 = vld [vmem:[#allocation7 + $0x68] ss:$48 sps:$4 sm:$0xff]   ;;  %7115 = vmatprep.subr.bf16.mxu1 %v11151_v61 }
 0xad7   : > { %v5274_v49 = vpop.xlane.xlu1 %5273 }
 0xad8   : > { %11841 = vrcp.f32 %v5274_v49  ;;  %v11154_v49 = vld [vmem:[#allocation7 + $0xcc] ss:$48 sps:$4 sm:$0xff]  }
 0xadb   : > { %v5280_v9 = vpop.xlane.xlu1 %5279  ;;  %v5276_v52 = vpop.xlane.xlu0 %5275 }
 0xadc   : > { %11843 = vrcp.f32 %v5276_v52  ;;  %v11157_v52 = vld [vmem:[#allocation7 + $0x124] ss:$48 sps:$4 sm:$0xff]  }
 0xadd   : > { %11845 = vrcp.f32 %v5280_v9  ;;  %v11152_v9 = vld [vmem:[#allocation7 + $0xc8] ss:$48 sps:$4 sm:$0xff]  }
 0xadf   : > { %v5278_v44 = vpop.xlane.xlu0 %5277 }
 0xae0   : > { %11847 = vrcp.f32 %v5278_v44  ;;  %v11160_v44 = vld [vmem:[#allocation7 + $0x12c] ss:$48 sps:$4 sm:$0xff]  }
 0xae1   : > { %v5284_v6 = vpop.xlane.xlu1 %5283 }
 0xae2   : > { %11849 = vrcp.f32 %v5284_v6  ;;  %v11842_v63 = vpop.eup %11841  ;;  %v11155_v6 = vld [vmem:[#allocation7 + $0x120] ss:$48 sps:$4 sm:$0xff]  }
 0xae3   : > { %v5282_v36 = vpop.xlane.xlu0 %5281  ;;  %v5313_v38 = vmul.f32 %v11842_v63, %v15826_v46  ;;  %v11163_v63 = vld [vmem:[#allocation7 + $0x184] ss:$48 sps:$4 sm:$0xff]  }
 0xae4   : > { %11851 = vrcp.f32 %v5282_v36  ;;  %v11158_v36 = vld [vmem:[#allocation7 + $0x128] ss:$48 sps:$4 sm:$0xff]  }
 0xae5   : > { %v5288_v16 = vpop.xlane.xlu1 %5287 }
 0xae6   : > { %11853 = vrcp.f32 %v5288_v16  ;;  %v11844_v19 = vpop.eup %11843  ;;  %v11166_v16 = vld [vmem:[#allocation7 + $0x18c] ss:$48 sps:$4 sm:$0xff]  }
 0xae7   : > { %v5286_v28 = vpop.xlane.xlu0 %5285  ;;  %v11846_v11 = vpop.eup %11845  ;;  %v5314_v26 = vmul.f32 %v11844_v19, %v15831_v22  ;;  %v11161_v19 = vld [vmem:[#allocation7 + $0x180] ss:$48 sps:$4 sm:$0xff]  }
 0xae8   : > { %11855 = vrcp.f32 %v5286_v28  ;;  %v5316_v42 = vmul.f32 %v11846_v11, %v15829_v27  ;;  %v11136_v27 = vld [vmem:[%s18191_s5 + $0xf4] ss:$8 sps:$4 sm:$0xff]   ;;  %v11164_v28 = vld [vmem:[#allocation7 + $0x188] ss:$48 sps:$4 sm:$0xff]  }
 0xae9   : > { %v5325_v24 = vpack.c.bf16 %v5314_v26, %v5313_v38  ;;  %5536 = vmatprep.subr.bf16.mxu0 %v11136_v27  ;;  %v11169_v11 = vld [vmem:[#allocation7 + $0x1e4] ss:$48 sps:$4 sm:$0xff]   ;;  %v11172_v38 = vld [vmem:[#allocation7 + $0x1ec] ss:$48 sps:$4 sm:$0xff]   ;;  %v11167_v26 = vld [vmem:[#allocation7 + $0x1e0] ss:$48 sps:$4 sm:$0xff]  }
 0xaea   : > { %v11848_v2 = vpop.eup %11847 }
 0xaeb   : > { %v5315_v0 = vmul.f32 %v11848_v2, %v15835_v34  ;;  %10590 = vmatprep.mubr.bf16.mxu0 %v5325_v24  ;;  %v11170_v2 = vld [vmem:[#allocation7 + $0x1e8] ss:$48 sps:$4 sm:$0xff]   ;;  %v11175_v24 = vld [vmem:[#allocation7 + $0x244] ss:$48 sps:$4 sm:$0xff]  }
 0xaec   : > { %v11850_v5 = vpop.eup %11849 }
 0xaed   : > { %v5326_v62 = vpack.c.bf16 %v5316_v42, %v5315_v0  ;;  %v5318_v18 = vmul.f32 %v11850_v5, %v15838_v55  ;;  %v11134_v55 = vld [vmem:[%s18191_s5 + $0xf0] ss:$8 sps:$4 sm:$0xff]   ;;  %v11178_v0 = vld [vmem:[#allocation7 + $0x24c] ss:$48 sps:$4 sm:$0xff]  }
 0xaee   : > { %v11852_v50 = vpop.eup %11851  ;;  %5537 = vmatpush1.bf16.msra.mxu0 %v11134_v55  ;;  %v11173_v42 = vld [vmem:[#allocation7 + $0x240] ss:$48 sps:$4 sm:$0xff]   ;;  %v11176_v5 = vld [vmem:[#allocation7 + $0x248] ss:$48 sps:$4 sm:$0xff]  }
 0xaef   : > { %10591 = vmatmul.mubr.bf16.gmra.mrb[152].mxu0 %v5326_v62  ;;  %v5317_v32 = vmul.f32 %v11852_v50, %v15841_v51  ;;  %7224 = vmatprep.subr.bf16.mxu0 %v11142_v12  ;;  %v11181_v62 = vld [vmem:[#allocation7 + $0x2a4] ss:$48 sps:$4 sm:$0xff]   ;;  %v11184_v50 = vld [vmem:[#allocation7 + $0x2ac] ss:$48 sps:$4 sm:$0xff]  }
 0xaf0   : > { %v11854_v43 = vpop.eup %11853  ;;  %v12341_v55 = vld [vmem:[%s12843_s13] sm:$0xff] }
 0xaf1   : > { %v5327_v53 = vpack.c.bf16 %v5318_v18, %v5317_v32  ;;  %v5320_v10 = vmul.f32 %v11854_v43, %v15844_v29  ;;  %v11179_v32 = vld [vmem:[#allocation7 + $0x2a0] ss:$48 sps:$4 sm:$0xff]   ;;  %v11182_v18 = vld [vmem:[#allocation7 + $0x2a8] ss:$48 sps:$4 sm:$0xff]   ;;  %v11187_v43 = vld [vmem:[#allocation7 + $0x304] ss:$48 sps:$4 sm:$0xff]  }
 0xaf2   : > { %v11856_v46 = vpop.eup %11855 }
 0xaf3   : > { %10594 = vmatprep.mubr.bf16.mxu0 %v5327_v53  ;;  %v5319_v22 = vmul.f32 %v11856_v46, %v15847_v7  ;;  %v11190_v53 = vld [vmem:[#allocation7 + $0x30c] ss:$48 sps:$4 sm:$0xff]   ;;  %v11185_v46 = vld [vmem:[#allocation7 + $0x300] ss:$48 sps:$4 sm:$0xff]  }
 0xaf5   : > { %v5328_v34 = vpack.c.bf16 %v5320_v10, %v5319_v22  ;;  %v11188_v22 = vld [vmem:[#allocation7 + $0x308] ss:$48 sps:$4 sm:$0xff]   ;;  %v11193_v10 = vld [vmem:[#allocation7 + $0x364] ss:$48 sps:$4 sm:$0xff]  }
 0xaf7   : > { %10595 = vmatmul.mubr.bf16.gmra.mrb[156].mxu0 %v5328_v34  ;;  %v11196_v34 = vld [vmem:[#allocation7 + $0x36c] ss:$48 sps:$4 sm:$0xff]  }
 0xaf8   : > { %5562 = vmatprep.mubr.bf16.mxu0 %v18811_v21 }
 0xb86   : > { %v10584_v51 = vpop.f32.mrb[144].mxu0 }
 0xb87   : > { %v5395_v59 = vpop.f32.mrb[145].mxu0 }
 0xb88   : > { %v10585_v23 = vpop.f32.mrb[146].mxu0 }
 0xb89   : > { %v5459_v7 = vpack.c.bf16 %v10585_v23, %v10584_v51  ;;  %v5398_v20 = vpop.f32.mrb[147].mxu0  ;;  %v11191_v23 = vld [vmem:[#allocation7 + $0x360] ss:$48 sps:$4 sm:$0xff]  }
 0xb8a   : > { %v5458_v29 = vpack.c.bf16 %v5398_v20, %v5395_v59 }
 0xb8c   : > { %9911 = vmatmul.mubr.msk.bf16.vlgmr.msra.gmra.mrb[96].mxu0 %vm2094_vm1, %v5458_v29 }
 0xb8d   : > { %5572 = vmatprep.mubr.bf16.mxu0 %v18811_v21  ;;  %7225 = vmatpush1.bf16.msra.mxu0 %v11140_v14  ;;  %v12347_v14 = vld [vmem:[%s12843_s13 + $0x30] sm:$0xff] }
 0xb8e   : > { %v10588_v33 = vpop.f32.mrb[148].mxu0  ;;  %7226 = vmatprep.subr.bf16.mxu0 %v11148_v8 }
 0xb8f   : > { %v5411_v45 = vpop.f32.mrb[149].mxu0 }
 0xb90   : > { %v10589_v47 = vpop.f32.mrb[150].mxu0 }
 0xb91   : > { %v5461_v3 = vpack.c.bf16 %v10589_v47, %v10588_v33  ;;  %v5414_v57 = vpop.f32.mrb[151].mxu0  ;;  %7227 = vmatpush1.bf16.msra.mxu0 %v11146_v48  ;;  %v11194_v33 = vld [vmem:[#allocation7 + $0x368] ss:$48 sps:$4 sm:$0xff]   ;;  %v12343_v47 = vld [vmem:[%s12843_s13 + $0x10] sm:$0xff] }
 0xb92   : > { %v5460_v56 = vpack.c.bf16 %v5414_v57, %v5411_v45  ;;  %7228 = vmatprep.subr.bf16.mxu0 %v11154_v49 }
 0xb94   : > { %9912 = vmatmul.mubr.msk.bf16.gmra.mrb[100].mxu0 %vm2094_vm1, %v5459_v7  ;;  %v12342_v7 = vld [vmem:[%s12843_s13 + $0x8] sm:$0xff] }
 0xb95   : > { %5582 = vmatprep.mubr.bf16.mxu0 %v18811_v21  ;;  %7229 = vmatpush1.bf16.msra.mxu0 %v11152_v9 }
 0xb96   : > { %7230 = vmatprep.subr.bf16.mxu0 %v11160_v44  ;;  %v12349_v44 = vld [vmem:[%s12843_s13 + $0x40] sm:$0xff] }
 0xb99   : > { %7231 = vmatpush1.bf16.msra.mxu0 %v11158_v36 }
 0xb9a   : > { %7232 = vmatprep.subr.bf16.mxu0 %v11166_v16 }
 0xb9c   : > { %9913 = vmatmul.mubr.msk.bf16.gmra.mrb[104].mxu0 %vm2094_vm1, %v5460_v56 }
 0xb9d   : > { %5592 = vmatprep.mubr.bf16.mxu0 %v18811_v21  ;;  %7233 = vmatpush1.bf16.msra.mxu0 %v11164_v28 }
 0xb9e   : > { %7234 = vmatprep.subr.bf16.mxu0 %v11172_v38 }
 0xba1   : > { %7235 = vmatpush1.bf16.msra.mxu0 %v11170_v2 }
 0xba2   : > { %7236 = vmatprep.subr.bf16.mxu0 %v11178_v0 }
 0xba4   : > { %9914 = vmatmul.mubr.msk.bf16.gmra.mrb[108].mxu0 %vm2094_vm1, %v5461_v3 }
 0xba5   : > { %5602 = vmatprep.mubr.bf16.mxu0 %v18811_v21  ;;  %7237 = vmatpush1.bf16.msra.mxu0 %v11176_v5 }
 0xba6   : > { %7238 = vmatprep.subr.bf16.mxu0 %v11184_v50  ;;  %v11199_v50 = vld [vmem:[#allocation7 + $0x3c4] ss:$48 sps:$4 sm:$0xff]  }
 0xba9   : > { %7239 = vmatpush1.bf16.msra.mxu0 %v11182_v18  ;;  %v11197_v18 = vld [vmem:[#allocation7 + $0x3c0] ss:$48 sps:$4 sm:$0xff]  }
 0xbaa   : > { %7240 = vmatprep.subr.bf16.mxu0 %v11190_v53 }
 0xbad   : > { %7241 = vmatpush1.bf16.msra.mxu0 %v11188_v22  ;;  %v12353_v22 = vld [vmem:[%s12843_s13 + $0x60] sm:$0xff] }
 0xbae   : > { %7242 = vmatprep.subr.bf16.mxu0 %v11196_v34 }
 0xbb1   : > { %7243 = vmatpush1.bf16.msra.mxu0 %v11194_v33  ;;  %v12355_v33 = vld [vmem:[%s12843_s13 + $0x70] sm:$0xff] }
 0xbc2   : > { %v10592_v54 = vpop.f32.mrb[152].mxu0 }
 0xbc3   : > { %v5427_v60 = vpop.f32.mrb[153].mxu0 }
 0xbc4   : > { %v10593_v37 = vpop.f32.mrb[154].mxu0 }
 0xbc5   : > { %v5463_v17 = vpack.c.bf16 %v10593_v37, %v10592_v54  ;;  %v5430_v1 = vpop.f32.mrb[155].mxu0  ;;  %v12344_v54 = vld [vmem:[%s12843_s13 + $0x18] sm:$0xff] }
 0xbc6   : > { %v5462_v30 = vpack.c.bf16 %v5430_v1, %v5427_v60 }
 0xbc8   : > { %9915 = vmatmul.mubr.msk.bf16.gmra.mrb[112].mxu0 %vm2094_vm1, %v5462_v30 }
 0xbc9   : > { %5612 = vmatprep.mubr.bf16.mxu0 %v18811_v21 }
 0xbca   : > { %v10596_v35 = vpop.f32.mrb[156].mxu0 }
 0xbcb   : > { %v5443_v41 = vpop.f32.mrb[157].mxu0 }
 0xbcc   : > { %v10597_v58 = vpop.f32.mrb[158].mxu0 }
 0xbcd   : > { %v5465_v31 = vpack.c.bf16 %v10597_v58, %v10596_v35  ;;  %v5446_v4 = vpop.f32.mrb[159].mxu0 }
 0xbce   : > { %v5464_v13 = vpack.c.bf16 %v5446_v4, %v5443_v41  ;;  %v12345_v41 = vld [vmem:[%s12843_s13 + $0x20] sm:$0xff]  ;;  %v12346_v4 = vld [vmem:[%s12843_s13 + $0x28] sm:$0xff] }
 0xbd0   : > { %9916 = vmatmul.mubr.msk.bf16.gmra.mrb[116].mxu0 %vm2094_vm1, %v5463_v17 }
 0xbd1   : > { %5622 = vmatprep.mubr.bf16.mxu0 %v18811_v21 }
 0xbd8   : > { %9917 = vmatmul.mubr.msk.bf16.gmra.mrb[120].mxu0 %vm2094_vm1, %v5464_v13 }
 0xbd9   : > { %5632 = vmatprep.mubr.bf16.mxu0 %v18811_v21  ;;  %v11149_v21 = vld [vmem:[#allocation7 + $0xc0] ss:$48 sps:$4 sm:$0xff]  }
 0xbda   : > { %7116 = vmatpush1.bf16.msra.mxu1 %v11149_v21 }
 0xbdb   : > { %7117 = vmatprep.subr.bf16.mxu1 %v11157_v52 }
 0xbde   : > { %7118 = vmatpush1.bf16.msra.mxu1 %v11155_v6 }
 0xbdf   : > { %7119 = vmatprep.subr.bf16.mxu1 %v11163_v63  ;;  %v12350_v63 = vld [vmem:[%s12843_s13 + $0x48] sm:$0xff] }
 0xbe0   : > { %9918 = vmatmul.mubr.msk.bf16.gmra.mrb[124].mxu0 %vm2094_vm1, %v5465_v31 }
 0xbe2   : > { %7120 = vmatpush1.bf16.msra.mxu1 %v11161_v19 }
 0xbe3   : > { %7121 = vmatprep.subr.bf16.mxu1 %v11169_v11  ;;  %v12351_v11 = vld [vmem:[%s12843_s13 + $0x50] sm:$0xff] }
 0xbe6   : > { %7122 = vmatpush1.bf16.msra.mxu1 %v11167_v26 }
 0xbe7   : > { %7123 = vmatprep.subr.bf16.mxu1 %v11175_v24  ;;  %v12352_v24 = vld [vmem:[%s12843_s13 + $0x58] sm:$0xff] }
 0xbea   : > { %7124 = vmatpush1.bf16.msra.mxu1 %v11173_v42 }
 0xbeb   : > { %7125 = vmatprep.subr.bf16.mxu1 %v11181_v62 }
 0xbee   : > { %7126 = vmatpush1.bf16.msra.mxu1 %v11179_v32  ;;  %v11202_v32 = vld [vmem:[#allocation7 + $0x3cc] ss:$48 sps:$4 sm:$0xff]  }
 0xbef   : > { %7127 = vmatprep.subr.bf16.mxu1 %v11187_v43  ;;  %v11200_v43 = vld [vmem:[#allocation7 + $0x3c8] ss:$48 sps:$4 sm:$0xff]   ;;  %7244 = vmatprep.subr.bf16.mxu0 %v11202_v32 }
 0xbf0   : > { %7245 = vmatpush1.bf16.msra.mxu0 %v11200_v43  ;;  %v12360_v43 = vld [vmem:[%s12843_s13 + $0x98] sm:$0xff] }
 0xbf2   : > { %7128 = vmatpush1.bf16.msra.mxu1 %v11185_v46 }
 0xbf3   : > { %7129 = vmatprep.subr.bf16.mxu1 %v11193_v10 }
 0xbf6   : > { %7130 = vmatpush1.bf16.msra.mxu1 %v11191_v23  ;;  %v11205_v23 = vld [vmem:[#allocation7 + $0x424] ss:$48 sps:$4 sm:$0xff]  }
 0xbf7   : > { %7131 = vmatprep.subr.bf16.mxu1 %v11199_v50 }
 0xbfa   : > { %7132 = vmatpush1.bf16.msra.mxu1 %v11197_v18 }
 0xbfb   : > { %7133 = vmatprep.subr.bf16.mxu1 %v11205_v23  ;;  %v12361_v23 = vld [vmem:[%s12843_s13 + $0xa0] sm:$0xff] }
 0xc5f   : > { %v5564_v27 = vpop.f32.mrb[96].mxu0 }
 0xc60   : > { %v15907_v51 = vadd.f32 %v12341_v55, %v5564_v27  ;;  %v5566_v59 = vpop.f32.mrb[97].mxu0  ;;  %v12354_v27 = vld [vmem:[%s12843_s13 + $0x68] sm:$0xff] }
 0xc61   : > { %v15910_v20 = vadd.f32 %v12342_v7, %v5566_v59  ;;  %v5568_v29 = vpop.f32.mrb[98].mxu0  ;;  %v11208_v7 = vld [vmem:[#allocation7 + $0x42c] ss:$48 sps:$4 sm:$0xff]  }
 0xc62   : > { %18816 = vst [vmem:[#allocation22_spill] sm:$0xff] %v15907_v51  ;;  %v5676_v45 = vmul.f32 %v15907_v51, %v15907_v51  ;;  %v15915_v3 = vadd.f32 %v12343_v47, %v5568_v29  ;;  %v5570_v57 = vpop.f32.mrb[99].mxu0  ;;  %7246 = vmatprep.subr.bf16.mxu0 %v11208_v7 }
 0xc63   : > { %18817 = vst [vmem:[#allocation20_spill] sm:$0xff] %v15910_v20  ;;  %v5677_v56 = vmul.f32 %v15910_v20, %v15910_v20  ;;  %v15920_v60 = vadd.f32 %v12344_v54, %v5570_v57  ;;  %v11203_v57 = vld [vmem:[#allocation7 + $0x420] ss:$48 sps:$4 sm:$0xff]  }
 0xc64   : > { %18818 = vst [vmem:[#allocation115_spill] sm:$0xff] %v15915_v3  ;;  %v5678_v37 = vmul.f32 %v15915_v3, %v15915_v3  ;;  %7134 = vmatpush1.bf16.msra.mxu1 %v11203_v57 }
 0xc65   : > { %18819 = vst [vmem:[#allocation117_spill] sm:$0xff] %v15920_v60  ;;  %v5679_v17 = vmul.f32 %v15920_v60, %v15920_v60  ;;  %v5708_v1 = vadd.f32 %v5677_v56, %v5676_v45  ;;  %v11206_v56 = vld [vmem:[#allocation7 + $0x428] ss:$48 sps:$4 sm:$0xff]  }
 0xc66   : > { %7247 = vmatpush1.bf16.msra.mxu0 %v11206_v56  ;;  %v11235_v56 = vld [vmem:[#allocation7 + $0x14] ss:$48 sps:$4 sm:$0xff]  }
 0xc67   : > { %5709 = vadd.xlane.f32.xlu0 %v5708_v1  ;;  %v5574_v30 = vpop.f32.mrb[100].mxu0  ;;  %v5711_v35 = vadd.f32 %v5679_v17, %v5678_v37  ;;  %v12356_v37 = vld [vmem:[%s12843_s13 + $0x78] sm:$0xff] }
 0xc68   : > { %v15927_v58 = vadd.f32 %v12345_v41, %v5574_v30  ;;  %v5576_v31 = vpop.f32.mrb[101].mxu0  ;;  %v11211_v41 = vld [vmem:[#allocation7 + $0x484] ss:$48 sps:$4 sm:$0xff]  }
 0xc69   : > { %v15930_v13 = vadd.f32 %v12346_v4, %v5576_v31  ;;  %5712 = vadd.xlane.f32.xlu1 %v5711_v35  ;;  %v5578_v25 = vpop.f32.mrb[102].mxu0  ;;  %v11214_v31 = vld [vmem:[#allocation7 + $0x48c] ss:$48 sps:$4 sm:$0xff]   ;;  %v11209_v4 = vld [vmem:[#allocation7 + $0x480] ss:$48 sps:$4 sm:$0xff]   ;;  %7135 = vmatprep.subr.bf16.mxu1 %v11211_v41 }
 0xc6a   : > { %18820 = vst [vmem:[#allocation119_spill] sm:$0xff] %v15927_v58  ;;  %v5680_v40 = vmul.f32 %v15927_v58, %v15927_v58  ;;  %v15935_v12 = vadd.f32 %v12347_v14, %v5578_v25  ;;  %v5580_v39 = vpop.f32.mrb[103].mxu0  ;;  %v11212_v25 = vld [vmem:[#allocation7 + $0x488] ss:$48 sps:$4 sm:$0xff]   ;;  %7248 = vmatprep.subr.bf16.mxu0 %v11214_v31  ;;  %7136 = vmatpush1.bf16.msra.mxu1 %v11209_v4  ;;  %v11217_v14 = vld [vmem:[#allocation7 + $0x4e4] ss:$48 sps:$4 sm:$0xff]  }
 0xc6b   : > { %18821 = vst [vmem:[#allocation121_spill] sm:$0xff] %v15930_v13  ;;  %v5681_v8 = vmul.f32 %v15930_v13, %v15930_v13  ;;  %v15940_v48 = vadd.f32 %v12348_v15, %v5580_v39  ;;  %7249 = vmatpush1.bf16.msra.mxu0 %v11212_v25  ;;  %v11220_v39 = vld [vmem:[#allocation7 + $0x4ec] ss:$48 sps:$4 sm:$0xff]   ;;  %v11218_v15 = vld [vmem:[#allocation7 + $0x4e8] ss:$48 sps:$4 sm:$0xff]   ;;  %7137 = vmatprep.subr.bf16.mxu1 %v11217_v14 }
 0xc6c   : > { %18822 = vst [vmem:[#allocation44_spill] sm:$0xff] %v15935_v12  ;;  %v5682_v61 = vmul.f32 %v15935_v12, %v15935_v12  ;;  %7250 = vmatprep.subr.bf16.mxu0 %v11220_v39  ;;  %v12364_v31 = vld [vmem:[%s12843_s13 + $0xb8] sm:$0xff] }
 0xc6d   : > { %18823 = vst [vmem:[#allocation46_spill] sm:$0xff] %v15940_v48  ;;  %v5683_v49 = vmul.f32 %v15940_v48, %v15940_v48  ;;  %v5714_v21 = vadd.f32 %v5681_v8, %v5680_v40  ;;  %v11215_v8 = vld [vmem:[#allocation7 + $0x4e0] ss:$48 sps:$4 sm:$0xff]  }
 0xc6e   : > { %7138 = vmatpush1.bf16.msra.mxu1 %v11215_v8 }
 0xc6f   : > { %5715 = vadd.xlane.f32.xlu0 %v5714_v21  ;;  %v5584_v9 = vpop.f32.mrb[104].mxu0  ;;  %v5717_v52 = vadd.f32 %v5683_v49, %v5682_v61  ;;  %7251 = vmatpush1.bf16.msra.mxu0 %v11218_v15  ;;  %v11223_v61 = vld [vmem:[#allocation7 + $0x544] ss:$48 sps:$4 sm:$0xff]   ;;  %v11226_v49 = vld [vmem:[#allocation7 + $0x54c] ss:$48 sps:$4 sm:$0xff]  }
 0xc70   : > { %v15947_v6 = vadd.f32 %v12349_v44, %v5584_v9  ;;  %v5586_v36 = vpop.f32.mrb[105].mxu0  ;;  %v11221_v21 = vld [vmem:[#allocation7 + $0x540] ss:$48 sps:$4 sm:$0xff]   ;;  %v11224_v9 = vld [vmem:[#allocation7 + $0x548] ss:$48 sps:$4 sm:$0xff]   ;;  %7139 = vmatprep.subr.bf16.mxu1 %v11223_v61  ;;  %7252 = vmatprep.subr.bf16.mxu0 %v11226_v49 }
 0xc71   : > { %v15950_v16 = vadd.f32 %v12350_v63, %v5586_v36  ;;  %5718 = vadd.xlane.f32.xlu1 %v5717_v52  ;;  %v5588_v19 = vpop.f32.mrb[106].mxu0  ;;  %v11229_v52 = vld [vmem:[#allocation7 + $0x5a4] ss:$48 sps:$4 sm:$0xff]   ;;  %v11232_v44 = vld [vmem:[#allocation7 + $0x5ac] ss:$48 sps:$4 sm:$0xff]  }
 0xc72   : > { %18824 = vst [vmem:[#allocation48_spill] sm:$0xff] %v15947_v6  ;;  %v5684_v28 = vmul.f32 %v15947_v6, %v15947_v6  ;;  %v15955_v38 = vadd.f32 %v12351_v11, %v5588_v19  ;;  %v5590_v26 = vpop.f32.mrb[107].mxu0  ;;  %7140 = vmatpush1.bf16.msra.mxu1 %v11221_v21  ;;  %v11227_v36 = vld [vmem:[#allocation7 + $0x5a0] ss:$48 sps:$4 sm:$0xff]   ;;  %v11230_v63 = vld [vmem:[#allocation7 + $0x5a8] ss:$48 sps:$4 sm:$0xff]  }
 0xc73   : > { %18825 = vst [vmem:[#allocation50_spill] sm:$0xff] %v15950_v16  ;;  %v5685_v2 = vmul.f32 %v15950_v16, %v15950_v16  ;;  %v15960_v0 = vadd.f32 %v12352_v24, %v5590_v26  ;;  %7253 = vmatpush1.bf16.msra.mxu0 %v11224_v9  ;;  %7141 = vmatprep.subr.bf16.mxu1 %v11229_v52  ;;  %v12365_v15 = vld [vmem:[%s12843_s13 + $0xc0] sm:$0xff]  ;;  %v12366_v21 = vld [vmem:[%s12843_s13 + $0xc8] sm:$0xff] }
 0xc74   : > { %18826 = vst [vmem:[#allocation52_spill] sm:$0xff] %v15955_v38  ;;  %v5686_v42 = vmul.f32 %v15955_v38, %v15955_v38  ;;  %7254 = vmatprep.subr.bf16.mxu0 %v11232_v44 }
 0xc75   : > { %18827 = vst [vmem:[#allocation54_spill] sm:$0xff] %v15960_v0  ;;  %v5687_v5 = vmul.f32 %v15960_v0, %v15960_v0  ;;  %v5720_v62 = vadd.f32 %v5685_v2, %v5684_v28  ;;  %v12357_v28 = vld [vmem:[%s12843_s13 + $0x80] sm:$0xff]  ;;  %v12358_v2 = vld [vmem:[%s12843_s13 + $0x88] sm:$0xff] }
 0xc76   : > { %7142 = vmatpush1.bf16.msra.mxu1 %v11227_v36  ;;  %v12367_v36 = vld [vmem:[%s12843_s13 + $0xd0] sm:$0xff] }
 0xc77   : > { %5721 = vadd.xlane.f32.xlu0 %v5720_v62  ;;  %v5594_v53 = vpop.f32.mrb[108].mxu0  ;;  %v5723_v46 = vadd.f32 %v5687_v5, %v5686_v42  ;;  %7255 = vmatpush1.bf16.msra.mxu0 %v11230_v63  ;;  %v12359_v62 = vld [vmem:[%s12843_s13 + $0x90] sm:$0xff] }
 0xc78   : > { %v15967_v10 = vadd.f32 %v12353_v22, %v5594_v53  ;;  %v5596_v34 = vpop.f32.mrb[109].mxu0  ;;  %7337 = vmatprep.subr.bf16.mxu1 %v11235_v56 }
 0xc79   : > { %v15970_v55 = vadd.f32 %v12354_v27, %v5596_v34  ;;  %5724 = vadd.xlane.f32.xlu1 %v5723_v46  ;;  %v5598_v59 = vpop.f32.mrb[110].mxu0 }
 0xc7a   : > { %18828 = vst [vmem:[#allocation56_spill] sm:$0xff] %v15967_v10  ;;  %v5688_v29 = vmul.f32 %v15967_v10, %v15967_v10  ;;  %v15975_v45 = vadd.f32 %v12355_v33, %v5598_v59  ;;  %v5600_v47 = vpop.f32.mrb[111].mxu0  ;;  %v12362_v33 = vld [vmem:[%s12843_s13 + $0xa8] sm:$0xff] }
 0xc7b   : > { %18829 = vst [vmem:[#allocation58_spill] sm:$0xff] %v15970_v55  ;;  %v5689_v54 = vmul.f32 %v15970_v55, %v15970_v55  ;;  %v15980_v17 = vadd.f32 %v12356_v37, %v5600_v47  ;;  %v12363_v37 = vld [vmem:[%s12843_s13 + $0xb0] sm:$0xff] }
 0xc7c   : > { %18830 = vst [vmem:[#allocation60_spill] sm:$0xff] %v15975_v45  ;;  %v5690_v1 = vmul.f32 %v15975_v45, %v15975_v45 }
 0xc7d   : > { %18831 = vst [vmem:[#allocation62_spill] sm:$0xff] %v15980_v17  ;;  %v5691_v30 = vmul.f32 %v15980_v17, %v15980_v17  ;;  %v5726_v35 = vadd.f32 %v5689_v54, %v5688_v29 }
 0xc7f   : > { %5727 = vadd.xlane.f32.xlu0 %v5726_v35  ;;  %v5729_v40 = vadd.f32 %v5691_v30, %v5690_v1  ;;  %v11238_v35 = vld [vmem:[#allocation7 + $0x1c] ss:$48 sps:$4 sm:$0xff]  }
 0xc80   : > { %7450 = vmatprep.subr.bf16.mxu0 %v11238_v35 }
 0xc81   : > { %5730 = vadd.xlane.f32.xlu1 %v5729_v40 }
 0xc9b   : > { %v5604_v19 = vpop.f32.mrb[112].mxu0 }
 0xc9c   : > { %v15987_v11 = vadd.f32 %v12357_v28, %v5604_v19  ;;  %v5606_v26 = vpop.f32.mrb[113].mxu0 }
 0xc9d   : > { %v15990_v24 = vadd.f32 %v12358_v2, %v5606_v26  ;;  %v5608_v42 = vpop.f32.mrb[114].mxu0  ;;  %v12368_v26 = vld [vmem:[%s12843_s13 + $0xd8] sm:$0xff] }
 0xc9e   : > { %18832 = vst [vmem:[#allocation64_spill] sm:$0xff] %v15987_v11  ;;  %v5692_v5 = vmul.f32 %v15987_v11, %v15987_v11  ;;  %v15995_v50 = vadd.f32 %v12359_v62, %v5608_v42  ;;  %v5610_v32 = vpop.f32.mrb[115].mxu0 }
 0xc9f   : > { %18833 = vst [vmem:[#allocation66_spill] sm:$0xff] %v15990_v24  ;;  %v5693_v18 = vmul.f32 %v15990_v24, %v15990_v24  ;;  %v16000_v53 = vadd.f32 %v12360_v43, %v5610_v32  ;;  %v12369_v43 = vld [vmem:[%s12843_s13 + $0xe0] sm:$0xff] }
 0xca0   : > { %18834 = vst [vmem:[#allocation68_spill] sm:$0xff] %v15995_v50  ;;  %v5694_v46 = vmul.f32 %v15995_v50, %v15995_v50 }
 0xca1   : > { %18835 = vst [vmem:[#allocation70_spill] sm:$0xff] %v16000_v53  ;;  %v5695_v22 = vmul.f32 %v16000_v53, %v16000_v53  ;;  %v5732_v34 = vadd.f32 %v5693_v18, %v5692_v5 }
 0xca3   : > { %5733 = vadd.xlane.f32.xlu0 %v5732_v34  ;;  %v5614_v27 = vpop.f32.mrb[116].mxu0  ;;  %v5735_v59 = vadd.f32 %v5695_v22, %v5694_v46  ;;  %v12370_v34 = vld [vmem:[%s12843_s13 + $0xe8] sm:$0xff] }
 0xca4   : > { %v16007_v7 = vadd.f32 %v12361_v23, %v5614_v27  ;;  %v5616_v29 = vpop.f32.mrb[117].mxu0 }
 0xca5   : > { %v16010_v47 = vadd.f32 %v12362_v33, %v5616_v29  ;;  %5736 = vadd.xlane.f32.xlu1 %v5735_v59  ;;  %v5618_v57 = vpop.f32.mrb[118].mxu0  ;;  %v12371_v29 = vld [vmem:[%s12843_s13 + $0xf0] sm:$0xff] }
 0xca6   : > { %18836 = vst [vmem:[#allocation74_spill] sm:$0xff] %v16007_v7  ;;  %v5696_v54 = vmul.f32 %v16007_v7, %v16007_v7  ;;  %v16015_v1 = vadd.f32 %v12363_v37, %v5618_v57  ;;  %v5620_v30 = vpop.f32.mrb[119].mxu0 }
 0xca7   : > { %18837 = vst [vmem:[#allocation53_spill] sm:$0xff] %v16010_v47  ;;  %v5697_v41 = vmul.f32 %v16010_v47, %v16010_v47  ;;  %v16020_v4 = vadd.f32 %v12364_v31, %v5620_v30 }
 0xca8   : > { %18838 = vst [vmem:[#allocation96_spill] sm:$0xff] %v16015_v1  ;;  %v5698_v25 = vmul.f32 %v16015_v1, %v16015_v1 }
 0xca9   : > { %18839 = vst [vmem:[#allocation98_spill] sm:$0xff] %v16020_v4  ;;  %v5699_v40 = vmul.f32 %v16020_v4, %v16020_v4  ;;  %v5738_v14 = vadd.f32 %v5697_v41, %v5696_v54  ;;  %v12372_v54 = vld [vmem:[%s12843_s13 + $0xf8] sm:$0xff]  ;;  %s19172_s13 = sld [smem:[#allocation124_spill]] }
 0xcab   : > { %5739 = vadd.xlane.f32.xlu0 %v5738_v14  ;;  %v5624_v39 = vpop.f32.mrb[120].mxu0  ;;  %v5741_v8 = vadd.f32 %v5699_v40, %v5698_v25 }
 0xcac   : > { %v16027_v61 = vadd.f32 %v12365_v15, %v5624_v39  ;;  %v5626_v49 = vpop.f32.mrb[121].mxu0 }
 0xcad   : > { %v16030_v9 = vadd.f32 %v12366_v21, %v5626_v49  ;;  %5742 = vadd.xlane.f32.xlu1 %v5741_v8  ;;  %v5628_v52 = vpop.f32.mrb[122].mxu0 }
 0xcae   : > { %18840 = vst [vmem:[#allocation116_spill] sm:$0xff] %v16027_v61  ;;  %v5700_v44 = vmul.f32 %v16027_v61, %v16027_v61  ;;  %v16035_v63 = vadd.f32 %v12367_v36, %v5628_v52  ;;  %v5630_v19 = vpop.f32.mrb[123].mxu0 }
 0xcaf   : > { %18841 = vst [vmem:[#allocation99_spill] sm:$0xff] %v16030_v9  ;;  %v5701_v28 = vmul.f32 %v16030_v9, %v16030_v9  ;;  %v16040_v2 = vadd.f32 %v12368_v26, %v5630_v19  ;;  %v5675_v19 = vld [vmem:[%s18192_s6] sm:$0x3]  ;;  %s18136_s12 = scalar_lea.hbm %s19172_s13, %s10213_s18 }
 0xcb0   : > { %18842 = vst [vmem:[#allocation118_spill] sm:$0xff] %v16035_v63  ;;  %v5702_v42 = vmul.f32 %v16035_v63, %v16035_v63 }
 0xcb1   : > { %18843 = vst [vmem:[#allocation97_spill] sm:$0xff] %v16040_v2  ;;  %v5703_v5 = vmul.f32 %v16040_v2, %v16040_v2  ;;  %v5744_v62 = vadd.f32 %v5701_v28, %v5700_v44 }
 0xcb3   : > { %5745 = vadd.xlane.f32.xlu0 %v5744_v62  ;;  %v5634_v32 = vpop.f32.mrb[124].mxu0  ;;  %v5747_v18 = vadd.f32 %v5703_v5, %v5702_v42  ;;  %v18848_v42 = vld [vmem:[#allocation19_spill] sm:$0xff]  ;;  %v18849_v62 = vld [vmem:[#allocation18_spill] sm:$0xff] }
 0xcb4   : > { %v16047_v46 = vadd.f32 %v12369_v43, %v5634_v32  ;;  %v5636_v22 = vpop.f32.mrb[125].mxu0  ;;  %v16070_v5 = vrot.slane %v5675_v19, %v18848_v42  ;;  %v16073_v32 = vrot.slane %v5675_v19, %v18849_v62 }
 0xcb5   : > { %v16050_v27 = vadd.f32 %v12370_v34, %v5636_v22  ;;  %5748 = vadd.xlane.f32.xlu1 %v5747_v18  ;;  %v5638_v59 = vpop.f32.mrb[126].mxu0 }
 0xcb6   : > { %18844 = vst [vmem:[#allocation45_spill] sm:$0xff] %v16047_v46  ;;  %v5704_v23 = vmul.f32 %v16047_v46, %v16047_v46  ;;  %v16055_v33 = vadd.f32 %v12371_v29, %v5638_v59  ;;  %v5640_v57 = vpop.f32.mrb[127].mxu0 }
 0xcb7   : > { %18845 = vst [vmem:[#allocation47_spill] sm:$0xff] %v16050_v27  ;;  %v5705_v56 = vmul.f32 %v16050_v27, %v16050_v27  ;;  %v16060_v37 = vadd.f32 %v12372_v54, %v5640_v57 }
 0xcb8   : > { %18846 = vst [vmem:[#allocation34_spill] sm:$0xff] %v16055_v33  ;;  %v5706_v30 = vmul.f32 %v16055_v33, %v16055_v33 }
 0xcb9   : > { %18847 = vst [vmem:[#allocation49_spill] sm:$0xff] %v16060_v37  ;;  %v5707_v35 = vmul.f32 %v16060_v37, %v16060_v37  ;;  %v5750_v41 = vadd.f32 %v5705_v56, %v5704_v23 }
 0xcbb   : > { %5751 = vadd.xlane.f32.xlu0 %v5750_v41  ;;  %v5753_v31 = vadd.f32 %v5707_v35, %v5706_v30 }
 0xcbd   : > { %5754 = vadd.xlane.f32.xlu1 %v5753_v31 }
 0xcf4   : > { %v5710_v25 = vpop.xlane.xlu0 %5709 }
 0xcf5   : > { %v5756_v40 = vmul.f32 0.00390625, %v5710_v25 }
 0xcf6   : > { %v5713_v14 = vpop.xlane.xlu1 %5712 }
 0xcf7   : > { %v5772_v39 = vadd.f32 1e-05, %v5756_v40  ;;  %v5757_v8 = vmul.f32 0.00390625, %v5713_v14 }
 0xcf9   : > { %11857 = vrsqrt.f32 %v5772_v39  ;;  %v5773_v15 = vadd.f32 1e-05, %v5757_v8  ;;  %v11233_v39 = vld [vmem:[#allocation7 + $0x10] ss:$48 sps:$4 sm:$0xff]  }
 0xcfb   : > { %11859 = vrsqrt.f32 %v5773_v15  ;;  %v11236_v15 = vld [vmem:[#allocation7 + $0x18] ss:$48 sps:$4 sm:$0xff]  }
 0xcfc   : > { %v5716_v49 = vpop.xlane.xlu0 %5715 }
 0xcfd   : > { %v5758_v21 = vmul.f32 0.00390625, %v5716_v49  ;;  %v11241_v49 = vld [vmem:[#allocation7 + $0x74] ss:$48 sps:$4 sm:$0xff]  }
 0xcfe   : > { %v5719_v52 = vpop.xlane.xlu1 %5718 }
 0xcff   : > { %v5774_v44 = vadd.f32 1e-05, %v5758_v21  ;;  %v5759_v36 = vmul.f32 0.00390625, %v5719_v52 }
 0xd01   : > { %11861 = vrsqrt.f32 %v5774_v44  ;;  %v5775_v28 = vadd.f32 1e-05, %v5759_v36  ;;  %v11244_v36 = vld [vmem:[#allocation7 + $0x7c] ss:$48 sps:$4 sm:$0xff]  }
 0xd03   : > { %v11858_v26 = vpop.eup %11857  ;;  %11863 = vrsqrt.f32 %v5775_v28 }
 0xd04   : > { %v5804_v18 = vmul.f32 %v11858_v26, %v15907_v51  ;;  %v5805_v43 = vmul.f32 %v11858_v26, %v15910_v20  ;;  %v5722_v22 = vpop.xlane.xlu0 %5721 }
 0xd05   : > { %v11860_v34 = vpop.eup %11859  ;;  %v5760_v59 = vmul.f32 0.00390625, %v5722_v22  ;;  %v11239_v22 = vld [vmem:[#allocation7 + $0x70] ss:$48 sps:$4 sm:$0xff]  }
 0xd06   : > { %v5806_v23 = vmul.f32 %v11860_v34, %v15915_v3  ;;  %v5807_v29 = vmul.f32 %v11860_v34, %v15920_v60  ;;  %v5725_v57 = vpop.xlane.xlu1 %5724  ;;  %v5847_v30 = vmul.f32 %v16070_v5, %v5804_v18  ;;  %v5848_v35 = vmul.f32 %v16073_v32, %v5805_v43  ;;  %v11242_v34 = vld [vmem:[#allocation7 + $0x78] ss:$48 sps:$4 sm:$0xff]  }
 0xd07   : > { %v5776_v56 = vadd.f32 1e-05, %v5760_v59  ;;  %v5761_v54 = vmul.f32 0.00390625, %v5725_v57 }
 0xd08   : > { %v5849_v41 = vmul.f32 %v16070_v5, %v5806_v23  ;;  %v5850_v31 = vmul.f32 %v16073_v32, %v5807_v29  ;;  %v11247_v29 = vld [vmem:[#allocation7 + $0xd4] ss:$48 sps:$4 sm:$0xff]  }
 0xd09   : > { %11865 = vrsqrt.f32 %v5776_v56  ;;  %v5777_v25 = vadd.f32 1e-05, %v5761_v54 }
 0xd0a   : > { %v16083_v40 = vpack.c.bf16 %v5849_v41, %v5847_v30  ;;  %v16085_v14 = vpack.c.bf16 %v5850_v31, %v5848_v35 }
 0xd0b   : > { %v11862_v8 = vpop.eup %11861  ;;  %11867 = vrsqrt.f32 %v5777_v25  ;;  %v11250_v25 = vld [vmem:[#allocation7 + $0xdc] ss:$48 sps:$4 sm:$0xff]  }
 0xd0c   : > { %v5808_v21 = vmul.f32 %v11862_v8, %v15927_v58  ;;  %v5809_v52 = vmul.f32 %v11862_v8, %v15930_v13  ;;  %7143 = vmatprep.mubr.bf16.mxu1 %v16085_v14  ;;  %v5728_v44 = vpop.xlane.xlu0 %5727  ;;  %7256 = vmatprep.mubr.bf16.mxu0 %v16085_v14  ;;  %v11245_v8 = vld [vmem:[#allocation7 + $0xd0] ss:$48 sps:$4 sm:$0xff]  }
 0xd0d   : > { %v11864_v19 = vpop.eup %11863  ;;  %v5762_v28 = vmul.f32 0.00390625, %v5728_v44  ;;  %7144 = vmatmul.mubr.bf16.vlgmr.msra.gmra.mrb[96].mxu1 %v16083_v40  ;;  %7257 = vmatmul.mubr.bf16.vlgmr.msra.gmra.mrb[160].mxu0 %v16083_v40  ;;  %v11256_v44 = vld [vmem:[#allocation7 + $0x13c] ss:$48 sps:$4 sm:$0xff]  }
 0xd0e   : > { %v5810_v26 = vmul.f32 %v11864_v19, %v15935_v12  ;;  %v5811_v18 = vmul.f32 %v11864_v19, %v15940_v48  ;;  %v5731_v43 = vpop.xlane.xlu1 %5730  ;;  %7338 = vmatpush1.bf16.msra.mxu1 %v11233_v39  ;;  %7451 = vmatpush1.bf16.msra.mxu0 %v11236_v15  ;;  %v5851_v57 = vmul.f32 %v16070_v5, %v5808_v21  ;;  %v11248_v15 = vld [vmem:[#allocation7 + $0xd8] ss:$48 sps:$4 sm:$0xff]  }
 0xd0f   : > { %v5778_v59 = vadd.f32 1e-05, %v5762_v28  ;;  %v5763_v23 = vmul.f32 0.00390625, %v5731_v43  ;;  %7339 = vmatprep.subr.bf16.mxu1 %v11241_v49  ;;  %v5852_v56 = vmul.f32 %v16073_v32, %v5809_v52  ;;  %7452 = vmatprep.subr.bf16.mxu0 %v11244_v36  ;;  %v11253_v52 = vld [vmem:[#allocation7 + $0x134] ss:$48 sps:$4 sm:$0xff]  }
 0xd10   : > { %v5853_v54 = vmul.f32 %v16070_v5, %v5810_v26  ;;  %v5854_v30 = vmul.f32 %v16073_v32, %v5811_v18  ;;  %v11251_v18 = vld [vmem:[#allocation7 + $0x130] ss:$48 sps:$4 sm:$0xff]   ;;  %v11254_v43 = vld [vmem:[#allocation7 + $0x138] ss:$48 sps:$4 sm:$0xff]  }
 0xd11   : > { %11869 = vrsqrt.f32 %v5778_v59  ;;  %v5779_v35 = vadd.f32 1e-05, %v5763_v23 }
 0xd12   : > { %v16099_v41 = vpack.c.bf16 %v5853_v54, %v5851_v57  ;;  %v16101_v31 = vpack.c.bf16 %v5854_v30, %v5852_v56  ;;  %7340 = vmatpush1.bf16.msra.mxu1 %v11239_v22  ;;  %7453 = vmatpush1.bf16.msra.mxu0 %v11242_v34  ;;  %v11259_v57 = vld [vmem:[#allocation7 + $0x194] ss:$48 sps:$4 sm:$0xff]   ;;  %v11257_v54 = vld [vmem:[#allocation7 + $0x190] ss:$48 sps:$4 sm:$0xff]   ;;  %v11262_v30 = vld [vmem:[#allocation7 + $0x19c] ss:$48 sps:$4 sm:$0xff]  }
 0xd13   : > { %v11866_v39 = vpop.eup %11865  ;;  %11871 = vrsqrt.f32 %v5779_v35  ;;  %7341 = vmatprep.subr.bf16.mxu1 %v11247_v29  ;;  %7454 = vmatprep.subr.bf16.mxu0 %v11250_v25 }
 0xd14   : > { %v5812_v49 = vmul.f32 %v11866_v39, %v15947_v6  ;;  %v5813_v21 = vmul.f32 %v11866_v39, %v15950_v16  ;;  %7153 = vmatprep.mubr.bf16.mxu1 %v16101_v31  ;;  %7266 = vmatprep.mubr.bf16.mxu0 %v16101_v31  ;;  %v11260_v39 = vld [vmem:[#allocation7 + $0x198] ss:$48 sps:$4 sm:$0xff]  }
 0xd15   : > { %v11868_v36 = vpop.eup %11867  ;;  %7154 = vmatmul.mubr.bf16.gmra.mrb[100].mxu1 %v16099_v41  ;;  %7267 = vmatmul.mubr.bf16.gmra.mrb[164].mxu0 %v16099_v41 }
 0xd16   : > { %v5814_v19 = vmul.f32 %v11868_v36, %v15955_v38  ;;  %v5815_v28 = vmul.f32 %v11868_v36, %v15960_v0  ;;  %v5855_v26 = vmul.f32 %v16070_v5, %v5812_v49  ;;  %7342 = vmatpush1.bf16.msra.mxu1 %v11245_v8  ;;  %7455 = vmatpush1.bf16.msra.mxu0 %v11248_v15  ;;  %v11265_v8 = vld [vmem:[#allocation7 + $0x1f4] ss:$48 sps:$4 sm:$0xff]   ;;  %v11268_v49 = vld [vmem:[#allocation7 + $0x1fc] ss:$48 sps:$4 sm:$0xff]   ;;  %v11263_v36 = vld [vmem:[#allocation7 + $0x1f0] ss:$48 sps:$4 sm:$0xff]  }
 0xd17   : > { %v5856_v22 = vmul.f32 %v16073_v32, %v5813_v21  ;;  %7343 = vmatprep.subr.bf16.mxu1 %v11253_v52  ;;  %7456 = vmatprep.subr.bf16.mxu0 %v11256_v44 }
 0xd18   : > { %v5857_v34 = vmul.f32 %v16070_v5, %v5814_v19  ;;  %v5858_v59 = vmul.f32 %v16073_v32, %v5815_v28 }
 0xd1a   : > { %v16115_v23 = vpack.c.bf16 %v5857_v34, %v5855_v26  ;;  %v16117_v29 = vpack.c.bf16 %v5858_v59, %v5856_v22  ;;  %7344 = vmatpush1.bf16.msra.mxu1 %v11251_v18  ;;  %7457 = vmatpush1.bf16.msra.mxu0 %v11254_v43  ;;  %v11266_v22 = vld [vmem:[#allocation7 + $0x1f8] ss:$48 sps:$4 sm:$0xff]   ;;  %v11271_v34 = vld [vmem:[#allocation7 + $0x254] ss:$48 sps:$4 sm:$0xff]   ;;  %v11269_v59 = vld [vmem:[#allocation7 + $0x250] ss:$48 sps:$4 sm:$0xff]  }
 0xd1b   : > { %v11870_v56 = vpop.eup %11869  ;;  %7345 = vmatprep.subr.bf16.mxu1 %v11259_v57  ;;  %7458 = vmatprep.subr.bf16.mxu0 %v11262_v30  ;;  %v11274_v57 = vld [vmem:[#allocation7 + $0x25c] ss:$48 sps:$4 sm:$0xff]   ;;  %v11275_v30 = vld [vmem:[#allocation7 + $0x2b0] ss:$48 sps:$4 sm:$0xff]  }
 0xd1c   : > { %v5816_v35 = vmul.f32 %v11870_v56, %v15967_v10  ;;  %v5817_v25 = vmul.f32 %v11870_v56, %v15970_v55  ;;  %7163 = vmatprep.mubr.bf16.mxu1 %v16117_v29  ;;  %7276 = vmatprep.mubr.bf16.mxu0 %v16117_v29  ;;  %v11277_v56 = vld [vmem:[#allocation7 + $0x2b4] ss:$48 sps:$4 sm:$0xff]  }
 0xd1d   : > { %v11872_v15 = vpop.eup %11871  ;;  %7164 = vmatmul.mubr.bf16.gmra.mrb[104].mxu1 %v16115_v23  ;;  %7277 = vmatmul.mubr.bf16.gmra.mrb[168].mxu0 %v16115_v23 }
 0xd1e   : > { %v5818_v21 = vmul.f32 %v11872_v15, %v15975_v45  ;;  %v5819_v52 = vmul.f32 %v11872_v15, %v15980_v17  ;;  %v5859_v44 = vmul.f32 %v16070_v5, %v5816_v35  ;;  %7346 = vmatpush1.bf16.msra.mxu1 %v11257_v54  ;;  %v5860_v19 = vmul.f32 %v16073_v32, %v5817_v25  ;;  %v11272_v54 = vld [vmem:[#allocation7 + $0x258] ss:$48 sps:$4 sm:$0xff]   ;;  %v11280_v35 = vld [vmem:[#allocation7 + $0x2bc] ss:$48 sps:$4 sm:$0xff]   ;;  %v11283_v25 = vld [vmem:[#allocation7 + $0x314] ss:$48 sps:$4 sm:$0xff]  }
 0xd1f   : > { %7459 = vmatpush1.bf16.msra.mxu0 %v11260_v39  ;;  %7347 = vmatprep.subr.bf16.mxu1 %v11265_v8  ;;  %v11278_v39 = vld [vmem:[#allocation7 + $0x2b8] ss:$48 sps:$4 sm:$0xff]   ;;  %v11281_v8 = vld [vmem:[#allocation7 + $0x310] ss:$48 sps:$4 sm:$0xff]   ;;  %v11286_v15 = vld [vmem:[#allocation7 + $0x31c] ss:$48 sps:$4 sm:$0xff]  }
 0xd20   : > { %v5861_v28 = vmul.f32 %v16070_v5, %v5818_v21  ;;  %v5862_v26 = vmul.f32 %v16073_v32, %v5819_v52  ;;  %7460 = vmatprep.subr.bf16.mxu0 %v11268_v49  ;;  %v11289_v49 = vld [vmem:[#allocation7 + $0x374] ss:$48 sps:$4 sm:$0xff]   ;;  %v11284_v21 = vld [vmem:[#allocation7 + $0x318] ss:$48 sps:$4 sm:$0xff]   ;;  %v11287_v52 = vld [vmem:[#allocation7 + $0x370] ss:$48 sps:$4 sm:$0xff]  }
 0xd22   : > { %v16131_v18 = vpack.c.bf16 %v5861_v28, %v5859_v44  ;;  %v16133_v43 = vpack.c.bf16 %v5862_v26, %v5860_v19  ;;  %7348 = vmatpush1.bf16.msra.mxu1 %v11263_v36  ;;  %v11292_v44 = vld [vmem:[#allocation7 + $0x37c] ss:$48 sps:$4 sm:$0xff]   ;;  %v11295_v19 = vld [vmem:[#allocation7 + $0x3d4] ss:$48 sps:$4 sm:$0xff]  }
 0xd23   : > { %7461 = vmatpush1.bf16.msra.mxu0 %v11266_v22  ;;  %7349 = vmatprep.subr.bf16.mxu1 %v11271_v34  ;;  %v11290_v22 = vld [vmem:[#allocation7 + $0x378] ss:$48 sps:$4 sm:$0xff]   ;;  %v11298_v34 = vld [vmem:[#allocation7 + $0x3dc] ss:$48 sps:$4 sm:$0xff]  }
 0xd24   : > { %7173 = vmatprep.mubr.bf16.mxu1 %v16133_v43  ;;  %7286 = vmatprep.mubr.bf16.mxu0 %v16133_v43 }
 0xd25   : > { %7174 = vmatmul.mubr.bf16.gmra.mrb[108].mxu1 %v16131_v18  ;;  %7287 = vmatmul.mubr.bf16.gmra.mrb[172].mxu0 %v16131_v18 }
 0xd26   : > { %7462 = vmatprep.subr.bf16.mxu0 %v11274_v57  ;;  %7350 = vmatpush1.bf16.msra.mxu1 %v11269_v59 }
 0xd27   : > { %7351 = vmatprep.subr.bf16.mxu1 %v11277_v56  ;;  %7463 = vmatpush1.bf16.msra.mxu0 %v11272_v54  ;;  %v11293_v56 = vld [vmem:[#allocation7 + $0x3d0] ss:$48 sps:$4 sm:$0xff]   ;;  %v11301_v54 = vld [vmem:[#allocation7 + $0x434] ss:$48 sps:$4 sm:$0xff]  }
 0xd28   : > { %7464 = vmatprep.subr.bf16.mxu0 %v11280_v35  ;;  %v11296_v35 = vld [vmem:[#allocation7 + $0x3d8] ss:$48 sps:$4 sm:$0xff]  }
 0xd2a   : > { %7352 = vmatpush1.bf16.msra.mxu1 %v11275_v30 }
 0xd2b   : > { %7353 = vmatprep.subr.bf16.mxu1 %v11283_v25  ;;  %7465 = vmatpush1.bf16.msra.mxu0 %v11278_v39  ;;  %v11299_v25 = vld [vmem:[#allocation7 + $0x430] ss:$48 sps:$4 sm:$0xff]   ;;  %v11304_v39 = vld [vmem:[#allocation7 + $0x43c] ss:$48 sps:$4 sm:$0xff]  }
 0xd2c   : > { %7466 = vmatprep.subr.bf16.mxu0 %v11286_v15  ;;  %v11307_v15 = vld [vmem:[#allocation7 + $0x494] ss:$48 sps:$4 sm:$0xff]  }
 0xd2e   : > { %7354 = vmatpush1.bf16.msra.mxu1 %v11281_v8 }
 0xd2f   : > { %7355 = vmatprep.subr.bf16.mxu1 %v11289_v49  ;;  %7467 = vmatpush1.bf16.msra.mxu0 %v11284_v21 }
 0xd30   : > { %v5734_v36 = vpop.xlane.xlu0 %5733  ;;  %7468 = vmatprep.subr.bf16.mxu0 %v11292_v44  ;;  %v11302_v44 = vld [vmem:[#allocation7 + $0x438] ss:$48 sps:$4 sm:$0xff]  }
 0xd31   : > { %v5764_v28 = vmul.f32 0.00390625, %v5734_v36 }
 0xd32   : > { %v5737_v26 = vpop.xlane.xlu1 %5736  ;;  %7356 = vmatpush1.bf16.msra.mxu1 %v11287_v52  ;;  %v11310_v52 = vld [vmem:[#allocation7 + $0x49c] ss:$48 sps:$4 sm:$0xff]  }
 0xd33   : > { %v5780_v59 = vadd.f32 1e-05, %v5764_v28  ;;  %v5765_v57 = vmul.f32 0.00390625, %v5737_v26  ;;  %7357 = vmatprep.subr.bf16.mxu1 %v11295_v19  ;;  %7469 = vmatpush1.bf16.msra.mxu0 %v11290_v22  ;;  %v11305_v28 = vld [vmem:[#allocation7 + $0x490] ss:$48 sps:$4 sm:$0xff]  }
 0xd34   : > { %7470 = vmatprep.subr.bf16.mxu0 %v11298_v34  ;;  %v11313_v26 = vld [vmem:[#allocation7 + $0x4f4] ss:$48 sps:$4 sm:$0xff]   ;;  %v11308_v34 = vld [vmem:[#allocation7 + $0x498] ss:$48 sps:$4 sm:$0xff]  }
 0xd35   : > { %11873 = vrsqrt.f32 %v5780_v59  ;;  %v5781_v30 = vadd.f32 1e-05, %v5765_v57  ;;  %v11311_v57 = vld [vmem:[#allocation7 + $0x4f0] ss:$48 sps:$4 sm:$0xff]  }
 0xd36   : > { %7358 = vmatpush1.bf16.msra.mxu1 %v11293_v56  ;;  %v11316_v56 = vld [vmem:[#allocation7 + $0x4fc] ss:$48 sps:$4 sm:$0xff]  }
 0xd37   : > { %11875 = vrsqrt.f32 %v5781_v30  ;;  %7359 = vmatprep.subr.bf16.mxu1 %v11301_v54  ;;  %7471 = vmatpush1.bf16.msra.mxu0 %v11296_v35 }
 0xd38   : > { %v5740_v8 = vpop.xlane.xlu0 %5739  ;;  %7472 = vmatprep.subr.bf16.mxu0 %v11304_v39 }
 0xd39   : > { %v5766_v49 = vmul.f32 0.00390625, %v5740_v8 }
 0xd3a   : > { %v5743_v21 = vpop.xlane.xlu1 %5742  ;;  %7360 = vmatpush1.bf16.msra.mxu1 %v11299_v25  ;;  %v11319_v25 = vld [vmem:[#allocation7 + $0x554] ss:$48 sps:$4 sm:$0xff]  }
 0xd3b   : > { %v5782_v36 = vadd.f32 1e-05, %v5766_v49  ;;  %v5767_v19 = vmul.f32 0.00390625, %v5743_v21  ;;  %7361 = vmatprep.subr.bf16.mxu1 %v11307_v15  ;;  %7473 = vmatpush1.bf16.msra.mxu0 %v11302_v44  ;;  %v11314_v44 = vld [vmem:[#allocation7 + $0x4f8] ss:$48 sps:$4 sm:$0xff]  }
 0xd3c   : > { %7474 = vmatprep.subr.bf16.mxu0 %v11310_v52  ;;  %v11317_v52 = vld [vmem:[#allocation7 + $0x550] ss:$48 sps:$4 sm:$0xff]  }
 0xd3d   : > { %11877 = vrsqrt.f32 %v5782_v36  ;;  %v5783_v22 = vadd.f32 1e-05, %v5767_v19 }
 0xd3e   : > { %7362 = vmatpush1.bf16.msra.mxu1 %v11305_v28  ;;  %v11322_v28 = vld [vmem:[#allocation7 + $0x55c] ss:$48 sps:$4 sm:$0xff]  }
 0xd3f   : > { %v11874_v59 = vpop.eup %11873  ;;  %11879 = vrsqrt.f32 %v5783_v22  ;;  %7363 = vmatprep.subr.bf16.mxu1 %v11313_v26  ;;  %7475 = vmatpush1.bf16.msra.mxu0 %v11308_v34 }
 0xd40   : > { %v5820_v54 = vmul.f32 %v11874_v59, %v15987_v11  ;;  %v5821_v30 = vmul.f32 %v11874_v59, %v15990_v24  ;;  %v5746_v35 = vpop.xlane.xlu0 %5745  ;;  %7476 = vmatprep.subr.bf16.mxu0 %v11316_v56 }
 0xd41   : > { %v11876_v39 = vpop.eup %11875  ;;  %v5768_v8 = vmul.f32 0.00390625, %v5746_v35 }
 0xd42   : > { %v5822_v15 = vmul.f32 %v11876_v39, %v15995_v50  ;;  %v5823_v49 = vmul.f32 %v11876_v39, %v16000_v53  ;;  %v5749_v21 = vpop.xlane.xlu1 %5748  ;;  %7364 = vmatpush1.bf16.msra.mxu1 %v11311_v57  ;;  %v5863_v22 = vmul.f32 %v16070_v5, %v5820_v54  ;;  %v5864_v26 = vmul.f32 %v16073_v32, %v5821_v30  ;;  %v11325_v57 = vld [vmem:[#allocation7 + $0x5b4] ss:$48 sps:$4 sm:$0xff]   ;;  %v11328_v54 = vld [vmem:[#allocation7 + $0x5bc] ss:$48 sps:$4 sm:$0xff]  }
 0xd43   : > { %v5784_v36 = vadd.f32 1e-05, %v5768_v8  ;;  %v5769_v19 = vmul.f32 0.00390625, %v5749_v21  ;;  %7365 = vmatprep.subr.bf16.mxu1 %v11319_v25  ;;  %7477 = vmatpush1.bf16.msra.mxu0 %v11314_v44  ;;  %v11320_v8 = vld [vmem:[#allocation7 + $0x558] ss:$48 sps:$4 sm:$0xff]  }
 0xd44   : > { %v5865_v59 = vmul.f32 %v16070_v5, %v5822_v15  ;;  %v5866_v35 = vmul.f32 %v16073_v32, %v5823_v49  ;;  %7478 = vmatprep.subr.bf16.mxu0 %v11322_v28  ;;  %v11323_v49 = vld [vmem:[#allocation7 + $0x5b0] ss:$48 sps:$4 sm:$0xff]   ;;  %v11331_v44 = vld [vmem:[#allocation7 + $0x24] ss:$48 sps:$4 sm:$0xff]  }
 0xd45   : > { %11881 = vrsqrt.f32 %v5784_v36  ;;  %v5785_v39 = vadd.f32 1e-05, %v5769_v19 }
 0xd46   : > { %v16147_v53 = vpack.c.bf16 %v5865_v59, %v5863_v22  ;;  %v16149_v34 = vpack.c.bf16 %v5866_v35, %v5864_v26  ;;  %7366 = vmatpush1.bf16.msra.mxu1 %v11317_v52  ;;  %v11326_v22 = vld [vmem:[#allocation7 + $0x5b8] ss:$48 sps:$4 sm:$0xff]   ;;  %v11334_v35 = vld [vmem:[#allocation7 + $0x2c] ss:$48 sps:$4 sm:$0xff]  }
 0xd47   : > { %v11878_v56 = vpop.eup %11877  ;;  %11883 = vrsqrt.f32 %v5785_v39  ;;  %7479 = vmatpush1.bf16.msra.mxu0 %v11320_v8  ;;  %7367 = vmatprep.subr.bf16.mxu1 %v11325_v57 }
 0xd48   : > { %v5824_v30 = vmul.f32 %v11878_v56, %v16007_v7  ;;  %v5825_v15 = vmul.f32 %v11878_v56, %v16010_v47  ;;  %7183 = vmatprep.mubr.bf16.mxu1 %v16149_v34  ;;  %7296 = vmatprep.mubr.bf16.mxu0 %v16149_v34  ;;  %v5752_v25 = vpop.xlane.xlu0 %5751 }
 0xd49   : > { %v11880_v21 = vpop.eup %11879  ;;  %v5770_v36 = vmul.f32 0.00390625, %v5752_v25  ;;  %7184 = vmatmul.mubr.bf16.gmra.mrb[112].mxu1 %v16147_v53  ;;  %7297 = vmatmul.mubr.bf16.gmra.mrb[176].mxu0 %v16147_v53 }
 0xd4a   : > { %v5826_v52 = vmul.f32 %v11880_v21, %v16015_v1  ;;  %v5827_v19 = vmul.f32 %v11880_v21, %v16020_v4  ;;  %v5755_v28 = vpop.xlane.xlu1 %5754  ;;  %7480 = vmatprep.subr.bf16.mxu0 %v11328_v54  ;;  %v5867_v39 = vmul.f32 %v16070_v5, %v5824_v30  ;;  %v5868_v56 = vmul.f32 %v16073_v32, %v5825_v15 }
 0xd4b   : > { %v5786_v26 = vadd.f32 1e-05, %v5770_v36  ;;  %v5771_v59 = vmul.f32 0.00390625, %v5755_v28  ;;  %7368 = vmatpush1.bf16.msra.mxu1 %v11323_v49  ;;  %7481 = vmatpush1.bf16.msra.mxu0 %v11326_v22 }
 0xd4c   : > { %v5869_v25 = vmul.f32 %v16070_v5, %v5826_v52  ;;  %v5870_v47 = vmul.f32 %v16073_v32, %v5827_v19  ;;  %7563 = vmatprep.subr.bf16.mxu1 %v11331_v44  ;;  %7676 = vmatprep.subr.bf16.mxu0 %v11334_v35 }
 0xd4d   : > { %11885 = vrsqrt.f32 %v5786_v26  ;;  %v5787_v1 = vadd.f32 1e-05, %v5771_v59 }
 0xd4e   : > { %v16163_v21 = vpack.c.bf16 %v5869_v25, %v5867_v39  ;;  %v16165_v8 = vpack.c.bf16 %v5870_v47, %v5868_v56 }
 0xd4f   : > { %v11882_v57 = vpop.eup %11881  ;;  %11887 = vrsqrt.f32 %v5787_v1 }
 0xd50   : > { %v5828_v54 = vmul.f32 %v11882_v57, %v16027_v61  ;;  %v5829_v30 = vmul.f32 %v11882_v57, %v16030_v9  ;;  %7193 = vmatprep.mubr.bf16.mxu1 %v16165_v8  ;;  %7306 = vmatprep.mubr.bf16.mxu0 %v16165_v8 }
 0xd51   : > { %v11884_v15 = vpop.eup %11883  ;;  %7194 = vmatmul.mubr.bf16.gmra.mrb[116].mxu1 %v16163_v21  ;;  %7307 = vmatmul.mubr.bf16.gmra.mrb[180].mxu0 %v16163_v21 }
 0xd52   : > { %v5830_v47 = vmul.f32 %v11884_v15, %v16035_v63  ;;  %v5831_v49 = vmul.f32 %v11884_v15, %v16040_v2  ;;  %v5871_v1 = vmul.f32 %v16070_v5, %v5828_v54  ;;  %v5872_v36 = vmul.f32 %v16073_v32, %v5829_v30 }
 0xd54   : > { %v5873_v44 = vmul.f32 %v16070_v5, %v5830_v47  ;;  %v5874_v52 = vmul.f32 %v16073_v32, %v5831_v49  ;;  %v11329_v49 = vld [vmem:[#allocation7 + $0x20] ss:$48 sps:$4 sm:$0xff]  }
 0xd56   : > { %v16179_v19 = vpack.c.bf16 %v5873_v44, %v5871_v1  ;;  %v16181_v28 = vpack.c.bf16 %v5874_v52, %v5872_v36  ;;  %v11337_v1 = vld [vmem:[#allocation7 + $0x84] ss:$48 sps:$4 sm:$0xff]   ;;  %v11335_v36 = vld [vmem:[#allocation7 + $0x80] ss:$48 sps:$4 sm:$0xff]   ;;  %v11338_v44 = vld [vmem:[#allocation7 + $0x88] ss:$48 sps:$4 sm:$0xff]  }
 0xd57   : > { %v11886_v22 = vpop.eup %11885  ;;  %v11343_v52 = vld [vmem:[#allocation7 + $0xe4] ss:$48 sps:$4 sm:$0xff]  }
 0xd58   : > { %v5832_v26 = vmul.f32 %v11886_v22, %v16047_v46  ;;  %v5833_v59 = vmul.f32 %v11886_v22, %v16050_v27  ;;  %7203 = vmatprep.mubr.bf16.mxu1 %v16181_v28  ;;  %7316 = vmatprep.mubr.bf16.mxu0 %v16181_v28  ;;  %v11346_v22 = vld [vmem:[#allocation7 + $0xec] ss:$48 sps:$4 sm:$0xff]  }
 0xd59   : > { %v11888_v35 = vpop.eup %11887  ;;  %7204 = vmatmul.mubr.bf16.gmra.mrb[120].mxu1 %v16179_v19  ;;  %7317 = vmatmul.mubr.bf16.gmra.mrb[184].mxu0 %v16179_v19 }
 0xd5a   : > { %v5834_v39 = vmul.f32 %v11888_v35, %v16055_v33  ;;  %v5835_v56 = vmul.f32 %v11888_v35, %v16060_v37  ;;  %v5875_v25 = vmul.f32 %v16070_v5, %v5832_v26  ;;  %v5876_v57 = vmul.f32 %v16073_v32, %v5833_v59  ;;  %v11341_v26 = vld [vmem:[#allocation7 + $0xe0] ss:$48 sps:$4 sm:$0xff]   ;;  %v11344_v59 = vld [vmem:[#allocation7 + $0xe8] ss:$48 sps:$4 sm:$0xff]   ;;  %v11349_v35 = vld [vmem:[#allocation7 + $0x144] ss:$48 sps:$4 sm:$0xff]  }
 0xd5c   : > { %v5877_v54 = vmul.f32 %v16070_v5, %v5834_v39  ;;  %v5878_v30 = vmul.f32 %v16073_v32, %v5835_v56  ;;  %v11332_v5 = vld [vmem:[#allocation7 + $0x28] ss:$48 sps:$4 sm:$0xff]   ;;  %v11340_v32 = vld [vmem:[#allocation7 + $0x8c] ss:$48 sps:$4 sm:$0xff]   ;;  %v11347_v56 = vld [vmem:[#allocation7 + $0x140] ss:$48 sps:$4 sm:$0xff]  }
 0xd5d   : > { %v11352_v39 = vld [vmem:[#allocation7 + $0x14c] ss:$48 sps:$4 sm:$0xff]  }
 0xd5e   : > { %v16195_v15 = vpack.c.bf16 %v5877_v54, %v5875_v25  ;;  %v16197_v47 = vpack.c.bf16 %v5878_v30, %v5876_v57  ;;  %v11350_v25 = vld [vmem:[#allocation7 + $0x148] ss:$48 sps:$4 sm:$0xff]   ;;  %v11355_v57 = vld [vmem:[#allocation7 + $0x1a4] ss:$48 sps:$4 sm:$0xff]   ;;  %v11358_v54 = vld [vmem:[#allocation7 + $0x1ac] ss:$48 sps:$4 sm:$0xff]  }
 0xd5f   : > { %v11353_v30 = vld [vmem:[#allocation7 + $0x1a0] ss:$48 sps:$4 sm:$0xff]  }
 0xd60   : > { %7213 = vmatprep.mubr.bf16.mxu1 %v16197_v47  ;;  %7326 = vmatprep.mubr.bf16.mxu0 %v16197_v47 }
 0xd61   : > { %7214 = vmatmul.mubr.bf16.gmra.mrb[124].mxu1 %v16195_v15  ;;  %7327 = vmatmul.mubr.bf16.gmra.mrb[188].mxu0 %v16195_v15 }
 0xd62   : > { %7369 = vmatprep.mubr.bf16.mxu1 %v16085_v14  ;;  %7482 = vmatprep.mubr.bf16.mxu0 %v16085_v14 }
 0xd69   : > { %7370 = vmatmul.mubr.bf16.vlgmr.msra.gmra.mrb[128].mxu1 %v16083_v40  ;;  %7483 = vmatmul.mubr.bf16.vlgmr.msra.gmra.mrb[192].mxu0 %v16083_v40 }
 0xd6a   : > { %7564 = vmatpush1.bf16.msra.mxu1 %v11329_v49  ;;  %7379 = vmatprep.mubr.bf16.mxu1 %v16101_v31  ;;  %v11356_v49 = vld [vmem:[#allocation7 + $0x1a8] ss:$48 sps:$4 sm:$0xff]  }
 0xd6b   : > { %7492 = vmatprep.mubr.bf16.mxu0 %v16101_v31  ;;  %7677 = vmatpush1.bf16.msra.mxu0 %v11332_v5  ;;  %v11361_v5 = vld [vmem:[#allocation7 + $0x204] ss:$48 sps:$4 sm:$0xff]  }
 0xd6c   : > { %7565 = vmatprep.subr.bf16.mxu1 %v11337_v1  ;;  %7678 = vmatprep.subr.bf16.mxu0 %v11340_v32  ;;  %v11364_v1 = vld [vmem:[#allocation7 + $0x20c] ss:$48 sps:$4 sm:$0xff]   ;;  %v11359_v32 = vld [vmem:[#allocation7 + $0x200] ss:$48 sps:$4 sm:$0xff]  }
 0xd6e   : > { %7566 = vmatpush1.bf16.msra.mxu1 %v11335_v36  ;;  %v11362_v36 = vld [vmem:[#allocation7 + $0x208] ss:$48 sps:$4 sm:$0xff]  }
 0xd6f   : > { %7679 = vmatpush1.bf16.msra.mxu0 %v11338_v44  ;;  %7567 = vmatprep.subr.bf16.mxu1 %v11343_v52  ;;  %v11367_v44 = vld [vmem:[#allocation7 + $0x264] ss:$48 sps:$4 sm:$0xff]   ;;  %v11370_v52 = vld [vmem:[#allocation7 + $0x26c] ss:$48 sps:$4 sm:$0xff]  }
 0xd70   : > { %7680 = vmatprep.subr.bf16.mxu0 %v11346_v22  ;;  %v11365_v22 = vld [vmem:[#allocation7 + $0x260] ss:$48 sps:$4 sm:$0xff]  }
 0xd71   : > { %7380 = vmatmul.mubr.bf16.gmra.mrb[132].mxu1 %v16099_v41  ;;  %7493 = vmatmul.mubr.bf16.gmra.mrb[196].mxu0 %v16099_v41 }
 0xd72   : > { %7568 = vmatpush1.bf16.msra.mxu1 %v11341_v26  ;;  %7389 = vmatprep.mubr.bf16.mxu1 %v16117_v29  ;;  %v11368_v26 = vld [vmem:[#allocation7 + $0x268] ss:$48 sps:$4 sm:$0xff]  }
 0xd73   : > { %7502 = vmatprep.mubr.bf16.mxu0 %v16117_v29  ;;  %7681 = vmatpush1.bf16.msra.mxu0 %v11344_v59  ;;  %v11373_v59 = vld [vmem:[#allocation7 + $0x2c4] ss:$48 sps:$4 sm:$0xff]  }
 0xd74   : > { %7569 = vmatprep.subr.bf16.mxu1 %v11349_v35  ;;  %7682 = vmatprep.subr.bf16.mxu0 %v11352_v39  ;;  %v11376_v35 = vld [vmem:[#allocation7 + $0x2cc] ss:$48 sps:$4 sm:$0xff]   ;;  %v11371_v39 = vld [vmem:[#allocation7 + $0x2c0] ss:$48 sps:$4 sm:$0xff]  }
 0xd76   : > { %7570 = vmatpush1.bf16.msra.mxu1 %v11347_v56  ;;  %v11374_v56 = vld [vmem:[#allocation7 + $0x2c8] ss:$48 sps:$4 sm:$0xff]  }
 0xd77   : > { %7683 = vmatpush1.bf16.msra.mxu0 %v11350_v25  ;;  %7571 = vmatprep.subr.bf16.mxu1 %v11355_v57  ;;  %v11379_v25 = vld [vmem:[#allocation7 + $0x324] ss:$48 sps:$4 sm:$0xff]   ;;  %v11382_v57 = vld [vmem:[#allocation7 + $0x32c] ss:$48 sps:$4 sm:$0xff]  }
 0xd78   : > { %7684 = vmatprep.subr.bf16.mxu0 %v11358_v54  ;;  %v11377_v54 = vld [vmem:[#allocation7 + $0x320] ss:$48 sps:$4 sm:$0xff]  }
 0xd79   : > { %7390 = vmatmul.mubr.bf16.gmra.mrb[136].mxu1 %v16115_v23  ;;  %7503 = vmatmul.mubr.bf16.gmra.mrb[200].mxu0 %v16115_v23 }
 0xd7a   : > { %7572 = vmatpush1.bf16.msra.mxu1 %v11353_v30  ;;  %7399 = vmatprep.mubr.bf16.mxu1 %v16133_v43  ;;  %v11380_v30 = vld [vmem:[#allocation7 + $0x328] ss:$48 sps:$4 sm:$0xff]  }
 0xd7b   : > { %7512 = vmatprep.mubr.bf16.mxu0 %v16133_v43  ;;  %7685 = vmatpush1.bf16.msra.mxu0 %v11356_v49  ;;  %v11385_v49 = vld [vmem:[#allocation7 + $0x384] ss:$48 sps:$4 sm:$0xff]  }
 0xd7c   : > { %7573 = vmatprep.subr.bf16.mxu1 %v11361_v5  ;;  %7686 = vmatprep.subr.bf16.mxu0 %v11364_v1  ;;  %v11388_v5 = vld [vmem:[#allocation7 + $0x38c] ss:$48 sps:$4 sm:$0xff]   ;;  %v11383_v1 = vld [vmem:[#allocation7 + $0x380] ss:$48 sps:$4 sm:$0xff]  }
 0xd7e   : > { %7574 = vmatpush1.bf16.msra.mxu1 %v11359_v32  ;;  %v11386_v32 = vld [vmem:[#allocation7 + $0x388] ss:$48 sps:$4 sm:$0xff]  }
 0xd7f   : > { %7687 = vmatpush1.bf16.msra.mxu0 %v11362_v36  ;;  %7575 = vmatprep.subr.bf16.mxu1 %v11367_v44  ;;  %v11391_v36 = vld [vmem:[#allocation7 + $0x3e4] ss:$48 sps:$4 sm:$0xff]   ;;  %v11394_v44 = vld [vmem:[#allocation7 + $0x3ec] ss:$48 sps:$4 sm:$0xff]  }
 0xd80   : > { %7688 = vmatprep.subr.bf16.mxu0 %v11370_v52  ;;  %v11389_v52 = vld [vmem:[#allocation7 + $0x3e0] ss:$48 sps:$4 sm:$0xff]  }
 0xd81   : > { %7400 = vmatmul.mubr.bf16.gmra.mrb[140].mxu1 %v16131_v18  ;;  %7513 = vmatmul.mubr.bf16.gmra.mrb[204].mxu0 %v16131_v18 }
 0xd82   : > { %7576 = vmatpush1.bf16.msra.mxu1 %v11365_v22  ;;  %7409 = vmatprep.mubr.bf16.mxu1 %v16149_v34  ;;  %v11392_v22 = vld [vmem:[#allocation7 + $0x3e8] ss:$48 sps:$4 sm:$0xff]  }
 0xd83   : > { %7522 = vmatprep.mubr.bf16.mxu0 %v16149_v34  ;;  %7689 = vmatpush1.bf16.msra.mxu0 %v11368_v26  ;;  %v11397_v26 = vld [vmem:[#allocation7 + $0x444] ss:$48 sps:$4 sm:$0xff]  }
 0xd84   : > { %7577 = vmatprep.subr.bf16.mxu1 %v11373_v59  ;;  %7690 = vmatprep.subr.bf16.mxu0 %v11376_v35  ;;  %v11400_v59 = vld [vmem:[#allocation7 + $0x44c] ss:$48 sps:$4 sm:$0xff]   ;;  %v11395_v35 = vld [vmem:[#allocation7 + $0x440] ss:$48 sps:$4 sm:$0xff]  }
 0xd86   : > { %7578 = vmatpush1.bf16.msra.mxu1 %v11371_v39  ;;  %v11398_v39 = vld [vmem:[#allocation7 + $0x448] ss:$48 sps:$4 sm:$0xff]  }
 0xd87   : > { %7691 = vmatpush1.bf16.msra.mxu0 %v11374_v56  ;;  %7579 = vmatprep.subr.bf16.mxu1 %v11379_v25  ;;  %v11403_v56 = vld [vmem:[#allocation7 + $0x4a4] ss:$48 sps:$4 sm:$0xff]   ;;  %v11406_v25 = vld [vmem:[#allocation7 + $0x4ac] ss:$48 sps:$4 sm:$0xff]  }
 0xd88   : > { %7692 = vmatprep.subr.bf16.mxu0 %v11382_v57  ;;  %v11401_v57 = vld [vmem:[#allocation7 + $0x4a0] ss:$48 sps:$4 sm:$0xff]  }
 0xd89   : > { %7410 = vmatmul.mubr.bf16.gmra.mrb[144].mxu1 %v16147_v53  ;;  %7523 = vmatmul.mubr.bf16.gmra.mrb[208].mxu0 %v16147_v53 }
 0xd8a   : > { %7580 = vmatpush1.bf16.msra.mxu1 %v11377_v54  ;;  %7419 = vmatprep.mubr.bf16.mxu1 %v16165_v8  ;;  %v11404_v54 = vld [vmem:[#allocation7 + $0x4a8] ss:$48 sps:$4 sm:$0xff]  }
 0xd8b   : > { %7532 = vmatprep.mubr.bf16.mxu0 %v16165_v8  ;;  %7693 = vmatpush1.bf16.msra.mxu0 %v11380_v30  ;;  %v11409_v30 = vld [vmem:[#allocation7 + $0x504] ss:$48 sps:$4 sm:$0xff]  }
 0xd8c   : > { %7581 = vmatprep.subr.bf16.mxu1 %v11385_v49  ;;  %7694 = vmatprep.subr.bf16.mxu0 %v11388_v5  ;;  %v11412_v49 = vld [vmem:[#allocation7 + $0x50c] ss:$48 sps:$4 sm:$0xff]   ;;  %v11407_v5 = vld [vmem:[#allocation7 + $0x500] ss:$48 sps:$4 sm:$0xff]  }
 0xd8e   : > { %7582 = vmatpush1.bf16.msra.mxu1 %v11383_v1  ;;  %v11410_v1 = vld [vmem:[#allocation7 + $0x508] ss:$48 sps:$4 sm:$0xff]  }
 0xd8f   : > { %7695 = vmatpush1.bf16.msra.mxu0 %v11386_v32  ;;  %7583 = vmatprep.subr.bf16.mxu1 %v11391_v36  ;;  %v11415_v32 = vld [vmem:[#allocation7 + $0x564] ss:$48 sps:$4 sm:$0xff]   ;;  %v11418_v36 = vld [vmem:[#allocation7 + $0x56c] ss:$48 sps:$4 sm:$0xff]  }
 0xd90   : > { %7696 = vmatprep.subr.bf16.mxu0 %v11394_v44  ;;  %v11413_v44 = vld [vmem:[#allocation7 + $0x560] ss:$48 sps:$4 sm:$0xff]  }
 0xd91   : > { %7420 = vmatmul.mubr.bf16.gmra.mrb[148].mxu1 %v16163_v21  ;;  %7533 = vmatmul.mubr.bf16.gmra.mrb[212].mxu0 %v16163_v21 }
 0xd92   : > { %7584 = vmatpush1.bf16.msra.mxu1 %v11389_v52  ;;  %7429 = vmatprep.mubr.bf16.mxu1 %v16181_v28  ;;  %v11416_v52 = vld [vmem:[#allocation7 + $0x568] ss:$48 sps:$4 sm:$0xff]  }
 0xd93   : > { %7542 = vmatprep.mubr.bf16.mxu0 %v16181_v28  ;;  %7697 = vmatpush1.bf16.msra.mxu0 %v11392_v22  ;;  %v11421_v22 = vld [vmem:[#allocation7 + $0x5c4] ss:$48 sps:$4 sm:$0xff]  }
 0xd94   : > { %7585 = vmatprep.subr.bf16.mxu1 %v11397_v26  ;;  %7698 = vmatprep.subr.bf16.mxu0 %v11400_v59  ;;  %v11424_v26 = vld [vmem:[#allocation7 + $0x5cc] ss:$48 sps:$4 sm:$0xff]   ;;  %v11419_v59 = vld [vmem:[#allocation7 + $0x5c0] ss:$48 sps:$4 sm:$0xff]  }
 0xd96   : > { %7586 = vmatpush1.bf16.msra.mxu1 %v11395_v35  ;;  %v11422_v35 = vld [vmem:[#allocation7 + $0x5c8] ss:$48 sps:$4 sm:$0xff]  }
 0xd97   : > { %7699 = vmatpush1.bf16.msra.mxu0 %v11398_v39  ;;  %7587 = vmatprep.subr.bf16.mxu1 %v11403_v56  ;;  %v11427_v39 = vld [vmem:[#allocation8 + $0x4] ss:$8 sps:$4 sm:$0xff]   ;;  %v11425_v56 = vld [vmem:[#allocation8] ss:$8 sps:$4 sm:$0xff]  }
 0xd98   : > { %7700 = vmatprep.subr.bf16.mxu0 %v11406_v25  ;;  %v11430_v25 = vld [vmem:[#allocation8 + $0x14] ss:$8 sps:$4 sm:$0xff]  }
 0xd99   : > { %7430 = vmatmul.mubr.bf16.gmra.mrb[152].mxu1 %v16179_v19  ;;  %7543 = vmatmul.mubr.bf16.gmra.mrb[216].mxu0 %v16179_v19 }
 0xd9a   : > { %7588 = vmatpush1.bf16.msra.mxu1 %v11401_v57  ;;  %7439 = vmatprep.mubr.bf16.mxu1 %v16197_v47  ;;  %v11428_v57 = vld [vmem:[#allocation8 + $0x10] ss:$8 sps:$4 sm:$0xff]  }
 0xd9b   : > { %7552 = vmatprep.mubr.bf16.mxu0 %v16197_v47  ;;  %7701 = vmatpush1.bf16.msra.mxu0 %v11404_v54  ;;  %v11431_v54 = vld [vmem:[#allocation8 + $0x20] ss:$8 sps:$4 sm:$0xff]  }
 0xd9c   : > { %7589 = vmatprep.subr.bf16.mxu1 %v11409_v30  ;;  %7702 = vmatprep.subr.bf16.mxu0 %v11412_v49  ;;  %v11436_v30 = vld [vmem:[#allocation8 + $0x34] ss:$8 sps:$4 sm:$0xff]   ;;  %v11437_v49 = vld [vmem:[#allocation8 + $0x40] ss:$8 sps:$4 sm:$0xff]  }
 0xd9e   : > { %7590 = vmatpush1.bf16.msra.mxu1 %v11407_v5  ;;  %v11442_v5 = vld [vmem:[#allocation8 + $0x54] ss:$8 sps:$4 sm:$0xff]  }
 0xd9f   : > { %7703 = vmatpush1.bf16.msra.mxu0 %v11410_v1  ;;  %7591 = vmatprep.subr.bf16.mxu1 %v11415_v32  ;;  %v11443_v1 = vld [vmem:[#allocation8 + $0x60] ss:$8 sps:$4 sm:$0xff]   ;;  %v11448_v32 = vld [vmem:[#allocation8 + $0x74] ss:$8 sps:$4 sm:$0xff]  }
 0xda0   : > { %7704 = vmatprep.subr.bf16.mxu0 %v11418_v36  ;;  %v11449_v36 = vld [vmem:[#allocation8 + $0x80] ss:$8 sps:$4 sm:$0xff]  }
 0xda1   : > { %7440 = vmatmul.mubr.bf16.gmra.mrb[156].mxu1 %v16195_v15  ;;  %7553 = vmatmul.mubr.bf16.gmra.mrb[220].mxu0 %v16195_v15 }
 0xda2   : > { %7592 = vmatpush1.bf16.msra.mxu1 %v11413_v44  ;;  %7595 = vmatprep.mubr.bf16.mxu1 %v16085_v14  ;;  %v11454_v44 = vld [vmem:[#allocation8 + $0x94] ss:$8 sps:$4 sm:$0xff]  }
 0xda3   : > { %7705 = vmatpush1.bf16.msra.mxu0 %v11416_v52  ;;  %7708 = vmatprep.mubr.bf16.mxu0 %v16085_v14  ;;  %v11433_v14 = vld [vmem:[#allocation8 + $0x24] ss:$8 sps:$4 sm:$0xff]   ;;  %v11455_v52 = vld [vmem:[#allocation8 + $0xa0] ss:$8 sps:$4 sm:$0xff]  }
 0xda4   : > { %7593 = vmatprep.subr.bf16.mxu1 %v11421_v22  ;;  %7706 = vmatprep.subr.bf16.mxu0 %v11424_v26  ;;  %v11460_v22 = vld [vmem:[#allocation8 + $0xb4] ss:$8 sps:$4 sm:$0xff]   ;;  %v11461_v26 = vld [vmem:[#allocation8 + $0xc0] ss:$8 sps:$4 sm:$0xff]  }
 0xda6   : > { %7594 = vmatpush1.bf16.msra.mxu1 %v11419_v59  ;;  %v18850_v59 = vld [vmem:[#allocation17_spill] sm:$0xff] }
 0xda7   : > { %7707 = vmatpush1.bf16.msra.mxu0 %v11422_v35  ;;  %9193 = vmatprep.subr.bf16.mxu1 %v11427_v39  ;;  %v18409_v35 = vsub.s32 2, %v18850_v59 }
 0xda9   : > { %7596 = vmatmul.mubr.bf16.vlgmr.msra.gmra.mrb[160].mxu1 %v16083_v40 }
 0xdaa   : > { %7709 = vmatmul.mubr.bf16.vlgmr.msra.gmra.mrb[224].mxu0 %v16083_v40  ;;  %7605 = vmatprep.mubr.bf16.mxu1 %v16101_v31  ;;  %v11434_v40 = vld [vmem:[#allocation8 + $0x30] ss:$8 sps:$4 sm:$0xff]  }
 0xdab   : > { %7718 = vmatprep.mubr.bf16.mxu0 %v16101_v31  ;;  %9194 = vmatpush1.bf16.msra.mxu1 %v11425_v56  ;;  %v11439_v31 = vld [vmem:[#allocation8 + $0x44] ss:$8 sps:$4 sm:$0xff]   ;;  %v11466_v56 = vld [vmem:[#allocation8 + $0xd4] ss:$8 sps:$4 sm:$0xff]  }
 0xdac   : > { %9195 = vmatprep.subr.bf16.mxu1 %v11430_v25 }
 0xdaf   : > { %9196 = vmatpush1.bf16.msra.mxu1 %v11428_v57 }
 0xdb0   : > { %9197 = vmatprep.subr.bf16.mxu1 %v11433_v14 }
 0xdb1   : > { %7606 = vmatmul.mubr.bf16.gmra.mrb[164].mxu1 %v16099_v41 }
 0xdb2   : > { %7719 = vmatmul.mubr.bf16.gmra.mrb[228].mxu0 %v16099_v41  ;;  %7615 = vmatprep.mubr.bf16.mxu1 %v16117_v29  ;;  %v11440_v41 = vld [vmem:[#allocation8 + $0x50] ss:$8 sps:$4 sm:$0xff]  }
 0xdb3   : > { %7728 = vmatprep.mubr.bf16.mxu0 %v16117_v29  ;;  %9198 = vmatpush1.bf16.msra.mxu1 %v11431_v54  ;;  %v11445_v29 = vld [vmem:[#allocation8 + $0x64] ss:$8 sps:$4 sm:$0xff]  }
 0xdb4   : > { %9199 = vmatprep.subr.bf16.mxu1 %v11436_v30 }
 0xdb7   : > { %9200 = vmatpush1.bf16.msra.mxu1 %v11434_v40 }
 0xdb8   : > { %9201 = vmatprep.subr.bf16.mxu1 %v11439_v31 }
 0xdb9   : > { %7616 = vmatmul.mubr.bf16.gmra.mrb[168].mxu1 %v16115_v23 }
 0xdba   : > { %7729 = vmatmul.mubr.bf16.gmra.mrb[232].mxu0 %v16115_v23  ;;  %7625 = vmatprep.mubr.bf16.mxu1 %v16133_v43  ;;  %v11446_v23 = vld [vmem:[#allocation8 + $0x70] ss:$8 sps:$4 sm:$0xff]  }
 0xdbb   : > { %7738 = vmatprep.mubr.bf16.mxu0 %v16133_v43  ;;  %9202 = vmatpush1.bf16.msra.mxu1 %v11437_v49  ;;  %v11451_v43 = vld [vmem:[#allocation8 + $0x84] ss:$8 sps:$4 sm:$0xff]  }
 0xdbc   : > { %9203 = vmatprep.subr.bf16.mxu1 %v11442_v5 }
 0xdbf   : > { %9204 = vmatpush1.bf16.msra.mxu1 %v11440_v41 }
 0xdc0   : > { %9205 = vmatprep.subr.bf16.mxu1 %v11445_v29 }
 0xdc1   : > { %7626 = vmatmul.mubr.bf16.gmra.mrb[172].mxu1 %v16131_v18 }
 0xdc2   : > { %7739 = vmatmul.mubr.bf16.gmra.mrb[236].mxu0 %v16131_v18  ;;  %7635 = vmatprep.mubr.bf16.mxu1 %v16149_v34  ;;  %v11452_v18 = vld [vmem:[#allocation8 + $0x90] ss:$8 sps:$4 sm:$0xff]  }
 0xdc3   : > { %7748 = vmatprep.mubr.bf16.mxu0 %v16149_v34  ;;  %9206 = vmatpush1.bf16.msra.mxu1 %v11443_v1  ;;  %v11457_v34 = vld [vmem:[#allocation8 + $0xa4] ss:$8 sps:$4 sm:$0xff]  }
 0xdc4   : > { %9207 = vmatprep.subr.bf16.mxu1 %v11448_v32  ;;  %v11469_v32 = vld [vmem:[#allocation8 + $0xe4] ss:$8 sps:$4 sm:$0xff]  }
 0xdc7   : > { %9208 = vmatpush1.bf16.msra.mxu1 %v11446_v23 }
 0xdc8   : > { %9209 = vmatprep.subr.bf16.mxu1 %v11451_v43 }
 0xdc9   : > { %7636 = vmatmul.mubr.bf16.gmra.mrb[176].mxu1 %v16147_v53 }
 0xdca   : > { %7749 = vmatmul.mubr.bf16.gmra.mrb[240].mxu0 %v16147_v53  ;;  %7645 = vmatprep.mubr.bf16.mxu1 %v16165_v8  ;;  %v11458_v53 = vld [vmem:[#allocation8 + $0xb0] ss:$8 sps:$4 sm:$0xff]  }
 0xdcb   : > { %7758 = vmatprep.mubr.bf16.mxu0 %v16165_v8  ;;  %9210 = vmatpush1.bf16.msra.mxu1 %v11449_v36  ;;  %v11463_v8 = vld [vmem:[#allocation8 + $0xc4] ss:$8 sps:$4 sm:$0xff]  }
 0xdcc   : > { %9211 = vmatprep.subr.bf16.mxu1 %v11454_v44 }
 0xdcf   : > { %9212 = vmatpush1.bf16.msra.mxu1 %v11452_v18 }
 0xdd0   : > { %9213 = vmatprep.subr.bf16.mxu1 %v11457_v34 }
 0xdd1   : > { %7646 = vmatmul.mubr.bf16.gmra.mrb[180].mxu1 %v16163_v21 }
 0xdd2   : > { %7759 = vmatmul.mubr.bf16.gmra.mrb[244].mxu0 %v16163_v21  ;;  %7655 = vmatprep.mubr.bf16.mxu1 %v16181_v28  ;;  %v16268_v21 = vld [vmem:[%s18194_s8] sm:$0xff] }
 0xdd3   : > { %7768 = vmatprep.mubr.bf16.mxu0 %v16181_v28  ;;  %9214 = vmatpush1.bf16.msra.mxu1 %v11455_v52  ;;  %v18408_v28 = vsub.s32 3, %v18850_v59  ;;  %v16274_v39 = vrot.slane %v16268_v21, %v18848_v42  ;;  %v16283_v25 = vrot.slane %v16268_v21, %v18849_v62  ;;  %v11467_v52 = vld [vmem:[#allocation8 + $0xe0] ss:$8 sps:$4 sm:$0xff]   ;;  %v6109_v62 = vsub.s32 4, %v18850_v59 }
 0xdd4   : > { %9215 = vmatprep.subr.bf16.mxu1 %v11460_v22  ;;  %v6117_v42 = vsub.s32 6, %v18850_v59 }
 0xdd5   : > { %v16288_v57 = vrot.slane %v16268_v21, %v18408_v28 }
 0xdd7   : > { %9216 = vmatpush1.bf16.msra.mxu1 %v11458_v53 }
 0xdd8   : > { %9217 = vmatprep.subr.bf16.mxu1 %v11463_v8 }
 0xdd9   : > { %7656 = vmatmul.mubr.bf16.gmra.mrb[184].mxu1 %v16179_v19 }
 0xdda   : > { %7769 = vmatmul.mubr.bf16.gmra.mrb[248].mxu0 %v16179_v19  ;;  %7665 = vmatprep.mubr.bf16.mxu1 %v16197_v47  ;;  %v16279_v19 = vrot.slane %v16268_v21, %v18409_v35  ;;  %v11472_v35 = vld [vmem:[#allocation8 + $0xf4] ss:$8 sps:$4 sm:$0xff]  }
 0xddb   : > { %7778 = vmatprep.mubr.bf16.mxu0 %v16197_v47  ;;  %9218 = vmatpush1.bf16.msra.mxu1 %v11461_v26  ;;  %v11464_v47 = vld [vmem:[#allocation8 + $0xd0] ss:$8 sps:$4 sm:$0xff]  }
 0xddc   : > { %9219 = vmatprep.subr.bf16.mxu1 %v11466_v56 }
 0xddf   : > { %9220 = vmatpush1.bf16.msra.mxu1 %v11464_v47 }
 0xde0   : > { %v7145_v14 = vpop.f32.mrb[96].mxu1  ;;  %v7258_v54 = vpop.f32.mrb[160].mxu0  ;;  %9221 = vmatprep.subr.bf16.mxu1 %v11469_v32  ;;  %v11470_v32 = vld [vmem:[#allocation8 + $0xf0] ss:$8 sps:$4 sm:$0xff]  }
 0xde1   : > { %v16291_v30 = vadd.f32 %v7145_v14, %v16274_v39  ;;  %v16294_v40 = vadd.f32 %v7258_v54, %v16279_v19  ;;  %v7147_v31 = vpop.f32.mrb[97].mxu1  ;;  %v7260_v49 = vpop.f32.mrb[161].mxu0  ;;  %7666 = vmatmul.mubr.bf16.gmra.mrb[188].mxu1 %v16195_v15 }
 0xde2   : > { %v16298_v5 = vadd.f32 %v7147_v31, %v16283_v25  ;;  %v16301_v41 = vadd.f32 %v7260_v49, %v16288_v57  ;;  %7779 = vmatmul.mubr.bf16.gmra.mrb[252].mxu0 %v16195_v15  ;;  %v7149_v29 = vpop.f32.mrb[98].mxu1  ;;  %v7262_v1 = vpop.f32.mrb[162].mxu0 }
 0xde3   : > { %v7789_v23 = vsub.f32 0.0, %v16291_v30  ;;  %v7791_v43 = vsub.f32 0.0, %v16294_v40  ;;  %v16307_v36 = vadd.f32 %v7149_v29, %v16274_v39  ;;  %v16310_v44 = vadd.f32 %v7262_v1, %v16279_v19  ;;  %v7151_v18 = vpop.f32.mrb[99].mxu1  ;;  %v7264_v34 = vpop.f32.mrb[163].mxu0  ;;  %9222 = vmatpush1.bf16.msra.mxu1 %v11467_v52 }
 0xde4   : > { %v7790_v22 = vsub.f32 0.0, %v16298_v5  ;;  %v7792_v15 = vsub.f32 0.0, %v16301_v41  ;;  %v16315_v53 = vadd.f32 %v7151_v18, %v16283_v25  ;;  %v16318_v8 = vadd.f32 %v7264_v34, %v16288_v57  ;;  %9223 = vmatprep.subr.bf16.mxu1 %v11472_v35 }
 0xde5   : > { %v7885_v26 = vmul.f32 1.442695, %v7789_v23  ;;  %v7889_v56 = vmul.f32 1.442695, %v7791_v43  ;;  %v7795_v47 = vsub.f32 0.0, %v16307_v36  ;;  %v7797_v14 = vsub.f32 0.0, %v16310_v44 }
 0xde6   : > { %v7887_v54 = vmul.f32 1.442695, %v7790_v22  ;;  %v7891_v31 = vmul.f32 1.442695, %v7792_v15  ;;  %v7796_v49 = vsub.f32 0.0, %v16315_v53  ;;  %v7798_v29 = vsub.f32 0.0, %v16318_v8 }
 0xde7   : > { %11889 = vpow2.f32 %v7885_v26  ;;  %v7897_v1 = vmul.f32 1.442695, %v7795_v47  ;;  %v7901_v18 = vmul.f32 1.442695, %v7797_v14  ;;  %9224 = vmatpush1.bf16.msra.mxu1 %v11470_v32 }
 0xde8   : > { %11891 = vpow2.f32 %v7889_v56  ;;  %v7155_v34 = vpop.f32.mrb[100].mxu1  ;;  %v7268_v28 = vpop.f32.mrb[164].mxu0  ;;  %v7899_v23 = vmul.f32 1.442695, %v7796_v49  ;;  %v7903_v37 = vmul.f32 1.442695, %v7798_v29 }
 0xde9   : > { %11893 = vpow2.f32 %v7887_v54  ;;  %v16325_v43 = vadd.f32 %v7155_v34, %v16274_v39  ;;  %v16328_v52 = vadd.f32 %v7268_v28, %v16279_v19  ;;  %v7157_v22 = vpop.f32.mrb[101].mxu1  ;;  %v7270_v15 = vpop.f32.mrb[165].mxu0  ;;  %v11475_v54 = vld [vmem:[#allocation8 + $0x104] ss:$8 sps:$4 sm:$0xff]  }
 0xdea   : > { %11895 = vpow2.f32 %v7891_v31  ;;  %v16331_v26 = vadd.f32 %v7157_v22, %v16283_v25  ;;  %v16334_v56 = vadd.f32 %v7270_v15, %v16288_v57  ;;  %v7159_v47 = vpop.f32.mrb[102].mxu1  ;;  %v7272_v14 = vpop.f32.mrb[166].mxu0  ;;  %9306 = vmatprep.subr.bf16.mxu1 %v11475_v54 }
 0xdeb   : > { %11897 = vpow2.f32 %v7897_v1  ;;  %v7801_v49 = vsub.f32 0.0, %v16325_v43  ;;  %v7803_v28 = vsub.f32 0.0, %v16328_v52  ;;  %v16339_v34 = vadd.f32 %v7159_v47, %v16274_v39  ;;  %v7161_v33 = vpop.f32.mrb[103].mxu1  ;;  %v7274_v31 = vpop.f32.mrb[167].mxu0 }
 0xdec   : > { %11899 = vpow2.f32 %v7901_v18  ;;  %v7802_v29 = vsub.f32 0.0, %v16331_v26  ;;  %v7804_v22 = vsub.f32 0.0, %v16334_v56  ;;  %v16345_v9 = vadd.f32 %v7272_v14, %v16279_v19 }
 0xded   : > { %11901 = vpow2.f32 %v7899_v23  ;;  %v7909_v15 = vmul.f32 1.442695, %v7801_v49  ;;  %v7913_v27 = vmul.f32 1.442695, %v7803_v28  ;;  %v7807_v1 = vsub.f32 0.0, %v16339_v34 }
 0xdee   : > { %11903 = vpow2.f32 %v7903_v37  ;;  %v7911_v46 = vmul.f32 1.442695, %v7802_v29  ;;  %v7915_v2 = vmul.f32 1.442695, %v7804_v22  ;;  %v16348_v22 = vadd.f32 %v7161_v33, %v16283_v25 }
 0xdef   : > { %11905 = vpow2.f32 %v7909_v15  ;;  %v7921_v47 = vmul.f32 1.442695, %v7807_v1  ;;  %v7809_v7 = vsub.f32 0.0, %v16345_v9  ;;  %v16352_v50 = vadd.f32 %v7274_v31, %v16288_v57 }
 0xdf0   : > { %11907 = vpow2.f32 %v7913_v27  ;;  %v7165_v63 = vpop.f32.mrb[104].mxu1  ;;  %v7278_v35 = vpop.f32.mrb[168].mxu0 }
 0xdf1   : > { %v11890_v18 = vpop.eup %11889  ;;  %11909 = vpow2.f32 %v7911_v46  ;;  %v7167_v32 = vpop.f32.mrb[105].mxu1  ;;  %v16359_v31 = vadd.f32 %v7278_v35, %v16279_v19 }
 0xdf2   : > { %v7280_v23 = vpop.f32.mrb[169].mxu0  ;;  %v11892_v49 = vpop.eup %11891  ;;  %v8077_v28 = vadd.f32 1.0, %v11890_v18  ;;  %11911 = vpow2.f32 %v7915_v2 }
 0xdf3   : > { %v7169_v61 = vpop.f32.mrb[106].mxu1  ;;  %v7282_v54 = vpop.f32.mrb[170].mxu0  ;;  %v8079_v29 = vadd.f32 1.0, %v11892_v49  ;;  %11913 = vpow2.f32 %v7921_v47  ;;  %v7808_v49 = vsub.f32 0.0, %v16348_v22  ;;  %v16374_v55 = vadd.f32 %v7280_v23, %v16288_v57 }
 0xdf4   : > { %v11894_v37 = vpop.eup %11893  ;;  %v7171_v27 = vpop.f32.mrb[107].mxu1  ;;  %11915 = vrcp.f32 %v8077_v28  ;;  %v16382_v38 = vadd.f32 %v7169_v61, %v16274_v39  ;;  %v16386_v23 = vadd.f32 %v7282_v54, %v16279_v19 }
 0xdf5   : > { %v11896_v15 = vpop.eup %11895  ;;  %v8078_v46 = vadd.f32 1.0, %v11894_v37  ;;  %v7284_v1 = vpop.f32.mrb[171].mxu0  ;;  %11917 = vrcp.f32 %v8079_v29  ;;  %v16356_v37 = vadd.f32 %v7165_v63, %v16274_v39  ;;  %v16367_v63 = vadd.f32 %v7167_v32, %v16283_v25 }
 0xdf6   : > { %v11898_v14 = vpop.eup %11897  ;;  %v8080_v4 = vadd.f32 1.0, %v11896_v15  ;;  %v7923_v35 = vmul.f32 1.442695, %v7808_v49  ;;  %v7815_v49 = vsub.f32 0.0, %v16359_v31 }
 0xdf7   : > { %v11900_v18 = vpop.eup %11899  ;;  %11919 = vrcp.f32 %v8078_v46  ;;  %v8083_v2 = vadd.f32 1.0, %v11898_v14  ;;  %v7925_v14 = vmul.f32 1.442695, %v7809_v7  ;;  %v7813_v32 = vsub.f32 0.0, %v16356_v37 }
 0xdf8   : > { %v11902_v47 = vpop.eup %11901  ;;  %11921 = vrcp.f32 %v8080_v4  ;;  %v8085_v33 = vadd.f32 1.0, %v11900_v18  ;;  %v7175_v29 = vpop.f32.mrb[108].mxu1  ;;  %v7937_v13 = vmul.f32 1.442695, %v7815_v49 }
 0xdf9   : > { %v11904_v24 = vpop.eup %11903  ;;  %11923 = vrcp.f32 %v8083_v2  ;;  %v8084_v28 = vadd.f32 1.0, %v11902_v47  ;;  %v7288_v15 = vpop.f32.mrb[172].mxu0  ;;  %v7810_v47 = vsub.f32 0.0, %v16352_v50  ;;  %v7933_v12 = vmul.f32 1.442695, %v7813_v32 }
 0xdfa   : > { %v11906_v11 = vpop.eup %11905  ;;  %11925 = vrcp.f32 %v8085_v33  ;;  %v8086_v46 = vadd.f32 1.0, %v11904_v24  ;;  %v16361_v17 = vpop.f32.mrb[109].mxu1 }
 0xdfb   : > { %v16363_v4 = vpop.f32.mrb[173].mxu0  ;;  %v11908_v18 = vpop.eup %11907  ;;  %11927 = vrcp.f32 %v8084_v28  ;;  %v8089_v2 = vadd.f32 1.0, %v11906_v11  ;;  %v7927_v61 = vmul.f32 1.442695, %v7810_v47  ;;  %v7821_v47 = vsub.f32 0.0, %v16386_v23 }
 0xdfc   : > { %v16369_v45 = vpop.f32.mrb[110].mxu1  ;;  %v16371_v33 = vpop.f32.mrb[174].mxu0  ;;  %11929 = vrcp.f32 %v8086_v46  ;;  %v8091_v7 = vadd.f32 1.0, %v11908_v18 }
 0xdfd   : > { %v11910_v24 = vpop.eup %11909  ;;  %v16376_v10 = vpop.f32.mrb[111].mxu1  ;;  %11931 = vrcp.f32 %v8089_v2  ;;  %v7814_v2 = vsub.f32 0.0, %v16367_v63  ;;  %v7949_v20 = vmul.f32 1.442695, %v7821_v47 }
 0xdfe   : > { %v16378_v28 = vpop.f32.mrb[175].mxu0  ;;  %v11912_v11 = vpop.eup %11911  ;;  %v8090_v0 = vadd.f32 1.0, %v11910_v24  ;;  %11933 = vrcp.f32 %v8091_v7  ;;  %v16392_v24 = vadd.f32 %v7171_v27, %v16283_v25  ;;  %v7816_v7 = vsub.f32 0.0, %v16374_v55 }
 0xdff   : > { %v11914_v16 = vpop.eup %11913  ;;  %v8092_v46 = vadd.f32 1.0, %v11912_v11  ;;  %v16398_v11 = vadd.f32 %v7284_v1, %v16288_v57  ;;  %v7935_v58 = vmul.f32 1.442695, %v7814_v2 }
 0xe00   : > { %v16388_v18 = vpop.eup %11915  ;;  %11935 = vrcp.f32 %v8090_v0  ;;  %v8095_v6 = vadd.f32 1.0, %v11914_v16  ;;  %v7819_v16 = vsub.f32 0.0, %v16382_v38  ;;  %v16404_v0 = vadd.f32 %v7175_v29, %v16274_v39 }
 0xe01   : > { %v16394_v48 = vpop.eup %11917  ;;  %11937 = vrcp.f32 %v8092_v46  ;;  %v16410_v46 = vadd.f32 %v7288_v15, %v16279_v19  ;;  %v7939_v29 = vmul.f32 1.442695, %v7816_v7  ;;  %v7822_v60 = vsub.f32 0.0, %v16398_v11 }
 0xe02   : > { %v16400_v54 = vpop.eup %11919  ;;  %11939 = vrcp.f32 %v8095_v6  ;;  %18851 = vst [vmem:[#allocation36_spill] sm:$0xff] %v16404_v0  ;;  %v7820_v6 = vsub.f32 0.0, %v16392_v24  ;;  %v7825_v49 = vsub.f32 0.0, %v16404_v0  ;;  %v16443_v0 = vadd.f32 %v16361_v17, %v16283_v25 }
 0xe03   : > { %v16406_v27 = vpop.eup %11921  ;;  %11941 = vpow2.f32 %v7925_v14  ;;  %18852 = vst [vmem:[#allocation51_spill] sm:$0xff] %v16410_v46  ;;  %v7945_v14 = vmul.f32 1.442695, %v7819_v16  ;;  %v7951_v7 = vmul.f32 1.442695, %v7822_v60  ;;  %v16460_v17 = vmul.f32 %v16394_v48, %v16294_v40 }
 0xe04   : > { %v16412_v1 = vpop.eup %11923  ;;  %11943 = vpow2.f32 %v7923_v35  ;;  %v7827_v35 = vsub.f32 0.0, %v16410_v46  ;;  %v7947_v51 = vmul.f32 1.442695, %v7820_v6  ;;  %v7957_v16 = vmul.f32 1.442695, %v7825_v49 }
 0xe05   : > { %v16415_v32 = vpop.eup %11925  ;;  %11945 = vpow2.f32 %v7927_v61  ;;  %v6113_v46 = vsub.s32 5, %v18850_v59  ;;  %18853 = vst [vmem:[#allocation38_spill] sm:$0xff] %v16460_v17  ;;  %v7826_v40 = vsub.f32 0.0, %v16443_v0 }
 0xe06   : > { %v16418_v3 = vpop.eup %11927  ;;  %11947 = vpow2.f32 %v7933_v12  ;;  %v7961_v47 = vmul.f32 1.442695, %v7827_v35 }
 0xe07   : > { %v16421_v15 = vpop.eup %11929  ;;  %11949 = vpow2.f32 %v7937_v13 }
 0xe08   : > { %v16424_v2 = vpop.eup %11931  ;;  %11951 = vpow2.f32 %v7935_v58  ;;  %v6121_v58 = vsub.s32 7, %v18850_v59 }
 0xe09   : > { %v16426_v61 = vpop.eup %11933  ;;  %11953 = vpow2.f32 %v7939_v29  ;;  %v16439_v29 = vrot.slane %v16268_v21, %v6109_v62 }
 0xe0a   : > { %v16429_v12 = vpop.eup %11935  ;;  %11955 = vpow2.f32 %v7945_v14 }
 0xe0b   : > { %v16432_v13 = vpop.eup %11937  ;;  %11957 = vpow2.f32 %v7949_v20  ;;  %v16446_v20 = vrot.slane %v16268_v21, %v6117_v42 }
 0xe0c   : > { %v16436_v6 = vpop.eup %11939  ;;  %11959 = vpow2.f32 %v7947_v51  ;;  %v16449_v51 = vrot.slane %v16268_v21, %v6113_v46 }
 0xe0d   : > { %v11942_v60 = vpop.eup %11941  ;;  %11961 = vpow2.f32 %v7951_v7  ;;  %v16452_v7 = vrot.slane %v16268_v21, %v6121_v58  ;;  %v16468_v21 = vadd.f32 %v16363_v4, %v16288_v57 }
 0xe0e   : > { %v11944_v14 = vpop.eup %11943  ;;  %v8097_v49 = vadd.f32 1.0, %v11942_v60  ;;  %11963 = vpow2.f32 %v7957_v16  ;;  %v16456_v16 = vmul.f32 %v16388_v18, %v16291_v30  ;;  %v16472_v30 = vmul.f32 %v16406_v27, %v16301_v41 }
 0xe0f   : > { %v11946_v35 = vpop.eup %11945  ;;  %v8096_v59 = vadd.f32 1.0, %v11944_v14  ;;  %11965 = vpow2.f32 %v7961_v47  ;;  %v16464_v47 = vmul.f32 %v16400_v54, %v16298_v5  ;;  %v16481_v5 = vadd.f32 %v16371_v33, %v16279_v19 }
 0xe10   : > { %v11948_v62 = vpop.eup %11947  ;;  %11967 = vrcp.f32 %v8097_v49  ;;  %v8098_v42 = vadd.f32 1.0, %v11946_v35  ;;  %18854 = vst [vmem:[#allocation100_spill] sm:$0xff] %v16472_v30  ;;  %v16485_v41 = vmul.f32 %v16412_v1, %v16307_v36  ;;  %v16489_v27 = vadd.f32 %v16376_v10, %v16283_v25 }
 0xe11   : > { %v11950_v60 = vpop.eup %11949  ;;  %11969 = vrcp.f32 %v8096_v59  ;;  %v8101_v46 = vadd.f32 1.0, %v11948_v62  ;;  %v16477_v59 = vadd.f32 %v16369_v45, %v16274_v39  ;;  %v7828_v45 = vsub.f32 0.0, %v16468_v21 }
 0xe12   : > { %v11952_v58 = vpop.eup %11951  ;;  %11971 = vrcp.f32 %v8098_v42  ;;  %v8103_v48 = vadd.f32 1.0, %v11950_v60  ;;  %v16494_v33 = vadd.f32 %v16378_v28, %v16288_v57  ;;  %v16498_v36 = vmul.f32 %v16415_v32, %v16310_v44 }
 0xe13   : > { %v11954_v18 = vpop.eup %11953  ;;  %11973 = vrcp.f32 %v8101_v46  ;;  %v8102_v14 = vadd.f32 1.0, %v11952_v58  ;;  %v7959_v42 = vmul.f32 1.442695, %v7826_v40  ;;  %v7831_v46 = vsub.f32 0.0, %v16477_v59 }
 0xe14   : > { %v11956_v4 = vpop.eup %11955  ;;  %11975 = vrcp.f32 %v8103_v48  ;;  %v8104_v54 = vadd.f32 1.0, %v11954_v18  ;;  %18855 = vst [vmem:[#allocation55_spill] sm:$0xff] %v16498_v36  ;;  %v7833_v58 = vsub.f32 0.0, %v16481_v5  ;;  %v16504_v28 = vmul.f32 %v16418_v3, %v16315_v53 }
 0xe15   : > { %v11958_v49 = vpop.eup %11957  ;;  %11977 = vrcp.f32 %v8102_v14  ;;  %v8107_v35 = vadd.f32 1.0, %v11956_v4  ;;  %v7832_v44 = vsub.f32 0.0, %v16489_v27  ;;  %v7963_v40 = vmul.f32 1.442695, %v7828_v45 }
 0xe16   : > { %v11960_v62 = vpop.eup %11959  ;;  %11979 = vrcp.f32 %v8104_v54  ;;  %v8109_v1 = vadd.f32 1.0, %v11958_v49  ;;  %v7834_v4 = vsub.f32 0.0, %v16494_v33  ;;  %v16510_v49 = vmul.f32 %v16421_v15, %v16318_v8 }
 0xe17   : > { %v11962_v60 = vpop.eup %11961  ;;  %11981 = vrcp.f32 %v8107_v35  ;;  %v8108_v10 = vadd.f32 1.0, %v11960_v62  ;;  %v16514_v35 = vmul.f32 %v16424_v2, %v16325_v43  ;;  %v16518_v62 = vmul.f32 %v16426_v61, %v16328_v52 }
 0xe18   : > { %v11964_v48 = vpop.eup %11963  ;;  %11983 = vrcp.f32 %v8109_v1  ;;  %v8110_v18 = vadd.f32 1.0, %v11962_v60  ;;  %18856 = vst [vmem:[#allocation102_spill] sm:$0xff] %v16510_v49  ;;  %v7969_v45 = vmul.f32 1.442695, %v7831_v46  ;;  %v7973_v1 = vmul.f32 1.442695, %v7833_v58 }
 0xe19   : > { %v11966_v32 = vpop.eup %11965  ;;  %11985 = vrcp.f32 %v8108_v10  ;;  %v8113_v14 = vadd.f32 1.0, %v11964_v48  ;;  %18857 = vst [vmem:[#allocation57_spill] sm:$0xff] %v16514_v35  ;;  %18858 = vst [vmem:[#allocation40_spill] sm:$0xff] %v16518_v62  ;;  %v16522_v10 = vmul.f32 %v16429_v12, %v16331_v26  ;;  %v16526_v8 = vmul.f32 %v16432_v13, %v16334_v56 }
 0xe1a   : > { %v11968_v54 = vpop.eup %11967  ;;  %11987 = vrcp.f32 %v8110_v18  ;;  %v8115_v3 = vadd.f32 1.0, %v11966_v32  ;;  %v7971_v43 = vmul.f32 1.442695, %v7832_v44  ;;  %v16530_v2 = vmul.f32 %v16436_v6, %v16339_v34 }
 0xe1b   : > { %v11970_v53 = vpop.eup %11969  ;;  %11989 = vrcp.f32 %v8113_v14  ;;  %18859 = vst [vmem:[#allocation59_spill] sm:$0xff] %v16522_v10  ;;  %18860 = vst [vmem:[#allocation42_spill] sm:$0xff] %v16526_v8  ;;  %v16533_v52 = vmul.f32 %v11968_v54, %v16345_v9  ;;  %v7975_v61 = vmul.f32 1.442695, %v7834_v4 }
 0xe1c   : > { %v11972_v60 = vpop.eup %11971  ;;  %11991 = vrcp.f32 %v8115_v3  ;;  %18861 = vst [vmem:[#allocation61_spill] sm:$0xff] %v16530_v2  ;;  %v16536_v26 = vmul.f32 %v11970_v53, %v16348_v22  ;;  %v7185_v13 = vpop.f32.mrb[112].mxu1 }
 0xe1d   : > { %v11974_v15 = vpop.eup %11973  ;;  %18862 = vst [vmem:[#allocation91_spill] sm:$0xff] %v16533_v52  ;;  %11993 = vpow2.f32 %v7959_v42  ;;  %v16539_v12 = vmul.f32 %v11972_v60, %v16352_v50  ;;  %v7298_v58 = vpop.f32.mrb[176].mxu0  ;;  %v16548_v9 = vadd.f32 %v7185_v13, %v16274_v39 }
 0xe1e   : > { %v11976_v46 = vpop.eup %11975  ;;  %18863 = vst [vmem:[#allocation63_spill] sm:$0xff] %v16536_v26  ;;  %v16542_v56 = vmul.f32 %v11974_v15, %v16356_v37  ;;  %11995 = vpow2.f32 %v7963_v40  ;;  %v16551_v22 = vadd.f32 %v7298_v58, %v16279_v19  ;;  %v7187_v42 = vpop.f32.mrb[113].mxu1 }
 0xe1f   : > { %18864 = vst [vmem:[#allocation89_spill] sm:$0xff] %v16539_v12  ;;  %v11978_v34 = vpop.eup %11977  ;;  %v16545_v6 = vmul.f32 %v11976_v46, %v16359_v31  ;;  %11997 = vpow2.f32 %v7969_v45  ;;  %v7300_v50 = vpop.f32.mrb[177].mxu0  ;;  %v16557_v18 = vadd.f32 %v7187_v42, %v16283_v25  ;;  %v7837_v4 = vsub.f32 0.0, %v16548_v9 }
 0xe20   : > { %18865 = vst [vmem:[#allocation65_spill] sm:$0xff] %v16542_v56  ;;  %v11980_v48 = vpop.eup %11979  ;;  %v16554_v37 = vmul.f32 %v11978_v34, %v16367_v63  ;;  %11999 = vpow2.f32 %v7973_v1  ;;  %v16560_v31 = vadd.f32 %v7300_v50, %v16288_v57  ;;  %v7189_v44 = vpop.f32.mrb[114].mxu1  ;;  %v7839_v54 = vsub.f32 0.0, %v16551_v22 }
 0xe21   : > { %18866 = vst [vmem:[#allocation104_spill] sm:$0xff] %v16545_v6  ;;  %v7302_v32 = vpop.f32.mrb[178].mxu0  ;;  %v11982_v14 = vpop.eup %11981  ;;  %v16563_v40 = vmul.f32 %v11980_v48, %v16374_v55  ;;  %12001 = vpow2.f32 %v7971_v43  ;;  %v7838_v1 = vsub.f32 0.0, %v16557_v18  ;;  %v7981_v43 = vmul.f32 1.442695, %v7837_v4  ;;  %v18873_v4 = vld [vmem:[#allocation36_spill] sm:$0xff] }
 0xe22   : > { %18867 = vst [vmem:[#allocation67_spill] sm:$0xff] %v16554_v37  ;;  %v7191_v63 = vpop.f32.mrb[115].mxu1  ;;  %v7304_v3 = vpop.f32.mrb[179].mxu0  ;;  %v16568_v45 = vmul.f32 %v11982_v14, %v16382_v38  ;;  %12003 = vpow2.f32 %v7975_v61  ;;  %v7840_v60 = vsub.f32 0.0, %v16560_v31  ;;  %v7985_v46 = vmul.f32 1.442695, %v7839_v54 }
 0xe23   : > { %18868 = vst [vmem:[#allocation106_spill] sm:$0xff] %v16563_v40  ;;  %v11984_v53 = vpop.eup %11983  ;;  %v16576_v13 = vadd.f32 %v7189_v44, %v16274_v39  ;;  %v7983_v38 = vmul.f32 1.442695, %v7838_v1  ;;  %v16582_v61 = vadd.f32 %v7302_v32, %v16279_v19  ;;  %12005 = vpow2.f32 %v7981_v43 }
 0xe24   : > { %18869 = vst [vmem:[#allocation69_spill] sm:$0xff] %v16568_v45  ;;  %v11986_v15 = vpop.eup %11985  ;;  %v16573_v55 = vmul.f32 %v11984_v53, %v16386_v23  ;;  %v7987_v42 = vmul.f32 1.442695, %v7840_v60  ;;  %v16589_v14 = vadd.f32 %v7191_v63, %v16283_v25  ;;  %12007 = vpow2.f32 %v7985_v46  ;;  %v7195_v53 = vpop.f32.mrb[116].mxu1  ;;  %v18875_v60 = vld [vmem:[#allocation51_spill] sm:$0xff] }
 0xe25   : > { %v11988_v58 = vpop.eup %11987  ;;  %v16579_v34 = vmul.f32 %v11986_v15, %v16392_v24  ;;  %v7843_v23 = vsub.f32 0.0, %v16576_v13  ;;  %v7845_v24 = vsub.f32 0.0, %v16582_v61  ;;  %v16596_v32 = vadd.f32 %v7304_v3, %v16288_v57  ;;  %v7308_v1 = vpop.f32.mrb[180].mxu0 }
 0xe26   : > { %18870 = vst [vmem:[#allocation92_spill] sm:$0xff] %v16573_v55  ;;  %v11990_v50 = vpop.eup %11989  ;;  %v16585_v48 = vmul.f32 %v11988_v58, %v16398_v11  ;;  %12009 = vpow2.f32 %v7983_v38  ;;  %v7844_v63 = vsub.f32 0.0, %v16589_v14  ;;  %v7197_v58 = vpop.f32.mrb[117].mxu1 }
 0xe27   : > { %18871 = vst [vmem:[#allocation71_spill] sm:$0xff] %v16579_v34  ;;  %v11992_v44 = vpop.eup %11991  ;;  %v16592_v54 = vmul.f32 %v11990_v50, %v18873_v4  ;;  %v7993_v43 = vmul.f32 1.442695, %v7843_v23  ;;  %12011 = vpow2.f32 %v7987_v42  ;;  %v7997_v46 = vmul.f32 1.442695, %v7845_v24  ;;  %v7199_v3 = vpop.f32.mrb[118].mxu1 }
 0xe28   : > { %18872 = vst [vmem:[#allocation94_spill] sm:$0xff] %v16585_v48  ;;  %v11994_v11 = vpop.eup %11993  ;;  %v16599_v15 = vmul.f32 %v11992_v44, %v18875_v60  ;;  %v7310_v48 = vpop.f32.mrb[181].mxu0  ;;  %v7846_v55 = vsub.f32 0.0, %v16596_v32  ;;  %v7995_v52 = vmul.f32 1.442695, %v7844_v63  ;;  %v16604_v44 = vadd.f32 %v7195_v53, %v16274_v39 }
 0xe29   : > { %18874 = vst [vmem:[#allocation73_spill] sm:$0xff] %v16592_v54  ;;  %v11996_v50 = vpop.eup %11995  ;;  %v8114_v4 = vadd.f32 1.0, %v11994_v11  ;;  %v7312_v40 = vpop.f32.mrb[182].mxu0  ;;  %12013 = vpow2.f32 %v7993_v43  ;;  %v16609_v42 = vadd.f32 %v7308_v1, %v16279_v19  ;;  %v16613_v43 = vadd.f32 %v7197_v58, %v16283_v25 }
 0xe2a   : > { %18876 = vst [vmem:[#allocation109_spill] sm:$0xff] %v16599_v15  ;;  %v11998_v6 = vpop.eup %11997  ;;  %v8116_v12 = vadd.f32 1.0, %v11996_v50  ;;  %v7201_v38 = vpop.f32.mrb[119].mxu1  ;;  %v16606_v8 = vmul.f32 1.442695, %v7846_v55  ;;  %v7849_v50 = vsub.f32 0.0, %v16604_v44 }
 0xe2b   : > { %v7314_v23 = vpop.f32.mrb[183].mxu0  ;;  %v12000_v60 = vpop.eup %11999  ;;  %12015 = vrcp.f32 %v8114_v4  ;;  %v8119_v15 = vadd.f32 1.0, %v11998_v6  ;;  %v7851_v62 = vsub.f32 0.0, %v16609_v42  ;;  %v16617_v6 = vadd.f32 %v7310_v48, %v16288_v57 }
 0xe2c   : > { %v12002_v24 = vpop.eup %12001  ;;  %12017 = vrcp.f32 %v8116_v12  ;;  %v8121_v11 = vadd.f32 1.0, %v12000_v60  ;;  %v16619_v1 = vmul.f32 1.442695, %v7849_v50  ;;  %v7850_v12 = vsub.f32 0.0, %v16613_v43 }
 0xe2d   : > { %v12004_v53 = vpop.eup %12003  ;;  %12019 = vrcp.f32 %v8119_v15  ;;  %v8120_v63 = vadd.f32 1.0, %v12002_v24  ;;  %v16622_v4 = vmul.f32 1.442695, %v7851_v62  ;;  %v7852_v58 = vsub.f32 0.0, %v16617_v6  ;;  %v7205_v15 = vpop.f32.mrb[120].mxu1 }
 0xe2e   : > { %12021 = vrcp.f32 %v8121_v11  ;;  %v8122_v55 = vadd.f32 1.0, %v12004_v53  ;;  %v16626_v60 = vadd.f32 %v7199_v3, %v16274_v39  ;;  %v7318_v24 = vpop.f32.mrb[184].mxu0  ;;  %v12006_v49 = vpop.eup %12005  ;;  %v16628_v48 = vmul.f32 1.442695, %v7850_v12 }
 0xe2f   : > { %12023 = vrcp.f32 %v8120_v63  ;;  %v16631_v11 = vadd.f32 %v7312_v40, %v16279_v19  ;;  %v16634_v50 = vadd.f32 %v7201_v38, %v16283_v25  ;;  %v7207_v53 = vpop.f32.mrb[121].mxu1  ;;  %v7320_v62 = vpop.f32.mrb[185].mxu0  ;;  %v8125_v36 = vadd.f32 1.0, %v12006_v49 }
 0xe30   : > { %12025 = vrcp.f32 %v8122_v55  ;;  %v12008_v63 = vpop.eup %12007  ;;  %v16636_v30 = vmul.f32 1.442695, %v7852_v58  ;;  %v7855_v3 = vsub.f32 0.0, %v16626_v60  ;;  %v7209_v17 = vpop.f32.mrb[122].mxu1  ;;  %v16646_v58 = vadd.f32 %v7314_v23, %v16288_v57 }
 0xe31   : > { %18877 = vst [vmem:[#allocation75_spill] sm:$0xff] %v16634_v50  ;;  %12027 = vpow2.f32 %v7997_v46  ;;  %v16639_v54 = vpop.f32.mrb[186].mxu0  ;;  %v12010_v55 = vpop.eup %12009  ;;  %v8127_v12 = vadd.f32 1.0, %v12008_v63  ;;  %v7857_v40 = vsub.f32 0.0, %v16631_v11  ;;  %v7856_v38 = vsub.f32 0.0, %v16634_v50 }
 0xe32   : > { %12029 = vpow2.f32 %v7995_v52  ;;  %v7211_v34 = vpop.f32.mrb[123].mxu1  ;;  %v16643_v45 = vpop.f32.mrb[187].mxu0  ;;  %v8126_v49 = vadd.f32 1.0, %v12010_v55  ;;  %v8017_v46 = vmul.f32 1.442695, %v7855_v3  ;;  %v7858_v35 = vsub.f32 0.0, %v16646_v58 }
 0xe33   : > { %v12012_v37 = vpop.eup %12011  ;;  %12031 = vrcp.f32 %v8125_v36  ;;  %v16648_v2 = vmul.f32 1.442695, %v7857_v40  ;;  %v16650_v52 = vmul.f32 1.442695, %v7856_v38  ;;  %v16654_v50 = vadd.f32 %v7205_v15, %v16274_v39 }
 0xe34   : > { %v12014_v56 = vpop.eup %12013  ;;  %12033 = vrcp.f32 %v8127_v12  ;;  %v8128_v26 = vadd.f32 1.0, %v12012_v37  ;;  %v16660_v23 = vadd.f32 %v7318_v24, %v16279_v19  ;;  %v16663_v37 = vadd.f32 %v7207_v53, %v16283_v25  ;;  %v7215_v40 = vpop.f32.mrb[124].mxu1 }
 0xe35   : > { %v12016_v63 = vpop.eup %12015  ;;  %12035 = vrcp.f32 %v8126_v49  ;;  %v8131_v10 = vadd.f32 1.0, %v12014_v56  ;;  %v16668_v56 = vmul.f32 1.442695, %v7858_v35  ;;  %v7861_v15 = vsub.f32 0.0, %v16654_v50  ;;  %v16671_v38 = vpop.f32.mrb[188].mxu0 }
 0xe36   : > { %v12018_v36 = vpop.eup %12017  ;;  %v16657_v3 = vmul.f32 %v12016_v63, %v16443_v0  ;;  %12037 = vrcp.f32 %v8128_v26  ;;  %v7863_v24 = vsub.f32 0.0, %v16660_v23  ;;  %v7862_v53 = vsub.f32 0.0, %v16663_v37  ;;  %v16679_v49 = vpop.f32.mrb[189].mxu0 }
 0xe37   : > { %v12020_v55 = vpop.eup %12019  ;;  %v16666_v12 = vmul.f32 %v12018_v36, %v16468_v21  ;;  %12039 = vrcp.f32 %v8131_v10  ;;  %v7217_v21 = vpop.f32.mrb[125].mxu1  ;;  %v8029_v63 = vmul.f32 1.442695, %v7861_v15  ;;  %v16686_v36 = vadd.f32 %v7320_v62, %v16288_v57 }
 0xe38   : > { %18878 = vst [vmem:[#allocation72_spill] sm:$0xff] %v16657_v3  ;;  %v12022_v0 = vpop.eup %12021  ;;  %v16674_v26 = vmul.f32 %v12020_v55, %v16477_v59  ;;  %12041 = vpow2.f32 %v16606_v8  ;;  %v16688_v59 = vpop.f32.mrb[126].mxu1  ;;  %v16696_v3 = vmul.f32 1.442695, %v7862_v53  ;;  %v16716_v53 = vadd.f32 %v7211_v34, %v16283_v25 }
 0xe39   : > { %18879 = vst [vmem:[#allocation120_spill] sm:$0xff] %v16666_v12  ;;  %v12024_v35 = vpop.eup %12023  ;;  %v16682_v10 = vmul.f32 %v12022_v0, %v16481_v5  ;;  %12043 = vpow2.f32 %v16619_v1  ;;  %v16690_v8 = vpop.f32.mrb[190].mxu0  ;;  %v7864_v0 = vsub.f32 0.0, %v16686_v36 }
 0xe3a   : > { %18880 = vst [vmem:[#allocation103_spill] sm:$0xff] %v16674_v26  ;;  %v12026_v55 = vpop.eup %12025  ;;  %v16693_v12 = vmul.f32 %v12024_v35, %v16489_v27  ;;  %12045 = vpow2.f32 %v16622_v4  ;;  %v8033_v26 = vmul.f32 1.442695, %v7863_v24  ;;  %v16698_v5 = vpop.f32.mrb[127].mxu1  ;;  %v16708_v27 = vadd.f32 %v7209_v17, %v16274_v39  ;;  %18884 = vst [vmem:[#allocation21_spill] sm:$0xff] %v16716_v53 }
 0xe3b   : > { %18881 = vst [vmem:[#allocation105_spill] sm:$0xff] %v16682_v10  ;;  %v16700_v1 = vpop.f32.mrb[191].mxu0  ;;  %v12028_v15 = vpop.eup %12027  ;;  %v16703_v62 = vmul.f32 %v12026_v55, %v16494_v33  ;;  %12047 = vpow2.f32 %v16628_v48  ;;  %v16713_v24 = vadd.f32 %v16639_v54, %v16279_v19  ;;  %v16718_v48 = vmul.f32 1.442695, %v7864_v0 }
 0xe3c   : > { %18882 = vst [vmem:[#allocation101_spill] sm:$0xff] %v16693_v12  ;;  %v12030_v35 = vpop.eup %12029  ;;  %v8133_v4 = vadd.f32 1.0, %v12028_v15  ;;  %12049 = vpow2.f32 %v16636_v30  ;;  %v7868_v54 = vsub.f32 0.0, %v16716_v53  ;;  %v16735_v0 = vpop.f32.mrb[128].mxu1 }
 0xe3d   : > { %18883 = vst [vmem:[#allocation23_spill] sm:$0xff] %v16703_v62  ;;  %v12032_v33 = vpop.eup %12031  ;;  %v8132_v55 = vadd.f32 1.0, %v12030_v35  ;;  %12051 = vpow2.f32 %v8017_v46  ;;  %v7867_v62 = vsub.f32 0.0, %v16708_v27  ;;  %v7869_v30 = vsub.f32 0.0, %v16713_v24 }
 0xe3e   : > { %v12034_v17 = vpop.eup %12033  ;;  %v16722_v10 = vmul.f32 %v12032_v33, %v16548_v9  ;;  %12053 = vrcp.f32 %v8133_v4  ;;  %v16733_v46 = vadd.f32 %v16643_v45, %v16288_v57  ;;  %v16737_v9 = vpop.f32.mrb[192].mxu0 }
 0xe3f   : > { %v12036_v15 = vpop.eup %12035  ;;  %v16727_v34 = vmul.f32 %v12034_v17, %v16551_v22  ;;  %12055 = vrcp.f32 %v8132_v55  ;;  %v16729_v35 = vmul.f32 1.442695, %v7867_v62  ;;  %v16745_v22 = vmul.f32 1.442695, %v7868_v54  ;;  %v16747_v62 = vpop.f32.mrb[129].mxu1 }
 0xe40   : > { %18885 = vst [vmem:[#allocation32_spill] sm:$0xff] %v16722_v10  ;;  %18887 = vst [vmem:[#allocation24_spill] sm:$0xff] %v16733_v46  ;;  %v12038_v4 = vpop.eup %12037  ;;  %v16740_v33 = vmul.f32 %v12036_v15, %v16557_v18  ;;  %12057 = vpow2.f32 %v16648_v2  ;;  %v16743_v10 = vmul.f32 1.442695, %v7869_v30  ;;  %v16749_v55 = vpop.f32.mrb[193].mxu0  ;;  %v16757_v18 = vadd.f32 %v7215_v40, %v16274_v39 }
 0xe41   : > { %18886 = vst [vmem:[#allocation25_spill] sm:$0xff] %v16727_v34  ;;  %v12040_v45 = vpop.eup %12039  ;;  %v16752_v17 = vmul.f32 %v12038_v4, %v16560_v31  ;;  %12059 = vpow2.f32 %v16650_v52  ;;  %v7870_v34 = vsub.f32 0.0, %v16733_v46  ;;  %v16759_v2 = vpop.f32.mrb[130].mxu1  ;;  %v16769_v31 = vadd.f32 %v16671_v38, %v16279_v19 }
 0xe42   : > { %18888 = vst [vmem:[#allocation28_spill] sm:$0xff] %v16740_v33  ;;  %18890 = vst [vmem:[#allocation76_spill] sm:$0xff] %v16757_v18  ;;  %v16761_v30 = vpop.f32.mrb[194].mxu0  ;;  %v12042_v54 = vpop.eup %12041  ;;  %v16764_v15 = vmul.f32 %v12040_v45, %v16576_v13  ;;  %12061 = vpow2.f32 %v16668_v56  ;;  %v16772_v52 = vadd.f32 %v7217_v21, %v16283_v25  ;;  %v7873_v13 = vsub.f32 0.0, %v16757_v18 }
 0xe43   : > { %18889 = vst [vmem:[#allocation29_spill] sm:$0xff] %v16752_v17  ;;  %18892 = vst [vmem:[#allocation27_spill] sm:$0xff] %v16769_v31  ;;  %v16774_v4 = vpop.f32.mrb[131].mxu1  ;;  %v16776_v40 = vpop.f32.mrb[195].mxu0  ;;  %v8134_v33 = vadd.f32 1.0, %v12042_v54  ;;  %12063 = vpow2.f32 %v8029_v63  ;;  %v7875_v38 = vsub.f32 0.0, %v16769_v31  ;;  %v16787_v54 = vadd.f32 %v16679_v49, %v16288_v57 }
 0xe44   : > { %18891 = vst [vmem:[#allocation26_spill] sm:$0xff] %v16764_v15  ;;  %18893 = vst [vmem:[#allocation31_spill] sm:$0xff] %v16772_v52  ;;  %v12044_v17 = vpop.eup %12043  ;;  %v16778_v12 = vmul.f32 1.442695, %v7870_v34  ;;  %12065 = vpow2.f32 %v8033_v26  ;;  %v7874_v15 = vsub.f32 0.0, %v16772_v52  ;;  %v16800_v49 = vpop.f32.mrb[196].mxu0 }
 0xe45   : > { %v12046_v45 = vpop.eup %12045  ;;  %v8137_v56 = vadd.f32 1.0, %v12044_v17  ;;  %12067 = vrcp.f32 %v8134_v33  ;;  %v16783_v53 = vmul.f32 1.442695, %v7873_v13  ;;  %18894 = vst [vmem:[#allocation30_spill] sm:$0xff] %v16787_v54  ;;  %v16789_v18 = vmul.f32 1.442695, %v7875_v38 }
 0xe46   : > { %v12048_v21 = vpop.eup %12047  ;;  %v8139_v46 = vadd.f32 1.0, %v12046_v45  ;;  %v16791_v17 = vmul.f32 1.442695, %v7874_v15  ;;  %v7876_v52 = vsub.f32 0.0, %v16787_v54  ;;  %v16796_v33 = vadd.f32 %v16688_v59, %v16274_v39  ;;  %v16798_v13 = vpop.f32.mrb[132].mxu1 }
 0xe47   : > { %v12050_v63 = vpop.eup %12049  ;;  %12069 = vrcp.f32 %v8137_v56  ;;  %v8138_v34 = vadd.f32 1.0, %v12048_v21  ;;  %v16804_v15 = vadd.f32 %v16690_v8, %v16279_v19  ;;  %v16810_v38 = vpop.f32.mrb[133].mxu1 }
 0xe48   : > { %v12052_v26 = vpop.eup %12051  ;;  %12071 = vrcp.f32 %v8139_v46  ;;  %v8140_v31 = vadd.f32 1.0, %v12050_v63  ;;  %18895 = vst [vmem:[#allocation78_spill] sm:$0xff] %v16796_v33  ;;  %v16808_v46 = vadd.f32 %v16698_v5, %v16283_v25  ;;  %v16812_v21 = vpop.f32.mrb[197].mxu0  ;;  %v16817_v63 = vmul.f32 1.442695, %v7876_v52 }
 0xe49   : > { %v12054_v45 = vpop.eup %12053  ;;  %12073 = vrcp.f32 %v8138_v34  ;;  %v8143_v56 = vadd.f32 1.0, %v12052_v26  ;;  %18896 = vst [vmem:[#allocation33_spill] sm:$0xff] %v16804_v15  ;;  %v7879_v34 = vsub.f32 0.0, %v16796_v33  ;;  %v16820_v26 = vpop.f32.mrb[134].mxu1  ;;  %v7881_v5 = vsub.f32 0.0, %v16804_v15 }
 0xe4a   : > { %18897 = vst [vmem:[#allocation35_spill] sm:$0xff] %v16808_v46  ;;  %v12056_v39 = vpop.eup %12055  ;;  %v16815_v59 = vmul.f32 %v12054_v45, %v16582_v61  ;;  %12075 = vrcp.f32 %v8140_v31  ;;  %v16822_v19 = vpop.f32.mrb[198].mxu0  ;;  %v7880_v54 = vsub.f32 0.0, %v16808_v46  ;;  %v16838_v33 = vadd.f32 %v16700_v1, %v16288_v57 }
 0xe4b   : > { %v12058_v8 = vpop.eup %12057  ;;  %v16825_v25 = vmul.f32 %v12056_v39, %v16589_v14  ;;  %12077 = vrcp.f32 %v8143_v56  ;;  %v16829_v61 = vpop.f32.mrb[135].mxu1  ;;  %v16841_v39 = vmul.f32 1.442695, %v7881_v5  ;;  %v7485_v1 = vadd.f32 %v16737_v9, %v16446_v20 }
 0xe4c   : > { %18898 = vst [vmem:[#allocation80_spill] sm:$0xff] %v16815_v59  ;;  %v16831_v31 = vpop.f32.mrb[199].mxu0  ;;  %v12060_v52 = vpop.eup %12059  ;;  %v8145_v45 = vadd.f32 1.0, %v12058_v8  ;;  %12079 = vpow2.f32 %v16696_v3  ;;  %v16834_v59 = vmul.f32 1.442695, %v7879_v34  ;;  %18900 = vst [vmem:[#allocation39_spill] sm:$0xff] %v16838_v33  ;;  %v16848_v3 = vadd.f32 %v16735_v0, %v16439_v29 }
 0xe4d   : > { %18899 = vst [vmem:[#allocation37_spill] sm:$0xff] %v16825_v25  ;;  %v12062_v14 = vpop.eup %12061  ;;  %v8144_v56 = vadd.f32 1.0, %v12060_v52  ;;  %12081 = vpow2.f32 %v16718_v48  ;;  %v16843_v25 = vmul.f32 1.442695, %v7880_v54  ;;  %v7882_v8 = vsub.f32 0.0, %v16838_v33  ;;  %v16861_v0 = vpop.f32.mrb[200].mxu0 }
 0xe4e   : > { %v12064_v46 = vpop.eup %12063  ;;  %12083 = vrcp.f32 %v8145_v45  ;;  %v8146_v15 = vadd.f32 1.0, %v12062_v14  ;;  %18901 = vst [vmem:[#allocation41_spill] sm:$0xff] %v16848_v3  ;;  %v16854_v48 = vadd.f32 %v16747_v62, %v16449_v51  ;;  %v7793_v45 = vsub.f32 0.0, %v16848_v3  ;;  %v16859_v14 = vpop.f32.mrb[136].mxu1 }
 0xe4f   : > { %v12066_v34 = vpop.eup %12065  ;;  %12085 = vrcp.f32 %v8144_v56  ;;  %v8149_v57 = vadd.f32 1.0, %v12064_v46  ;;  %v16856_v52 = vmul.f32 1.442695, %v7882_v8  ;;  %v16867_v9 = vmul.f32 %v16456_v16, %v7485_v1  ;;  %v16872_v8 = vpop.f32.mrb[201].mxu0 }
 0xe50   : > { %v12068_v54 = vpop.eup %12067  ;;  %12087 = vrcp.f32 %v8146_v15  ;;  %v8151_v5 = vadd.f32 1.0, %v12066_v34  ;;  %v7794_v62 = vsub.f32 0.0, %v16854_v48  ;;  %v16870_v15 = vpop.f32.mrb[137].mxu1  ;;  %v16877_v33 = vmul.f32 1.442695, %v7793_v45 }
 0xe51   : > { %v12070_v56 = vpop.eup %12069  ;;  %v16864_v46 = vmul.f32 %v12068_v54, %v16596_v32  ;;  %12089 = vrcp.f32 %v8149_v57  ;;  %v7487_v32 = vadd.f32 %v16749_v55, %v16452_v7  ;;  %v16881_v57 = vpop.f32.mrb[138].mxu1 }
 0xe52   : > { %v12072_v34 = vpop.eup %12071  ;;  %v16875_v3 = vmul.f32 %v12070_v56, %v16604_v44  ;;  %12091 = vrcp.f32 %v8151_v5  ;;  %v16883_v16 = vpop.f32.mrb[202].mxu0  ;;  %v16893_v44 = vadd.f32 %v16759_v2, %v16439_v29 }
 0xe53   : > { %18902 = vst [vmem:[#allocation43_spill] sm:$0xff] %v16864_v46  ;;  %v12074_v1 = vpop.eup %12073  ;;  %v16886_v54 = vmul.f32 %v12072_v34, %v16609_v42  ;;  %12093 = vpow2.f32 %v16729_v35  ;;  %v16889_v46 = vmul.f32 1.442695, %v7794_v62  ;;  %v16895_v5 = vpop.f32.mrb[139].mxu1  ;;  %v16904_v42 = vmul.f32 %v16464_v47, %v7487_v32 }
 0xe54   : > { %v16897_v45 = vpop.f32.mrb[203].mxu0  ;;  %v12076_v55 = vpop.eup %12075  ;;  %v16900_v56 = vmul.f32 %v12074_v1, %v16613_v43  ;;  %12095 = vpow2.f32 %v16743_v10  ;;  %v7489_v35 = vadd.f32 %v16761_v30, %v16446_v20  ;;  %v7799_v34 = vsub.f32 0.0, %v16893_v44 }
 0xe55   : > { %18903 = vst [vmem:[#allocation82_spill] sm:$0xff] %v16886_v54  ;;  %v12078_v62 = vpop.eup %12077  ;;  %v16909_v2 = vmul.f32 %v12076_v55, %v16617_v6  ;;  %12097 = vpow2.f32 %v16745_v22  ;;  %v16915_v43 = vadd.f32 %v16774_v4, %v16449_v51  ;;  %v7491_v6 = vadd.f32 %v16776_v40, %v16452_v7  ;;  %v16936_v40 = vpop.f32.mrb[204].mxu0  ;;  %v18914_v54 = vld [vmem:[#allocation57_spill] sm:$0xff] }
 0xe56   : > { %18904 = vst [vmem:[#allocation84_spill] sm:$0xff] %v16900_v56  ;;  %v12080_v1 = vpop.eup %12079  ;;  %v16918_v10 = vmul.f32 %v12078_v62, %v16626_v60  ;;  %12099 = vpow2.f32 %v16778_v12  ;;  %v16922_v47 = vmul.f32 %v16485_v41, %v7489_v35  ;;  %v16927_v32 = vmul.f32 1.442695, %v7799_v34  ;;  %v16934_v12 = vpop.f32.mrb[140].mxu1 }
 0xe57   : > { %18905 = vst [vmem:[#allocation86_spill] sm:$0xff] %v16909_v2  ;;  %v12082_v30 = vpop.eup %12081  ;;  %v8150_v22 = vadd.f32 1.0, %v12080_v1  ;;  %12101 = vpow2.f32 %v16783_v53  ;;  %v7800_v4 = vsub.f32 0.0, %v16915_v43  ;;  %v8468_v41 = vmul.f32 %v16504_v28, %v7491_v6  ;;  %v16949_v1 = vpop.f32.mrb[205].mxu0  ;;  %v18909_v6 = vld [vmem:[#allocation75_spill] sm:$0xff] }
 0xe58   : > { %18906 = vst [vmem:[#allocation93_spill] sm:$0xff] %v16918_v10  ;;  %v12084_v55 = vpop.eup %12083  ;;  %v8152_v2 = vadd.f32 1.0, %v12082_v30  ;;  %12103 = vpow2.f32 %v16789_v18  ;;  %v16945_v34 = vadd.f32 %v16798_v13, %v16439_v29  ;;  %v16947_v18 = vpop.f32.mrb[141].mxu1 }
 0xe59   : > { %v12086_v35 = vpop.eup %12085  ;;  %v16939_v53 = vmul.f32 %v12084_v55, %v16631_v11  ;;  %12105 = vrcp.f32 %v8150_v22  ;;  %v16941_v62 = vmul.f32 1.442695, %v7800_v4  ;;  %v7495_v11 = vadd.f32 %v16800_v49, %v16446_v20  ;;  %v16960_v4 = vpop.f32.mrb[142].mxu1 }
 0xe5a   : > { %18908 = vst [vmem:[#allocation107_spill] sm:$0xff] %v16945_v34  ;;  %v12088_v28 = vpop.eup %12087  ;;  %v16952_v30 = vmul.f32 %v12086_v35, %v18909_v6  ;;  %12107 = vrcp.f32 %v8152_v2  ;;  %v16958_v22 = vadd.f32 %v16810_v38, %v16449_v51  ;;  %v16962_v13 = vpop.f32.mrb[206].mxu0  ;;  %v7805_v35 = vsub.f32 0.0, %v16945_v34 }
 0xe5b   : > { %18907 = vst [vmem:[#allocation88_spill] sm:$0xff] %v16939_v53  ;;  %v12090_v55 = vpop.eup %12089  ;;  %v16965_v60 = vmul.f32 %v12088_v28, %v16646_v58  ;;  %12109 = vpow2.f32 %v16791_v17  ;;  %v7497_v2 = vadd.f32 %v16812_v21, %v16452_v7  ;;  %v16971_v49 = vpop.f32.mrb[143].mxu1  ;;  %v16980_v58 = vmul.f32 %v18914_v54, %v7495_v11 }
 0xe5c   : > { %18910 = vst [vmem:[#allocation108_spill] sm:$0xff] %v16952_v30  ;;  %18911 = vst [vmem:[#allocation79_spill] sm:$0xff] %v16958_v22  ;;  %v16973_v6 = vpop.f32.mrb[207].mxu0  ;;  %v12092_v38 = vpop.eup %12091  ;;  %v16976_v53 = vmul.f32 %v12090_v55, %v16654_v50  ;;  %12111 = vpow2.f32 %v16817_v63  ;;  %v7806_v17 = vsub.f32 0.0, %v16958_v22  ;;  %v16987_v21 = vmul.f32 1.442695, %v7805_v35 }
 0xe5d   : > { %18912 = vst [vmem:[#allocation113_spill] sm:$0xff] %v16965_v60  ;;  %v12094_v28 = vpop.eup %12093  ;;  %v16984_v60 = vmul.f32 %v12092_v38, %v16660_v23  ;;  %12113 = vpow2.f32 %v16834_v59  ;;  %v18916_v30 = vld [vmem:[#allocation59_spill] sm:$0xff]  ;;  %v16997_v54 = vadd.f32 %v16820_v26, %v16439_v29  ;;  %v7499_v59 = vadd.f32 %v16822_v19, %v16446_v20  ;;  %v11473_v35 = vld [vmem:[#allocation8 + $0x100] ss:$8 sps:$4 sm:$0xff]  }
 0xe5e   : > { %18913 = vst [vmem:[#allocation77_spill] sm:$0xff] %v16976_v53  ;;  %v16990_v10 = vmul.f32 %v18916_v30, %v7497_v2  ;;  %v12096_v50 = vpop.eup %12095  ;;  %v8155_v55 = vadd.f32 1.0, %v12094_v28  ;;  %12115 = vpow2.f32 %v16841_v39  ;;  %v16993_v63 = vmul.f32 1.442695, %v7806_v17  ;;  %v11478_v26 = vld [vmem:[#allocation8 + $0x114] ss:$8 sps:$4 sm:$0xff]  }
 0xe5f   : > { %18915 = vst [vmem:[#allocation81_spill] sm:$0xff] %v16984_v60  ;;  %18917 = vst [vmem:[#allocation83_spill] sm:$0xff] %v16997_v54  ;;  %v12098_v11 = vpop.eup %12097  ;;  %v8157_v23 = vadd.f32 1.0, %v12096_v50  ;;  %12117 = vpow2.f32 %v16843_v25  ;;  %v8558_v30 = vpack.c.bf16 %v8468_v41, %v16904_v42  ;;  %v7811_v39 = vsub.f32 0.0, %v16997_v54  ;;  %v17008_v28 = vpop.f32.mrb[144].mxu1  ;;  %v18919_v60 = vld [vmem:[#allocation61_spill] sm:$0xff] }
 0xe60   : > { %v12100_v2 = vpop.eup %12099  ;;  %12119 = vrcp.f32 %v8155_v55  ;;  %v8156_v38 = vadd.f32 1.0, %v12098_v11  ;;  %v17006_v17 = vadd.f32 %v16829_v61, %v16449_v51  ;;  %v17010_v50 = vpop.f32.mrb[208].mxu0  ;;  %v17013_v42 = vmul.f32 %v18919_v60, %v7499_v59 }
 0xe61   : > { %v12102_v25 = vpop.eup %12101  ;;  %12121 = vrcp.f32 %v8157_v23  ;;  %v8158_v19 = vadd.f32 1.0, %v12100_v2  ;;  %9225 = vmatprep.mubr.bf16.mxu1 %v8558_v30  ;;  %v7501_v41 = vadd.f32 %v16831_v31, %v16452_v7  ;;  %v17017_v55 = vpop.f32.mrb[145].mxu1  ;;  %v17021_v54 = vmul.f32 1.442695, %v7811_v39  ;;  %v18921_v2 = vld [vmem:[#allocation63_spill] sm:$0xff] }
 0xe62   : > { %18918 = vst [vmem:[#allocation110_spill] sm:$0xff] %v17006_v17  ;;  %v17019_v11 = vpop.f32.mrb[209].mxu0  ;;  %v12104_v61 = vpop.eup %12103  ;;  %12123 = vrcp.f32 %v8156_v38  ;;  %v8161_v53 = vadd.f32 1.0, %v12102_v25  ;;  %v7812_v56 = vsub.f32 0.0, %v17006_v17  ;;  %v18920_v23 = vpack.c.bf16 %v16922_v47, %v16867_v9  ;;  %v11476_v38 = vld [vmem:[#allocation8 + $0x110] ss:$8 sps:$4 sm:$0xff]  }
 0xe63   : > { %v17027_v60 = vpop.f32.mrb[146].mxu1  ;;  %v17029_v59 = vpop.f32.mrb[210].mxu0  ;;  %12125 = vrcp.f32 %v8158_v19  ;;  %v8163_v30 = vadd.f32 1.0, %v12104_v61  ;;  %v17032_v22 = vmul.f32 %v18921_v2, %v7501_v41  ;;  %v17036_v39 = vadd.f32 %v16859_v14, %v16439_v29  ;;  %v11481_v41 = vld [vmem:[#allocation8 + $0x124] ss:$8 sps:$4 sm:$0xff]  }
 0xe64   : > { %9226 = vmatmul.mubr.bf16.vlgmr.msra.gmra.mrb[192].mxu1 %v18920_v23  ;;  %v12106_v31 = vpop.eup %12105  ;;  %v17038_v25 = vpop.f32.mrb[147].mxu1  ;;  %12127 = vrcp.f32 %v8161_v53  ;;  %v17045_v19 = vmul.f32 1.442695, %v7812_v56  ;;  %v17055_v17 = vadd.f32 %v16870_v15, %v16449_v51  ;;  %v18926_v56 = vld [vmem:[#allocation65_spill] sm:$0xff] }
 0xe65   : > { %9307 = vmatpush1.bf16.msra.mxu1 %v11473_v35  ;;  %18922 = vst [vmem:[#allocation112_spill] sm:$0xff] %v17036_v39  ;;  %v17040_v9 = vpop.f32.mrb[211].mxu0  ;;  %v12108_v47 = vpop.eup %12107  ;;  %v17043_v23 = vmul.f32 %v12106_v31, %v16663_v37  ;;  %v7505_v35 = vadd.f32 %v16861_v0, %v16446_v20  ;;  %12129 = vrcp.f32 %v8163_v30  ;;  %v7817_v2 = vsub.f32 0.0, %v17036_v39 }
 0xe66   : > { %9308 = vmatprep.subr.bf16.mxu1 %v11478_v26  ;;  %v12110_v61 = vpop.eup %12109  ;;  %v17050_v14 = vmul.f32 %v12108_v47, %v16686_v36  ;;  %18925 = vst [vmem:[#allocation87_spill] sm:$0xff] %v17055_v17  ;;  %12131 = vpow2.f32 %v16856_v52  ;;  %v7507_v0 = vadd.f32 %v16872_v8, %v16452_v7  ;;  %v7818_v15 = vsub.f32 0.0, %v17055_v17  ;;  %v11479_v47 = vld [vmem:[#allocation8 + $0x120] ss:$8 sps:$4 sm:$0xff]   ;;  %v18927_v52 = vld [vmem:[#allocation67_spill] sm:$0xff] }
 0xe67   : > { %18923 = vst [vmem:[#allocation111_spill] sm:$0xff] %v17043_v23  ;;  %v12112_v37 = vpop.eup %12111  ;;  %v8162_v53 = vadd.f32 1.0, %v12110_v61  ;;  %v17059_v26 = vmul.f32 %v18926_v56, %v7505_v35  ;;  %12133 = vpow2.f32 %v16877_v33  ;;  %v17064_v30 = vmul.f32 1.442695, %v7817_v2  ;;  %v11484_v8 = vld [vmem:[#allocation8 + $0x134] ss:$8 sps:$4 sm:$0xff]  }
 0xe68   : > { %18924 = vst [vmem:[#allocation114_spill] sm:$0xff] %v17050_v14  ;;  %v12114_v31 = vpop.eup %12113  ;;  %v8164_v36 = vadd.f32 1.0, %v12112_v37  ;;  %v17068_v23 = vmul.f32 %v18927_v52, %v7507_v0  ;;  %v17072_v35 = vadd.f32 %v16881_v57, %v16439_v29  ;;  %v17074_v37 = vpop.f32.mrb[148].mxu1  ;;  %v17078_v56 = vmul.f32 1.442695, %v7818_v15 }
 0xe69   : > { %9309 = vmatpush1.bf16.msra.mxu1 %v11476_v38  ;;  %v12116_v14 = vpop.eup %12115  ;;  %12135 = vrcp.f32 %v8162_v53  ;;  %v8167_v61 = vadd.f32 1.0, %v12114_v31  ;;  %v17076_v33 = vpop.f32.mrb[212].mxu0  ;;  %v7509_v53 = vadd.f32 %v16883_v16, %v16446_v20  ;;  %v8564_v17 = vpack.c.bf16 %v17032_v22, %v16990_v10  ;;  %v18930_v16 = vld [vmem:[#allocation69_spill] sm:$0xff] }
 0xe6a   : > { %18928 = vst [vmem:[#allocation85_spill] sm:$0xff] %v17072_v35  ;;  %9310 = vmatprep.subr.bf16.mxu1 %v11481_v41  ;;  %v12118_v38 = vpop.eup %12117  ;;  %12137 = vrcp.f32 %v8164_v36  ;;  %v8169_v2 = vadd.f32 1.0, %v12116_v14  ;;  %v17082_v0 = vpop.f32.mrb[149].mxu1  ;;  %v7823_v52 = vsub.f32 0.0, %v17072_v35 }
 0xe6b   : > { %v17084_v31 = vpop.f32.mrb[213].mxu0  ;;  %v12120_v57 = vpop.eup %12119  ;;  %12139 = vrcp.f32 %v8167_v61  ;;  %v8168_v41 = vadd.f32 1.0, %v12118_v38  ;;  %v17097_v34 = vmul.f32 %v18930_v16, %v7509_v53  ;;  %v17101_v61 = vadd.f32 %v16895_v5, %v16449_v51  ;;  %9235 = vmatprep.mubr.bf16.mxu1 %v8564_v17  ;;  %v11482_v53 = vld [vmem:[#allocation8 + $0x130] ss:$8 sps:$4 sm:$0xff]  }
 0xe6c   : > { %v17089_v39 = vpop.f32.mrb[150].mxu1  ;;  %v17091_v14 = vpop.f32.mrb[214].mxu0  ;;  %v17094_v15 = vmul.f32 %v12120_v57, %v16708_v27  ;;  %12141 = vrcp.f32 %v8169_v2  ;;  %v17110_v27 = vmul.f32 1.442695, %v7823_v52  ;;  %v7511_v2 = vadd.f32 %v16897_v45, %v16452_v7  ;;  %v18932_v57 = vld [vmem:[#allocation21_spill] sm:$0xff]  ;;  %v18936_v45 = vld [vmem:[#allocation71_spill] sm:$0xff] }
 0xe6d   : > { %v12122_v36 = vpop.eup %12121  ;;  %9311 = vmatpush1.bf16.msra.mxu1 %v11479_v47  ;;  %v17103_v38 = vpop.f32.mrb[151].mxu1  ;;  %12143 = vrcp.f32 %v8168_v41  ;;  %v7824_v16 = vsub.f32 0.0, %v17101_v61  ;;  %v11487_v41 = vld [vmem:[#allocation8 + $0x144] ss:$8 sps:$4 sm:$0xff]  }
 0xe6e   : > { %18929 = vst [vmem:[#allocation95_spill] sm:$0xff] %v17094_v15  ;;  %v17105_v10 = vpop.f32.mrb[215].mxu0  ;;  %v12124_v22 = vpop.eup %12123  ;;  %v17108_v35 = vmul.f32 %v12122_v36, %v16713_v24  ;;  %9312 = vmatprep.subr.bf16.mxu1 %v11484_v8  ;;  %12145 = vpow2.f32 %v16889_v46  ;;  %v8563_v24 = vpack.c.bf16 %v17013_v42, %v16980_v58  ;;  %v18934_v36 = vld [vmem:[#allocation24_spill] sm:$0xff]  ;;  %v17126_v8 = vmul.f32 %v18936_v45, %v7511_v2  ;;  %v18943_v45 = vld [vmem:[#allocation73_spill] sm:$0xff] }
 0xe6f   : > { %v12126_v5 = vpop.eup %12125  ;;  %v17115_v47 = vmul.f32 %v12124_v22, %v18932_v57  ;;  %12147 = vpow2.f32 %v16927_v32  ;;  %v17130_v22 = vadd.f32 %v16934_v12, %v16439_v29  ;;  %v18938_v57 = vld [vmem:[#allocation76_spill] sm:$0xff]  ;;  %v17136_v58 = vmul.f32 1.442695, %v7824_v16  ;;  %v17149_v16 = vpop.f32.mrb[152].mxu1 }
 0xe70   : > { %18931 = vst [vmem:[#allocation90_spill] sm:$0xff] %v17108_v35  ;;  %v12128_v52 = vpop.eup %12127  ;;  %v17122_v17 = vmul.f32 %v12126_v5, %v18934_v36  ;;  %12149 = vpow2.f32 %v16941_v62  ;;  %9236 = vmatmul.mubr.bf16.gmra.mrb[196].mxu1 %v8563_v24  ;;  %v7515_v42 = vadd.f32 %v16936_v40, %v16446_v20  ;;  %v18940_v5 = vld [vmem:[#allocation27_spill] sm:$0xff]  ;;  %v11485_v62 = vld [vmem:[#allocation8 + $0x140] ss:$8 sps:$4 sm:$0xff]   ;;  %v17151_v24 = vpop.f32.mrb[216].mxu0 }
 0xe71   : > { %18933 = vst [vmem:[#allocation36_spill] sm:$0xff] %v17115_v47  ;;  %18937 = vst [vmem:[#allocation75_spill] sm:$0xff] %v17130_v22  ;;  %v12130_v46 = vpop.eup %12129  ;;  %v17133_v35 = vmul.f32 %v12128_v52, %v18938_v57  ;;  %12151 = vpow2.f32 %v16987_v21  ;;  %9313 = vmatpush1.bf16.msra.mxu1 %v11482_v53  ;;  %v7829_v12 = vsub.f32 0.0, %v17130_v22  ;;  %v17147_v52 = vadd.f32 %v16947_v18, %v16449_v51  ;;  %v11490_v53 = vld [vmem:[#allocation8 + $0x154] ss:$8 sps:$4 sm:$0xff]   ;;  %v17159_v57 = vpop.f32.mrb[153].mxu1 }
 0xe72   : > { %18935 = vst [vmem:[#allocation51_spill] sm:$0xff] %v17122_v17  ;;  %v12132_v32 = vpop.eup %12131  ;;  %v17141_v2 = vmul.f32 %v12130_v46, %v18940_v5  ;;  %12153 = vpow2.f32 %v16993_v63  ;;  %v17155_v46 = vmul.f32 %v18943_v45, %v7515_v42  ;;  %v7517_v21 = vadd.f32 %v16949_v1, %v16452_v7  ;;  %9314 = vmatprep.subr.bf16.mxu1 %v11487_v41  ;;  %v17161_v18 = vpop.f32.mrb[217].mxu0  ;;  %v18945_v1 = vld [vmem:[#allocation31_spill] sm:$0xff]  ;;  %v18948_v22 = vld [vmem:[#allocation30_spill] sm:$0xff] }
 0xe73   : > { %18939 = vst [vmem:[#allocation57_spill] sm:$0xff] %v17133_v35  ;;  %18942 = vst [vmem:[#allocation61_spill] sm:$0xff] %v17147_v52  ;;  %v12134_v36 = vpop.eup %12133  ;;  %v8170_v40 = vadd.f32 1.0, %v12132_v32  ;;  %12155 = vpow2.f32 %v17021_v54  ;;  %v17164_v17 = vmul.f32 1.442695, %v7829_v12  ;;  %v7830_v63 = vsub.f32 0.0, %v17147_v52 }
 0xe74   : > { %18941 = vst [vmem:[#allocation59_spill] sm:$0xff] %v17141_v2  ;;  %v12136_v5 = vpop.eup %12135  ;;  %v8081_v2 = vadd.f32 1.0, %v12134_v36  ;;  %v17167_v32 = vpop.f32.mrb[154].mxu1  ;;  %v18947_v35 = vld [vmem:[#allocation72_spill] sm:$0xff]  ;;  %v17179_v36 = vadd.f32 %v16960_v4, %v16439_v29 }
 0xe75   : > { %v17169_v42 = vpop.f32.mrb[218].mxu0  ;;  %v12138_v45 = vpop.eup %12137  ;;  %v17172_v41 = vmul.f32 %v12136_v5, %v18945_v1  ;;  %12157 = vrcp.f32 %v8170_v40  ;;  %v17175_v47 = vmul.f32 %v18947_v35, %v7517_v21  ;;  %v7519_v40 = vadd.f32 %v16962_v13, %v16446_v20  ;;  %9315 = vmatpush1.bf16.msra.mxu1 %v11485_v62  ;;  %v11488_v35 = vld [vmem:[#allocation8 + $0x150] ss:$8 sps:$4 sm:$0xff]   ;;  %v18950_v5 = vld [vmem:[#allocation78_spill] sm:$0xff] }
 0xe76   : > { %18944 = vst [vmem:[#allocation63_spill] sm:$0xff] %v17169_v42  ;;  %v17181_v54 = vpop.f32.mrb[155].mxu1  ;;  %v17183_v12 = vpop.f32.mrb[219].mxu0  ;;  %v17186_v15 = vmul.f32 %v12138_v45, %v18948_v22  ;;  %12159 = vrcp.f32 %v8081_v2  ;;  %v17188_v42 = vmul.f32 1.442695, %v7830_v63  ;;  %v7835_v1 = vsub.f32 0.0, %v17179_v36  ;;  %9316 = vmatprep.subr.bf16.mxu1 %v11490_v53 }
 0xe77   : > { %18946 = vst [vmem:[#allocation65_spill] sm:$0xff] %v17172_v41  ;;  %v12140_v52 = vpop.eup %12139  ;;  %12161 = vpow2.f32 %v17045_v19  ;;  %v8570_v22 = vpack.c.bf16 %v17126_v8, %v17068_v23  ;;  %v11493_v2 = vld [vmem:[#allocation8 + $0x164] ss:$8 sps:$4 sm:$0xff]   ;;  %v18954_v13 = vld [vmem:[#allocation103_spill] sm:$0xff]  ;;  %v7521_v8 = vadd.f32 %v16973_v6, %v16452_v7 }
 0xe78   : > { %18949 = vst [vmem:[#allocation67_spill] sm:$0xff] %v17186_v15  ;;  %v12142_v21 = vpop.eup %12141  ;;  %v17193_v4 = vmul.f32 %v12140_v52, %v18950_v5  ;;  %v18952_v45 = vld [vmem:[#allocation33_spill] sm:$0xff]  ;;  %12163 = vpow2.f32 %v17064_v30  ;;  %v17204_v62 = vmul.f32 %v18954_v13, %v7519_v40  ;;  %v17208_v52 = vadd.f32 %v16971_v49, %v16449_v51  ;;  %v18956_v5 = vld [vmem:[#allocation35_spill] sm:$0xff] }
 0xe79   : > { %v12144_v63 = vpop.eup %12143  ;;  %v17200_v15 = vmul.f32 %v12142_v21, %v18952_v45  ;;  %12165 = vpow2.f32 %v17078_v56  ;;  %v17214_v23 = vmul.f32 1.442695, %v7835_v1  ;;  %9245 = vmatprep.mubr.bf16.mxu1 %v8570_v22  ;;  %v8569_v49 = vpack.c.bf16 %v17097_v34, %v17059_v26  ;;  %9317 = vmatpush1.bf16.msra.mxu1 %v11488_v35  ;;  %v11491_v21 = vld [vmem:[#allocation8 + $0x160] ss:$8 sps:$4 sm:$0xff]   ;;  %v17224_v56 = vpop.f32.mrb[220].mxu0 }
 0xe7a   : > { %18951 = vst [vmem:[#allocation69_spill] sm:$0xff] %v17193_v4  ;;  %18955 = vst [vmem:[#allocation24_spill] sm:$0xff] %v17208_v52  ;;  %v12146_v19 = vpop.eup %12145  ;;  %v17211_v4 = vmul.f32 %v12144_v63, %v18956_v5  ;;  %12167 = vpow2.f32 %v17110_v27  ;;  %v7836_v40 = vsub.f32 0.0, %v17208_v52  ;;  %v17222_v63 = vpop.f32.mrb[156].mxu1  ;;  %v18958_v6 = vld [vmem:[#allocation101_spill] sm:$0xff]  ;;  %v17232_v27 = vadd.f32 %v17008_v28, %v16439_v29  ;;  %9318 = vmatprep.subr.bf16.mxu1 %v11493_v2 }
 0xe7b   : > { %18953 = vst [vmem:[#allocation21_spill] sm:$0xff] %v17200_v15  ;;  %v12148_v30 = vpop.eup %12147  ;;  %v8082_v53 = vadd.f32 1.0, %v12146_v19  ;;  %12169 = vpow2.f32 %v17136_v58  ;;  %v17228_v45 = vmul.f32 %v18958_v6, %v7521_v8  ;;  %v11496_v13 = vld [vmem:[#allocation8 + $0x174] ss:$8 sps:$4 sm:$0xff]   ;;  %v17234_v34 = vpop.f32.mrb[157].mxu1  ;;  %9246 = vmatmul.mubr.bf16.gmra.mrb[200].mxu1 %v8569_v49  ;;  %v7525_v58 = vadd.f32 %v17010_v50, %v16446_v20 }
 0xe7c   : > { %18957 = vst [vmem:[#allocation71_spill] sm:$0xff] %v17211_v4  ;;  %v12150_v1 = vpop.eup %12149  ;;  %v8087_v22 = vadd.f32 1.0, %v12148_v30  ;;  %18959 = vst [vmem:[#allocation76_spill] sm:$0xff] %v17232_v27  ;;  %v17236_v26 = vpop.f32.mrb[221].mxu0  ;;  %v17238_v5 = vmul.f32 1.442695, %v7836_v40  ;;  %v17249_v15 = vadd.f32 %v17017_v55, %v16449_v51 }
 0xe7d   : > { %v12152_v35 = vpop.eup %12151  ;;  %12171 = vrcp.f32 %v8082_v53  ;;  %v8088_v19 = vadd.f32 1.0, %v12150_v1  ;;  %v17242_v8 = vpop.f32.mrb[158].mxu1  ;;  %v7841_v6 = vsub.f32 0.0, %v17232_v27  ;;  %v18962_v1 = vld [vmem:[#allocation32_spill] sm:$0xff]  ;;  %9319 = vmatpush1.bf16.msra.mxu1 %v11491_v21 }
 0xe7e   : > { %v17244_v30 = vpop.f32.mrb[222].mxu0  ;;  %v12154_v28 = vpop.eup %12153  ;;  %12173 = vrcp.f32 %v8087_v22  ;;  %v8093_v2 = vadd.f32 1.0, %v12152_v35  ;;  %v17256_v4 = vmul.f32 %v18962_v1, %v7525_v58  ;;  %v7527_v22 = vadd.f32 %v17019_v11, %v16452_v7  ;;  %v11494_v35 = vld [vmem:[#allocation8 + $0x170] ss:$8 sps:$4 sm:$0xff]   ;;  %9320 = vmatprep.subr.bf16.mxu1 %v11496_v13 }
 0xe7f   : > { %v17251_v53 = vpop.f32.mrb[159].mxu1  ;;  %v17253_v40 = vpop.f32.mrb[223].mxu0  ;;  %12175 = vrcp.f32 %v8088_v19  ;;  %v8094_v50 = vadd.f32 1.0, %v12154_v28  ;;  %v17260_v55 = vmul.f32 1.442695, %v7841_v6  ;;  %v18963_v19 = vld [vmem:[#allocation39_spill] sm:$0xff]  ;;  %v17271_v11 = vadd.f32 %v17027_v60, %v16439_v29 }
 0xe80   : > { %18960 = vst [vmem:[#allocation27_spill] sm:$0xff] %v17251_v53  ;;  %18961 = vst [vmem:[#allocation73_spill] sm:$0xff] %v17253_v40  ;;  %v12156_v49 = vpop.eup %12155  ;;  %12177 = vrcp.f32 %v8093_v2  ;;  %v7842_v53 = vsub.f32 0.0, %v17249_v15  ;;  %v11499_v40 = vld [vmem:[#allocation8 + $0x184] ss:$8 sps:$4 sm:$0xff]   ;;  %v18965_v58 = vld [vmem:[#allocation28_spill] sm:$0xff]  ;;  %v7529_v13 = vadd.f32 %v17029_v59, %v16446_v20  ;;  %v8576_v60 = vpack.c.bf16 %v17228_v45, %v17175_v47 }
 0xe81   : > { %v12158_v27 = vpop.eup %12157  ;;  %v8099_v52 = vadd.f32 1.0, %v12156_v49  ;;  %12179 = vrcp.f32 %v8094_v50  ;;  %v17267_v1 = vmul.f32 %v18965_v58, %v7527_v22  ;;  %v18966_v2 = vld [vmem:[#allocation41_spill] sm:$0xff]  ;;  %v7847_v50 = vsub.f32 0.0, %v17271_v11  ;;  %9321 = vmatpush1.bf16.msra.mxu1 %v11494_v35  ;;  %v17284_v58 = vpop.f32.mrb[160].mxu1 }
 0xe82   : > { %v12160_v41 = vpop.eup %12159  ;;  %v17264_v28 = vmul.f32 %v12158_v27, %v18963_v19  ;;  %v17276_v49 = vmul.f32 1.442695, %v7842_v53  ;;  %v11497_v22 = vld [vmem:[#allocation8 + $0x180] ss:$8 sps:$4 sm:$0xff]   ;;  %v17292_v59 = vadd.f32 %v17038_v25, %v16449_v51  ;;  %9322 = vmatprep.subr.bf16.mxu1 %v11499_v40  ;;  %v17296_v47 = vpop.f32.mrb[161].mxu1  ;;  %9255 = vmatprep.mubr.bf16.mxu1 %v8576_v60 }
 0xe83   : > { %v12162_v21 = vpop.eup %12161  ;;  %v17274_v6 = vmul.f32 %v12160_v41, %v18966_v2  ;;  %12181 = vrcp.f32 %v8099_v52  ;;  %v18968_v53 = vld [vmem:[#allocation26_spill] sm:$0xff]  ;;  %18970 = vst [vmem:[#allocation78_spill] sm:$0xff] %v17296_v47 }
 0xe84   : > { %18964 = vst [vmem:[#allocation31_spill] sm:$0xff] %v17264_v28  ;;  %v12164_v27 = vpop.eup %12163  ;;  %v8100_v19 = vadd.f32 1.0, %v12162_v21  ;;  %12183 = vpow2.f32 %v17164_v17  ;;  %v17288_v2 = vmul.f32 %v18968_v53, %v7529_v13  ;;  %v11502_v17 = vld [vmem:[#allocation8 + $0x194] ss:$8 sps:$4 sm:$0xff]   ;;  %v17294_v21 = vpop.f32.mrb[224].mxu0  ;;  %v7848_v53 = vsub.f32 0.0, %v17292_v59 }
 0xe85   : > { %18967 = vst [vmem:[#allocation72_spill] sm:$0xff] %v17274_v6  ;;  %v12166_v41 = vpop.eup %12165  ;;  %v8105_v52 = vadd.f32 1.0, %v12164_v27  ;;  %12185 = vpow2.f32 %v17188_v42  ;;  %18969 = vst [vmem:[#allocation30_spill] sm:$0xff] %v17294_v21  ;;  %v17298_v28 = vmul.f32 1.442695, %v7847_v50  ;;  %v7531_v42 = vadd.f32 %v17040_v9, %v16452_v7  ;;  %v17302_v13 = vpop.f32.mrb[225].mxu0  ;;  %9323 = vmatpush1.bf16.msra.mxu1 %v11497_v22 }
 0xe86   : > { %v12168_v45 = vpop.eup %12167  ;;  %12187 = vrcp.f32 %v8100_v19  ;;  %v8106_v35 = vadd.f32 1.0, %v12166_v41  ;;  %18971 = vst [vmem:[#allocation33_spill] sm:$0xff] %v17302_v13  ;;  %v17304_v27 = vpop.f32.mrb[162].mxu1  ;;  %v8575_v6 = vpack.c.bf16 %v17204_v62, %v17155_v46  ;;  %v18972_v9 = vld [vmem:[#allocation37_spill] sm:$0xff]  ;;  %v17318_v13 = vadd.f32 %v17074_v37, %v16439_v29  ;;  %9324 = vmatprep.subr.bf16.mxu1 %v11502_v17  ;;  %v18973_v17 = vld [vmem:[#allocation107_spill] sm:$0xff] }
 0xe87   : > { %v12170_v25 = vpop.eup %12169  ;;  %12189 = vrcp.f32 %v8105_v52  ;;  %v8111_v40 = vadd.f32 1.0, %v12168_v45  ;;  %v17309_v19 = vpop.f32.mrb[226].mxu0  ;;  %v17314_v47 = vmul.f32 %v18972_v9, %v7531_v42  ;;  %v11500_v52 = vld [vmem:[#allocation8 + $0x190] ss:$8 sps:$4 sm:$0xff]   ;;  %v8003_v62 = vmul.f32 1.442695, %v7848_v53 }
 0xe88   : > { %v17311_v50 = vpop.f32.mrb[163].mxu1  ;;  %v12172_v60 = vpop.eup %12171  ;;  %12191 = vrcp.f32 %v8106_v35  ;;  %v8112_v41 = vadd.f32 1.0, %v12170_v25  ;;  %9256 = vmatmul.mubr.bf16.gmra.mrb[204].mxu1 %v8575_v6  ;;  %v7535_v35 = vadd.f32 %v17076_v33, %v16446_v20  ;;  %v11505_v42 = vld [vmem:[#allocation8 + $0x1a4] ss:$8 sps:$4 sm:$0xff]   ;;  %v7853_v22 = vsub.f32 0.0, %v17318_v13 }
 0xe89   : > { %v17320_v45 = vpop.f32.mrb[227].mxu0  ;;  %v12174_v21 = vpop.eup %12173  ;;  %v17323_v46 = vmul.f32 %v12172_v60, %v16854_v48  ;;  %12193 = vrcp.f32 %v8111_v40  ;;  %v17333_v9 = vadd.f32 %v17082_v0, %v16449_v51  ;;  %9325 = vmatpush1.bf16.msra.mxu1 %v11500_v52 }
 0xe8a   : > { %v12176_v25 = vpop.eup %12175  ;;  %v17328_v37 = vmul.f32 %v12174_v21, %v16893_v44  ;;  %12195 = vrcp.f32 %v8112_v41  ;;  %v17340_v33 = vmul.f32 %v16875_v3, %v7535_v35  ;;  %v7537_v44 = vadd.f32 %v17084_v31, %v16452_v7  ;;  %v17349_v60 = vpop.f32.mrb[164].mxu1  ;;  %v18975_v41 = vld [vmem:[#allocation79_spill] sm:$0xff]  ;;  %v18977_v31 = vld [vmem:[#allocation84_spill] sm:$0xff]  ;;  %9326 = vmatprep.subr.bf16.mxu1 %v11505_v42 }
 0xe8b   : > { %v12178_v48 = vpop.eup %12177  ;;  %v17336_v40 = vmul.f32 %v12176_v25, %v16915_v43  ;;  %12197 = vpow2.f32 %v17214_v23  ;;  %v8013_v0 = vmul.f32 1.442695, %v7853_v22  ;;  %v7854_v53 = vsub.f32 0.0, %v17333_v9  ;;  %v11503_v43 = vld [vmem:[#allocation8 + $0x1a0] ss:$8 sps:$4 sm:$0xff]   ;;  %v17362_v22 = vpop.f32.mrb[228].mxu0 }
 0xe8c   : > { %v12180_v6 = vpop.eup %12179  ;;  %v17345_v21 = vmul.f32 %v12178_v48, %v18973_v17  ;;  %12199 = vpow2.f32 %v17238_v5  ;;  %v17356_v35 = vmul.f32 %v18977_v31, %v7537_v44  ;;  %v17360_v25 = vadd.f32 %v17089_v39, %v16439_v29  ;;  %v11508_v5 = vld [vmem:[#allocation8 + $0x1b4] ss:$8 sps:$4 sm:$0xff]   ;;  %v17364_v52 = vpop.f32.mrb[165].mxu1 }
 0xe8d   : > { %v12182_v23 = vpop.eup %12181  ;;  %v17352_v3 = vmul.f32 %v12180_v6, %v18975_v41  ;;  %12201 = vpow2.f32 %v17260_v55  ;;  %v18978_v17 = vld [vmem:[#allocation83_spill] sm:$0xff]  ;;  %v8015_v55 = vmul.f32 1.442695, %v7854_v53  ;;  %v7539_v44 = vadd.f32 %v17091_v14, %v16446_v20  ;;  %v17372_v6 = vpop.f32.mrb[229].mxu0  ;;  %v18983_v14 = vld [vmem:[#allocation93_spill] sm:$0xff]  ;;  %9327 = vmatpush1.bf16.msra.mxu1 %v11503_v43 }
 0xe8e   : > { %18974 = vst [vmem:[#allocation103_spill] sm:$0xff] %v17345_v21  ;;  %v12184_v48 = vpop.eup %12183  ;;  %v17367_v21 = vmul.f32 %v12182_v23, %v18978_v17  ;;  %12203 = vpow2.f32 %v17276_v49  ;;  %18980 = vst [vmem:[#allocation32_spill] sm:$0xff] %v17372_v6  ;;  %v17374_v39 = vpop.f32.mrb[166].mxu1  ;;  %v7859_v31 = vsub.f32 0.0, %v17360_v25  ;;  %v8582_v23 = vpack.c.bf16 %v17314_v47, %v17267_v1  ;;  %v18984_v6 = vld [vmem:[#allocation110_spill] sm:$0xff]  ;;  %9328 = vmatprep.subr.bf16.mxu1 %v11508_v5 }
 0xe8f   : > { %18976 = vst [vmem:[#allocation35_spill] sm:$0xff] %v17352_v3  ;;  %18981 = vst [vmem:[#allocation39_spill] sm:$0xff] %v17374_v39  ;;  %v12186_v42 = vpop.eup %12185  ;;  %v8117_v41 = vadd.f32 1.0, %v12184_v48  ;;  %12205 = vpow2.f32 %v17298_v28  ;;  %v17380_v17 = vpop.f32.mrb[230].mxu0  ;;  %v17385_v3 = vmul.f32 %v18983_v14, %v7539_v44  ;;  %v17389_v48 = vadd.f32 %v17103_v38, %v16449_v51  ;;  %v18986_v14 = vld [vmem:[#allocation112_spill] sm:$0xff] }
 0xe90   : > { %18979 = vst [vmem:[#allocation101_spill] sm:$0xff] %v17367_v21  ;;  %v17382_v49 = vpop.f32.mrb[167].mxu1  ;;  %v12188_v53 = vpop.eup %12187  ;;  %v8118_v21 = vadd.f32 1.0, %v12186_v42  ;;  %12207 = vpow2.f32 %v8003_v62  ;;  %v8025_v47 = vmul.f32 1.442695, %v7859_v31  ;;  %9265 = vmatprep.mubr.bf16.mxu1 %v8582_v23  ;;  %v7541_v62 = vadd.f32 %v17105_v10, %v16452_v7  ;;  %v18990_v23 = vld [vmem:[#allocation108_spill] sm:$0xff] }
 0xe91   : > { %18982 = vst [vmem:[#allocation28_spill] sm:$0xff] %v17382_v49  ;;  %v17391_v28 = vpop.f32.mrb[231].mxu0  ;;  %v12190_v39 = vpop.eup %12189  ;;  %v17394_v1 = vmul.f32 %v12188_v53, %v18984_v6  ;;  %12209 = vrcp.f32 %v8117_v41  ;;  %v11506_v42 = vld [vmem:[#allocation8 + $0x1b0] ss:$8 sps:$4 sm:$0xff]   ;;  %v7860_v38 = vsub.f32 0.0, %v17389_v48  ;;  %v8581_v43 = vpack.c.bf16 %v17288_v2, %v17256_v4 }
 0xe92   : > { %v12192_v44 = vpop.eup %12191  ;;  %v17399_v49 = vmul.f32 %v12190_v39, %v18986_v14  ;;  %12211 = vrcp.f32 %v8118_v21  ;;  %v11511_v6 = vld [vmem:[#allocation8 + $0x1c4] ss:$8 sps:$4 sm:$0xff]   ;;  %v18988_v41 = vld [vmem:[#allocation87_spill] sm:$0xff]  ;;  %v8528_v10 = vmul.f32 %v18990_v23, %v7541_v62  ;;  %v17410_v5 = vadd.f32 %v17149_v16, %v16439_v29  ;;  %v17417_v2 = vpop.f32.mrb[168].mxu1  ;;  %9329 = vmatpush1.bf16.msra.mxu1 %v11506_v42 }
 0xe93   : > { %18985 = vst [vmem:[#allocation41_spill] sm:$0xff] %v17394_v1  ;;  %v12194_v53 = vpop.eup %12193  ;;  %v17405_v31 = vmul.f32 %v12192_v44, %v18988_v41  ;;  %12213 = vpow2.f32 %v8013_v0  ;;  %v18991_v14 = vld [vmem:[#allocation85_spill] sm:$0xff]  ;;  %9266 = vmatmul.mubr.bf16.gmra.mrb[208].mxu1 %v8581_v43  ;;  %v7545_v4 = vadd.f32 %v17151_v24, %v16446_v20  ;;  %v17425_v62 = vadd.f32 %v17159_v57, %v16449_v51  ;;  %v17429_v43 = vpop.f32.mrb[169].mxu1 }
 0xe94   : > { %18987 = vst [vmem:[#allocation26_spill] sm:$0xff] %v17399_v49  ;;  %v12196_v39 = vpop.eup %12195  ;;  %v17413_v21 = vmul.f32 %v12194_v53, %v18991_v14  ;;  %12215 = vpow2.f32 %v8015_v55  ;;  %v8027_v49 = vmul.f32 1.442695, %v7860_v38  ;;  %v7865_v16 = vsub.f32 0.0, %v17410_v5  ;;  %v11509_v55 = vld [vmem:[#allocation8 + $0x1c0] ss:$8 sps:$4 sm:$0xff]   ;;  %9330 = vmatprep.subr.bf16.mxu1 %v11511_v6 }
 0xe95   : > { %18989 = vst [vmem:[#allocation37_spill] sm:$0xff] %v17405_v31  ;;  %v12198_v44 = vpop.eup %12197  ;;  %v17420_v0 = vmul.f32 %v12196_v39, %v17101_v61  ;;  %12217 = vpow2.f32 %v8025_v47  ;;  %v17427_v38 = vpop.f32.mrb[232].mxu0  ;;  %18995 = vst [vmem:[#allocation83_spill] sm:$0xff] %v17429_v43  ;;  %v18996_v41 = vld [vmem:[#allocation77_spill] sm:$0xff]  ;;  %v7547_v61 = vadd.f32 %v17161_v18, %v16452_v7  ;;  %v11514_v47 = vld [vmem:[#allocation8 + $0x1d4] ss:$8 sps:$4 sm:$0xff]  }
 0xe96   : > { %18992 = vst [vmem:[#allocation107_spill] sm:$0xff] %v17413_v21  ;;  %18994 = vst [vmem:[#allocation84_spill] sm:$0xff] %v17427_v38  ;;  %v12200_v24 = vpop.eup %12199  ;;  %v8123_v53 = vadd.f32 1.0, %v12198_v44  ;;  %12219 = vpow2.f32 %v8027_v49  ;;  %v17432_v23 = vmul.f32 %v18996_v41, %v7545_v4  ;;  %v17436_v39 = vpop.f32.mrb[233].mxu0  ;;  %v7866_v21 = vsub.f32 0.0, %v17425_v62  ;;  %v19002_v41 = vld [vmem:[#allocation111_spill] sm:$0xff]  ;;  %9331 = vmatpush1.bf16.msra.mxu1 %v11509_v55 }
 0xe97   : > { %18993 = vst [vmem:[#allocation79_spill] sm:$0xff] %v17420_v0  ;;  %18997 = vst [vmem:[#allocation93_spill] sm:$0xff] %v17436_v39  ;;  %v17438_v57 = vpop.f32.mrb[170].mxu1  ;;  %v12202_v42 = vpop.eup %12201  ;;  %v8124_v14 = vadd.f32 1.0, %v12200_v24  ;;  %v8037_v0 = vmul.f32 1.442695, %v7865_v16  ;;  %v17443_v49 = vadd.f32 %v17167_v32, %v16439_v29  ;;  %v17450_v31 = vmul.f32 %v19002_v41, %v7547_v61  ;;  %9332 = vmatprep.subr.bf16.mxu1 %v11514_v47 }
 0xe98   : > { %18998 = vst [vmem:[#allocation110_spill] sm:$0xff] %v17438_v57  ;;  %v17445_v4 = vpop.f32.mrb[234].mxu0  ;;  %v17447_v44 = vpop.f32.mrb[171].mxu1  ;;  %12221 = vrcp.f32 %v8123_v53  ;;  %v8129_v6 = vadd.f32 1.0, %v12202_v42  ;;  %v19003_v57 = vld [vmem:[#allocation63_spill] sm:$0xff]  ;;  %v8588_v61 = vpack.c.bf16 %v8528_v10, %v17356_v35  ;;  %v8587_v35 = vpack.c.bf16 %v17385_v3, %v17340_v33 }
 0xe99   : > { %18999 = vst [vmem:[#allocation112_spill] sm:$0xff] %v17443_v49  ;;  %19000 = vst [vmem:[#allocation87_spill] sm:$0xff] %v17445_v4  ;;  %v12204_v18 = vpop.eup %12203  ;;  %v7549_v24 = vadd.f32 %v19003_v57, %v16446_v20  ;;  %v17454_v16 = vpop.f32.mrb[235].mxu0  ;;  %12223 = vrcp.f32 %v8124_v14  ;;  %v8039_v32 = vmul.f32 1.442695, %v7866_v21  ;;  %v7871_v43 = vsub.f32 0.0, %v17443_v49 }
 0xe9a   : > { %19001 = vst [vmem:[#allocation108_spill] sm:$0xff] %v17447_v44  ;;  %19004 = vst [vmem:[#allocation85_spill] sm:$0xff] %v17454_v16  ;;  %v12206_v39 = vpop.eup %12205  ;;  %v8130_v1 = vadd.f32 1.0, %v12204_v18  ;;  %v11512_v4 = vld [vmem:[#allocation8 + $0x1d0] ss:$8 sps:$4 sm:$0xff]   ;;  %12225 = vrcp.f32 %v8129_v6  ;;  %v17463_v21 = vadd.f32 %v17181_v54, %v16449_v51  ;;  %9275 = vmatprep.mubr.bf16.mxu1 %v8588_v61  ;;  %v17472_v10 = vpop.f32.mrb[172].mxu1 }
 0xe9b   : > { %v12208_v44 = vpop.eup %12207  ;;  %v8135_v53 = vadd.f32 1.0, %v12206_v39  ;;  %v19005_v42 = vld [vmem:[#allocation95_spill] sm:$0xff]  ;;  %v11517_v57 = vld [vmem:[#allocation8 + $0x1e4] ss:$8 sps:$4 sm:$0xff]   ;;  %v8049_v14 = vmul.f32 1.442695, %v7871_v43  ;;  %v7551_v39 = vadd.f32 %v17183_v12, %v16452_v7  ;;  %9333 = vmatpush1.bf16.msra.mxu1 %v11512_v4 }
 0xe9c   : > { %v17458_v38 = vmul.f32 %v19005_v42, %v7549_v24  ;;  %v12210_v41 = vpop.eup %12209  ;;  %12227 = vrcp.f32 %v8130_v1  ;;  %v8136_v16 = vadd.f32 1.0, %v12208_v44  ;;  %v19006_v18 = vld [vmem:[#allocation75_spill] sm:$0xff]  ;;  %v19007_v43 = vld [vmem:[#allocation61_spill] sm:$0xff]  ;;  %v7872_v54 = vsub.f32 0.0, %v17463_v21  ;;  %v17482_v24 = vpop.f32.mrb[236].mxu0  ;;  %9276 = vmatmul.mubr.bf16.gmra.mrb[212].mxu1 %v8587_v35  ;;  %9334 = vmatprep.subr.bf16.mxu1 %v11517_v57 }
 0xe9d   : > { %v12212_v55 = vpop.eup %12211  ;;  %v17466_v49 = vmul.f32 %v12210_v41, %v19006_v18  ;;  %12229 = vrcp.f32 %v8135_v53  ;;  %v17480_v44 = vadd.f32 %v17222_v63, %v16439_v29  ;;  %v11515_v6 = vld [vmem:[#allocation8 + $0x1e0] ss:$8 sps:$4 sm:$0xff]   ;;  %v17484_v12 = vpop.f32.mrb[173].mxu1  ;;  %v19009_v53 = vld [vmem:[#allocation36_spill] sm:$0xff] }
 0xe9e   : > { %v12214_v1 = vpop.eup %12213  ;;  %v17475_v47 = vmul.f32 %v12212_v55, %v19007_v43  ;;  %12231 = vrcp.f32 %v8136_v16  ;;  %v8540_v42 = vmul.f32 %v19009_v53, %v7551_v39  ;;  %v7555_v16 = vadd.f32 %v17224_v56, %v16446_v20  ;;  %v11520_v61 = vld [vmem:[#allocation8 + $0x1f4] ss:$8 sps:$4 sm:$0xff]   ;;  %v17489_v41 = vpop.f32.mrb[237].mxu0  ;;  %v19012_v56 = vld [vmem:[#allocation57_spill] sm:$0xff] }
 0xe9f   : > { %v12216_v33 = vpop.eup %12215  ;;  %v8141_v3 = vadd.f32 1.0, %v12214_v1  ;;  %12233 = vpow2.f32 %v8037_v0  ;;  %v17491_v63 = vpop.f32.mrb[174].mxu1  ;;  %v8051_v18 = vmul.f32 1.442695, %v7872_v54  ;;  %v7877_v43 = vsub.f32 0.0, %v17480_v44  ;;  %9335 = vmatpush1.bf16.msra.mxu1 %v11515_v6 }
 0xea0   : > { %19008 = vst [vmem:[#allocation77_spill] sm:$0xff] %v17475_v47  ;;  %v12218_v4 = vpop.eup %12217  ;;  %v8142_v55 = vadd.f32 1.0, %v12216_v33  ;;  %12235 = vpow2.f32 %v8039_v32  ;;  %v17494_v1 = vpop.f32.mrb[238].mxu0  ;;  %v17499_v57 = vmul.f32 %v19012_v56, %v7555_v16  ;;  %v17503_v53 = vadd.f32 %v17234_v34, %v16449_v51  ;;  %9336 = vmatprep.subr.bf16.mxu1 %v11520_v61  ;;  %v19015_v56 = vld [vmem:[#allocation24_spill] sm:$0xff] }
 0xea1   : > { %19010 = vst [vmem:[#allocation111_spill] sm:$0xff] %v17494_v1  ;;  %v17496_v0 = vpop.f32.mrb[175].mxu1  ;;  %v12220_v39 = vpop.eup %12219  ;;  %12237 = vrcp.f32 %v8141_v3  ;;  %v8147_v35 = vadd.f32 1.0, %v12218_v4  ;;  %v8061_v54 = vmul.f32 1.442695, %v7877_v43  ;;  %v7557_v33 = vadd.f32 %v17236_v26, %v16452_v7  ;;  %v19014_v26 = vld [vmem:[#allocation65_spill] sm:$0xff] }
 0xea2   : > { %19011 = vst [vmem:[#allocation63_spill] sm:$0xff] %v17496_v0  ;;  %v17505_v47 = vpop.f32.mrb[239].mxu0  ;;  %12239 = vrcp.f32 %v8142_v55  ;;  %v8148_v32 = vadd.f32 1.0, %v12220_v39  ;;  %v11518_v0 = vld [vmem:[#allocation8 + $0x1f0] ss:$8 sps:$4 sm:$0xff]   ;;  %v12222_v1 = vpop.eup %12221  ;;  %v7878_v3 = vsub.f32 0.0, %v17503_v53  ;;  %v17512_v16 = vadd.f32 %v17242_v8, %v16439_v29 }
 0xea3   : > { %19013 = vst [vmem:[#allocation95_spill] sm:$0xff] %v17505_v47  ;;  %12241 = vrcp.f32 %v8147_v35  ;;  %v7559_v34 = vadd.f32 %v17244_v30, %v16446_v20  ;;  %v11523_v4 = vld [vmem:[#allocation8 + $0x204] ss:$8 sps:$4 sm:$0xff]   ;;  %v12224_v55 = vpop.eup %12223  ;;  %v17517_v43 = vmul.f32 %v12222_v1, %v17179_v36  ;;  %v17520_v6 = vmul.f32 %v19014_v26, %v7557_v33  ;;  %v17527_v8 = vpop.f32.mrb[176].mxu1  ;;  %v19016_v61 = vld [vmem:[#allocation76_spill] sm:$0xff]  ;;  %9337 = vmatpush1.bf16.msra.mxu1 %v11518_v0 }
 0xea4   : > { %12243 = vrcp.f32 %v8148_v32  ;;  %v8594_v39 = vpack.c.bf16 %v8540_v42, %v17450_v31  ;;  %v12226_v35 = vpop.eup %12225  ;;  %v17524_v47 = vmul.f32 %v12224_v55, %v19015_v56  ;;  %v8063_v29 = vmul.f32 1.442695, %v7878_v3  ;;  %v19017_v1 = vld [vmem:[#allocation69_spill] sm:$0xff]  ;;  %v19018_v31 = vld [vmem:[#allocation27_spill] sm:$0xff]  ;;  %v17542_v33 = vpop.f32.mrb[240].mxu0  ;;  %9419 = vmatprep.subr.bf16.mxu1 %v11523_v4 }
 0xea5   : > { %12245 = vpow2.f32 %v8049_v14  ;;  %v7883_v20 = vsub.f32 0.0, %v17512_v16  ;;  %v17530_v36 = vmul.f32 %v12226_v35, %v19016_v61  ;;  %v17533_v32 = vmul.f32 %v19017_v1, %v7559_v34  ;;  %v6088_v14 = vld [vmem:[%s18194_s8 + $0x8] sm:$0xf]  ;;  %v17544_v3 = vpop.f32.mrb[177].mxu1  ;;  %v19020_v26 = vld [vmem:[#allocation73_spill] sm:$0xff] }
 0xea6   : > { %v12228_v30 = vpop.eup %12227  ;;  %12247 = vpow2.f32 %v8051_v18  ;;  %9285 = vmatprep.mubr.bf16.mxu1 %v8594_v39  ;;  %v17537_v42 = vadd.f32 %v19018_v31, %v16449_v51  ;;  %v7561_v39 = vadd.f32 %v19020_v26, %v16452_v7  ;;  %v17551_v51 = vpop.f32.mrb[241].mxu0  ;;  %v19026_v31 = vld [vmem:[#allocation19_spill] sm:$0xff] }
 0xea7   : > { %v12230_v55 = vpop.eup %12229  ;;  %v17547_v18 = vmul.f32 %v12228_v30, %v17249_v15  ;;  %12249 = vpow2.f32 %v8061_v54  ;;  %v8073_v34 = vmul.f32 1.442695, %v7883_v20  ;;  %v17553_v35 = vpop.f32.mrb[178].mxu1  ;;  %v8593_v15 = vpack.c.bf16 %v17458_v38, %v17432_v23  ;;  %v19025_v30 = vld [vmem:[#allocation71_spill] sm:$0xff]  ;;  %v19027_v38 = vld [vmem:[#allocation17_spill] sm:$0xff] }
 0xea8   : > { %v12232_v56 = vpop.eup %12231  ;;  %v17556_v0 = vmul.f32 %v12230_v55, %v17271_v11  ;;  %12251 = vpow2.f32 %v8063_v29  ;;  %v7884_v61 = vsub.f32 0.0, %v17537_v42  ;;  %v17561_v54 = vpop.f32.mrb[242].mxu0  ;;  %v8552_v1 = vmul.f32 %v19025_v30, %v7561_v39 }
 0xea9   : > { %19019 = vst [vmem:[#allocation75_spill] sm:$0xff] %v17547_v18  ;;  %19022 = vst [vmem:[#allocation36_spill] sm:$0xff] %v17561_v54  ;;  %v17563_v20 = vpop.f32.mrb[179].mxu1  ;;  %v12234_v7 = vpop.eup %12233  ;;  %v17566_v4 = vmul.f32 %v12232_v56, %v17292_v59  ;;  %12253 = vpow2.f32 %v8073_v34  ;;  %v17570_v11 = vrot.slane %v6088_v14, %v19026_v31  ;;  %9286 = vmatmul.mubr.bf16.gmra.mrb[216].mxu1 %v8593_v15  ;;  %v19028_v23 = vsub.s32 2, %v19027_v38 }
 0xeaa   : > { %19021 = vst [vmem:[#allocation61_spill] sm:$0xff] %v17556_v0  ;;  %19023 = vst [vmem:[#allocation57_spill] sm:$0xff] %v17563_v20  ;;  %v17572_v29 = vpop.f32.mrb[243].mxu0  ;;  %v12236_v55 = vpop.eup %12235  ;;  %v8153_v26 = vadd.f32 1.0, %v12234_v7  ;;  %v8075_v0 = vmul.f32 1.442695, %v7884_v61 }
 0xeab   : > { %19024 = vst [vmem:[#allocation65_spill] sm:$0xff] %v17566_v4  ;;  %v17576_v18 = vrot.slane %v6088_v14, %v19028_v23  ;;  %v19029_v20 = vld [vmem:[#allocation18_spill] sm:$0xff]  ;;  %v12238_v59 = vpop.eup %12237  ;;  %v8154_v34 = vadd.f32 1.0, %v12236_v55  ;;  %v7598_v39 = vadd.f32 %v17284_v58, %v17570_v11  ;;  %v19030_v56 = vsub.s32 3, %v19027_v38 }
 0xeac   : > { %v17579_v54 = vrot.slane %v6088_v14, %v19029_v20  ;;  %v7602_v61 = vadd.f32 %v17304_v27, %v17570_v11  ;;  %v12240_v15 = vpop.eup %12239  ;;  %v17590_v7 = vmul.f32 %v12238_v59, %v17318_v13  ;;  %12255 = vrcp.f32 %v8153_v26  ;;  %v19032_v23 = vld [vmem:[#allocation30_spill] sm:$0xff]  ;;  %v19035_v27 = vld [vmem:[#allocation33_spill] sm:$0xff]  ;;  %v17604_v13 = vpop.f32.mrb[180].mxu1 }
 0xead   : > { %v17585_v30 = vrot.slane %v6088_v14, %v19030_v56  ;;  %v7711_v20 = vadd.f32 %v19032_v23, %v17576_v18  ;;  %v19033_v55 = vld [vmem:[#allocation78_spill] sm:$0xff]  ;;  %v12242_v4 = vpop.eup %12241  ;;  %v17597_v58 = vmul.f32 %v12240_v15, %v17333_v9  ;;  %12257 = vrcp.f32 %v8154_v34  ;;  %v19037_v23 = vld [vmem:[#allocation72_spill] sm:$0xff]  ;;  %v17615_v34 = vpop.f32.mrb[244].mxu0 }
 0xeae   : > { %19031 = vst [vmem:[#allocation24_spill] sm:$0xff] %v17590_v7  ;;  %v7600_v31 = vadd.f32 %v19033_v55, %v17579_v54  ;;  %v19034_v14 = vld [vmem:[#allocation38_spill] sm:$0xff]  ;;  %v12244_v26 = vpop.eup %12243  ;;  %v17607_v59 = vmul.f32 %v12242_v4, %v17360_v25  ;;  %12259 = vpow2.f32 %v8075_v0  ;;  %v19039_v7 = vld [vmem:[#allocation100_spill] sm:$0xff]  ;;  %v19042_v25 = vld [vmem:[#allocation55_spill] sm:$0xff]  ;;  %v7715_v0 = vadd.f32 %v17309_v19, %v17576_v18 }
 0xeaf   : > { %v17600_v38 = vmul.f32 %v19034_v14, %v7598_v39  ;;  %v7713_v56 = vadd.f32 %v19035_v27, %v17585_v30  ;;  %v17610_v55 = vmul.f32 %v19037_v23, %v7711_v20  ;;  %v17617_v39 = vpop.f32.mrb[181].mxu1  ;;  %v12246_v15 = vpop.eup %12245  ;;  %v17620_v14 = vmul.f32 %v12244_v26, %v17389_v48 }
 0xeb0   : > { %19036 = vst [vmem:[#allocation76_spill] sm:$0xff] %v17607_v59  ;;  %v17613_v9 = vmul.f32 %v19039_v7, %v7600_v31  ;;  %v17626_v4 = vmul.f32 %v19042_v25, %v7602_v61  ;;  %v17630_v20 = vpop.f32.mrb[245].mxu0  ;;  %v17632_v31 = vpop.f32.mrb[182].mxu1  ;;  %v8159_v23 = vadd.f32 1.0, %v12246_v15  ;;  %v8600_v59 = vpack.c.bf16 %v8552_v1, %v17520_v6  ;;  %v19045_v15 = vld [vmem:[#allocation102_spill] sm:$0xff] }
 0xeb1   : > { %19038 = vst [vmem:[#allocation69_spill] sm:$0xff] %v17610_v55  ;;  %19040 = vst [vmem:[#allocation27_spill] sm:$0xff] %v17620_v14  ;;  %v17623_v27 = vmul.f32 %v17323_v46, %v7713_v56  ;;  %v12248_v7 = vpop.eup %12247  ;;  %v7604_v48 = vadd.f32 %v17311_v50, %v17579_v54  ;;  %v7717_v46 = vadd.f32 %v17320_v45, %v17585_v30  ;;  %v17639_v56 = vpop.f32.mrb[246].mxu0 }
 0xeb2   : > { %v17641_v61 = vpop.f32.mrb[183].mxu1  ;;  %v12250_v26 = vpop.eup %12249  ;;  %v8160_v19 = vadd.f32 1.0, %v12248_v7  ;;  %v8559_v25 = vpack.c.bf16 %v17626_v4, %v17600_v38  ;;  %v8599_v6 = vpack.c.bf16 %v17533_v32, %v17499_v57  ;;  %12261 = vrcp.f32 %v8159_v23  ;;  %9295 = vmatprep.mubr.bf16.mxu1 %v8600_v59  ;;  %v19048_v23 = vld [vmem:[#allocation32_spill] sm:$0xff] }
 0xeb3   : > { %19041 = vst [vmem:[#allocation73_spill] sm:$0xff] %v17623_v27  ;;  %19043 = vst [vmem:[#allocation71_spill] sm:$0xff] %v17641_v61  ;;  %v17646_v27 = vmul.f32 %v17328_v37, %v7715_v0  ;;  %v17650_v1 = vpop.f32.mrb[247].mxu0  ;;  %v12252_v50 = vpop.eup %12251  ;;  %v8165_v45 = vadd.f32 1.0, %v12250_v26  ;;  %v8470_v14 = vmul.f32 %v19045_v15, %v7604_v48  ;;  %v17654_v61 = vmul.f32 %v17336_v40, %v7717_v46  ;;  %v19047_v40 = vld [vmem:[#allocation40_spill] sm:$0xff]  ;;  %v19049_v46 = vld [vmem:[#allocation39_spill] sm:$0xff] }
 0xeb4   : > { %v12254_v7 = vpop.eup %12253  ;;  %12263 = vrcp.f32 %v8160_v19  ;;  %v8166_v38 = vadd.f32 1.0, %v12252_v50  ;;  %9296 = vmatmul.mubr.bf16.gmra.mrb[220].mxu1 %v8599_v6  ;;  %v7608_v57 = vadd.f32 %v17349_v60, %v17570_v11  ;;  %v7721_v59 = vadd.f32 %v17362_v22, %v17576_v18  ;;  %v17671_v19 = vpop.f32.mrb[184].mxu1  ;;  %v19050_v6 = vld [vmem:[#allocation103_spill] sm:$0xff]  ;;  %v19052_v22 = vld [vmem:[#allocation42_spill] sm:$0xff]  ;;  %v19058_v37 = vld [vmem:[#allocation101_spill] sm:$0xff] }
 0xeb5   : > { %19044 = vst [vmem:[#allocation17_spill] sm:$0xff] %v17646_v27  ;;  %19046 = vst [vmem:[#allocation30_spill] sm:$0xff] %v17654_v61  ;;  %12265 = vrcp.f32 %v8165_v45  ;;  %v8171_v32 = vadd.f32 1.0, %v12254_v7  ;;  %v7610_v4 = vadd.f32 %v17364_v52, %v17579_v54  ;;  %v7723_v48 = vadd.f32 %v19048_v23, %v17585_v30  ;;  %v17679_v15 = vpop.f32.mrb[248].mxu0  ;;  %v17681_v7 = vpop.f32.mrb[185].mxu1  ;;  %v19070_v61 = vld [vmem:[#allocation110_spill] sm:$0xff] }
 0xeb6   : > { %12267 = vrcp.f32 %v8166_v38  ;;  %v17665_v0 = vmul.f32 %v19047_v40, %v7608_v57  ;;  %v7612_v26 = vadd.f32 %v19049_v46, %v17570_v11  ;;  %v12256_v60 = vpop.eup %12255  ;;  %v17674_v50 = vmul.f32 %v19050_v6, %v7721_v59  ;;  %v19054_v40 = vld [vmem:[#allocation35_spill] sm:$0xff]  ;;  %v17695_v6 = vpop.f32.mrb[186].mxu1 }
 0xeb7   : > { %12269 = vrcp.f32 %v8171_v32  ;;  %v8476_v45 = vmul.f32 %v19052_v22, %v7610_v4  ;;  %v7725_v52 = vadd.f32 %v17380_v17, %v17576_v18  ;;  %v12258_v38 = vpop.eup %12257  ;;  %v17684_v57 = vmul.f32 %v12256_v60, %v17410_v5  ;;  %v19056_v32 = vld [vmem:[#allocation91_spill] sm:$0xff]  ;;  %v17693_v4 = vpop.f32.mrb[249].mxu0  ;;  %v11521_v5 = vld [vmem:[#allocation8 + $0x200] ss:$8 sps:$4 sm:$0xff]  }
 0xeb8   : > { %19051 = vst [vmem:[#allocation78_spill] sm:$0xff] %v17674_v50  ;;  %v17687_v23 = vmul.f32 %v19054_v40, %v7723_v48  ;;  %v17690_v46 = vmul.f32 %v19056_v32, %v7612_v26  ;;  %v8560_v59 = vpack.c.bf16 %v8470_v14, %v17613_v9  ;;  %v12260_v17 = vpop.eup %12259  ;;  %v17698_v22 = vmul.f32 %v12258_v38, %v17425_v62  ;;  %v19060_v48 = vld [vmem:[#allocation28_spill] sm:$0xff]  ;;  %v17707_v40 = vpop.f32.mrb[250].mxu0  ;;  %v19064_v38 = vld [vmem:[#allocation83_spill] sm:$0xff]  ;;  %v19067_v50 = vld [vmem:[#allocation41_spill] sm:$0xff] }
 0xeb9   : > { %19053 = vst [vmem:[#allocation38_spill] sm:$0xff] %v17684_v57  ;;  %v17701_v55 = vmul.f32 %v19058_v37, %v7725_v52  ;;  %v7614_v60 = vadd.f32 %v19060_v48, %v17579_v54  ;;  %v7727_v26 = vadd.f32 %v17391_v28, %v17585_v30  ;;  %19061 = vst [vmem:[#allocation55_spill] sm:$0xff] %v17707_v40  ;;  %v17709_v9 = vpop.f32.mrb[187].mxu1  ;;  %v8172_v14 = vadd.f32 1.0, %v12260_v17  ;;  %v11526_v32 = vld [vmem:[#allocation8 + $0x214] ss:$8 sps:$4 sm:$0xff]  }
 0xeba   : > { %19055 = vst [vmem:[#allocation33_spill] sm:$0xff] %v17687_v23  ;;  %19057 = vst [vmem:[#allocation72_spill] sm:$0xff] %v17698_v22  ;;  %9338 = vmatprep.mubr.bf16.mxu1 %v8560_v59  ;;  %v7618_v62 = vadd.f32 %v17417_v2, %v17570_v11  ;;  %v19063_v37 = vld [vmem:[#allocation84_spill] sm:$0xff]  ;;  %v7620_v27 = vadd.f32 %v19064_v38, %v17579_v54  ;;  %v17717_v48 = vpop.f32.mrb[251].mxu0  ;;  %v19069_v17 = vld [vmem:[#allocation93_spill] sm:$0xff] }
 0xebb   : > { %19059 = vst [vmem:[#allocation100_spill] sm:$0xff] %v17701_v55  ;;  %19062 = vst [vmem:[#allocation102_spill] sm:$0xff] %v17709_v9  ;;  %v7731_v52 = vadd.f32 %v19063_v37, %v17576_v18  ;;  %v19066_v55 = vld [vmem:[#allocation89_spill] sm:$0xff]  ;;  %v17721_v23 = vmul.f32 %v19067_v50, %v7727_v26  ;;  %v7733_v59 = vadd.f32 %v19069_v17, %v17585_v30  ;;  %12271 = vrcp.f32 %v8172_v14  ;;  %v19071_v2 = vld [vmem:[#allocation104_spill] sm:$0xff] }
 0xebc   : > { %19065 = vst [vmem:[#allocation40_spill] sm:$0xff] %v17717_v48  ;;  %v8482_v28 = vmul.f32 %v19066_v55, %v7614_v60  ;;  %v7622_v9 = vadd.f32 %v19070_v61, %v17570_v11  ;;  %9339 = vmatmul.mubr.bf16.vlgmr.msra.gmra.mrb[192].mxu1 %v8559_v25  ;;  %v17728_v37 = vmul.f32 %v19071_v2, %v7618_v62  ;;  %v19072_v22 = vld [vmem:[#allocation26_spill] sm:$0xff]  ;;  %v12262_v55 = vpop.eup %12261  ;;  %v11524_v50 = vld [vmem:[#allocation8 + $0x210] ss:$8 sps:$4 sm:$0xff]   ;;  %v19075_v60 = vld [vmem:[#allocation37_spill] sm:$0xff] }
 0xebd   : > { %19068 = vst [vmem:[#allocation32_spill] sm:$0xff] %v17721_v23  ;;  %v17731_v38 = vmul.f32 %v19072_v22, %v7731_v52  ;;  %v19074_v48 = vld [vmem:[#allocation106_spill] sm:$0xff]  ;;  %9420 = vmatpush1.bf16.msra.mxu1 %v11521_v5  ;;  %v17735_v26 = vmul.f32 %v19075_v60, %v7733_v59  ;;  %v19076_v17 = vld [vmem:[#allocation92_spill] sm:$0xff]  ;;  %v19077_v61 = vld [vmem:[#allocation87_spill] sm:$0xff]  ;;  %v17751_v59 = vpop.f32.mrb[188].mxu1 }
 0xebe   : > { %v8488_v40 = vmul.f32 %v19074_v48, %v7620_v27  ;;  %v17738_v23 = vmul.f32 %v19076_v17, %v7622_v9  ;;  %v7735_v25 = vadd.f32 %v19077_v61, %v17576_v18  ;;  %v8566_v14 = vpack.c.bf16 %v8482_v28, %v8476_v45  ;;  %v12264_v62 = vpop.eup %12263  ;;  %v19078_v2 = vld [vmem:[#allocation112_spill] sm:$0xff]  ;;  %9421 = vmatprep.subr.bf16.mxu1 %v11526_v32  ;;  %v11529_v22 = vld [vmem:[#allocation8 + $0x224] ss:$8 sps:$4 sm:$0xff]   ;;  %v19081_v28 = vld [vmem:[#allocation107_spill] sm:$0xff]  ;;  %v17763_v61 = vpop.f32.mrb[252].mxu0 }
 0xebf   : > { %19073 = vst [vmem:[#allocation39_spill] sm:$0xff] %v17731_v38  ;;  %v17743_v57 = vmul.f32 %v12262_v55, %v19078_v2  ;;  %v19079_v27 = vld [vmem:[#allocation108_spill] sm:$0xff]  ;;  %v19080_v52 = vld [vmem:[#allocation85_spill] sm:$0xff]  ;;  %v8565_v9 = vpack.c.bf16 %v17690_v46, %v17665_v0  ;;  %v12266_v60 = vpop.eup %12265  ;;  %v17754_v45 = vmul.f32 %v12264_v62, %v17463_v21  ;;  %v7628_v32 = vadd.f32 %v17472_v10, %v17570_v11  ;;  %v17765_v2 = vpop.f32.mrb[189].mxu1  ;;  %v19083_v21 = vld [vmem:[#allocation94_spill] sm:$0xff] }
 0xec0   : > { %v7624_v5 = vadd.f32 %v19079_v27, %v17579_v54  ;;  %v7737_v48 = vadd.f32 %v19080_v52, %v17585_v30  ;;  %v17757_v55 = vmul.f32 %v19081_v28, %v7735_v25  ;;  %9348 = vmatprep.mubr.bf16.mxu1 %v8566_v14  ;;  %v7741_v17 = vadd.f32 %v17482_v24, %v17576_v18  ;;  %v12268_v0 = vpop.eup %12267  ;;  %v19084_v27 = vld [vmem:[#allocation79_spill] sm:$0xff]  ;;  %v17776_v10 = vpop.f32.mrb[253].mxu0 }
 0xec1   : > { %v17768_v46 = vmul.f32 %v12266_v60, %v17480_v44  ;;  %v7630_v14 = vadd.f32 %v17484_v12, %v17579_v54  ;;  %v17778_v52 = vpop.f32.mrb[190].mxu1  ;;  %v12270_v24 = vpop.eup %12269  ;;  %v17781_v28 = vmul.f32 %v12268_v0, %v17503_v53  ;;  %9422 = vmatpush1.bf16.msra.mxu1 %v11524_v50  ;;  %v19086_v44 = vld [vmem:[#allocation109_spill] sm:$0xff]  ;;  %v11532_v53 = vld [vmem:[#allocation8 + $0x234] ss:$8 sps:$4 sm:$0xff]  }
 0xec2   : > { %19082 = vst [vmem:[#allocation103_spill] sm:$0xff] %v17757_v55  ;;  %v8494_v62 = vmul.f32 %v19083_v21, %v7624_v5  ;;  %v17772_v25 = vmul.f32 %v19084_v27, %v7737_v48  ;;  %v11527_v55 = vld [vmem:[#allocation8 + $0x220] ss:$8 sps:$4 sm:$0xff]   ;;  %v17784_v60 = vmul.f32 %v19086_v44, %v7628_v32  ;;  %v17787_v5 = vmul.f32 %v17466_v49, %v7741_v17  ;;  %v17791_v12 = vpop.f32.mrb[254].mxu0  ;;  %v17793_v21 = vpop.f32.mrb[191].mxu1  ;;  %v19088_v50 = vld [vmem:[#allocation120_spill] sm:$0xff] }
 0xec3   : > { %v7743_v48 = vadd.f32 %v17489_v41, %v17585_v30  ;;  %v17796_v27 = vmul.f32 %v12270_v24, %v17512_v16  ;;  %9423 = vmatprep.subr.bf16.mxu1 %v11529_v22  ;;  %v8500_v0 = vmul.f32 %v19088_v50, %v7630_v14  ;;  %v7632_v32 = vadd.f32 %v17491_v63, %v17570_v11  ;;  %v19089_v49 = vld [vmem:[#allocation111_spill] sm:$0xff]  ;;  %v17803_v44 = vpop.f32.mrb[255].mxu0  ;;  %v19090_v41 = vld [vmem:[#allocation77_spill] sm:$0xff] }
 0xec4   : > { %19085 = vst [vmem:[#allocation42_spill] sm:$0xff] %v17772_v25  ;;  %19087 = vst [vmem:[#allocation35_spill] sm:$0xff] %v17787_v5  ;;  %v7745_v17 = vadd.f32 %v19089_v49, %v17576_v18  ;;  %v8572_v38 = vpack.c.bf16 %v8494_v62, %v8488_v40  ;;  %v19091_v25 = vld [vmem:[#allocation63_spill] sm:$0xff]  ;;  %9349 = vmatmul.mubr.bf16.gmra.mrb[196].mxu1 %v8565_v9  ;;  %v19093_v14 = vld [vmem:[#allocation105_spill] sm:$0xff]  ;;  %v8571_v49 = vpack.c.bf16 %v17738_v23, %v17728_v37 }
 0xec5   : > { %v17806_v5 = vmul.f32 %v19090_v41, %v7743_v48  ;;  %v7634_v16 = vadd.f32 %v19091_v25, %v17579_v54  ;;  %v19092_v22 = vld [vmem:[#allocation95_spill] sm:$0xff]  ;;  %v17813_v50 = vmul.f32 %v19093_v14, %v7632_v32  ;;  %v7638_v48 = vadd.f32 %v17527_v8, %v17570_v11  ;;  %9424 = vmatpush1.bf16.msra.mxu1 %v11527_v55  ;;  %v12272_v32 = vpop.eup %12271 }
 0xec6   : > { %v7747_v24 = vadd.f32 %v19092_v22, %v17585_v30  ;;  %v17816_v63 = vmul.f32 %v17517_v43, %v7745_v17  ;;  %v11530_v40 = vld [vmem:[#allocation8 + $0x230] ss:$8 sps:$4 sm:$0xff]   ;;  %9358 = vmatprep.mubr.bf16.mxu1 %v8572_v38  ;;  %v7751_v9 = vadd.f32 %v17542_v33, %v17576_v18  ;;  %9425 = vmatprep.subr.bf16.mxu1 %v11532_v53  ;;  %v11535_v43 = vld [vmem:[#allocation8 + $0x244] ss:$8 sps:$4 sm:$0xff]  }
 0xec7   : > { %v19094_v62 = vld [vmem:[#allocation23_spill] sm:$0xff]  ;;  %v19095_v17 = vld [vmem:[#allocation25_spill] sm:$0xff]  ;;  %v7640_v8 = vadd.f32 %v17544_v3, %v17579_v54  ;;  %v7753_v23 = vadd.f32 %v17551_v51, %v17585_v30  ;;  %v7642_v37 = vadd.f32 %v17553_v35, %v17570_v11  ;;  %v19096_v38 = vld [vmem:[#allocation36_spill] sm:$0xff] }
 0xec8   : > { %v8506_v25 = vmul.f32 %v19094_v62, %v7634_v16  ;;  %v17824_v41 = vmul.f32 %v17524_v47, %v7747_v24  ;;  %v17829_v22 = vmul.f32 %v19095_v17, %v7638_v48  ;;  %v17838_v47 = vmul.f32 %v12272_v32, %v17537_v42  ;;  %v19097_v16 = vld [vmem:[#allocation29_spill] sm:$0xff]  ;;  %v19098_v3 = vld [vmem:[#allocation75_spill] sm:$0xff]  ;;  %v19099_v51 = vld [vmem:[#allocation80_spill] sm:$0xff] }
 0xec9   : > { %v17841_v33 = vmul.f32 %v17530_v36, %v7751_v9  ;;  %v7755_v55 = vadd.f32 %v19096_v38, %v17576_v18  ;;  %v17846_v24 = vmul.f32 %v19097_v16, %v7640_v8  ;;  %v17849_v14 = vmul.f32 %v19098_v3, %v7753_v23  ;;  %v19100_v35 = vld [vmem:[#allocation57_spill] sm:$0xff]  ;;  %9426 = vmatpush1.bf16.msra.mxu1 %v11530_v40  ;;  %v11538_v17 = vld [vmem:[#allocation8 + $0x254] ss:$8 sps:$4 sm:$0xff]  }
 0xeca   : > { %v8578_v53 = vpack.c.bf16 %v8506_v25, %v8500_v0  ;;  %v17852_v48 = vmul.f32 %v19099_v51, %v7642_v37  ;;  %v7644_v42 = vadd.f32 %v19100_v35, %v17579_v54  ;;  %v11533_v62 = vld [vmem:[#allocation8 + $0x240] ss:$8 sps:$4 sm:$0xff]   ;;  %v7757_v0 = vadd.f32 %v17572_v29, %v17585_v30  ;;  %9427 = vmatprep.subr.bf16.mxu1 %v11535_v43  ;;  %v19102_v8 = vld [vmem:[#allocation43_spill] sm:$0xff] }
 0xecb   : > { %v19101_v36 = vld [vmem:[#allocation61_spill] sm:$0xff]  ;;  %v8577_v25 = vpack.c.bf16 %v17813_v50, %v17784_v60  ;;  %v7648_v32 = vadd.f32 %v17604_v13, %v17570_v11  ;;  %v7761_v40 = vadd.f32 %v17615_v34, %v17576_v18  ;;  %v7650_v37 = vadd.f32 %v17617_v39, %v17579_v54  ;;  %v19104_v60 = vld [vmem:[#allocation82_spill] sm:$0xff]  ;;  %v19105_v34 = vld [vmem:[#allocation24_spill] sm:$0xff] }
 0xecc   : > { %v17857_v9 = vmul.f32 %v19101_v36, %v7755_v55  ;;  %v8518_v23 = vmul.f32 %v19102_v8, %v7644_v42  ;;  %v7763_v38 = vadd.f32 %v17630_v20, %v17585_v30  ;;  %v19103_v29 = vld [vmem:[#allocation65_spill] sm:$0xff]  ;;  %v7652_v13 = vadd.f32 %v17632_v31, %v17570_v11  ;;  %9359 = vmatmul.mubr.bf16.gmra.mrb[200].mxu1 %v8571_v49  ;;  %v19106_v39 = vld [vmem:[#allocation86_spill] sm:$0xff]  ;;  %v11536_v35 = vld [vmem:[#allocation8 + $0x250] ss:$8 sps:$4 sm:$0xff]  }
 0xecd   : > { %v17873_v55 = vmul.f32 %v19103_v29, %v7757_v0  ;;  %v17876_v50 = vmul.f32 %v19104_v60, %v7648_v32  ;;  %v7765_v43 = vadd.f32 %v17639_v56, %v17576_v18  ;;  %v17883_v16 = vmul.f32 %v19105_v34, %v7761_v40  ;;  %9428 = vmatpush1.bf16.msra.mxu1 %v11533_v62  ;;  %v19107_v42 = vld [vmem:[#allocation88_spill] sm:$0xff]  ;;  %v19109_v49 = vld [vmem:[#allocation71_spill] sm:$0xff]  ;;  %v11541_v32 = vld [vmem:[#allocation8 + $0x264] ss:$8 sps:$4 sm:$0xff]  }
 0xece   : > { %v17886_v3 = vmul.f32 %v19106_v39, %v7650_v37  ;;  %v17889_v20 = vmul.f32 %v17597_v58, %v7763_v38  ;;  %v8584_v51 = vpack.c.bf16 %v8518_v23, %v17846_v24  ;;  %9368 = vmatprep.mubr.bf16.mxu1 %v8578_v53  ;;  %v17893_v31 = vmul.f32 %v19107_v42, %v7652_v13  ;;  %v19108_v36 = vld [vmem:[#allocation76_spill] sm:$0xff]  ;;  %v19110_v8 = vld [vmem:[#allocation113_spill] sm:$0xff]  ;;  %v19111_v37 = vld [vmem:[#allocation27_spill] sm:$0xff] }
 0xecf   : > { %v17896_v56 = vmul.f32 %v19108_v36, %v7765_v43  ;;  %v7654_v0 = vadd.f32 %v19109_v49, %v17579_v54  ;;  %9429 = vmatprep.subr.bf16.mxu1 %v11538_v17  ;;  %v7767_v58 = vadd.f32 %v17650_v1, %v17585_v30  ;;  %v8583_v24 = vpack.c.bf16 %v17852_v48, %v17829_v22  ;;  %v19112_v29 = vld [vmem:[#allocation81_spill] sm:$0xff]  ;;  %v19113_v60 = vld [vmem:[#allocation38_spill] sm:$0xff]  ;;  %v19114_v13 = vld [vmem:[#allocation55_spill] sm:$0xff] }
 0xed0   : > { %v7658_v53 = vadd.f32 %v17671_v19, %v17570_v11  ;;  %v7771_v62 = vadd.f32 %v17679_v15, %v17576_v18  ;;  %v7660_v40 = vadd.f32 %v17681_v7, %v17579_v54  ;;  %v7773_v17 = vadd.f32 %v17693_v4, %v17585_v30  ;;  %v11539_v7 = vld [vmem:[#allocation8 + $0x260] ss:$8 sps:$4 sm:$0xff]   ;;  %v19116_v4 = vld [vmem:[#allocation72_spill] sm:$0xff]  ;;  %v11559_v22 = vld [vmem:[#allocation8 + $0x2c4] ss:$8 sps:$4 sm:$0xff]  }
 0xed1   : > { %v17909_v23 = vmul.f32 %v19110_v8, %v7654_v0  ;;  %v7662_v1 = vadd.f32 %v17695_v6, %v17570_v11  ;;  %v17918_v38 = vmul.f32 %v19111_v37, %v7767_v58  ;;  %v7775_v43 = vadd.f32 %v19114_v13, %v17576_v18  ;;  %9430 = vmatpush1.bf16.msra.mxu1 %v11536_v35  ;;  %v19115_v34 = vld [vmem:[#allocation114_spill] sm:$0xff]  ;;  %v11544_v0 = vld [vmem:[#allocation8 + $0x274] ss:$8 sps:$4 sm:$0xff]  }
 0xed2   : > { %v17921_v19 = vmul.f32 %v19112_v29, %v7658_v53  ;;  %v17924_v15 = vmul.f32 %v19113_v60, %v7771_v62  ;;  %v17929_v39 = vmul.f32 %v19115_v34, %v7660_v40  ;;  %v17932_v42 = vmul.f32 %v19116_v4, %v7773_v17  ;;  %v19117_v6 = vld [vmem:[#allocation90_spill] sm:$0xff]  ;;  %9431 = vmatprep.subr.bf16.mxu1 %v11541_v32  ;;  %v19119_v62 = vld [vmem:[#allocation40_spill] sm:$0xff]  ;;  %v19126_v4 = vld [vmem:[#allocation33_spill] sm:$0xff] }
 0xed3   : > { %v17935_v36 = vmul.f32 %v19117_v6, %v7662_v1  ;;  %v8590_v49 = vpack.c.bf16 %v17909_v23, %v17886_v3  ;;  %v17940_v58 = vmul.f32 %v17743_v57, %v7775_v43  ;;  %v19118_v35 = vld [vmem:[#allocation102_spill] sm:$0xff]  ;;  %v7777_v8 = vadd.f32 %v19119_v62, %v17585_v30  ;;  %v19120_v23 = vld [vmem:[#allocation51_spill] sm:$0xff]  ;;  %v19124_v43 = vld [vmem:[#allocation73_spill] sm:$0xff] }
 0xed4   : > { %v7664_v53 = vadd.f32 %v19118_v35, %v17579_v54  ;;  %v8589_v40 = vpack.c.bf16 %v17893_v31, %v17876_v50  ;;  %v7668_v17 = vadd.f32 %v17751_v59, %v17570_v11  ;;  %v7781_v3 = vadd.f32 %v17763_v61, %v17576_v18  ;;  %9369 = vmatmul.mubr.bf16.gmra.mrb[204].mxu1 %v8577_v25  ;;  %v11542_v61 = vld [vmem:[#allocation8 + $0x270] ss:$8 sps:$4 sm:$0xff]   ;;  %v11557_v48 = vld [vmem:[#allocation8 + $0x2c0] ss:$8 sps:$4 sm:$0xff]  }
 0xed5   : > { %v7670_v32 = vadd.f32 %v17765_v2, %v17579_v54  ;;  %v7783_v57 = vadd.f32 %v17776_v10, %v17585_v30  ;;  %v17958_v37 = vmul.f32 %v17754_v45, %v7777_v8  ;;  %v7672_v50 = vadd.f32 %v17778_v52, %v17570_v11  ;;  %9432 = vmatpush1.bf16.msra.mxu1 %v11539_v7  ;;  %v19121_v31 = vld [vmem:[#allocation59_spill] sm:$0xff]  ;;  %v11547_v45 = vld [vmem:[#allocation8 + $0x284] ss:$8 sps:$4 sm:$0xff]   ;;  %v19127_v6 = vld [vmem:[#allocation32_spill] sm:$0xff] }
 0xed6   : > { %v8542_v1 = vmul.f32 %v19120_v23, %v7664_v53  ;;  %v7785_v59 = vadd.f32 %v17791_v12, %v17576_v18  ;;  %9378 = vmatprep.mubr.bf16.mxu1 %v8584_v51  ;;  %v17965_v2 = vmul.f32 %v19121_v31, %v7668_v17  ;;  %v17968_v10 = vmul.f32 %v17768_v46, %v7781_v3  ;;  %v19122_v25 = vld [vmem:[#allocation67_spill] sm:$0xff]  ;;  %v19123_v11 = vld [vmem:[#allocation21_spill] sm:$0xff]  ;;  %v19125_v7 = vld [vmem:[#allocation30_spill] sm:$0xff] }
 0xed7   : > { %v8548_v29 = vmul.f32 %v19122_v25, %v7670_v32  ;;  %9433 = vmatprep.subr.bf16.mxu1 %v11544_v0  ;;  %v17972_v60 = vmul.f32 %v17781_v28, %v7783_v57  ;;  %v8553_v52 = vmul.f32 %v19123_v11, %v7672_v50  ;;  %v7674_v51 = vadd.f32 %v17793_v21, %v17579_v54  ;;  %v19128_v0 = vld [vmem:[#allocation78_spill] sm:$0xff]  ;;  %v19129_v35 = vld [vmem:[#allocation100_spill] sm:$0xff]  ;;  %v19133_v62 = vld [vmem:[#allocation103_spill] sm:$0xff] }
 0xed8   : > { %v17976_v18 = vmul.f32 %v17796_v27, %v7785_v59  ;;  %v8596_v12 = vpack.c.bf16 %v8542_v1, %v17929_v39  ;;  %v7787_v46 = vadd.f32 %v17803_v44, %v17585_v30  ;;  %v8595_v13 = vpack.c.bf16 %v17935_v36, %v17921_v19  ;;  %v19130_v53 = vld [vmem:[#allocation42_spill] sm:$0xff]  ;;  %v19131_v30 = vld [vmem:[#allocation31_spill] sm:$0xff]  ;;  %v8701_v59 = vld [vmem:[%s19138_s10] sm:$0x3] }
 0xed9   : > { %v8562_v28 = vpack.c.bf16 %v19125_v7, %v19124_v43  ;;  %v8601_v34 = vpack.c.bf16 %v8553_v52, %v17965_v2  ;;  %v8568_v27 = vpack.c.bf16 %v19127_v6, %v19126_v4  ;;  %v8567_v39 = vpack.c.bf16 %v19129_v35, %v19128_v0  ;;  %9434 = vmatpush1.bf16.msra.mxu1 %v11542_v61  ;;  %v11545_v21 = vld [vmem:[#allocation8 + $0x280] ss:$8 sps:$4 sm:$0xff]   ;;  %v19132_v36 = vld [vmem:[#allocation39_spill] sm:$0xff] }
 0xeda   : > { %v8574_v54 = vpack.c.bf16 %v19130_v53, %v17735_v26  ;;  %v8554_v44 = vmul.f32 %v19131_v30, %v7674_v51  ;;  %v17996_v19 = vmul.f32 %v17838_v47, %v7787_v46  ;;  %v8573_v8 = vpack.c.bf16 %v19133_v62, %v19132_v36  ;;  %9435 = vmatprep.subr.bf16.mxu1 %v11547_v45  ;;  %v11550_v3 = vld [vmem:[#allocation8 + $0x294] ss:$8 sps:$4 sm:$0xff]   ;;  %v19140_v2 = vld [vmem:[#allocation18_spill] sm:$0xff] }
 0xedb   : > { %v8580_v17 = vpack.c.bf16 %v17824_v41, %v17806_v5  ;;  %v19134_v32 = vld [vmem:[#allocation35_spill] sm:$0xff]  ;;  %v8586_v26 = vpack.c.bf16 %v17873_v55, %v17849_v14  ;;  %v8585_v23 = vpack.c.bf16 %v17857_v9, %v17841_v33  ;;  %v8592_v47 = vpack.c.bf16 %v17918_v38, %v17889_v20  ;;  %v11553_v9 = vld [vmem:[#allocation8 + $0x2a4] ss:$8 sps:$4 sm:$0xff]   ;;  %v11551_v55 = vld [vmem:[#allocation8 + $0x2a0] ss:$8 sps:$4 sm:$0xff]  }
 0xedc   : > { %v8579_v57 = vpack.c.bf16 %v17816_v63, %v19134_v32  ;;  %v8602_v1 = vpack.c.bf16 %v8554_v44, %v8548_v29  ;;  %v8591_v50 = vpack.c.bf16 %v17896_v56, %v17883_v16  ;;  %v8598_v5 = vpack.c.bf16 %v17958_v37, %v17932_v42  ;;  %9379 = vmatmul.mubr.bf16.gmra.mrb[208].mxu1 %v8583_v24  ;;  %v11548_v14 = vld [vmem:[#allocation8 + $0x290] ss:$8 sps:$4 sm:$0xff]   ;;  %v11556_v16 = vld [vmem:[#allocation8 + $0x2b4] ss:$8 sps:$4 sm:$0xff]   ;;  %v11565_v38 = vld [vmem:[#allocation8 + $0x2e4] ss:$8 sps:$4 sm:$0xff]  }
 0xedd   : > { %v8597_v41 = vpack.c.bf16 %v17940_v58, %v17924_v15  ;;  %v8604_v63 = vpack.c.bf16 %v17996_v19, %v17972_v60  ;;  %v8603_v33 = vpack.c.bf16 %v17976_v18, %v17968_v10  ;;  %9436 = vmatpush1.bf16.msra.mxu1 %v11545_v21  ;;  %9388 = vmatprep.mubr.bf16.mxu1 %v8590_v49  ;;  %v11554_v20 = vld [vmem:[#allocation8 + $0x2b0] ss:$8 sps:$4 sm:$0xff]   ;;  %v11562_v56 = vld [vmem:[#allocation8 + $0x2d4] ss:$8 sps:$4 sm:$0xff]   ;;  %v11563_v15 = vld [vmem:[#allocation8 + $0x2e0] ss:$8 sps:$4 sm:$0xff]  }
 0xede   : > { %9437 = vmatprep.subr.bf16.mxu1 %v11550_v3  ;;  %v11560_v24 = vld [vmem:[#allocation8 + $0x2d0] ss:$8 sps:$4 sm:$0xff]   ;;  %v11568_v42 = vld [vmem:[#allocation8 + $0x2f4] ss:$8 sps:$4 sm:$0xff]   ;;  %v19135_v58 = vld [vmem:[#allocation17_spill] sm:$0xff]  ;;  %v18033_v10 = vrot.slane %v8701_v59, %v19140_v2 }
 0xedf   : > { %v11566_v49 = vld [vmem:[#allocation8 + $0x2f0] ss:$8 sps:$4 sm:$0xff]   ;;  %v19141_v52 = vld [vmem:[#allocation22_spill] sm:$0xff]  ;;  %v19146_v44 = vld [vmem:[#allocation121_spill] sm:$0xff] }
 0xee0   : > { %v19139_v61 = vld [vmem:[#allocation19_spill] sm:$0xff]  ;;  %v19142_v46 = vld [vmem:[#allocation20_spill] sm:$0xff] }
 0xee1   : > { %9438 = vmatpush1.bf16.msra.mxu1 %v11548_v14  ;;  %v18030_v31 = vrot.slane %v8701_v59, %v19139_v61  ;;  %v19143_v7 = vld [vmem:[#allocation115_spill] sm:$0xff]  ;;  %v19147_v62 = vld [vmem:[#allocation44_spill] sm:$0xff] }
 0xee2   : > { %9439 = vmatprep.subr.bf16.mxu1 %v11553_v9  ;;  %v19145_v53 = vld [vmem:[#allocation119_spill] sm:$0xff]  ;;  %v19151_v9 = vld [vmem:[#allocation52_spill] sm:$0xff] }
 0xee3   : > { %v19155_v61 = vld [vmem:[#allocation60_spill] sm:$0xff] }
 0xee4   : > { %9389 = vmatmul.mubr.bf16.gmra.mrb[212].mxu1 %v8589_v40  ;;  %v19136_v40 = vld [vmem:[#allocation69_spill] sm:$0xff] }
 0xee5   : > { %9440 = vmatpush1.bf16.msra.mxu1 %v11551_v55  ;;  %9398 = vmatprep.mubr.bf16.mxu1 %v8596_v12  ;;  %v19137_v37 = vpack.c.bf16 %v19135_v58, %v19136_v40  ;;  %v19154_v40 = vld [vmem:[#allocation58_spill] sm:$0xff] }
 0xee6   : > { %9441 = vmatprep.subr.bf16.mxu1 %v11556_v16  ;;  %v19152_v16 = vld [vmem:[#allocation54_spill] sm:$0xff] }
 0xee9   : > { %9442 = vmatpush1.bf16.msra.mxu1 %v11554_v20 }
 0xeea   : > { %9443 = vmatprep.subr.bf16.mxu1 %v11559_v22 }
 0xeec   : > { %9399 = vmatmul.mubr.bf16.gmra.mrb[216].mxu1 %v8595_v13 }
 0xeed   : > { %9444 = vmatpush1.bf16.msra.mxu1 %v11557_v48  ;;  %9408 = vmatprep.mubr.bf16.mxu1 %v8602_v1  ;;  %v19149_v1 = vld [vmem:[#allocation48_spill] sm:$0xff] }
 0xeee   : > { %9445 = vmatprep.subr.bf16.mxu1 %v11562_v56 }
 0xef1   : > { %9446 = vmatpush1.bf16.msra.mxu1 %v11560_v24 }
 0xef2   : > { %9447 = vmatprep.subr.bf16.mxu1 %v11565_v38 }
 0xef4   : > { %9409 = vmatmul.mubr.bf16.gmra.mrb[220].mxu1 %v8601_v34  ;;  %v19144_v34 = vld [vmem:[#allocation117_spill] sm:$0xff] }
 0xef5   : > { %9448 = vmatpush1.bf16.msra.mxu1 %v11563_v15  ;;  %9451 = vmatprep.mubr.bf16.mxu1 %v8562_v28  ;;  %v19153_v15 = vld [vmem:[#allocation56_spill] sm:$0xff] }
 0xef6   : > { %9449 = vmatprep.subr.bf16.mxu1 %v11568_v42 }
 0xef9   : > { %9450 = vmatpush1.bf16.msra.mxu1 %v11566_v49 }
 0xefc   : > { %9452 = vmatmul.mubr.bf16.vlgmr.msra.gmra.mrb[192].mxu1 %v19137_v37 }
 0xefd   : > { %9461 = vmatprep.mubr.bf16.mxu1 %v8568_v27 }
 0xf04   : > { %9462 = vmatmul.mubr.bf16.gmra.mrb[196].mxu1 %v8567_v39 }
 0xf05   : > { %9471 = vmatprep.mubr.bf16.mxu1 %v8574_v54 }
 0xf0c   : > { %9472 = vmatmul.mubr.bf16.gmra.mrb[200].mxu1 %v8573_v8 }
 0xf0d   : > { %9481 = vmatprep.mubr.bf16.mxu1 %v8580_v17  ;;  %v19148_v17 = vld [vmem:[#allocation46_spill] sm:$0xff] }
 0xf14   : > { %9482 = vmatmul.mubr.bf16.gmra.mrb[204].mxu1 %v8579_v57 }
 0xf15   : > { %9491 = vmatprep.mubr.bf16.mxu1 %v8586_v26 }
 0xf1c   : > { %9492 = vmatmul.mubr.bf16.gmra.mrb[208].mxu1 %v8585_v23 }
 0xf1d   : > { %9501 = vmatprep.mubr.bf16.mxu1 %v8592_v47 }
 0xf24   : > { %9502 = vmatmul.mubr.bf16.gmra.mrb[212].mxu1 %v8591_v50 }
 0xf25   : > { %9511 = vmatprep.mubr.bf16.mxu1 %v8598_v5 }
 0xf2c   : > { %9512 = vmatmul.mubr.bf16.gmra.mrb[216].mxu1 %v8597_v41 }
 0xf2d   : > { %9521 = vmatprep.mubr.bf16.mxu1 %v8604_v63  ;;  %v19150_v63 = vld [vmem:[#allocation50_spill] sm:$0xff] }
 0xf34   : > { %9522 = vmatmul.mubr.bf16.gmra.mrb[220].mxu1 %v8603_v33 }
 0xfcf   : > { %v9453_v25 = vpop.f32.mrb[192].mxu1 }
 0xfd0   : > { %v10630_v29 = vadd.f32 %v9453_v25, %v18030_v31  ;;  %v9455_v45 = vpop.f32.mrb[193].mxu1  ;;  %v19156_v25 = vld [vmem:[#allocation62_spill] sm:$0xff] }
 0xfd1   : > { %v10631_v60 = vadd.f32 %v9455_v45, %v18033_v10  ;;  %v9457_v11 = vpop.f32.mrb[194].mxu1 }
 0xfd2   : > { %v9532_v18 = vadd.f32 %v10630_v29, %v19141_v52  ;;  %v10632_v12 = vadd.f32 %v9457_v11, %v18030_v31  ;;  %v9459_v51 = vpop.f32.mrb[195].mxu1 }
 0xfd3   : > { %v9533_v13 = vadd.f32 %v10631_v60, %v19142_v46  ;;  %v10633_v43 = vadd.f32 %v9459_v51, %v18033_v10 }
 0xfd4   : > { %9564 = vst [vmem:[%s18043_s26] sm:$0xff] %v9532_v18  ;;  %v9534_v28 = vadd.f32 %v10632_v12, %v19143_v7  ;;  %v19157_v12 = vld [vmem:[#allocation64_spill] sm:$0xff] }
 0xfd5   : > { %9565 = vst [vmem:[%s18043_s26 + $0x8] sm:$0xff] %v9533_v13  ;;  %v9535_v4 = vadd.f32 %v10633_v43, %v19144_v34  ;;  %v19158_v43 = vld [vmem:[#allocation66_spill] sm:$0xff]  ;;  %v19159_v34 = vld [vmem:[#allocation68_spill] sm:$0xff] }
 0xfd6   : > { %9566 = vst [vmem:[%s18043_s26 + $0x10] sm:$0xff] %v9534_v28 }
 0xfd7   : > { %9567 = vst [vmem:[%s18043_s26 + $0x18] sm:$0xff] %v9535_v4  ;;  %v9463_v6 = vpop.f32.mrb[196].mxu1 }
 0xfd8   : > { %v10634_v27 = vadd.f32 %v9463_v6, %v18030_v31  ;;  %v9465_v0 = vpop.f32.mrb[197].mxu1  ;;  %v19160_v6 = vld [vmem:[#allocation70_spill] sm:$0xff] }
 0xfd9   : > { %v10635_v35 = vadd.f32 %v9465_v0, %v18033_v10  ;;  %v9467_v39 = vpop.f32.mrb[198].mxu1 }
 0xfda   : > { %v9536_v54 = vadd.f32 %v10634_v27, %v19145_v53  ;;  %v10636_v21 = vadd.f32 %v9467_v39, %v18030_v31  ;;  %v9469_v30 = vpop.f32.mrb[199].mxu1 }
 0xfdb   : > { %v9537_v19 = vadd.f32 %v10635_v35, %v19146_v44  ;;  %v10637_v36 = vadd.f32 %v9469_v30, %v18033_v10 }
 0xfdc   : > { %9568 = vst [vmem:[%s18043_s26 + $0x20] sm:$0xff] %v9536_v54  ;;  %v9538_v8 = vadd.f32 %v10636_v21, %v19147_v62  ;;  %v19161_v21 = vld [vmem:[#allocation74_spill] sm:$0xff] }
 0xfdd   : > { %9569 = vst [vmem:[%s18043_s26 + $0x28] sm:$0xff] %v9537_v19  ;;  %v9539_v3 = vadd.f32 %v10637_v36, %v19148_v17  ;;  %v19162_v36 = vld [vmem:[#allocation53_spill] sm:$0xff]  ;;  %v19163_v17 = vld [vmem:[#allocation96_spill] sm:$0xff] }
 0xfde   : > { %9570 = vst [vmem:[%s18043_s26 + $0x30] sm:$0xff] %v9538_v8 }
 0xfdf   : > { %9571 = vst [vmem:[%s18043_s26 + $0x38] sm:$0xff] %v9539_v3  ;;  %v9473_v32 = vpop.f32.mrb[200].mxu1 }
 0xfe0   : > { %v10638_v57 = vadd.f32 %v9473_v32, %v18030_v31  ;;  %v9475_v26 = vpop.f32.mrb[201].mxu1  ;;  %v19164_v32 = vld [vmem:[#allocation98_spill] sm:$0xff] }
 0xfe1   : > { %v10639_v23 = vadd.f32 %v9475_v26, %v18033_v10  ;;  %v9477_v47 = vpop.f32.mrb[202].mxu1 }
 0xfe2   : > { %v9540_v50 = vadd.f32 %v10638_v57, %v19149_v1  ;;  %v10640_v5 = vadd.f32 %v9477_v47, %v18030_v31  ;;  %v9479_v41 = vpop.f32.mrb[203].mxu1 }
 0xfe3   : > { %v9541_v33 = vadd.f32 %v10639_v23, %v19150_v63  ;;  %v10641_v14 = vadd.f32 %v9479_v41, %v18033_v10 }
 0xfe4   : > { %9572 = vst [vmem:[%s18043_s26 + $0x40] sm:$0xff] %v9540_v50  ;;  %v9542_v55 = vadd.f32 %v10640_v5, %v19151_v9  ;;  %v19165_v5 = vld [vmem:[#allocation116_spill] sm:$0xff] }
 0xfe5   : > { %9573 = vst [vmem:[%s18043_s26 + $0x48] sm:$0xff] %v9541_v33  ;;  %v9543_v20 = vadd.f32 %v10641_v14, %v19152_v16  ;;  %v19166_v14 = vld [vmem:[#allocation99_spill] sm:$0xff]  ;;  %v19167_v16 = vld [vmem:[#allocation118_spill] sm:$0xff] }
 0xfe6   : > { %9574 = vst [vmem:[%s18043_s26 + $0x50] sm:$0xff] %v9542_v55 }
 0xfe7   : > { %9575 = vst [vmem:[%s18043_s26 + $0x58] sm:$0xff] %v9543_v20  ;;  %v9483_v22 = vpop.f32.mrb[204].mxu1 }
 0xfe8   : > { %v10642_v48 = vadd.f32 %v9483_v22, %v18030_v31  ;;  %v9485_v56 = vpop.f32.mrb[205].mxu1  ;;  %v19168_v22 = vld [vmem:[#allocation97_spill] sm:$0xff] }
 0xfe9   : > { %v10643_v24 = vadd.f32 %v9485_v56, %v18033_v10  ;;  %v9487_v38 = vpop.f32.mrb[206].mxu1 }
 0xfea   : > { %v9544_v42 = vadd.f32 %v10642_v48, %v19153_v15  ;;  %v10644_v49 = vadd.f32 %v9487_v38, %v18030_v31  ;;  %v9489_v58 = vpop.f32.mrb[207].mxu1 }
 0xfeb   : > { %v9545_v37 = vadd.f32 %v10643_v24, %v19154_v40  ;;  %v10645_v59 = vadd.f32 %v9489_v58, %v18033_v10 }
 0xfec   : > { %9576 = vst [vmem:[%s18043_s26 + $0x60] sm:$0xff] %v9544_v42  ;;  %v9546_v2 = vadd.f32 %v10644_v49, %v19155_v61  ;;  %v19169_v49 = vld [vmem:[#allocation45_spill] sm:$0xff] }
 0xfed   : > { %9577 = vst [vmem:[%s18043_s26 + $0x68] sm:$0xff] %v9545_v37  ;;  %v9547_v29 = vadd.f32 %v10645_v59, %v19156_v25  ;;  %v19170_v59 = vld [vmem:[#allocation47_spill] sm:$0xff]  ;;  %v19171_v25 = vld [vmem:[#allocation34_spill] sm:$0xff] }
 0xfee   : > { %9578 = vst [vmem:[%s18043_s26 + $0x70] sm:$0xff] %v9546_v2 }
 0xfef   : > { %9579 = vst [vmem:[%s18043_s26 + $0x78] sm:$0xff] %v9547_v29  ;;  %v9493_v45 = vpop.f32.mrb[208].mxu1 }
 0xff0   : > { %v10646_v60 = vadd.f32 %v9493_v45, %v18030_v31  ;;  %v9495_v11 = vpop.f32.mrb[209].mxu1 }
 0xff1   : > { %v10647_v52 = vadd.f32 %v9495_v11, %v18033_v10  ;;  %v9497_v18 = vpop.f32.mrb[210].mxu1 }
 0xff2   : > { %v9548_v51 = vadd.f32 %v10646_v60, %v19157_v12  ;;  %v10648_v46 = vadd.f32 %v9497_v18, %v18030_v31  ;;  %v9499_v13 = vpop.f32.mrb[211].mxu1 }
 0xff3   : > { %v9549_v7 = vadd.f32 %v10647_v52, %v19158_v43  ;;  %v10649_v28 = vadd.f32 %v9499_v13, %v18033_v10 }
 0xff4   : > { %9580 = vst [vmem:[%s18043_s26 + $0x80] sm:$0xff] %v9548_v51  ;;  %v9550_v4 = vadd.f32 %v10648_v46, %v19159_v34 }
 0xff5   : > { %9581 = vst [vmem:[%s18043_s26 + $0x88] sm:$0xff] %v9549_v7  ;;  %v9551_v27 = vadd.f32 %v10649_v28, %v19160_v6 }
 0xff6   : > { %9582 = vst [vmem:[%s18043_s26 + $0x90] sm:$0xff] %v9550_v4 }
 0xff7   : > { %9583 = vst [vmem:[%s18043_s26 + $0x98] sm:$0xff] %v9551_v27  ;;  %v9503_v0 = vpop.f32.mrb[212].mxu1 }
 0xff8   : > { %v10650_v35 = vadd.f32 %v9503_v0, %v18030_v31  ;;  %v9505_v39 = vpop.f32.mrb[213].mxu1 }
 0xff9   : > { %v10651_v53 = vadd.f32 %v9505_v39, %v18033_v10  ;;  %v9507_v54 = vpop.f32.mrb[214].mxu1 }
 0xffa   : > { %v9552_v30 = vadd.f32 %v10650_v35, %v19161_v21  ;;  %v10652_v44 = vadd.f32 %v9507_v54, %v18030_v31  ;;  %v9509_v19 = vpop.f32.mrb[215].mxu1 }
 0xffb   : > { %v9553_v62 = vadd.f32 %v10651_v53, %v19162_v36  ;;  %v10653_v8 = vadd.f32 %v9509_v19, %v18033_v10 }
 0xffc   : > { %9584 = vst [vmem:[%s18043_s26 + $0xa0] sm:$0xff] %v9552_v30  ;;  %v9554_v3 = vadd.f32 %v10652_v44, %v19163_v17 }
 0xffd   : > { %9585 = vst [vmem:[%s18043_s26 + $0xa8] sm:$0xff] %v9553_v62  ;;  %v9555_v57 = vadd.f32 %v10653_v8, %v19164_v32 }
 0xffe   : > { %9586 = vst [vmem:[%s18043_s26 + $0xb0] sm:$0xff] %v9554_v3 }
 0xfff   : > { %9587 = vst [vmem:[%s18043_s26 + $0xb8] sm:$0xff] %v9555_v57  ;;  %v9513_v26 = vpop.f32.mrb[216].mxu1 }
0x1000   : > { %v10654_v23 = vadd.f32 %v9513_v26, %v18030_v31  ;;  %v9515_v47 = vpop.f32.mrb[217].mxu1 }
0x1001   : > { %v10655_v1 = vadd.f32 %v9515_v47, %v18033_v10  ;;  %v9517_v50 = vpop.f32.mrb[218].mxu1 }
0x1002   : > { %v9556_v41 = vadd.f32 %v10654_v23, %v19165_v5  ;;  %v10656_v63 = vadd.f32 %v9517_v50, %v18030_v31  ;;  %v9519_v33 = vpop.f32.mrb[219].mxu1 }
0x1003   : > { %v9557_v9 = vadd.f32 %v10655_v1, %v19166_v14  ;;  %v10657_v55 = vadd.f32 %v9519_v33, %v18033_v10 }
0x1004   : > { %9588 = vst [vmem:[%s18043_s26 + $0xc0] sm:$0xff] %v9556_v41  ;;  %v9558_v20 = vadd.f32 %v10656_v63, %v19167_v16 }
0x1005   : > { %9589 = vst [vmem:[%s18043_s26 + $0xc8] sm:$0xff] %v9557_v9  ;;  %v9559_v48 = vadd.f32 %v10657_v55, %v19168_v22 }
0x1006   : > { %9590 = vst [vmem:[%s18043_s26 + $0xd0] sm:$0xff] %v9558_v20 }
0x1007   : > { %9591 = vst [vmem:[%s18043_s26 + $0xd8] sm:$0xff] %v9559_v48  ;;  %v9523_v56 = vpop.f32.mrb[220].mxu1 }
0x1008   : > { %v10658_v24 = vadd.f32 %v9523_v56, %v18030_v31  ;;  %v9525_v38 = vpop.f32.mrb[221].mxu1 }
0x1009   : > { %v10659_v15 = vadd.f32 %v9525_v38, %v18033_v10  ;;  %v9527_v42 = vpop.f32.mrb[222].mxu1 }
0x100a   : > { %v9560_v58 = vadd.f32 %v10658_v24, %v19169_v49  ;;  %v10660_v40 = vadd.f32 %v9527_v42, %v18030_v31  ;;  %v9529_v37 = vpop.f32.mrb[223].mxu1  ;;  %v19173_v31 = vld [vmem:[#allocation49_spill] sm:$0xff] }
0x100b   : > { %v9561_v61 = vadd.f32 %v10659_v15, %v19170_v59  ;;  %v10661_v2 = vadd.f32 %v9529_v37, %v18033_v10 }
0x100c   : > { %9592 = vst [vmem:[%s18043_s26 + $0xe0] sm:$0xff] %v9560_v58  ;;  %v9562_v29 = vadd.f32 %v10660_v40, %v19171_v25 }
0x100d   : > { %9593 = vst [vmem:[%s18043_s26 + $0xe8] sm:$0xff] %v9561_v61  ;;  %v9563_v45 = vadd.f32 %v10661_v2, %v19173_v31 }
0x100e   : > { %9594 = vst [vmem:[%s18043_s26 + $0xf0] sm:$0xff] %v9562_v29 }
0x100f   : > { %9595 = vst [vmem:[%s18043_s26 + $0xf8] sm:$0xff] %v9563_v45 }
0x1010   : > { %12500 = shalt.err (!%p12497_p4)
}
0x1011   : > { %s12501_s15 = scalar_lea.hbm %s18136_s12, 4096  ;;  %s12505_s26 = scalar_lea.hbm %s19172_s13, 8192 }
0x1012   : > { %p12502_p9 = scmp.ne.s32.totalorder %s18136_s12, %s12501_s15  ;;  %p12506_p8 = scmp.lt.u32.totalorder %s18136_s12, %s19172_s13 }
0x1013   : > { %p12507_p13 = scmp.lt.u32.totalorder %s12505_s26, %s12501_s15  ;;  %p12509_p10 = scmp.lt.u32.totalorder %s12501_s15, %s18136_s12 }
0x1014   : > { %p12503_p0 = pnand %p12502_p9, %p12789_p5 }
0x1015   : > { %p12508_p6 = por %p12507_p13, %p12506_p8 }
0x1016   : > { %p12504_p11 = pneg %p12503_p0 }
0x1017   : > { %p12510_p3 = por %p12509_p10, %p12508_p6 }
0x1019   : > { %p12511_p7 = pnand %p12510_p3, %p12504_p11 }
0x101b   : > { %12514 = shalt.err (!%p12511_p7)
}
0x101c   : > { %s12580_s30 = smov 256   ;;  %s12581_s28 = smov 16  }
0x101d   : > { %10868 = dma.vmem_to_hbm [thread:$0]  (%p12789_p5), %s18138_s17, 4096, %s18136_s12, %s9597_s11, %s12580_s30, %s12580_s30, %s12581_s28  }
0x101e PF: > { %s19174_s4 = sld [smem:[#allocation15_spill]]  ;;  %s19175_s25 = sld [smem:[#allocation16_spill]] }
0x101f   : > { %p19177_p2 = scmp.ge.s32.totalorder %s12561_s24, 2 }
0x1024   : > { %s9625_s16 = sand.u32 1, %s19174_s4   ;;  %p19176_p12 = scmp.ne.s32.totalorder %s19175_s25, 0 }
0x1025   : > { %s9626_s15 = scalar_lea.sflag [#allocation4], %s9625_s16 }
0x1026   : > { %p10885_p1 = pnand %p19177_p2, %p19176_p12 }
0x1028   : > { %12544 = dma.done.wait (!%p10885_p1), %s9626_s15, 4096  }
0x1029   : > { %12546 = vsyncadd (!%p10885_p1), %s9626_s15, 4294963200  ;;  %s19178_s27 = smov %s12775_s21  ;;  %p27_p4 = scmp.ge.s32.totalorder %s12775_s21, 4  }
0x102a   : > { %s19179_s21 = smov %s12553_s22  ;;  %s19180_s22 = smov %s12557_s23 }
0x102b   : > { %s19181_s23 = smov %s12785_s19  ;;  %s19182_s24 = smov %s19178_s27 }
0x102c   :  { %29 = sbr.rel (!%p27_p4) target bundleno = 11 (0xb), region = 125 }
0x1033   :  { %9631 = vsyncpa [#allocation3], 1 }
0x1034   :  { %9633 = vsyncpa [#allocation3 + $0x1], 1 }
0x1035   :  { %9634 = vsyncpa [#allocation6], 1 }
0x1036   :  { %9635 = vsyncpa [#allocation9], 1 }
0x1037   :  { %9636 = vsyncpa [#allocation4], 1 }
0x1038   :  { %9638 = vsyncpa [#allocation4 + $0x1], 1 }

</bundles_post_ra>
